<compile_context>
chip_gen: v7x
topology: tpu7x:2x2x1
jax: 0.10.0
libtpu: 0.0.40
codegen_flags: <defaults>
</compile_context>

<pallas_src>
import numpy as np
import jax
import jax.numpy as jnp
from jax import lax
from jax.experimental import pallas as pl
from jax.experimental.pallas import tpu as pltpu

NEG_INF = -1e30            # stands in for the -inf diagonal of torch INF()
_PAD_OFF = 8               # sublane-aligned interior offset inside the conv halo scratch

_VMEM_LIMIT_CACHE = None


def _vmem_limit():
    """Scoped-VMEM request derived from the actual chip (v5e/v6e: 128 MiB, v7x: 64 MiB)."""
    global _VMEM_LIMIT_CACHE
    if _VMEM_LIMIT_CACHE is None:
        try:
            cap = int(pltpu.get_tpu_info().vmem_capacity_bytes)
        except Exception:
            cap = 64 * 1024 * 1024
        _VMEM_LIMIT_CACHE = int(min(max(cap * 3 // 4, 32 * 1024 * 1024),
                                    100 * 1024 * 1024))
    return _VMEM_LIMIT_CACHE


# ----------------------------------------------------------------------------
# Kernel 1: fully fused conv_diff = conv3x3 -> ReLU -> BN(affine) -> conv3x3 -> ReLU
# ----------------------------------------------------------------------------
def _conv_diff_kernel(x_ref, w1_ref, b1_ref, scale_ref, shift_ref,
                      w2_ref, b2_ref, out_ref, pad1_ref, pad2_ref):
    # x_ref  : (1, H, W, Cin) f32
    # w1_ref : (9*Cin, Cmid) bf16   w2_ref : (9*Cmid, Cout) bf16
    # b1/scale/shift : (1, Cmid) f32   b2 : (1, Cout) f32
    # out_ref: (1, H, W, Cout)
    # pad*_ref: VMEM halo scratch (H+2, W+2*_PAD_OFF, C*) f32
    H, W = x_ref.shape[1], x_ref.shape[2]
    P = _PAD_OFF
    f32 = jnp.float32

    def conv3x3(pad_ref, src, w_ref):
        c = src.shape[-1]
        # Zero only the 1-pixel halo strips that the shifted slices actually read
        # (never the whole buffer), re-done every invocation so no cross-iteration
        # state is assumed (safe under megacore grid splitting).
        pad_ref[0:1, P - 1:P + W + 1, :] = jnp.zeros((1, W + 2, c), f32)
        pad_ref[H + 1:H + 2, P - 1:P + W + 1, :] = jnp.zeros((1, W + 2, c), f32)
        pad_ref[:, P - 1:P, :] = jnp.zeros((H + 2, 1, c), f32)
        pad_ref[:, P + W:P + W + 1, :] = jnp.zeros((H + 2, 1, c), f32)
        # Sublane-aligned interior write (column offset P = 8).
        pad_ref[1:H + 1, P:P + W, :] = src
        xp = pad_ref[...]
        # im2col: one (H*W, 9*C) x (9*C, Cout) bf16 MXU matmul (f32 accumulation).
        cols = [xp[dh:dh + H, P - 1 + dw:P - 1 + dw + W, :]
                for dh in range(3) for dw in range(3)]
        patch = jnp.concatenate(cols, axis=-1).reshape(H * W, 9 * c)
        return jnp.dot(patch.astype(jnp.bfloat16), w_ref[...],
                       preferred_element_type=f32)

    # conv -> ReLU -> BatchNorm (folded inference-mode affine)
    h1 = conv3x3(pad1_ref, x_ref[0].astype(f32), w1_ref)
    h1 = jnp.maximum(h1 + b1_ref[...], 0.0) * scale_ref[...] + shift_ref[...]
    # conv -> ReLU
    h2 = conv3x3(pad2_ref, h1.reshape(H, W, h1.shape[-1]), w2_ref)
    h2 = jnp.maximum(h2 + b2_ref[...], 0.0)
    out_ref[0] = h2.reshape(H, W, h2.shape[-1]).astype(out_ref.dtype)


def conv_diff_apply(x_nhwc, p, out_dtype=jnp.float32):
    B, H, W, Cin = x_nhwc.shape
    Cmid = p["w1"].shape[-1]
    Cout = p["w2"].shape[-1]
    Wp = W + 2 * _PAD_OFF
    return pl.pallas_call(
        _conv_diff_kernel,
        out_shape=jax.ShapeDtypeStruct((B, H, W, Cout), out_dtype),
        grid_spec=pltpu.PrefetchScalarGridSpec(
            num_scalar_prefetch=0,
            grid=(B,),
            in_specs=[
                pl.BlockSpec((1, H, W, Cin), lambda b: (b, 0, 0, 0)),
                pl.BlockSpec((9 * Cin, Cmid), lambda b: (0, 0)),
                pl.BlockSpec((1, Cmid), lambda b: (0, 0)),
                pl.BlockSpec((1, Cmid), lambda b: (0, 0)),
                pl.BlockSpec((1, Cmid), lambda b: (0, 0)),
                pl.BlockSpec((9 * Cmid, Cout), lambda b: (0, 0)),
                pl.BlockSpec((1, Cout), lambda b: (0, 0)),
            ],
            out_specs=pl.BlockSpec((1, H, W, Cout), lambda b: (b, 0, 0, 0)),
            scratch_shapes=[
                pltpu.VMEM((H + 2, Wp, Cin), jnp.float32),
                pltpu.VMEM((H + 2, Wp, Cmid), jnp.float32),
            ],
        ),
        compiler_params=pltpu.CompilerParams(
            dimension_semantics=("parallel",),
            vmem_limit_bytes=_vmem_limit()),
    )(x_nhwc,
      p["w1"].reshape(9 * Cin, Cmid).astype(jnp.bfloat16),
      p["b1"].reshape(1, Cmid).astype(jnp.float32),
      p["bn_scale"].reshape(1, Cmid).astype(jnp.float32),
      p["bn_shift"].reshape(1, Cmid).astype(jnp.float32),
      p["w2"].reshape(9 * Cmid, Cout).astype(jnp.bfloat16),
      p["b2"].reshape(1, Cout).astype(jnp.float32))


def _fuse_conv_diff(pa, pb):
    """Fuse two conv_diff stacks sharing the same input into one (block-diag 2nd conv)."""
    ca, cb = pa["w2"].shape[-1], pb["w2"].shape[-1]
    w2 = jnp.zeros((3, 3, ca + cb, ca + cb), jnp.float32)
    w2 = w2.at[:, :, :ca, :ca].set(pa["w2"]).at[:, :, ca:, ca:].set(pb["w2"])
    cat = lambda a, b: jnp.concatenate([a, b], axis=-1)
    return dict(
        w1=cat(pa["w1"], pb["w1"]), b1=cat(pa["b1"], pb["b1"]),
        bn_scale=cat(pa["bn_scale"], pb["bn_scale"]),
        bn_shift=cat(pa["bn_shift"], pb["bn_shift"]),
        w2=w2, b2=cat(pa["b2"], pb["b2"]))


# ----------------------------------------------------------------------------
# Kernel 2: criss-cross attention core (energies + joint softmax + aggregation
#           + fused epilogue gamma*attn + skip), tiled over query rows.
# ----------------------------------------------------------------------------
def _criss_cross_kernel(q_ref, k_ref, v_ref, skip_ref, gamma_ref, out_ref):
    # q_ref   : (1, TH, W, C8) bf16     k_ref : (1, H, W, C8) bf16
    # v_ref   : (1, H,  W, C)  bf16     skip_ref: (1, TH, W*C) f32
    # gamma_ref: (1, 1) f32 in SMEM     out_ref : (1, TH, W*C) f32 (lane-dense)
    f32 = jnp.float32
    TH, W, C8 = q_ref.shape[1], q_ref.shape[2], q_ref.shape[3]
    H = k_ref.shape[1]
    C = v_ref.shape[3]
    row0 = pl.multiple_of(pl.program_id(1) * TH, TH)

    q = q_ref[0].astype(f32)                           # (TH, W, C8)
    k = k_ref[0].astype(f32)                           # (H,  W, C8)
    k_rows = k_ref[0, pl.ds(row0, TH)].astype(f32)     # (TH, W, C8)

    # ---- energies (horizontal: (TH,W,W); vertical, w-major: (W,TH,H)) ----
    if C8 <= 8:
        # Tiny contraction depth -> VPU c-broadcast multiply-adds (MXU would idle).
        e_w = q[:, :, 0][:, :, None] * k_rows[:, :, 0][:, None, :]
        e_h = q[:, :, 0].T[:, :, None] * k[:, :, 0].T[:, None, :]
        for c in range(1, C8):
            e_w = e_w + q[:, :, c][:, :, None] * k_rows[:, :, c][:, None, :]
            e_h = e_h + q[:, :, c].T[:, :, None] * k[:, :, c].T[:, None, :]
    else:
        e_w = jnp.einsum('twc,tvc->twv', q, k_rows, preferred_element_type=f32)
        q_wm = pltpu.einshape('twc->wtc', q)
        k_wm = pltpu.einshape('gwc->wgc', k)
        e_h = jnp.einsum('wtc,wgc->wtg', q_wm, k_wm, preferred_element_type=f32)

    # Additive -inf mask for the h == h' self term of the vertical path (kept in f32).
    trow = lax.broadcasted_iota(jnp.int32, (TH, H), 0) + row0
    grow = lax.broadcasted_iota(jnp.int32, (TH, H), 1)
    diag = jnp.where(trow == grow, NEG_INF, 0.0).astype(f32)          # (TH, H)
    e_h = e_h + diag[None, :, :]                                      # (W, TH, H)

    # ---- joint softmax over the concatenated (H + W) key axis (f32 stats) ----
    m = jnp.maximum(jnp.max(e_w, axis=2), jnp.max(e_h, axis=2).T)     # (TH, W)
    p_w = jnp.exp(e_w - m[:, :, None])                                # (TH, W, W)
    p_h = jnp.exp(e_h - m.T[:, :, None])                              # (W, TH, H)
    s = jnp.sum(p_w, axis=2) + jnp.sum(p_h, axis=2).T                 # (TH, W)
    inv = pl.reciprocal(s, approx=True)                               # (TH, W)

    # ---- aggregation: one w-major transpose of v + two batched MXU matmuls ----
    v_rows = v_ref[0, pl.ds(row0, TH)]                                # (TH, W, C) bf16
    v_wm = pltpu.einshape('hwc->whc', v_ref[0])                       # (W, H, C)  bf16
    row_out = jnp.einsum('twv,tvc->twc', p_w.astype(jnp.bfloat16), v_rows,
                         preferred_element_type=f32)                  # (TH, W, C)
    col_wm = jnp.einsum('wtg,wgc->wtc', p_h.astype(jnp.bfloat16), v_wm,
                        preferred_element_type=f32)                   # (W, TH, C)
    col_out = pltpu.einshape('wtc->twc', col_wm)                      # (TH, W, C)

    # ---- fused epilogue: gamma * attention + skip, ONE lane-dense bulk store ----
    gamma = gamma_ref[0, 0]
    attn = (row_out + col_out) * inv[:, :, None]                      # (TH, W, C)
    res = gamma * attn.reshape(TH, W * C) + skip_ref[0]               # (TH, W*C)
    out_ref[0] = res.astype(out_ref.dtype)


def _pick_row_tile(h):
    for t in (32, 16, 8):
        if h % t == 0:
            return t
    return h


def criss_cross_attention_core(q, k, v, skip_flat, gamma):
    # q, k: (B, H, W, C8) bf16; v: (B, H, W, C) bf16; skip_flat: (B, H, W*C) f32
    B, H, W, C8 = q.shape
    C = v.shape[-1]
    TH = _pick_row_tile(H)
    gamma_arr = jnp.asarray(gamma, jnp.float32).reshape(1, 1)
    return pl.pallas_call(
        _criss_cross_kernel,
        out_shape=jax.ShapeDtypeStruct((B, H, W * C), jnp.float32),
        grid_spec=pltpu.PrefetchScalarGridSpec(
            num_scalar_prefetch=0,
            grid=(B, H // TH),
            in_specs=[
                pl.BlockSpec((1, TH, W, C8), lambda b, t: (b, t, 0, 0)),
                pl.BlockSpec((1, H, W, C8), lambda b, t: (b, 0, 0, 0)),
                pl.BlockSpec((1, H, W, C), lambda b, t: (b, 0, 0, 0)),
                pl.BlockSpec((1, TH, W * C), lambda b, t: (b, t, 0)),
                pl.BlockSpec(memory_space=pltpu.MemorySpace.SMEM),
            ],
            out_specs=pl.BlockSpec((1, TH, W * C), lambda b, t: (b, t, 0)),
        ),
        compiler_params=pltpu.CompilerParams(
            dimension_semantics=("parallel", "parallel"),
            vmem_limit_bytes=_vmem_limit()),
    )(q, k, v, skip_flat, gamma_arr)


# ----------------------------------------------------------------------------
# Full forward pass (mirrors CrissCrossAttention.forward)
# ----------------------------------------------------------------------------
def criss_cross_attention_nhwc(params, x_nhwc, y_nhwc):
    x = x_nhwc.astype(jnp.float32)
    y = y_nhwc.astype(jnp.float32)
    xy = jnp.concatenate([x, y], axis=-1)

    skip = conv_diff_apply(xy, params["conv_skip"])                              # f32
    qk_params = _fuse_conv_diff(params["query_conv"], params["key_conv"])
    qk = conv_diff_apply(x, qk_params, out_dtype=jnp.bfloat16)                   # (B,H,W,2*C8)
    c8 = params["query_conv"]["w2"].shape[-1]
    q, kk = qk[..., :c8], qk[..., c8:]
    v = conv_diff_apply(y, params["value_conv"], out_dtype=jnp.bfloat16)         # (B,H,W,C)

    B, H, W, C = skip.shape
    out_flat = criss_cross_attention_core(q, kk, v, skip.reshape(B, H, W * C),
                                          params["gamma"])
    return out_flat.reshape(B, H, W, C)


def criss_cross_attention(params, x_nchw, y_nchw):
    # TODO(synk): for production, accept/return NHWC end-to-end and drop these
    # XLA layout transposes (extra HBM passes over the activations).
    x = jnp.transpose(x_nchw, (0, 2, 3, 1))
    y = jnp.transpose(y_nchw, (0, 2, 3, 1))
    out = criss_cross_attention_nhwc(params, x, y)
    return jnp.transpose(out, (0, 3, 1, 2))


# ----------------------------------------------------------------------------
# Deterministic parameter init (shapes follow the torch module's __init__)
# ----------------------------------------------------------------------------
def init_conv_diff(key, cin, cout):
    k1, k2, k3, k4, k5, k6 = jax.random.split(key, 6)
    eps = 1e-5
    bn_w = 1.0 + 0.1 * jax.random.normal(k3, (cout,), jnp.float32)
    bn_b = 0.1 * jax.random.normal(k4, (cout,), jnp.float32)
    return dict(
        w1=0.1 * jax.random.normal(k1, (3, 3, cin, cout), jnp.float32),
        b1=0.1 * jax.random.normal(k2, (cout,), jnp.float32),
        # TODO(synk): BatchNorm2d folded in inference mode (running mean=0, var=1);
        # training-mode batch statistics are not computed in-kernel.
        bn_scale=bn_w / jnp.sqrt(1.0 + eps),
        bn_shift=bn_b,
        w2=0.1 * jax.random.normal(k5, (3, 3, cout, cout), jnp.float32),
        b2=0.1 * jax.random.normal(k6, (cout,), jnp.float32),
    )


# ----------------------------------------------------------------------------
# Pure-JAX reference (for correctness check)
# ----------------------------------------------------------------------------
def _conv3x3_ref(x, w, b):
    return lax.conv_general_dilated(
        x, w, (1, 1), 'SAME',
        dimension_numbers=('NHWC', 'HWIO', 'NHWC')) + b


def _conv_diff_ref(x, p):
    h = jnp.maximum(_conv3x3_ref(x, p['w1'], p['b1']), 0.0)
    h = h * p['bn_scale'] + p['bn_shift']
    return jnp.maximum(_conv3x3_ref(h, p['w2'], p['b2']), 0.0)


def criss_cross_ref(params, x_nchw, y_nchw):
    x = jnp.transpose(x_nchw, (0, 2, 3, 1))
    y = jnp.transpose(y_nchw, (0, 2, 3, 1))
    xy = jnp.concatenate([x, y], -1)
    skip = _conv_diff_ref(xy, params['conv_skip'])
    q = _conv_diff_ref(x, params['query_conv'])
    k = _conv_diff_ref(x, params['key_conv'])
    v = _conv_diff_ref(y, params['value_conv'])
    B, H, W, _ = q.shape
    e_h = jnp.einsum('bhwc,bgwc->bhwg', q, k)
    diag = (jnp.arange(H)[:, None] == jnp.arange(H)[None, :])
    e_h = jnp.where(diag[None, :, None, :], NEG_INF, e_h)
    e_w = jnp.einsum('bhwc,bhvc->bhwv', q, k)
    att = jax.nn.softmax(jnp.concatenate([e_h, e_w], -1), axis=-1)
    att_h, att_w = att[..., :H], att[..., H:]
    out_h = jnp.einsum('bhwg,bgwc->bhwc', att_h, v)
    out_w = jnp.einsum('bhwv,bhvc->bhwc', att_w, v)
    out = params['gamma'] * (out_h + out_w) + skip
    return jnp.transpose(out, (0, 3, 1, 2))


if __name__ == "__main__":
    B, H, W = 2, 16, 16
    in_dim, in_dim_1 = 16, 8

    key = jax.random.PRNGKey(0)
    keys = jax.random.split(key, 6)
    params = {
        'query_conv': init_conv_diff(keys[0], in_dim, in_dim // 8),
        'key_conv': init_conv_diff(keys[1], in_dim, in_dim // 8),
        'value_conv': init_conv_diff(keys[2], in_dim_1, in_dim),
        'conv_skip': init_conv_diff(keys[3], in_dim + in_dim_1, in_dim),
        # The torch module initializes gamma to 0; use a non-zero value so the
        # attention path actually contributes under test.
        'gamma': jnp.float32(0.7),
    }

    x = jax.random.normal(keys[4], (B, in_dim, H, W), jnp.float32)
    y = jax.random.normal(keys[5], (B, in_dim_1, H, W), jnp.float32)

    out = jax.block_until_ready(criss_cross_attention(params, x, y))
    ref = jax.block_until_ready(criss_cross_ref(params, x, y))

    assert out.shape == (B, in_dim, H, W)
    # bf16 conv + bf16 attention MXU operands + approx reciprocal vs a pure-f32
    # reference -> relaxed (but still bug-catching) tolerance.
    np.testing.assert_allclose(np.asarray(out), np.asarray(ref),
                               rtol=3e-2, atol=3e-2)
    print("KERNEL_OK")
</pallas_src>

<mosaic_0001>
module attributes {stable_mosaic.version = 11 : i64} {
  func.func @_conv_diff_kernel(%arg0: i32, %arg1: memref<1x16x16x24xf32, #tpu.memory_space<vmem>>, %arg2: memref<216x16xbf16, #tpu.memory_space<vmem>>, %arg3: memref<1x16xf32, #tpu.memory_space<vmem>>, %arg4: memref<1x16xf32, #tpu.memory_space<vmem>>, %arg5: memref<1x16xf32, #tpu.memory_space<vmem>>, %arg6: memref<144x16xbf16, #tpu.memory_space<vmem>>, %arg7: memref<1x16xf32, #tpu.memory_space<vmem>>, %arg8: memref<1x16x16x16xf32, #tpu.memory_space<vmem>>, %arg9: memref<18x32x24xf32, #tpu.memory_space<vmem>>, %arg10: memref<18x32x16xf32, #tpu.memory_space<vmem>>) attributes {dimension_semantics = [#tpu.dimension_semantics<parallel>], iteration_bounds = array<i64: 2>, scalar_prefetch = 0 : i64, scratch_operands = 2 : i64, tpu.core_type = #tpu.core_type<tc>, window_params = [{transform_indices = @transform_0, window_bounds = array<i64: 1, 16, 16, 24>}, {pipeline_mode = #tpu.pipeline_mode<synchronous>, transform_indices = @transform_1, window_bounds = array<i64: 216, 16>}, {pipeline_mode = #tpu.pipeline_mode<synchronous>, transform_indices = @transform_2, window_bounds = array<i64: 1, 16>}, {pipeline_mode = #tpu.pipeline_mode<synchronous>, transform_indices = @transform_3, window_bounds = array<i64: 1, 16>}, {pipeline_mode = #tpu.pipeline_mode<synchronous>, transform_indices = @transform_4, window_bounds = array<i64: 1, 16>}, {pipeline_mode = #tpu.pipeline_mode<synchronous>, transform_indices = @transform_5, window_bounds = array<i64: 144, 16>}, {pipeline_mode = #tpu.pipeline_mode<synchronous>, transform_indices = @transform_6, window_bounds = array<i64: 1, 16>}, {transform_indices = @transform_7, window_bounds = array<i64: 1, 16, 16, 16>}]} {
    %c0 = arith.constant 0 : index
    %c0_0 = arith.constant 0 : index
    %c0_1 = arith.constant 0 : index
    %c0_2 = arith.constant 0 : index
    %0 = vector.load %arg1[%c0, %c0_0, %c0_1, %c0_2] : memref<1x16x16x24xf32, #tpu.memory_space<vmem>>, vector<1x16x16x24xf32>
    %1 = vector.shape_cast %0 : vector<1x16x16x24xf32> to vector<16x16x24xf32>
    %cst = arith.constant 0.000000e+00 : f32
    %2 = vector.broadcast %cst : f32 to vector<1x18x24xf32>
    %c0_3 = arith.constant 0 : index
    %c7 = arith.constant 7 : index
    %c0_4 = arith.constant 0 : index
    %3 = vector.load %arg9[%c0_3, %c7, %c0_4] : memref<18x32x24xf32, #tpu.memory_space<vmem>>, vector<1x18x24xf32>
    tpu.vector_store %arg9[%c0_3, %c7, %c0_4], %2 {strides = array<i32>} : memref<18x32x24xf32, #tpu.memory_space<vmem>>, vector<1x18x24xf32>,
    %cst_5 = arith.constant 0.000000e+00 : f32
    %4 = vector.broadcast %cst_5 : f32 to vector<1x18x24xf32>
    %c17 = arith.constant 17 : index
    %c7_6 = arith.constant 7 : index
    %c0_7 = arith.constant 0 : index
    %5 = vector.load %arg9[%c17, %c7_6, %c0_7] : memref<18x32x24xf32, #tpu.memory_space<vmem>>, vector<1x18x24xf32>
    tpu.vector_store %arg9[%c17, %c7_6, %c0_7], %4 {strides = array<i32>} : memref<18x32x24xf32, #tpu.memory_space<vmem>>, vector<1x18x24xf32>,
    %cst_8 = arith.constant 0.000000e+00 : f32
    %6 = vector.broadcast %cst_8 : f32 to vector<18x1x24xf32>
    %c0_9 = arith.constant 0 : index
    %c7_10 = arith.constant 7 : index
    %c0_11 = arith.constant 0 : index
    %7 = vector.load %arg9[%c0_9, %c7_10, %c0_11] : memref<18x32x24xf32, #tpu.memory_space<vmem>>, vector<18x1x24xf32>
    tpu.vector_store %arg9[%c0_9, %c7_10, %c0_11], %6 {strides = array<i32>} : memref<18x32x24xf32, #tpu.memory_space<vmem>>, vector<18x1x24xf32>,
    %cst_12 = arith.constant 0.000000e+00 : f32
    %8 = vector.broadcast %cst_12 : f32 to vector<18x1x24xf32>
    %c0_13 = arith.constant 0 : index
    %c24 = arith.constant 24 : index
    %c0_14 = arith.constant 0 : index
    %9 = vector.load %arg9[%c0_13, %c24, %c0_14] : memref<18x32x24xf32, #tpu.memory_space<vmem>>, vector<18x1x24xf32>
    tpu.vector_store %arg9[%c0_13, %c24, %c0_14], %8 {strides = array<i32>} : memref<18x32x24xf32, #tpu.memory_space<vmem>>, vector<18x1x24xf32>,
    %c1 = arith.constant 1 : index
    %c8 = arith.constant 8 : index
    %c0_15 = arith.constant 0 : index
    %10 = vector.load %arg9[%c1, %c8, %c0_15] : memref<18x32x24xf32, #tpu.memory_space<vmem>>, vector<16x16x24xf32>
    tpu.vector_store %arg9[%c1, %c8, %c0_15], %1 {strides = array<i32>} : memref<18x32x24xf32, #tpu.memory_space<vmem>>, vector<16x16x24xf32>,
    %c0_16 = arith.constant 0 : index
    %c0_17 = arith.constant 0 : index
    %c0_18 = arith.constant 0 : index
    %11 = vector.load %arg9[%c0_16, %c0_17, %c0_18] : memref<18x32x24xf32, #tpu.memory_space<vmem>>, vector<18x32x24xf32>
    %12 = vector.extract_strided_slice %11 {offsets = [0, 7, 0], sizes = [16, 16, 24], strides = [1, 1, 1]} : vector<18x32x24xf32> to vector<16x16x24xf32>
    %13 = vector.extract_strided_slice %11 {offsets = [0, 8, 0], sizes = [16, 16, 24], strides = [1, 1, 1]} : vector<18x32x24xf32> to vector<16x16x24xf32>
    %14 = vector.extract_strided_slice %11 {offsets = [0, 9, 0], sizes = [16, 16, 24], strides = [1, 1, 1]} : vector<18x32x24xf32> to vector<16x16x24xf32>
    %15 = vector.extract_strided_slice %11 {offsets = [1, 7, 0], sizes = [16, 16, 24], strides = [1, 1, 1]} : vector<18x32x24xf32> to vector<16x16x24xf32>
    %16 = vector.extract_strided_slice %11 {offsets = [1, 8, 0], sizes = [16, 16, 24], strides = [1, 1, 1]} : vector<18x32x24xf32> to vector<16x16x24xf32>
    %17 = vector.extract_strided_slice %11 {offsets = [1, 9, 0], sizes = [16, 16, 24], strides = [1, 1, 1]} : vector<18x32x24xf32> to vector<16x16x24xf32>
    %18 = vector.extract_strided_slice %11 {offsets = [2, 7, 0], sizes = [16, 16, 24], strides = [1, 1, 1]} : vector<18x32x24xf32> to vector<16x16x24xf32>
    %19 = vector.extract_strided_slice %11 {offsets = [2, 8, 0], sizes = [16, 16, 24], strides = [1, 1, 1]} : vector<18x32x24xf32> to vector<16x16x24xf32>
    %20 = vector.extract_strided_slice %11 {offsets = [2, 9, 0], sizes = [16, 16, 24], strides = [1, 1, 1]} : vector<18x32x24xf32> to vector<16x16x24xf32>
    %21 = tpu.concatenate %12, %13, %14, %15, %16, %17, %18, %19, %20 in 2 : vector<16x16x24xf32>, vector<16x16x24xf32>, vector<16x16x24xf32>, vector<16x16x24xf32>, vector<16x16x24xf32>, vector<16x16x24xf32>, vector<16x16x24xf32>, vector<16x16x24xf32>, vector<16x16x24xf32> -> vector<16x16x216xf32>
    %22 = vector.shape_cast %21 : vector<16x16x216xf32> to vector<256x216xf32>
    %23 = arith.truncf %22 : vector<256x216xf32> to vector<256x216xbf16>
    %c0_19 = arith.constant 0 : index
    %c0_20 = arith.constant 0 : index
    %24 = vector.load %arg2[%c0_19, %c0_20] : memref<216x16xbf16, #tpu.memory_space<vmem>>, vector<216x16xbf16>
    %cst_21 = arith.constant dense<0.000000e+00> : vector<256x16xf32>
    %25 = tpu.matmul %23, %24, %cst_21 {dimension_numbers = #tpu.dot_dimension_numbers<[1], [0], [0], [1], [0, 0, 1, 1], [], []>} : vector<256x216xbf16>, vector<216x16xbf16>, vector<256x16xf32> -> vector<256x16xf32>
    %c0_22 = arith.constant 0 : index
    %c0_23 = arith.constant 0 : index
    %26 = vector.load %arg3[%c0_22, %c0_23] : memref<1x16xf32, #tpu.memory_space<vmem>>, vector<1x16xf32>
    %27 = vector.broadcast %26 : vector<1x16xf32> to vector<256x16xf32>
    %28 = arith.addf %25, %27 : vector<256x16xf32>
    %cst_24 = arith.constant 0.000000e+00 : f32
    %29 = vector.broadcast %cst_24 : f32 to vector<256x16xf32>
    %30 = arith.maximumf %28, %29 : vector<256x16xf32>
    %c0_25 = arith.constant 0 : index
    %c0_26 = arith.constant 0 : index
    %31 = vector.load %arg4[%c0_25, %c0_26] : memref<1x16xf32, #tpu.memory_space<vmem>>, vector<1x16xf32>
    %32 = vector.broadcast %31 : vector<1x16xf32> to vector<256x16xf32>
    %33 = arith.mulf %30, %32 : vector<256x16xf32>
    %c0_27 = arith.constant 0 : index
    %c0_28 = arith.constant 0 : index
    %34 = vector.load %arg5[%c0_27, %c0_28] : memref<1x16xf32, #tpu.memory_space<vmem>>, vector<1x16xf32>
    %35 = vector.broadcast %34 : vector<1x16xf32> to vector<256x16xf32>
    %36 = arith.addf %33, %35 : vector<256x16xf32>
    %37 = vector.shape_cast %36 : vector<256x16xf32> to vector<16x16x16xf32>
    %cst_29 = arith.constant 0.000000e+00 : f32
    %38 = vector.broadcast %cst_29 : f32 to vector<1x18x16xf32>
    %c0_30 = arith.constant 0 : index
    %c7_31 = arith.constant 7 : index
    %c0_32 = arith.constant 0 : index
    %39 = vector.load %arg10[%c0_30, %c7_31, %c0_32] : memref<18x32x16xf32, #tpu.memory_space<vmem>>, vector<1x18x16xf32>
    tpu.vector_store %arg10[%c0_30, %c7_31, %c0_32], %38 {strides = array<i32>} : memref<18x32x16xf32, #tpu.memory_space<vmem>>, vector<1x18x16xf32>,
    %cst_33 = arith.constant 0.000000e+00 : f32
    %40 = vector.broadcast %cst_33 : f32 to vector<1x18x16xf32>
    %c17_34 = arith.constant 17 : index
    %c7_35 = arith.constant 7 : index
    %c0_36 = arith.constant 0 : index
    %41 = vector.load %arg10[%c17_34, %c7_35, %c0_36] : memref<18x32x16xf32, #tpu.memory_space<vmem>>, vector<1x18x16xf32>
    tpu.vector_store %arg10[%c17_34, %c7_35, %c0_36], %40 {strides = array<i32>} : memref<18x32x16xf32, #tpu.memory_space<vmem>>, vector<1x18x16xf32>,
    %cst_37 = arith.constant 0.000000e+00 : f32
    %42 = vector.broadcast %cst_37 : f32 to vector<18x1x16xf32>
    %c0_38 = arith.constant 0 : index
    %c7_39 = arith.constant 7 : index
    %c0_40 = arith.constant 0 : index
    %43 = vector.load %arg10[%c0_38, %c7_39, %c0_40] : memref<18x32x16xf32, #tpu.memory_space<vmem>>, vector<18x1x16xf32>
    tpu.vector_store %arg10[%c0_38, %c7_39, %c0_40], %42 {strides = array<i32>} : memref<18x32x16xf32, #tpu.memory_space<vmem>>, vector<18x1x16xf32>,
    %cst_41 = arith.constant 0.000000e+00 : f32
    %44 = vector.broadcast %cst_41 : f32 to vector<18x1x16xf32>
    %c0_42 = arith.constant 0 : index
    %c24_43 = arith.constant 24 : index
    %c0_44 = arith.constant 0 : index
    %45 = vector.load %arg10[%c0_42, %c24_43, %c0_44] : memref<18x32x16xf32, #tpu.memory_space<vmem>>, vector<18x1x16xf32>
    tpu.vector_store %arg10[%c0_42, %c24_43, %c0_44], %44 {strides = array<i32>} : memref<18x32x16xf32, #tpu.memory_space<vmem>>, vector<18x1x16xf32>,
    %c1_45 = arith.constant 1 : index
    %c8_46 = arith.constant 8 : index
    %c0_47 = arith.constant 0 : index
    %46 = vector.load %arg10[%c1_45, %c8_46, %c0_47] : memref<18x32x16xf32, #tpu.memory_space<vmem>>, vector<16x16x16xf32>
    tpu.vector_store %arg10[%c1_45, %c8_46, %c0_47], %37 {strides = array<i32>} : memref<18x32x16xf32, #tpu.memory_space<vmem>>, vector<16x16x16xf32>,
    %c0_48 = arith.constant 0 : index
    %c0_49 = arith.constant 0 : index
    %c0_50 = arith.constant 0 : index
    %47 = vector.load %arg10[%c0_48, %c0_49, %c0_50] : memref<18x32x16xf32, #tpu.memory_space<vmem>>, vector<18x32x16xf32>
    %48 = vector.extract_strided_slice %47 {offsets = [0, 7, 0], sizes = [16, 16, 16], strides = [1, 1, 1]} : vector<18x32x16xf32> to vector<16x16x16xf32>
    %49 = vector.extract_strided_slice %47 {offsets = [0, 8, 0], sizes = [16, 16, 16], strides = [1, 1, 1]} : vector<18x32x16xf32> to vector<16x16x16xf32>
    %50 = vector.extract_strided_slice %47 {offsets = [0, 9, 0], sizes = [16, 16, 16], strides = [1, 1, 1]} : vector<18x32x16xf32> to vector<16x16x16xf32>
    %51 = vector.extract_strided_slice %47 {offsets = [1, 7, 0], sizes = [16, 16, 16], strides = [1, 1, 1]} : vector<18x32x16xf32> to vector<16x16x16xf32>
    %52 = vector.extract_strided_slice %47 {offsets = [1, 8, 0], sizes = [16, 16, 16], strides = [1, 1, 1]} : vector<18x32x16xf32> to vector<16x16x16xf32>
    %53 = vector.extract_strided_slice %47 {offsets = [1, 9, 0], sizes = [16, 16, 16], strides = [1, 1, 1]} : vector<18x32x16xf32> to vector<16x16x16xf32>
    %54 = vector.extract_strided_slice %47 {offsets = [2, 7, 0], sizes = [16, 16, 16], strides = [1, 1, 1]} : vector<18x32x16xf32> to vector<16x16x16xf32>
    %55 = vector.extract_strided_slice %47 {offsets = [2, 8, 0], sizes = [16, 16, 16], strides = [1, 1, 1]} : vector<18x32x16xf32> to vector<16x16x16xf32>
    %56 = vector.extract_strided_slice %47 {offsets = [2, 9, 0], sizes = [16, 16, 16], strides = [1, 1, 1]} : vector<18x32x16xf32> to vector<16x16x16xf32>
    %57 = tpu.concatenate %48, %49, %50, %51, %52, %53, %54, %55, %56 in 2 : vector<16x16x16xf32>, vector<16x16x16xf32>, vector<16x16x16xf32>, vector<16x16x16xf32>, vector<16x16x16xf32>, vector<16x16x16xf32>, vector<16x16x16xf32>, vector<16x16x16xf32>, vector<16x16x16xf32> -> vector<16x16x144xf32>
    %58 = vector.shape_cast %57 : vector<16x16x144xf32> to vector<256x144xf32>
    %59 = arith.truncf %58 : vector<256x144xf32> to vector<256x144xbf16>
    %c0_51 = arith.constant 0 : index
    %c0_52 = arith.constant 0 : index
    %60 = vector.load %arg6[%c0_51, %c0_52] : memref<144x16xbf16, #tpu.memory_space<vmem>>, vector<144x16xbf16>
    %cst_53 = arith.constant dense<0.000000e+00> : vector<256x16xf32>
    %61 = tpu.matmul %59, %60, %cst_53 {dimension_numbers = #tpu.dot_dimension_numbers<[1], [0], [0], [1], [0, 0, 1, 1], [], []>} : vector<256x144xbf16>, vector<144x16xbf16>, vector<256x16xf32> -> vector<256x16xf32>
    %c0_54 = arith.constant 0 : index
    %c0_55 = arith.constant 0 : index
    %62 = vector.load %arg7[%c0_54, %c0_55] : memref<1x16xf32, #tpu.memory_space<vmem>>, vector<1x16xf32>
    %63 = vector.broadcast %62 : vector<1x16xf32> to vector<256x16xf32>
    %64 = arith.addf %61, %63 : vector<256x16xf32>
    %cst_56 = arith.constant 0.000000e+00 : f32
    %65 = vector.broadcast %cst_56 : f32 to vector<256x16xf32>
    %66 = arith.maximumf %64, %65 : vector<256x16xf32>
    %67 = vector.shape_cast %66 : vector<256x16xf32> to vector<16x16x16xf32>
    %c0_57 = arith.constant 0 : index
    %c0_58 = arith.constant 0 : index
    %c0_59 = arith.constant 0 : index
    %c0_60 = arith.constant 0 : index
    %68 = vector.load %arg8[%c0_57, %c0_58, %c0_59, %c0_60] : memref<1x16x16x16xf32, #tpu.memory_space<vmem>>, vector<1x16x16x16xf32>
    %69 = vector.shape_cast %68 : vector<1x16x16x16xf32> to vector<16x16x16xf32>
    %70 = vector.shape_cast %67 : vector<16x16x16xf32> to vector<1x16x16x16xf32>
    tpu.vector_store %arg8[%c0_57, %c0_58, %c0_59, %c0_60], %70 {strides = array<i32>} : memref<1x16x16x16xf32, #tpu.memory_space<vmem>>, vector<1x16x16x16xf32>,
    return
  }
  func.func @transform_0(%arg0: i32) -> (i32, i32, i32, i32) {
    %c0_i32 = arith.constant 0 : i32
    %c0_i32_0 = arith.constant 0 : i32
    %c0_i32_1 = arith.constant 0 : i32
    %c0_i32_2 = arith.constant 0 : i32
    return %arg0, %c0_i32, %c0_i32_0, %c0_i32_1 : i32, i32, i32, i32
  }
  func.func @transform_1(%arg0: i32) -> (i32, i32) {
    %c0_i32 = arith.constant 0 : i32
    %c0_i32_0 = arith.constant 0 : i32
    %c0_i32_1 = arith.constant 0 : i32
    return %c0_i32, %c0_i32_0 : i32, i32
  }
  func.func @transform_2(%arg0: i32) -> (i32, i32) {
    %c0_i32 = arith.constant 0 : i32
    %c0_i32_0 = arith.constant 0 : i32
    %c0_i32_1 = arith.constant 0 : i32
    return %c0_i32, %c0_i32_0 : i32, i32
  }
  func.func @transform_3(%arg0: i32) -> (i32, i32) {
    %c0_i32 = arith.constant 0 : i32
    %c0_i32_0 = arith.constant 0 : i32
    %c0_i32_1 = arith.constant 0 : i32
    return %c0_i32, %c0_i32_0 : i32, i32
  }
  func.func @transform_4(%arg0: i32) -> (i32, i32) {
    %c0_i32 = arith.constant 0 : i32
    %c0_i32_0 = arith.constant 0 : i32
    %c0_i32_1 = arith.constant 0 : i32
    return %c0_i32, %c0_i32_0 : i32, i32
  }
  func.func @transform_5(%arg0: i32) -> (i32, i32) {
    %c0_i32 = arith.constant 0 : i32
    %c0_i32_0 = arith.constant 0 : i32
    %c0_i32_1 = arith.constant 0 : i32
    return %c0_i32, %c0_i32_0 : i32, i32
  }
  func.func @transform_6(%arg0: i32) -> (i32, i32) {
    %c0_i32 = arith.constant 0 : i32
    %c0_i32_0 = arith.constant 0 : i32
    %c0_i32_1 = arith.constant 0 : i32
    return %c0_i32, %c0_i32_0 : i32, i32
  }
  func.func @transform_7(%arg0: i32) -> (i32, i32, i32, i32) {
    %c0_i32 = arith.constant 0 : i32
    %c0_i32_0 = arith.constant 0 : i32
    %c0_i32_1 = arith.constant 0 : i32
    %c0_i32_2 = arith.constant 0 : i32
    return %arg0, %c0_i32, %c0_i32_0, %c0_i32_1 : i32, i32, i32, i32
  }
}

</mosaic_0001>

<bundles_post_ra>
// kernel: tpu_custom_call.1
= control target key start
LH: loop header
LB: loop body
LE: loop exit
PB: predicated region body
PF: predicated region fallthrough
CT: control target
= control target key end

     0   :  { %12 = vsyncpa [#allocation5], 0  ;;  %s13704_s0 = inlined_call_operand.hbm [shape: f32[2,16,16,24], index: 0, kind: input, shape index: {}]   ;;  %s13705_s1 = inlined_call_operand.vmem [shape: bf16[216,16], index: 1, kind: input, shape index: {}]   ;;  %s13706_s2 = inlined_call_operand.vmem [shape: f32[1,16], index: 2, kind: input, shape index: {}]   ;;  %s13707_s3 = inlined_call_operand.vmem [shape: f32[1,16], index: 3, kind: input, shape index: {}]   ;;  %s13708_s4 = inlined_call_operand.vmem [shape: f32[1,16], index: 4, kind: input, shape index: {}]   ;;  %s13709_s5 = inlined_call_operand.vmem [shape: bf16[144,16], index: 5, kind: input, shape index: {}]   ;;  %s13710_s6 = inlined_call_operand.vmem [shape: f32[1,16], index: 6, kind: input, shape index: {}]   ;;  %s13711_s7 = inlined_call_operand.hbm [shape: f32[2,16,16,16], index: 7, kind: output, shape index: {}]  }
   0x1   :  { %14 = vsyncpa [#allocation5 + $0x1], 0 }
   0x2   :  { %15 = vsyncpa [#allocation6], 0 }
   0x3   :  { %17 = vsyncpa [#allocation6 + $0x1], 0  ;;  %s7697_s24 = smov 0   ;;  %s7699_s25 = smov 0  }
   0x4   :  { %s7701_s26 = smov 0   ;;  %s7703_s27 = smov 0  }
   0x5 LB: > { %s7718_s28 = sadd.s32 4294967295, %s7636_s27   ;;  %s5488_s29 = sadd.s32 4294967294, %s7636_s27   ;;  %s7636_s27 = sphi %s7703_s27, %s15254_s27   ;;  %s7632_s26 = sphi %s7701_s26, %s15253_s26   ;;  %s7628_s25 = sphi %s7699_s25, %s15252_s25   ;;  %s7624_s24 = sphi %s7697_s24, %s15251_s24  }
   0x6   : > { %s7722_s30 = sadd.s32 1, %s7636_s27   ;;  %s30_s8 = sadd.s32 1, %s7632_s26 }
   0x7   : > { %s27_s9 = ssub.s32 %s7636_s27, %s7722_s30  ;;  %p37_p0 = scmp.ne.s32.totalorder %s7632_s26, %s7628_s25 }
   0x8   : > { %p28_p1 = scmp.eq.s32.totalorder %s27_s9, 0  ;;  %p38_p2 = scmp.eq.s32.totalorder %s7636_s27, 0 }
   0x9   : > { %p43_p3 = scmp.ne.s32.totalorder %s7628_s25, %s7624_s24  ;;  %p44_p4 = scmp.eq.s32.totalorder %s7718_s28, 0 }
   0xa   : > { %s7734_s10 = scalar_select %p28_p1, %s7632_s26, %s30_s8  }
   0xb   : > { %p7736_p5 = por %p38_p2, %p37_p0  ;;  %p7740_p6 = por %p44_p4, %p43_p3 }
   0xc   : > { %p193_p7 = scmp.eq.s32.totalorder %s7718_s28, 1  ;;  %p199_p8 = scmp.eq.s32.totalorder %s5488_s29, 1 }
   0xd   : > { %p5575_p10 = scmp.lt.s32.totalorder %s7636_s27, 2  ;;  %s237_s15 = sand.u32 1, %s7632_s26  }
   0xe   : > { %p7747_p11 = por %p193_p7, %p37_p0  ;;  %p7751_p12 = por %p199_p8, %p43_p3 }
   0xf   : > { %s5561_s16 = sshll.u32 %s7636_s27, 12  ;;  %s5491_s17 = sshll.u32 %s237_s15, 8 }
  0x10   : > { %s14215_s13 = scalar_select %p7747_p11, 1, 0 }
  0x11   : > { %s14216_s14 = scalar_select %p7751_p12, 1, 0 }
  0x12   : > { %s7760_s20 = scalar_lea.hbm %s13704_s0, %s5561_s16  ;;  %s241_s21 = scalar_lea.vmem [#allocation4], %s5491_s17 }
  0x13   : > { %s248_s22 = sshll.u32 %s241_s21, 4  ;;  %p7764_p13 = pnand %p5575_p10, %p7736_p5  ;;  %s7768_s22 = int_to_ptr.vmem [resolvable:$true] %s248_s22 }
  0x14   : > { %s7770_s29 = scalar_lea.sflag [#allocation5], %s237_s15  ;;  %s7540_s8 = scalar_lea.hbm %s7760_s20, 4096 }
  0x15   : > { %p7541_p0 = scmp.ne.s32.totalorder %s7760_s20, %s7540_s8  ;;  %p7542_p1 = pneg %p7764_p13 }
  0x16   : > { %s7545_s16 = scalar_lea.hbm %s13704_s0, 8192  ;;  %p7546_p4 = scmp.lt.u32.totalorder %s7760_s20, %s13704_s0 }
  0x17   : > { %p7543_p2 = pnand %p7542_p1, %p7541_p0  ;;  %p7547_p5 = scmp.lt.u32.totalorder %s7545_s16, %s7540_s8 }
  0x18   : > { %p7549_p8 = scmp.lt.u32.totalorder %s7540_s8, %s7760_s20 }
  0x19   : > { %p7544_p3 = pneg %p7543_p2  ;;  %p7548_p7 = por %p7547_p5, %p7546_p4 }
  0x1b   : > { %p7550_p10 = por %p7549_p8, %p7548_p7 }
  0x1d   : > { %p7551_p9 = pnand %p7550_p10, %p7544_p3 }
  0x1f   : > { %7554 = shalt.err (!%p7551_p9)
}
  0x20   : > { %s7555_s15 = scalar_lea.vmem %s7768_s22, 4096  ;;  %s7638_s19 = smov [#allocation4]  }
  0x21   : > { %p7556_p0 = scmp.ne.s32.totalorder %s7768_s22, %s7555_s15  ;;  %s7560_s21 = sshll.u32 %s7638_s19, 4  ;;  %s7561_s21 = int_to_ptr.vmem [resolvable:$false] %s7560_s21 }
  0x22   : > { %s7562_s9 = scalar_lea.vmem %s7561_s21, 8192  ;;  %p7563_p11 = scmp.lt.s32.totalorder %s7768_s22, %s7561_s21 }
  0x23   : > { %p7558_p2 = pnand %p7556_p0, %p7542_p1  ;;  %p7564_p4 = scmp.lt.s32.totalorder %s7562_s9, %s7555_s15 }
  0x25   : > { %p7559_p12 = pneg %p7558_p2  ;;  %p7565_p5 = por %p7564_p4, %p7563_p11 }
  0x27   : > { %p7566_p7 = pnand %p7565_p5, %p7559_p12 }
  0x29   : > { %7569 = shalt.err (!%p7566_p7)
}
  0x2a   : > { %s7639_s8 = smov 128   ;;  %s7640_s11 = smov 8  }
  0x2b   : > { %5570 = dma.hbm_to_vmem [thread:$0]  (!%p7764_p13), %s7760_s20, 4096, %s7768_s22, %s7770_s29, %s7639_s8, %s7639_s8, %s7640_s11  }
  0x2c   : > { %p5494_p9 = scmp.ge.s32.totalorder %s7636_s27, 1  ;;  %p256_p1 = scmp.lt.s32.totalorder %s7636_s27, 3 }
  0x2e   : > { %p257_p3 = pnand %p5494_p9, %p256_p1 }
  0x30   : > { %260 = sbr.rel (%p257_p3) target bundleno = 1511 (0x5e7), region = 48 }
  0x37   : > { %s7801_s16 = sand.u32 1, %s7628_s25  }
  0x38   : > { %s5495_s17 = sshll.u32 %s7801_s16, 8  ;;  %s263_s18 = scalar_lea.sflag [#allocation5], %s7801_s16 }
  0x39   : > { %s7807_s15 = scalar_lea.vmem [#allocation4], %s5495_s17 }
  0x3a   : > { %7615 = dma.done.wait (%p7740_p6), %s263_s18, 4096  }
  0x3b   : > { %7617 = vsyncadd (%p7740_p6), %s263_s18, 4294963200  ;;  %vm330_vm0 = vcmask 195584   ;;  %vm333_vm1 = vcmask 189440   ;;  %vm339_vm2 = vcmask 188416   ;;  %v13713_v0 = vmov 0.0   ;;  %v305_v1 = vld [vmem:[%s7807_s15 + $0x38] sm:$0xff] }
  0x3c   : > { %331 = vst.msk [vmem:[#allocation2 + $0x7] sm:$0xff] %vm330_vm0, %v13713_v0  ;;  %332 = vst.msk [vmem:[#allocation2 + $0xf] sm:$0xff] %vm330_vm0, %v13713_v0  ;;  %v306_v2 = vld [vmem:[%s7807_s15 + $0x40] sm:$0xff]  ;;  %vm513_vm3 = vcmask 1046528   ;;  %v301_v6 = vld [vmem:[%s7807_s15 + $0x18] sm:$0xff]  ;;  %s7642_s12 = smov 24  }
  0x3d   : > { %334 = vst.msk [vmem:[#allocation2 + $0x17] sm:$0x3] %vm333_vm1, %v13713_v0  ;;  %338 = vst.msk [vmem:[#allocation2 + $0x237] sm:$0x3] %vm333_vm1, %v13713_v0  ;;  %v298_v3 = vld [vmem:[%s7807_s15] sm:$0xff]  ;;  %v299_v10 = vld [vmem:[%s7807_s15 + $0x8] sm:$0xff] }
  0x3e   : > { %336 = vst.msk [vmem:[#allocation2 + $0x227] sm:$0xff] %vm330_vm0, %v13713_v0  ;;  %337 = vst.msk [vmem:[#allocation2 + $0x22f] sm:$0xff] %vm330_vm0, %v13713_v0  ;;  %v302_v9 = vld [vmem:[%s7807_s15 + $0x20] sm:$0xff]  ;;  %v304_v11 = vld [vmem:[%s7807_s15 + $0x30] sm:$0xff]  ;;  %vm722_vm4 = vcmask 1045504   ;;  %s7643_s20 = smov 48  }
  0x3f   : > { %341 = vst.msk [vmem:[#allocation2 + $0x27] sm:$0x1] %vm339_vm2, %v13713_v0  ;;  %342 = vst.msk [vmem:[#allocation2 + $0x47] sm:$0x1] %vm339_vm2, %v13713_v0  ;;  %v300_v12 = vld [vmem:[%s7807_s15 + $0x10] sm:$0xff]  ;;  %v307_v13 = vld [vmem:[%s7807_s15 + $0x48] sm:$0xff] }
  0x40   : > { %343 = vst.msk [vmem:[#allocation2 + $0x67] sm:$0x1] %vm339_vm2, %v13713_v0  ;;  %344 = vst.msk [vmem:[#allocation2 + $0x87] sm:$0x1] %vm339_vm2, %v13713_v0  ;;  %v303_v14 = vld [vmem:[%s7807_s15 + $0x28] sm:$0xff]  ;;  %v309_v16 = vld [vmem:[%s7807_s15 + $0x58] sm:$0xff] }
  0x41   : > { %345 = vst.msk [vmem:[#allocation2 + $0xa7] sm:$0x1] %vm339_vm2, %v13713_v0  ;;  %346 = vst.msk [vmem:[#allocation2 + $0xc7] sm:$0x1] %vm339_vm2, %v13713_v0  ;;  %v310_v17 = vld [vmem:[%s7807_s15 + $0x60] sm:$0xff]  ;;  %v308_v18 = vld [vmem:[%s7807_s15 + $0x50] sm:$0xff] }
  0x42   : > { %347 = vst.msk [vmem:[#allocation2 + $0xe7] sm:$0x1] %vm339_vm2, %v13713_v0  ;;  %348 = vst.msk [vmem:[#allocation2 + $0x107] sm:$0x1] %vm339_vm2, %v13713_v0  ;;  %v312_v20 = vld [vmem:[%s7807_s15 + $0x70] sm:$0xff]  ;;  %v313_v21 = vld [vmem:[%s7807_s15 + $0x78] sm:$0xff] }
  0x43   : > { %349 = vst.msk [vmem:[#allocation2 + $0x127] sm:$0x1] %vm339_vm2, %v13713_v0  ;;  %350 = vst.msk [vmem:[#allocation2 + $0x147] sm:$0x1] %vm339_vm2, %v13713_v0  ;;  %v7898_v4 = vld [vmem:[#allocation2 + $0x8] sm:$0xff]  ;;  %v314_v23 = vld [vmem:[%s7807_s15 + $0x80] sm:$0xff] }
  0x44   : > { %351 = vst.msk [vmem:[#allocation2 + $0x167] sm:$0x1] %vm339_vm2, %v13713_v0  ;;  %352 = vst.msk [vmem:[#allocation2 + $0x187] sm:$0x1] %vm339_vm2, %v13713_v0  ;;  %v7900_v5 = vld [vmem:[#allocation2 + $0x10] sm:$0xff]  ;;  %v514_v7 = vrot.slane %v7898_v4, 1 }
  0x45   : > { %353 = vst.msk [vmem:[#allocation2 + $0x1a7] sm:$0x1] %vm339_vm2, %v13713_v0  ;;  %354 = vst.msk [vmem:[#allocation2 + $0x1c7] sm:$0x1] %vm339_vm2, %v13713_v0  ;;  %v515_v8 = vrot.slane %v7900_v5, 1  ;;  %v311_v22 = vld [vmem:[%s7807_s15 + $0x68] sm:$0xff] }
  0x46   : > { %355 = vst.msk [vmem:[#allocation2 + $0x1e7] sm:$0x1] %vm339_vm2, %v13713_v0  ;;  %356 = vst.msk [vmem:[#allocation2 + $0x207] sm:$0x1] %vm339_vm2, %v13713_v0  ;;  %v315_v24 = vld [vmem:[%s7807_s15 + $0x88] sm:$0xff]  ;;  %v317_v25 = vld [vmem:[%s7807_s15 + $0x98] sm:$0xff] }
  0x47   : > { %359 = vst.msk [vmem:[#allocation2 + $0x38] sm:$0x1] %vm339_vm2, %v13713_v0  ;;  %360 = vst.msk [vmem:[#allocation2 + $0x58] sm:$0x1] %vm339_vm2, %v13713_v0  ;;  %v516_v15 = vsel %vm513_vm3, %v514_v7, %v515_v8  ;;  %v318_v26 = vld [vmem:[%s7807_s15 + $0xa0] sm:$0xff]  ;;  %v316_v27 = vld [vmem:[%s7807_s15 + $0x90] sm:$0xff] }
  0x48   : > { %361 = vst.msk [vmem:[#allocation2 + $0x78] sm:$0x1] %vm339_vm2, %v13713_v0  ;;  %362 = vst.msk [vmem:[#allocation2 + $0x98] sm:$0x1] %vm339_vm2, %v13713_v0  ;;  %v5626_v19 = vpack.i.bf16 %v516_v15, %v514_v7  ;;  %v320_v28 = vld [vmem:[%s7807_s15 + $0xb0] sm:$0xff]  ;;  %v321_v36 = vld [vmem:[%s7807_s15 + $0xb8] sm:$0xff] }
  0x49   : > { %363 = vst.msk [vmem:[#allocation2 + $0xb8] sm:$0x1] %vm339_vm2, %v13713_v0  ;;  %364 = vst.msk [vmem:[#allocation2 + $0xd8] sm:$0x1] %vm339_vm2, %v13713_v0  ;;  %v319_v37 = vld [vmem:[%s7807_s15 + $0xa8] sm:$0xff]  ;;  %v322_v60 = vld [vmem:[%s7807_s15 + $0xc0] sm:$0xff] }
  0x4a   : > { %365 = vst.msk [vmem:[#allocation2 + $0xf8] sm:$0x1] %vm339_vm2, %v13713_v0  ;;  %366 = vst.msk [vmem:[#allocation2 + $0x118] sm:$0x1] %vm339_vm2, %v13713_v0  ;;  %5627 = vrot.lane.b32.xlu0 %v5626_v19, %s7642_s12  ;;  %v323_v61 = vld [vmem:[%s7807_s15 + $0xc8] sm:$0xff]  ;;  %s7644_s22 = smov 72  }
  0x4b   : > { %367 = vst.msk [vmem:[#allocation2 + $0x138] sm:$0x1] %vm339_vm2, %v13713_v0  ;;  %368 = vst.msk [vmem:[#allocation2 + $0x158] sm:$0x1] %vm339_vm2, %v13713_v0  ;;  %s7645_s23 = smov 96   ;;  %s7646_s29 = smov 120  }
  0x4c   : > { %369 = vst.msk [vmem:[#allocation2 + $0x178] sm:$0x1] %vm339_vm2, %v13713_v0  ;;  %370 = vst.msk [vmem:[#allocation2 + $0x198] sm:$0x1] %vm339_vm2, %v13713_v0  ;;  %vm2094_vm5 = vcmask 130048   ;;  %s7647_s19 = smov 16  }
  0x4d   : > { %371 = vst.msk [vmem:[#allocation2 + $0x1b8] sm:$0x1] %vm339_vm2, %v13713_v0  ;;  %372 = vst.msk [vmem:[#allocation2 + $0x1d8] sm:$0x1] %vm339_vm2, %v13713_v0  ;;  %vm1898_vm6 = vcmask 392192   ;;  %vm1947_vm7 = vcmask 588800  }
  0x4e   : > { %373 = vst.msk [vmem:[#allocation2 + $0x1f8] sm:$0x1] %vm339_vm2, %v13713_v0  ;;  %374 = vst.msk [vmem:[#allocation2 + $0x218] sm:$0x1] %vm339_vm2, %v13713_v0  ;;  %vm1996_vm8 = vcmask 785408   ;;  %vm2045_vm9 = vcmask 982016  }
  0x4f   : > { %340 = vst.msk [vmem:[#allocation2 + $0x7] sm:$0x1] %vm339_vm2, %v13713_v0  ;;  %358 = vst.msk [vmem:[#allocation2 + $0x18] sm:$0x1] %vm339_vm2, %v13713_v0  ;;  %vm2758_vm10 = vcmask 1043456   ;;  %vm2337_vm11 = vcmask 1040384  }
  0x50   : > { %357 = vst.msk [vmem:[#allocation2 + $0x227] sm:$0x1] %vm339_vm2, %v13713_v0  ;;  %375 = vst.msk [vmem:[#allocation2 + $0x238] sm:$0x1] %vm339_vm2, %v13713_v0  ;;  %s7650_s18 = smov 64   ;;  %vm2143_vm12 = vcmask 326656  }
  0x51   : > { %384 = vst.msk [vmem:[#allocation2 + $0x90] sm:$0xff] %vm330_vm0, %v305_v1  ;;  %385 = vst.msk [vmem:[#allocation2 + $0xa8] sm:$0xff] %vm330_vm0, %v306_v2  ;;  %vm2192_vm13 = vcmask 523264   ;;  %vm2709_vm14 = vcmask 719872   ;;  %vm3035_vm15 = vcmask 123904   ;;  %s7651_s8 = smov 32  }
  0x52   : > { %377 = vst.msk [vmem:[#allocation2 + $0x28] sm:$0xff] %vm330_vm0, %v298_v3  ;;  %380 = vst.msk [vmem:[#allocation2 + $0x50] sm:$0xff] %vm330_vm0, %v301_v6  ;;  %s7653_s9 = smov 112   ;;  %vm4454_vm1 = vcmask 261120   ;;  %vm4599_vm2 = vcmask 654336   ;;  %p15248_p11 = scmp.ne.s32.totalorder %s14215_s13, 0 }
  0x53   : > { %381 = vst.msk [vmem:[#allocation2 + $0x68] sm:$0xff] %vm330_vm0, %v302_v9  ;;  %378 = vst.msk [vmem:[#allocation2 + $0x30] sm:$0xff] %vm330_vm0, %v299_v10  ;;  %v325_v9 = vld [vmem:[%s7807_s15 + $0xd8] sm:$0xff]  ;;  %v326_v10 = vld [vmem:[%s7807_s15 + $0xe0] sm:$0xff] }
  0x54   : > { %383 = vst.msk [vmem:[#allocation2 + $0x88] sm:$0xff] %vm330_vm0, %v304_v11  ;;  %379 = vst.msk [vmem:[#allocation2 + $0x48] sm:$0xff] %vm330_vm0, %v300_v12  ;;  %v324_v11 = vld [vmem:[%s7807_s15 + $0xd0] sm:$0xff] }
  0x55   : > { %386 = vst.msk [vmem:[#allocation2 + $0xb0] sm:$0xff] %vm330_vm0, %v307_v13  ;;  %382 = vst.msk [vmem:[#allocation2 + $0x70] sm:$0xff] %vm330_vm0, %v303_v14  ;;  %v327_v14 = vld [vmem:[%s7807_s15 + $0xe8] sm:$0xff] }
  0x56   : > { %388 = vst.msk [vmem:[#allocation2 + $0xd0] sm:$0xff] %vm330_vm0, %v309_v16  ;;  %389 = vst.msk [vmem:[#allocation2 + $0xe8] sm:$0xff] %vm330_vm0, %v310_v17 }
  0x57   : > { %387 = vst.msk [vmem:[#allocation2 + $0xc8] sm:$0xff] %vm330_vm0, %v308_v18  ;;  %391 = vst.msk [vmem:[#allocation2 + $0x108] sm:$0xff] %vm330_vm0, %v312_v20 }
  0x58   : > { %392 = vst.msk [vmem:[#allocation2 + $0x110] sm:$0xff] %vm330_vm0, %v313_v21  ;;  %390 = vst.msk [vmem:[#allocation2 + $0xf0] sm:$0xff] %vm330_vm0, %v311_v22  ;;  %v7944_v29 = vld [vmem:[#allocation2 + $0x90] sm:$0xff]  ;;  %v7946_v30 = vld [vmem:[#allocation2 + $0xa8] sm:$0xff] }
  0x59   : > { %393 = vst.msk [vmem:[#allocation2 + $0x128] sm:$0xff] %vm330_vm0, %v314_v23  ;;  %394 = vst.msk [vmem:[#allocation2 + $0x130] sm:$0xff] %vm330_vm0, %v315_v24  ;;  %v7948_v31 = vld [vmem:[#allocation2 + $0x28] sm:$0xff]  ;;  %v7954_v32 = vrot.slane %v7944_v29, 1  ;;  %v7957_v33 = vrot.slane %v7946_v30, 1  ;;  %v7962_v35 = vld [vmem:[#allocation2 + $0x50] sm:$0xff] }
  0x5a   : > { %396 = vst.msk [vmem:[#allocation2 + $0x150] sm:$0xff] %vm330_vm0, %v317_v25  ;;  %397 = vst.msk [vmem:[#allocation2 + $0x168] sm:$0xff] %vm330_vm0, %v318_v26  ;;  %v7960_v34 = vrot.slane %v7948_v31, 1  ;;  %v7966_v38 = vld [vmem:[#allocation2 + $0x68] sm:$0xff]  ;;  %v7969_v39 = vrot.slane %v7962_v35, 1  ;;  %v7971_v40 = vld [vmem:[#allocation2 + $0x30] sm:$0xff] }
  0x5b   : > { %395 = vst.msk [vmem:[#allocation2 + $0x148] sm:$0xff] %vm330_vm0, %v316_v27  ;;  %399 = vst.msk [vmem:[#allocation2 + $0x188] sm:$0xff] %vm330_vm0, %v320_v28  ;;  %v7973_v41 = vld [vmem:[#allocation2 + $0x88] sm:$0xff]  ;;  %v7979_v42 = vpack.i.bf16 %v7957_v33, %v7954_v32  ;;  %v7983_v44 = vrot.slane %v7966_v38, 1  ;;  %v7986_v45 = vrot.slane %v7971_v40, 1 }
  0x5c   : > { %14218 = vst [vmem:[#allocation10_spill] sm:$0xff] %v7954_v32  ;;  %14219 = vst [vmem:[#allocation11_spill] sm:$0xff] %v7957_v33  ;;  %v5631_v43 = vpack.i.bf16 %v7960_v34, %v515_v8  ;;  %v7988_v46 = vld [vmem:[#allocation2 + $0x48] sm:$0xff]  ;;  %v7990_v47 = vld [vmem:[#allocation2 + $0xb0] sm:$0xff]  ;;  %v7995_v49 = vrot.slane %v7973_v41, 1 }
  0x5d   : > { %400 = vst.msk [vmem:[#allocation2 + $0x190] sm:$0xff] %vm330_vm0, %v321_v36  ;;  %398 = vst.msk [vmem:[#allocation2 + $0x170] sm:$0xff] %vm330_vm0, %v319_v37  ;;  %v7992_v48 = vld [vmem:[#allocation2 + $0x70] sm:$0xff]  ;;  %v7998_v50 = vrot.slane %v7988_v46, 1  ;;  %5642 = vrot.lane.b32.xlu1 %v7979_v42, %s7642_s12  ;;  %v8005_v51 = vpack.i.bf16 %v7983_v44, %v7969_v39  ;;  %v8010_v52 = vsel %vm513_vm3, %v7960_v34, %v7986_v45  ;;  %v8013_v53 = vrot.slane %v7990_v47, 1  ;;  %v8047_v1 = vld [vmem:[#allocation2 + $0xe8] sm:$0xff] }
  0x5e   : > { %14220 = vst [vmem:[#allocation12_spill] sm:$0xff] %v7979_v42  ;;  %5632 = vrot.lane.b32.xlu0 %v5631_v43, %s7642_s12  ;;  %v5646_v54 = vpack.i.bf16 %v7986_v45, %v8010_v52  ;;  %v8020_v55 = vsel %vm513_vm3, %v7995_v49, %v7954_v32  ;;  %v8028_v57 = vrot.slane %v7992_v48, 1  ;;  %v8030_v58 = vld [vmem:[#allocation2 + $0xd0] sm:$0xff]  ;;  %v8032_v59 = vld [vmem:[#allocation2 + $0xc8] sm:$0xff]  ;;  %401 = vst.msk [vmem:[#allocation2 + $0x1a8] sm:$0xff] %vm330_vm0, %v322_v60  ;;  %v8094_v17 = vrot.slane %v8047_v1, 1 }
  0x5f   : > { %14221 = vst [vmem:[#allocation13_spill] sm:$0xff] %v8005_v51  ;;  %14222 = vst [vmem:[#allocation14_spill] sm:$0xff] %v8013_v53  ;;  %v8025_v56 = vsel %vm513_vm3, %v7998_v50, %v7969_v39  ;;  %v8041_v62 = vpack.i.bf16 %v8020_v55, %v7995_v49  ;;  %v8049_v2 = vld [vmem:[#allocation2 + $0x108] sm:$0xff]  ;;  %v8056_v3 = vsel %vm513_vm3, %v7957_v33, %v8013_v53  ;;  %v8064_v7 = vrot.slane %v8030_v58, 1  ;;  %v8072_v12 = vld [vmem:[#allocation2 + $0x110] sm:$0xff] }
  0x60   : > { %14223 = vst [vmem:[#allocation15_spill] sm:$0xff] %v8020_v55  ;;  %v8045_v63 = vpack.i.bf16 %v8025_v56, %v7998_v50  ;;  %402 = vst.msk [vmem:[#allocation2 + $0x1b0] sm:$0xff] %vm330_vm0, %v323_v61  ;;  %v8061_v6 = vsel %vm513_vm3, %v7983_v44, %v8028_v57  ;;  %v8067_v8 = vrot.slane %v8032_v59, 1  ;;  %v8074_v13 = vld [vmem:[#allocation2 + $0xf0] sm:$0xff]  ;;  %v8087_v15 = vpack.i.bf16 %v8013_v53, %v8056_v3  ;;  %v8110_v22 = vld [vmem:[#allocation2 + $0x128] sm:$0xff] }
  0x61   : > { %5647 = vrot.lane.b32.xlu1 %v5646_v54, %s7642_s12  ;;  %14224 = vst [vmem:[#allocation16_spill] sm:$0xff] %v8041_v62  ;;  %14226 = vst [vmem:[#allocation18_spill] sm:$0xff] %v8056_v3  ;;  %v8091_v16 = vpack.i.bf16 %v8028_v57, %v8061_v6  ;;  %v8102_v19 = vrot.slane %v8049_v2, 1  ;;  %v8105_v20 = vrot.slane %v8072_v12, 1  ;;  %v8108_v21 = vrot.slane %v8074_v13, 1  ;;  %v8112_v23 = vld [vmem:[#allocation2 + $0x130] sm:$0xff] }
  0x62   : > { %5637 = vrot.lane.b32.xlu0 %v8005_v51, %s7642_s12  ;;  %14225 = vst [vmem:[#allocation17_spill] sm:$0xff] %v8045_v63  ;;  %14227 = vst [vmem:[#allocation19_spill] sm:$0xff] %v8061_v6  ;;  %v8099_v18 = vsel %vm513_vm3, %v8067_v8, %v8064_v7  ;;  %v8120_v24 = vpack.i.bf16 %v8094_v17, %v8064_v7  ;;  %v8137_v28 = vrot.slane %v8110_v22, 1  ;;  %v8140_v36 = vrot.slane %v8112_v23, 1  ;;  %v8142_v37 = vld [vmem:[#allocation2 + $0x150] sm:$0xff]  ;;  %v8144_v43 = vld [vmem:[#allocation2 + $0x148] sm:$0xff] }
  0x63   : > { %14228 = vst [vmem:[#allocation20_spill] sm:$0xff] %v8064_v7  ;;  %14229 = vst [vmem:[#allocation21_spill] sm:$0xff] %v8067_v8  ;;  %v8124_v25 = vpack.i.bf16 %v8099_v18, %v8067_v8  ;;  %v8129_v26 = vsel %vm513_vm3, %v8102_v19, %v8105_v20  ;;  %v8134_v27 = vsel %vm513_vm3, %v8094_v17, %v8108_v21  ;;  %v8158_v61 = vld [vmem:[#allocation2 + $0x168] sm:$0xff]  ;;  %v734_v53 = vrot.slane %v7962_v35, 2  ;;  %v432_v32 = vld [vmem:[#allocation2 + $0xb8] sm:$0xff] }
  0x64   : > { %404 = vst.msk [vmem:[#allocation2 + $0x1d0] sm:$0xff] %vm330_vm0, %v325_v9  ;;  %405 = vst.msk [vmem:[#allocation2 + $0x1e8] sm:$0xff] %vm330_vm0, %v326_v10  ;;  %v8152_v54 = vpack.i.bf16 %v8129_v26, %v8102_v19  ;;  %v8156_v60 = vpack.i.bf16 %v8108_v21, %v8134_v27  ;;  %v8163_v9 = vsel %vm513_vm3, %v8137_v28, %v8140_v36  ;;  %v8166_v10 = vrot.slane %v8142_v37, 1  ;;  %v8173_v0 = vld [vmem:[#allocation2 + $0x190] sm:$0xff]  ;;  %v428_v55 = vld [vmem:[#allocation2 + $0x98] sm:$0xff] }
  0x65   : > { %403 = vst.msk [vmem:[#allocation2 + $0x1c8] sm:$0xff] %vm330_vm0, %v324_v11  ;;  %406 = vst.msk [vmem:[#allocation2 + $0x1f0] sm:$0xff] %vm330_vm0, %v327_v14  ;;  %5652 = vrot.lane.b32.xlu1 %v8045_v63, %s7642_s12  ;;  %v8169_v11 = vrot.slane %v8144_v43, 1  ;;  %v8171_v14 = vld [vmem:[#allocation2 + $0x188] sm:$0xff]  ;;  %v8189_v42 = vpack.i.bf16 %v8140_v36, %v8163_v9  ;;  %v8193_v51 = vpack.i.bf16 %v8137_v28, %v8105_v20 }
  0x66   : > { %5662 = vrot.lane.b32.xlu0 %v8041_v62, %s7642_s12  ;;  %14230 = vst [vmem:[#allocation22_spill] sm:$0xff] %v8087_v15  ;;  %14231 = vst [vmem:[#allocation23_spill] sm:$0xff] %v8091_v16  ;;  %v329_v62 = vld [vmem:[%s7807_s15 + $0xf8] sm:$0xff]  ;;  %v8210_v63 = vld [vmem:[#allocation2 + $0x1a8] sm:$0xff] }
  0x67   : > { %14232 = vst [vmem:[#allocation24_spill] sm:$0xff] %v8094_v17  ;;  %14233 = vst [vmem:[#allocation25_spill] sm:$0xff] %v8099_v18 }
  0x68   : > { %14234 = vst [vmem:[#allocation26_spill] sm:$0xff] %v8102_v19  ;;  %14235 = vst [vmem:[#allocation27_spill] sm:$0xff] %v8105_v20 }
  0x69   : > { %14236 = vst [vmem:[#allocation28_spill] sm:$0xff] %v8108_v21  ;;  %5657 = vrot.lane.b32.xlu1 %v8091_v16, %s7642_s12  ;;  %14237 = vst [vmem:[#allocation29_spill] sm:$0xff] %v8120_v24  ;;  %v8196_v16 = vrot.slane %v8171_v14, 1  ;;  %v729_v21 = vrot.slane %v7971_v40, 2 }
  0x6a   : > { %5667 = vrot.lane.b32.xlu0 %v8087_v15, %s7642_s12  ;;  %14238 = vst [vmem:[#allocation30_spill] sm:$0xff] %v8124_v25  ;;  %14239 = vst [vmem:[#allocation31_spill] sm:$0xff] %v8129_v26  ;;  %v328_v15 = vld [vmem:[%s7807_s15 + $0xf0] sm:$0xff]  ;;  %v8227_v26 = vrot.slane %v8210_v63, 1 }
  0x6b   : > { %14240 = vst [vmem:[#allocation32_spill] sm:$0xff] %v8134_v27  ;;  %14241 = vst [vmem:[#allocation33_spill] sm:$0xff] %v8137_v28  ;;  %v8258_v28 = vld [vmem:[#allocation2 + $0x1e8] sm:$0xff] }
  0x6c   : > { %14242 = vst [vmem:[#allocation34_spill] sm:$0xff] %v8140_v36  ;;  %14243 = vst [vmem:[#allocation35_spill] sm:$0xff] %v8152_v54  ;;  %v8212_v36 = vld [vmem:[#allocation2 + $0x1b0] sm:$0xff] }
  0x6d   : > { %5677 = vrot.lane.b32.xlu1 %v8124_v25, %s7642_s12  ;;  %14244 = vst [vmem:[#allocation36_spill] sm:$0xff] %v8156_v60  ;;  %14245 = vst [vmem:[#allocation37_spill] sm:$0xff] %v8163_v9  ;;  %v8179_v25 = vrot.slane %v8158_v61, 1  ;;  %v8271_v17 = vld [vmem:[#allocation2 + $0x1f0] sm:$0xff] }
  0x6e   : > { %5672 = vrot.lane.b32.xlu0 %v8120_v24, %s7642_s12  ;;  %14246 = vst [vmem:[#allocation38_spill] sm:$0xff] %v8166_v10  ;;  %14247 = vst [vmem:[#allocation39_spill] sm:$0xff] %v8169_v11  ;;  %v8175_v24 = vld [vmem:[#allocation2 + $0x170] sm:$0xff] }
  0x6f   : > { %14248 = vst [vmem:[#allocation40_spill] sm:$0xff] %v8179_v25  ;;  %407 = vst.msk [vmem:[#allocation2 + $0x208] sm:$0xff] %vm330_vm0, %v328_v15  ;;  %v8199_v15 = vrot.slane %v8173_v0, 1 }
  0x70   : > { %14249 = vst [vmem:[#allocation41_spill] sm:$0xff] %v8189_v42  ;;  %14250 = vst [vmem:[#allocation42_spill] sm:$0xff] %v8193_v51 }
  0x71   : > { %5682 = vrot.lane.b32.xlu1 %v8156_v60, %s7642_s12  ;;  %14251 = vst [vmem:[#allocation43_spill] sm:$0xff] %v8196_v16  ;;  %14252 = vst [vmem:[#allocation44_spill] sm:$0xff] %v8199_v15  ;;  %v8208_v60 = vrot.slane %v8175_v24, 1  ;;  %v8232_v9 = vsel %vm513_vm3, %v8196_v16, %v8199_v15 }
  0x72   : > { %5687 = vrot.lane.b32.xlu0 %v8152_v54, %s7642_s12  ;;  %408 = vst.msk [vmem:[#allocation2 + $0x210] sm:$0xff] %vm330_vm0, %v329_v62  ;;  %v8205_v54 = vsel %vm513_vm3, %v8169_v11, %v8166_v10  ;;  %v8220_v62 = vpack.i.bf16 %v8179_v25, %v8166_v10  ;;  %14257 = vst [vmem:[#allocation49_spill] sm:$0xff] %v8227_v26  ;;  %v8242_v10 = vld [vmem:[#allocation2 + $0x1d0] sm:$0xff] }
  0x73   : > { %14253 = vst [vmem:[#allocation45_spill] sm:$0xff] %v8205_v54  ;;  %14254 = vst [vmem:[#allocation46_spill] sm:$0xff] %v8208_v60  ;;  %v8224_v20 = vpack.i.bf16 %v8205_v54, %v8169_v11  ;;  %v8244_v11 = vld [vmem:[#allocation2 + $0x1c8] sm:$0xff]  ;;  %v8252_v54 = vpack.i.bf16 %v8232_v9, %v8196_v16  ;;  %v8286_v16 = vrot.slane %v8258_v28, 1 }
  0x74   : > { %14255 = vst [vmem:[#allocation47_spill] sm:$0xff] %v8220_v62  ;;  %14258 = vst [vmem:[#allocation50_spill] sm:$0xff] %v8232_v9 }
  0x75   : > { %5692 = vrot.lane.b32.xlu1 %v8193_v51, %s7642_s12  ;;  %14256 = vst [vmem:[#allocation48_spill] sm:$0xff] %v8224_v20  ;;  %v8240_v51 = vrot.slane %v8212_v36, 1  ;;  %14261 = vst [vmem:[#allocation53_spill] sm:$0xff] %v8252_v54 }
  0x76   : > { %5697 = vrot.lane.b32.xlu0 %v8189_v42, %s7642_s12  ;;  %v8237_v42 = vsel %vm513_vm3, %v8179_v25, %v8208_v60  ;;  %14268 = vst [vmem:[#allocation60_spill] sm:$0xff] %v8286_v16 }
  0x77   : > { %14259 = vst [vmem:[#allocation51_spill] sm:$0xff] %v8237_v42  ;;  %14260 = vst [vmem:[#allocation52_spill] sm:$0xff] %v8240_v51  ;;  %v8256_v25 = vpack.i.bf16 %v8208_v60, %v8237_v42  ;;  %v8263_v27 = vsel %vm513_vm3, %v8227_v26, %v8240_v51  ;;  %v8283_v42 = vpack.i.bf16 %v8227_v26, %v8199_v15  ;;  %v416_v60 = vld [vmem:[#allocation2 + $0x38] sm:$0xff]  ;;  %v8299_v15 = vrot.slane %v7948_v31, 2 }
  0x78   : > { %14263 = vst [vmem:[#allocation55_spill] sm:$0xff] %v8263_v27  ;;  %v8279_v9 = vpack.i.bf16 %v8240_v51, %v8263_v27  ;;  %v8296_v51 = vrot.slane %v8271_v17, 1  ;;  %v412_v27 = vld [vmem:[#allocation2 + $0x18] sm:$0xff]  ;;  %v731_v8 = vrot.slane %v416_v60, 2 }
  0x79   : > { %5702 = vrot.lane.b32.xlu1 %v8224_v20, %s7642_s12  ;;  %14262 = vst [vmem:[#allocation54_spill] sm:$0xff] %v8256_v25  ;;  %v8269_v20 = vrot.slane %v8244_v11, 1  ;;  %14267 = vst [vmem:[#allocation59_spill] sm:$0xff] %v8283_v42  ;;  %v420_v26 = vld [vmem:[#allocation2 + $0x58] sm:$0xff] }
  0x7a   : > { %5707 = vrot.lane.b32.xlu0 %v8220_v62, %s7642_s12  ;;  %v8266_v62 = vrot.slane %v8242_v10, 1  ;;  %14266 = vst [vmem:[#allocation58_spill] sm:$0xff] %v8279_v9  ;;  %14270 = vst [vmem:[#allocation62_spill] sm:$0xff] %v8296_v51  ;;  %v8319_v60 = vsel %vm513_vm3, %v8286_v16, %v8296_v51  ;;  %v736_v18 = vrot.slane %v420_v26, 2  ;;  %v8337_v26 = vrot.slane %v7988_v46, 2 }
  0x7b   : > { %14265 = vst [vmem:[#allocation57_spill] sm:$0xff] %v8269_v20  ;;  %14271 = vst [vmem:[#allocation63_spill] sm:$0xff] %v8299_v15 }
  0x7c   : > { %14264 = vst [vmem:[#allocation56_spill] sm:$0xff] %v8266_v62  ;;  %v8291_v19 = vsel %vm513_vm3, %v8269_v20, %v8266_v62  ;;  %14274 = vst [vmem:[#allocation66_spill] sm:$0xff] %v8319_v60 }
  0x7d   : > { %5712 = vrot.lane.b32.xlu1 %v8256_v25, %s7642_s12  ;;  %14269 = vst [vmem:[#allocation61_spill] sm:$0xff] %v8291_v19  ;;  %v724_v25 = vrot.slane %v7900_v5, 2  ;;  %v8312_v5 = vpack.i.bf16 %v8291_v19, %v8269_v20  ;;  %14278 = vst [vmem:[#allocation70_spill] sm:$0xff] %v8337_v26 }
  0x7e   : > { %5717 = vrot.lane.b32.xlu0 %v8252_v54, %s7642_s12  ;;  %v723_v54 = vrot.slane %v7898_v4, 2  ;;  %v8308_v4 = vpack.i.bf16 %v8286_v16, %v8266_v62  ;;  %v8326_v62 = vsel %vm722_vm4, %v729_v21, %v731_v8  ;;  %v8334_v16 = vpack.i.bf16 %v8296_v51, %v8319_v60  ;;  %v8353_v60 = vld [vmem:[#allocation2 + $0x200] sm:$0xff]  ;;  %v8355_v51 = vld [vmem:[#allocation2 + $0x208] sm:$0xff] }
  0x7f   : > { %14273 = vst [vmem:[#allocation65_spill] sm:$0xff] %v8312_v5  ;;  %14276 = vst [vmem:[#allocation68_spill] sm:$0xff] %v8326_v62 }
  0x80   : > { %14272 = vst [vmem:[#allocation64_spill] sm:$0xff] %v8308_v4  ;;  %v725_v7 = vsel %vm722_vm4, %v723_v54, %v724_v25  ;;  %14277 = vst [vmem:[#allocation69_spill] sm:$0xff] %v8334_v16 }
  0x81   : > { %5722 = vrot.lane.b32.xlu1 %v8283_v42, %s7642_s12  ;;  %v8323_v42 = vsel %vm722_vm4, %v8299_v15, %v729_v21  ;;  %v5746_v20 = vpack.i.bf16 %v725_v7, %v723_v54  ;;  %v8343_v21 = vrot.slane %v7966_v38, 2  ;;  %v8349_v7 = vrot.slane %v7973_v41, 2 }
  0x82   : > { %5727 = vrot.lane.b32.xlu0 %v8279_v9, %s7642_s12  ;;  %v726_v9 = vrot.slane %v412_v27, 2  ;;  %14275 = vst [vmem:[#allocation67_spill] sm:$0xff] %v8323_v42  ;;  %v424_v27 = vld [vmem:[#allocation2 + $0x78] sm:$0xff]  ;;  %v5756_v8 = vpack.i.bf16 %v8326_v62, %v8323_v42  ;;  %v744_v54 = vrot.slane %v7944_v29, 2  ;;  %v8386_v62 = vrot.slane %v7946_v30, 2 }
  0x83   : > { %14279 = vst [vmem:[#allocation71_spill] sm:$0xff] %v8343_v21  ;;  %14281 = vst [vmem:[#allocation73_spill] sm:$0xff] %v8349_v7  ;;  %v452_v42 = vld [vmem:[#allocation2 + $0x158] sm:$0xff] }
  0x84   : > { %v727_v19 = vsel %vm722_vm4, %v724_v25, %v726_v9  ;;  %v8363_v25 = vsel %vm722_vm4, %v8337_v26, %v734_v53  ;;  %v741_v9 = vrot.slane %v424_v27, 2  ;;  %14287 = vst [vmem:[#allocation79_spill] sm:$0xff] %v8386_v62 }
  0x85   : > { %5732 = vrot.lane.b32.xlu1 %v8312_v5, %s7642_s12  ;;  %v739_v5 = vrot.slane %v7992_v48, 2  ;;  %14282 = vst [vmem:[#allocation74_spill] sm:$0xff] %v8363_v25 }
  0x86   : > { %5737 = vrot.lane.b32.xlu0 %v8308_v4, %s7642_s12  ;;  %v8346_v4 = vsel %vm722_vm4, %v734_v53, %v736_v18  ;;  %v5751_v18 = vpack.i.bf16 %v8299_v15, %v727_v19  ;;  %v8375_v19 = vpack.i.bf16 %v8363_v25, %v8337_v26  ;;  %v8379_v53 = vsel %vm722_vm4, %v8349_v7, %v744_v54  ;;  %v436_v25 = vld [vmem:[#allocation2 + $0xd8] sm:$0xff] }
  0x87   : > { %14280 = vst [vmem:[#allocation72_spill] sm:$0xff] %v8346_v4  ;;  %14285 = vst [vmem:[#allocation77_spill] sm:$0xff] %v8379_v53  ;;  %v8383_v27 = vsel %vm722_vm4, %v8343_v21, %v739_v5  ;;  %v8391_v3 = vsel %vm722_vm4, %v739_v5, %v741_v9  ;;  %v751_v26 = vrot.slane %v432_v32, 2  ;;  %v8396_v33 = vpack.i.bf16 %v8379_v53, %v8349_v7 }
  0x88   : > { %14284 = vst [vmem:[#allocation76_spill] sm:$0xff] %v8375_v19  ;;  %14286 = vst [vmem:[#allocation78_spill] sm:$0xff] %v8383_v27  ;;  %v756_v6 = vrot.slane %v436_v25, 2  ;;  %v440_v25 = vld [vmem:[#allocation2 + $0xf8] sm:$0xff]  ;;  %v8421_v9 = vrot.slane %v8047_v1, 2  ;;  %v8470_v7 = vrot.slane %v8110_v22, 2 }
  0x89   : > { %5742 = vrot.lane.b32.xlu1 %v8334_v16, %s7642_s12  ;;  %14288 = vst [vmem:[#allocation80_spill] sm:$0xff] %v8391_v3  ;;  %v749_v16 = vrot.slane %v7990_v47, 2  ;;  %14289 = vst [vmem:[#allocation81_spill] sm:$0xff] %v8396_v33  ;;  %v761_v53 = vrot.slane %v440_v25, 2  ;;  %s7649_s12 = smov 40  }
  0x8a   : > { %5747 = vrot.lane.b32.xlu0 %v5746_v20, %s7643_s20  ;;  %v8371_v20 = vpack.i.bf16 %v8343_v21, %v8346_v4  ;;  %v746_v4 = vrot.slane %v428_v55, 2  ;;  %v8400_v21 = vpack.i.bf16 %v8391_v3, %v8383_v27  ;;  %14295 = vst [vmem:[#allocation87_spill] sm:$0xff] %v8421_v9  ;;  %v444_v27 = vld [vmem:[#allocation2 + $0x118] sm:$0xff]  ;;  %14306 = vst [vmem:[#allocation98_spill] sm:$0xff] %v8470_v7 }
  0x8b   : > { %v8409_v32 = vsel %vm722_vm4, %v8386_v62, %v749_v16  ;;  %v8412_v55 = vsel %vm722_vm4, %v749_v16, %v751_v26  ;;  %v764_v26 = vrot.slane %v8072_v12, 2  ;;  %v766_v15 = vrot.slane %v444_v27, 2 }
  0x8c   : > { %14283 = vst [vmem:[#allocation75_spill] sm:$0xff] %v8371_v20  ;;  %14290 = vst [vmem:[#allocation82_spill] sm:$0xff] %v8400_v21  ;;  %v8415_v5 = vsel %vm722_vm4, %v744_v54, %v746_v4  ;;  %v8438_v54 = vld [vmem:[#allocation2 + $0x210] sm:$0xff] }
  0x8d   : > { %5752 = vrot.lane.b32.xlu1 %v5751_v18, %s7643_s20  ;;  %14291 = vst [vmem:[#allocation83_spill] sm:$0xff] %v8409_v32  ;;  %14292 = vst [vmem:[#allocation84_spill] sm:$0xff] %v8412_v55  ;;  %v8418_v18 = vrot.slane %v8032_v59, 2  ;;  %v8432_v16 = vpack.i.bf16 %v8386_v62, %v8415_v5 }
  0x8e   : > { %5757 = vrot.lane.b32.xlu0 %v5756_v8, %s7643_s20  ;;  %v754_v8 = vrot.slane %v8030_v58, 2  ;;  %14293 = vst [vmem:[#allocation85_spill] sm:$0xff] %v8415_v5  ;;  %v759_v5 = vrot.slane %v8074_v13, 2 }
  0x8f   : > { %14294 = vst [vmem:[#allocation86_spill] sm:$0xff] %v8418_v18  ;;  %14298 = vst [vmem:[#allocation90_spill] sm:$0xff] %v8432_v16 }
  0x90   : > { %v8435_v4 = vsel %vm722_vm4, %v754_v8, %v756_v6  ;;  %v8450_v6 = vrot.slane %v8438_v54, 1 }
  0x91   : > { %5762 = vrot.lane.b32.xlu1 %v8375_v19, %s7643_s20  ;;  %v8428_v19 = vpack.i.bf16 %v8412_v55, %v8409_v32  ;;  %14299 = vst [vmem:[#allocation91_spill] sm:$0xff] %v8435_v4  ;;  %v8446_v55 = vsel %vm722_vm4, %v8418_v18, %v754_v8  ;;  %v448_v32 = vld [vmem:[#allocation2 + $0x138] sm:$0xff]  ;;  %v8454_v62 = vpack.i.bf16 %v8421_v9, %v8435_v4  ;;  %v769_v4 = vrot.slane %v8112_v23, 2 }
  0x92   : > { %5767 = vrot.lane.b32.xlu0 %v8371_v20, %s7643_s20  ;;  %v8424_v20 = vrot.slane %v8049_v2, 2  ;;  %14300 = vst [vmem:[#allocation92_spill] sm:$0xff] %v8446_v55  ;;  %14301 = vst [vmem:[#allocation93_spill] sm:$0xff] %v8450_v6  ;;  %v8463_v8 = vpack.i.bf16 %v8446_v55, %v8418_v18  ;;  %v8482_v18 = vsel %vm722_vm4, %v759_v5, %v761_v53  ;;  %v771_v55 = vrot.slane %v448_v32, 2 }
  0x93   : > { %14297 = vst [vmem:[#allocation89_spill] sm:$0xff] %v8428_v19  ;;  %14302 = vst [vmem:[#allocation94_spill] sm:$0xff] %v8454_v62  ;;  %v8505_v53 = vsel %vm722_vm4, %v8470_v7, %v769_v4  ;;  %v774_v32 = vrot.slane %v8142_v37, 2 }
  0x94   : > { %14296 = vst [vmem:[#allocation88_spill] sm:$0xff] %v8424_v20  ;;  %14304 = vst [vmem:[#allocation96_spill] sm:$0xff] %v8463_v8  ;;  %v8467_v25 = vsel %vm722_vm4, %v8424_v20, %v764_v26  ;;  %v8508_v27 = vsel %vm722_vm4, %v769_v4, %v771_v55  ;;  %v8536_v55 = vrot.slane %v8171_v14, 2  ;;  %v784_v4 = vrot.slane %v8173_v0, 2 }
  0x95   : > { %5772 = vrot.lane.b32.xlu1 %v8400_v21, %s7643_s20  ;;  %14305 = vst [vmem:[#allocation97_spill] sm:$0xff] %v8467_v25  ;;  %v8479_v21 = vsel %vm722_vm4, %v8421_v9, %v759_v5  ;;  %14311 = vst [vmem:[#allocation103_spill] sm:$0xff] %v8505_v53  ;;  %v776_v5 = vrot.slane %v452_v42, 2 }
  0x96   : > { %5777 = vrot.lane.b32.xlu0 %v8396_v33, %s7643_s20  ;;  %v8457_v33 = vrot.slane %v8355_v51, 1  ;;  %14307 = vst [vmem:[#allocation99_spill] sm:$0xff] %v8479_v21  ;;  %v8497_v9 = vpack.i.bf16 %v8482_v18, %v8479_v21  ;;  %14312 = vst [vmem:[#allocation104_spill] sm:$0xff] %v8508_v27  ;;  %v8522_v21 = vrot.slane %v8158_v61, 2 }
  0x98   : > { %14303 = vst [vmem:[#allocation95_spill] sm:$0xff] %v8457_v33  ;;  %v8487_v3 = vsel %vm513_vm3, %v8457_v33, %v8450_v6  ;;  %14310 = vst [vmem:[#allocation102_spill] sm:$0xff] %v8497_v9 }
  0x99   : > { %5782 = vrot.lane.b32.xlu1 %v8432_v16, %s7643_s20  ;;  %14308 = vst [vmem:[#allocation100_spill] sm:$0xff] %v8487_v3  ;;  %v8493_v16 = vpack.i.bf16 %v8467_v25, %v8424_v20  ;;  %v8515_v25 = vrot.slane %v8144_v43, 2  ;;  %14316 = vst [vmem:[#allocation108_spill] sm:$0xff] %v8522_v21 }
  0x9a   : > { %5787 = vrot.lane.b32.xlu0 %v8428_v19, %s7643_s20  ;;  %v8512_v19 = vsel %vm722_vm4, %v764_v26, %v766_v15  ;;  %v8533_v15 = vsel %vm722_vm4, %v774_v32, %v776_v5 }
  0x9b   : > { %14309 = vst [vmem:[#allocation101_spill] sm:$0xff] %v8493_v16  ;;  %14313 = vst [vmem:[#allocation105_spill] sm:$0xff] %v8512_v19  ;;  %v8530_v42 = vpack.i.bf16 %v8470_v7, %v8512_v19  ;;  %v8541_v26 = vsel %vm722_vm4, %v8515_v25, %v774_v32  ;;  %v8546_v19 = vpack.i.bf16 %v8522_v21, %v8533_v15 }
  0x9c   : > { %14314 = vst [vmem:[#allocation106_spill] sm:$0xff] %v8515_v25  ;;  %14318 = vst [vmem:[#allocation110_spill] sm:$0xff] %v8533_v15  ;;  %v8554_v5 = vpack.i.bf16 %v8541_v26, %v8515_v25  ;;  %v8558_v32 = vsel %vm722_vm4, %v8536_v55, %v784_v4  ;;  %v789_v15 = vrot.slane %v8212_v36, 2  ;;  %v468_v25 = vld [vmem:[#allocation2 + $0x1d8] sm:$0xff] }
  0x9d   : > { %5792 = vrot.lane.b32.xlu1 %v8463_v8, %s7643_s20  ;;  %v8519_v8 = vpack.i.bf16 %v8508_v27, %v8505_v53  ;;  %14317 = vst [vmem:[#allocation109_spill] sm:$0xff] %v8530_v42  ;;  %14319 = vst [vmem:[#allocation111_spill] sm:$0xff] %v8541_v26  ;;  %v460_v53 = vld [vmem:[#allocation2 + $0x198] sm:$0xff]  ;;  %v8577_v26 = vpack.i.bf16 %v8558_v32, %v8536_v55 }
  0x9e   : > { %5797 = vrot.lane.b32.xlu0 %v8454_v62, %s7643_s20  ;;  %v456_v62 = vld [vmem:[#allocation2 + $0x178] sm:$0xff]  ;;  %14320 = vst [vmem:[#allocation112_spill] sm:$0xff] %v8546_v19  ;;  %14321 = vst [vmem:[#allocation113_spill] sm:$0xff] %v8554_v5  ;;  %v786_v20 = vrot.slane %v460_v53, 2 }
  0x9f   : > { %14315 = vst [vmem:[#allocation107_spill] sm:$0xff] %v8519_v8  ;;  %v781_v27 = vrot.slane %v456_v62, 2  ;;  %14322 = vst [vmem:[#allocation114_spill] sm:$0xff] %v8558_v32  ;;  %v8561_v62 = vrot.slane %v8210_v63, 2  ;;  %v472_v32 = vld [vmem:[#allocation2 + $0x1f8] sm:$0xff] }
  0xa0   : > { %14324 = vst [vmem:[#allocation116_spill] sm:$0xff] %v8577_v26 }
  0xa1   : > { %5802 = vrot.lane.b32.xlu1 %v8497_v9, %s7643_s20  ;;  %v464_v9 = vld [vmem:[#allocation2 + $0x1b8] sm:$0xff] }
  0xa2   : > { %5807 = vrot.lane.b32.xlu0 %v8493_v16, %s7643_s20  ;;  %v779_v16 = vrot.slane %v8175_v24, 2 }
  0xa4   : > { %v8566_v7 = vsel %vm722_vm4, %v8522_v21, %v779_v16 }
  0xa5   : > { %5812 = vrot.lane.b32.xlu1 %v8530_v42, %s7643_s20  ;;  %14323 = vst [vmem:[#allocation115_spill] sm:$0xff] %v8566_v7  ;;  %v791_v42 = vrot.slane %v464_v9, 2  ;;  %v794_v9 = vrot.slane %v8242_v10, 2 }
  0xa6   : > { %5817 = vrot.lane.b32.xlu0 %v8519_v8, %s7643_s20  ;;  %v8569_v8 = vsel %vm722_vm4, %v779_v16, %v781_v27  ;;  %v8585_v16 = vsel %vm722_vm4, %v8561_v62, %v789_v15  ;;  %v8592_v27 = vsel %vm722_vm4, %v784_v4, %v786_v20  ;;  %v8610_v20 = vrot.slane %v8258_v28, 2 }
  0xa7   : > { %v8581_v21 = vpack.i.bf16 %v8569_v8, %v8566_v7  ;;  %v8589_v53 = vsel %vm722_vm4, %v789_v15, %v791_v42  ;;  %v8607_v42 = vpack.i.bf16 %v8561_v62, %v8592_v27  ;;  %v799_v4 = vrot.slane %v8271_v17, 2 }
  0xa8   : > { %14326 = vst [vmem:[#allocation118_spill] sm:$0xff] %v8589_v53  ;;  %v8603_v7 = vpack.i.bf16 %v8589_v53, %v8585_v16  ;;  %v413_v53 = vld [vmem:[#allocation2 + $0x20] sm:$0xff] }
  0xa9   : > { %5822 = vrot.lane.b32.xlu1 %v8554_v5, %s7643_s20  ;;  %14325 = vst [vmem:[#allocation117_spill] sm:$0xff] %v8581_v21  ;;  %v8595_v5 = vrot.slane %v8244_v11, 2  ;;  %14329 = vst [vmem:[#allocation121_spill] sm:$0xff] %v8607_v42 }
  0xaa   : > { %5827 = vrot.lane.b32.xlu0 %v8546_v19, %s7643_s20  ;;  %v796_v19 = vrot.slane %v468_v25, 2  ;;  %14328 = vst [vmem:[#allocation120_spill] sm:$0xff] %v8603_v7 }
  0xab   : > { %14327 = vst [vmem:[#allocation119_spill] sm:$0xff] %v8595_v5  ;;  %v8617_v15 = vsel %vm722_vm4, %v8595_v5, %v794_v9 }
  0xac   : > { %v8613_v25 = vsel %vm722_vm4, %v794_v9, %v796_v19  ;;  %v8630_v19 = vpack.i.bf16 %v8617_v15, %v8595_v5  ;;  %v8634_v9 = vsel %vm722_vm4, %v8610_v20, %v799_v4  ;;  %v8648_v5 = vld [vmem:[#allocation2 + $0x40] sm:$0xff] }
  0xad   : > { %5832 = vrot.lane.b32.xlu1 %v8581_v21, %s7643_s20  ;;  %v8626_v21 = vpack.i.bf16 %v8610_v20, %v8613_v25 }
  0xae   : > { %5837 = vrot.lane.b32.xlu0 %v8577_v26, %s7643_s20  ;;  %v801_v26 = vrot.slane %v472_v32, 2  ;;  %14331 = vst [vmem:[#allocation123_spill] sm:$0xff] %v8630_v19 }
  0xaf   : > { %14330 = vst [vmem:[#allocation122_spill] sm:$0xff] %v8626_v21 }
  0xb0   : > { %v8637_v32 = vsel %vm722_vm4, %v799_v4, %v801_v26  ;;  %v5876_v26 = vpack.i.bf16 %v7962_v35, %v7988_v46  ;;  %v5871_v4 = vpack.i.bf16 %v8648_v5, %v7971_v40  ;;  %v5891_v40 = vpack.i.bf16 %v7944_v29, %v7973_v41  ;;  %v8675_v46 = vld [vmem:[#allocation2 + $0xc0] sm:$0xff] }
  0xb1   : > { %5842 = vrot.lane.b32.xlu1 %v8607_v42, %s7643_s20  ;;  %v8646_v42 = vpack.i.bf16 %v8637_v32, %v8634_v9 }
  0xb2   : > { %5847 = vrot.lane.b32.xlu0 %v8603_v7, %s7643_s20  ;;  %v5866_v7 = vpack.i.bf16 %v7948_v31, %v413_v53  ;;  %v8659_v31 = vld [vmem:[#allocation2 + $0x60] sm:$0xff] }
  0xb3   : > { %14332 = vst [vmem:[#allocation124_spill] sm:$0xff] %v8646_v42  ;;  %v5881_v53 = vpack.i.bf16 %v7966_v38, %v8659_v31  ;;  %v5906_v38 = vpack.i.bf16 %v8030_v58, %v8032_v59  ;;  %v8695_v58 = vld [vmem:[#allocation2 + $0x120] sm:$0xff]  ;;  %v5921_v59 = vpack.i.bf16 %v8072_v12, %v8049_v2 }
  0xb5   : > { %5852 = vrot.lane.b32.xlu1 %v8630_v19, %s7643_s20  ;;  %v14402_v19 = vld [vmem:[#allocation73_spill] sm:$0xff] }
  0xb6   : > { %5857 = vrot.lane.b32.xlu0 %v8626_v21, %s7643_s20  ;;  %v8657_v21 = vld [vmem:[#allocation2 + $0x80] sm:$0xff] }
  0xb9   : > { %5862 = vrot.lane.b32.xlu1 %v8646_v42, %s7643_s20  ;;  %v8667_v42 = vld [vmem:[#allocation2 + $0xa0] sm:$0xff] }
  0xba   : > { %5867 = vrot.lane.b32.xlu0 %v5866_v7, %s7644_s22  ;;  %v5886_v7 = vpack.i.bf16 %v8657_v21, %v7992_v48  ;;  %v5896_v35 = vpack.i.bf16 %v7946_v30, %v8667_v42  ;;  %v5901_v48 = vpack.i.bf16 %v8675_v46, %v7990_v47  ;;  %v5926_v47 = vpack.i.bf16 %v8110_v22, %v8695_v58  ;;  %v8715_v22 = vld [vmem:[#allocation2 + $0x180] sm:$0xff] }
  0xbc   : > { %v8689_v29 = vpop.permute.xlu0 %5627 }
  0xbd   : > { %5872 = vrot.lane.b32.xlu1 %v5871_v4, %s7644_s22  ;;  %v8685_v4 = vld [vmem:[#allocation2 + $0xe0] sm:$0xff]  ;;  %14333 = vst [vmem:[#allocation125_spill] sm:$0xff] %v8689_v29  ;;  %v14401_v29 = vld [vmem:[#allocation80_spill] sm:$0xff] }
  0xbe   : > { %5877 = vrot.lane.b32.xlu0 %v5876_v26, %s7644_s22  ;;  %v8683_v26 = vld [vmem:[#allocation2 + $0x100] sm:$0xff]  ;;  %v5911_v41 = vpack.i.bf16 %v8047_v1, %v8685_v4  ;;  %v5936_v1 = vpack.i.bf16 %v8142_v37, %v8144_v43 }
  0xbf   : > { %v5916_v30 = vpack.i.bf16 %v8683_v26, %v8074_v13  ;;  %v8729_v43 = vld [vmem:[#allocation2 + $0x1a0] sm:$0xff] }
  0xc1   : > { %5882 = vrot.lane.b32.xlu1 %v5881_v53, %s7644_s22 }
  0xc2   : > { %5887 = vrot.lane.b32.xlu0 %v5886_v7, %s7644_s22  ;;  %v8703_v7 = vld [vmem:[#allocation2 + $0x140] sm:$0xff] }
  0xc5   : > { %5892 = vrot.lane.b32.xlu1 %v5891_v40, %s7644_s22  ;;  %v8717_v40 = vld [vmem:[#allocation2 + $0x160] sm:$0xff] }
  0xc6   : > { %5897 = vrot.lane.b32.xlu0 %v5896_v35, %s7644_s22  ;;  %v5931_v35 = vpack.i.bf16 %v8703_v7, %v8112_v23  ;;  %v5941_v37 = vpack.i.bf16 %v8158_v61, %v8717_v40 }
  0xc9   : > { %5902 = vrot.lane.b32.xlu1 %v5901_v48, %s7644_s22 }
  0xca   : > { %5907 = vrot.lane.b32.xlu0 %v5906_v38, %s7644_s22  ;;  %v5946_v38 = vpack.i.bf16 %v8715_v22, %v8175_v24  ;;  %v8741_v24 = vld [vmem:[#allocation2 + $0x1c0] sm:$0xff] }
  0xcd   : > { %5912 = vrot.lane.b32.xlu1 %v5911_v41, %s7644_s22  ;;  %v5951_v41 = vpack.i.bf16 %v8173_v0, %v8171_v14  ;;  %v5976_v14 = vpack.i.bf16 %v8353_v60, %v8271_v17 }
  0xce   : > { %5917 = vrot.lane.b32.xlu0 %v5916_v30, %s7644_s22  ;;  %v5956_v30 = vpack.i.bf16 %v8210_v63, %v8729_v43  ;;  %v8753_v63 = vld [vmem:[#allocation2 + $0x1e0] sm:$0xff] }
  0xcf   : > { %v8705_v53 = vpop.permute.xlu1 %5642 }
  0xd0   : > { %14334 = vst [vmem:[#allocation126_spill] sm:$0xff] %v8705_v53  ;;  %v8707_v13 = vpop.permute.xlu0 %5632 }
  0xd1   : > { %14335 = vst [vmem:[#allocation127_spill] sm:$0xff] %v8707_v13  ;;  %5922 = vrot.lane.b32.xlu1 %v5921_v59, %s7644_s22  ;;  %v5966_v59 = vpack.i.bf16 %v8242_v10, %v8244_v11 }
  0xd2   : > { %5927 = vrot.lane.b32.xlu0 %v5926_v47, %s7644_s22 }
  0xd3   : > { %v8721_v12 = vpop.permute.xlu1 %5647 }
  0xd4   : > { %v8719_v2 = vpop.permute.xlu0 %5637  ;;  %14337 = vst [vmem:[#allocation129_spill] sm:$0xff] %v8721_v12 }
  0xd5   : > { %14336 = vst [vmem:[#allocation128_spill] sm:$0xff] %v8719_v2  ;;  %5932 = vrot.lane.b32.xlu1 %v5931_v35, %s7644_s22  ;;  %v14363_v2 = vld [vmem:[#allocation27_spill] sm:$0xff] }
  0xd6   : > { %5937 = vrot.lane.b32.xlu0 %v5936_v1, %s7644_s22  ;;  %v5961_v1 = vpack.i.bf16 %v8741_v24, %v8212_v36  ;;  %v5981_v36 = vpack.i.bf16 %v8438_v54, %v8355_v51 }
  0xd7   : > { %v8733_v48 = vpop.permute.xlu1 %5652 }
  0xd8   : > { %v8731_v23 = vpop.permute.xlu0 %5662  ;;  %14339 = vst [vmem:[#allocation131_spill] sm:$0xff] %v8733_v48 }
  0xd9   : > { %14338 = vst [vmem:[#allocation130_spill] sm:$0xff] %v8731_v23  ;;  %5942 = vrot.lane.b32.xlu1 %v5941_v37, %s7644_s22  ;;  %v14358_v23 = vld [vmem:[#allocation32_spill] sm:$0xff] }
  0xda   : > { %5947 = vrot.lane.b32.xlu0 %v5946_v38, %s7644_s22  ;;  %v5971_v38 = vpack.i.bf16 %v8258_v28, %v8753_v63 }
  0xdb   : > { %v8745_v61 = vpop.permute.xlu1 %5657 }
  0xdc   : > { %v8743_v47 = vpop.permute.xlu0 %5667  ;;  %14341 = vst [vmem:[#allocation133_spill] sm:$0xff] %v8745_v61 }
  0xdd   : > { %14340 = vst [vmem:[#allocation132_spill] sm:$0xff] %v8743_v47  ;;  %5952 = vrot.lane.b32.xlu1 %v5951_v41, %s7644_s22  ;;  %v14354_v47 = vld [vmem:[#allocation21_spill] sm:$0xff] }
  0xde   : > { %5957 = vrot.lane.b32.xlu0 %v5956_v30, %s7644_s22 }
  0xdf   : > { %v8757_v0 = vpop.permute.xlu1 %5677 }
  0xe0   : > { %v8755_v35 = vpop.permute.xlu0 %5672  ;;  %14343 = vst [vmem:[#allocation135_spill] sm:$0xff] %v8757_v0 }
  0xe1   : > { %14342 = vst [vmem:[#allocation134_spill] sm:$0xff] %v8755_v35  ;;  %5962 = vrot.lane.b32.xlu1 %v5961_v1, %s7644_s22  ;;  %v14345_v1 = vpack.i.bf16 %v8010_v52, %v7960_v34  ;;  %v6006_v34 = vpack.i.bf16 %v7995_v49, %v8028_v57  ;;  %v14346_v52 = vld [vmem:[#allocation19_spill] sm:$0xff]  ;;  %v14350_v35 = vld [vmem:[#allocation10_spill] sm:$0xff]  ;;  %v14352_v57 = vld [vmem:[#allocation20_spill] sm:$0xff] }
  0xe2   : > { %5967 = vrot.lane.b32.xlu0 %v5966_v59, %s7644_s22 }
  0xe3   : > { %v8767_v30 = vpop.permute.xlu1 %5682 }
  0xe4   : > { %v8765_v37 = vpop.permute.xlu0 %5687  ;;  %14344 = vst [vmem:[#allocation136_spill] sm:$0xff] %v8767_v30 }
  0xe5   : > { %5972 = vrot.lane.b32.xlu1 %v5971_v38, %s7644_s22  ;;  %v5991_v38 = vpack.i.bf16 %v7998_v50, %v7986_v45  ;;  %v14347_v45 = vld [vmem:[#allocation11_spill] sm:$0xff]  ;;  %v14348_v50 = vld [vmem:[#allocation18_spill] sm:$0xff] }
  0xe6   : > { %5977 = vrot.lane.b32.xlu0 %v5976_v14, %s7644_s22  ;;  %v5996_v14 = vpack.i.bf16 %v7969_v39, %v8025_v56  ;;  %v6016_v56 = vpack.i.bf16 %v14348_v50, %v14347_v45  ;;  %v14356_v50 = vld [vmem:[#allocation26_spill] sm:$0xff] }
  0xe7   : > { %v8775_v59 = vpop.permute.xlu1 %5692 }
  0xe8   : > { %v8773_v41 = vpop.permute.xlu0 %5697 }
  0xe9   : > { %5982 = vrot.lane.b32.xlu1 %v5981_v36, %s7644_s22  ;;  %v6001_v36 = vpack.i.bf16 %v14346_v52, %v7983_v44  ;;  %v14351_v44 = vld [vmem:[#allocation25_spill] sm:$0xff] }
  0xea   : > { %5987 = vrot.lane.b32.xlu0 %v14345_v1, %s7645_s23  ;;  %v6026_v52 = vpack.i.bf16 %v14352_v57, %v14351_v44  ;;  %v14361_v57 = vld [vmem:[#allocation37_spill] sm:$0xff] }
  0xeb   : > { %v8788_v0 = vpop.permute.xlu1 %5702 }
  0xec   : > { %v8786_v30 = vpop.permute.xlu0 %5707 }
  0xed   : > { %5992 = vrot.lane.b32.xlu1 %v5991_v38, %s7645_s23 }
  0xee   : > { %5997 = vrot.lane.b32.xlu0 %v5996_v14, %s7645_s23  ;;  %v14349_v14 = vld [vmem:[#allocation15_spill] sm:$0xff] }
  0xef   : > { %v8798_v39 = vpop.permute.xlu1 %5712  ;;  %v6011_v38 = vpack.i.bf16 %v14350_v35, %v14349_v14  ;;  %v14355_v35 = vld [vmem:[#allocation28_spill] sm:$0xff] }
  0xf0   : > { %v8796_v1 = vpop.permute.xlu0 %5717  ;;  %v6036_v14 = vpack.i.bf16 %v14356_v50, %v14355_v35  ;;  %v14367_v50 = vld [vmem:[#allocation38_spill] sm:$0xff] }
  0xf1   : > { %6002 = vrot.lane.b32.xlu1 %v6001_v36, %s7645_s23 }
  0xf2   : > { %6007 = vrot.lane.b32.xlu0 %v6006_v34, %s7645_s23  ;;  %v14353_v34 = vld [vmem:[#allocation14_spill] sm:$0xff] }
  0xf3   : > { %v8808_v49 = vpop.permute.xlu1 %5722  ;;  %v6021_v36 = vpack.i.bf16 %v14354_v47, %v14353_v34  ;;  %v14360_v47 = vld [vmem:[#allocation33_spill] sm:$0xff] }
  0xf4   : > { %v8806_v61 = vpop.permute.xlu0 %5727  ;;  %v6046_v34 = vpack.i.bf16 %v14361_v57, %v14360_v47  ;;  %v14373_v57 = vld [vmem:[#allocation43_spill] sm:$0xff] }
  0xf5   : > { %6012 = vrot.lane.b32.xlu1 %v6011_v38, %s7645_s23 }
  0xf6   : > { %6017 = vrot.lane.b32.xlu0 %v6016_v56, %s7645_s23  ;;  %v14357_v56 = vld [vmem:[#allocation24_spill] sm:$0xff] }
  0xf7   : > { %v8818_v45 = vpop.permute.xlu1 %5732  ;;  %v6031_v38 = vpack.i.bf16 %v14358_v23, %v14357_v56  ;;  %v14366_v23 = vld [vmem:[#allocation45_spill] sm:$0xff] }
  0xf8   : > { %v8816_v48 = vpop.permute.xlu0 %5737  ;;  %v6056_v56 = vpack.i.bf16 %v14367_v50, %v14366_v23  ;;  %v14379_v50 = vld [vmem:[#allocation55_spill] sm:$0xff] }
  0xf9   : > { %6022 = vrot.lane.b32.xlu1 %v6021_v36, %s7645_s23 }
  0xfa   : > { %6027 = vrot.lane.b32.xlu0 %v6026_v52, %s7645_s23  ;;  %v14362_v52 = vld [vmem:[#allocation31_spill] sm:$0xff] }
  0xfb   : > { %v8828_v44 = vpop.permute.xlu1 %5742  ;;  %v6041_v36 = vpack.i.bf16 %v14363_v2, %v14362_v52  ;;  %v14372_v2 = vld [vmem:[#allocation46_spill] sm:$0xff] }
  0xfc   : > { %v8826_v12 = vpop.permute.xlu0 %5747  ;;  %v6066_v52 = vpack.i.bf16 %v14373_v57, %v14372_v2  ;;  %v14385_v57 = vld [vmem:[#allocation56_spill] sm:$0xff] }
  0xfd   : > { %14359 = vst [vmem:[#allocation19_spill] sm:$0xff] %v8826_v12  ;;  %6032 = vrot.lane.b32.xlu1 %v6031_v38, %s7645_s23  ;;  %v14369_v12 = vld [vmem:[#allocation39_spill] sm:$0xff] }
  0xfe   : > { %6037 = vrot.lane.b32.xlu0 %v6036_v14, %s7645_s23  ;;  %v14368_v14 = vld [vmem:[#allocation34_spill] sm:$0xff] }
  0xff   : > { %v8838_v35 = vpop.permute.xlu1 %5752  ;;  %v6051_v38 = vpack.i.bf16 %v14369_v12, %v14368_v14  ;;  %v14378_v12 = vld [vmem:[#allocation49_spill] sm:$0xff] }
 0x100   : > { %v8836_v13 = vpop.permute.xlu0 %5757  ;;  %14365 = vst [vmem:[#allocation18_spill] sm:$0xff] %v8838_v35  ;;  %v14375_v35 = vld [vmem:[#allocation51_spill] sm:$0xff]  ;;  %v6076_v14 = vpack.i.bf16 %v14379_v50, %v14378_v12 }
 0x101   : > { %14364 = vst [vmem:[#allocation11_spill] sm:$0xff] %v8836_v13  ;;  %6042 = vrot.lane.b32.xlu1 %v6041_v36, %s7645_s23 }
 0x102   : > { %6047 = vrot.lane.b32.xlu0 %v6046_v34, %s7645_s23  ;;  %v14374_v34 = vld [vmem:[#allocation40_spill] sm:$0xff] }
 0x103   : > { %v8848_v47 = vpop.permute.xlu1 %5762  ;;  %v6061_v36 = vpack.i.bf16 %v14375_v35, %v14374_v34  ;;  %v14384_v35 = vld [vmem:[#allocation61_spill] sm:$0xff] }
 0x104   : > { %v8846_v53 = vpop.permute.xlu0 %5767  ;;  %14371 = vst [vmem:[#allocation10_spill] sm:$0xff] %v8848_v47  ;;  %v14381_v47 = vld [vmem:[#allocation44_spill] sm:$0xff]  ;;  %v6086_v34 = vpack.i.bf16 %v14385_v57, %v14384_v35 }
 0x105   : > { %14370 = vst [vmem:[#allocation15_spill] sm:$0xff] %v8846_v53  ;;  %6052 = vrot.lane.b32.xlu1 %v6051_v38, %s7645_s23 }
 0x106   : > { %6057 = vrot.lane.b32.xlu0 %v6056_v56, %s7645_s23  ;;  %v14380_v56 = vld [vmem:[#allocation50_spill] sm:$0xff] }
 0x107   : > { %v8858_v23 = vpop.permute.xlu1 %5772  ;;  %v6071_v38 = vpack.i.bf16 %v14381_v47, %v14380_v56  ;;  %v14390_v47 = vld [vmem:[#allocation62_spill] sm:$0xff] }
 0x108   : > { %v8856_v13 = vpop.permute.xlu0 %5777  ;;  %14377 = vst [vmem:[#allocation20_spill] sm:$0xff] %v8858_v23  ;;  %v14387_v23 = vld [vmem:[#allocation57_spill] sm:$0xff]  ;;  %v6096_v50 = vpack.i.bf16 %v8457_v33, %v14390_v47  ;;  %v14392_v56 = vld [vmem:[#allocation66_spill] sm:$0xff] }
 0x109   : > { %14376 = vst [vmem:[#allocation25_spill] sm:$0xff] %v8856_v13  ;;  %6062 = vrot.lane.b32.xlu1 %v6061_v36, %s7645_s23 }
 0x10a   : > { %6067 = vrot.lane.b32.xlu0 %v6066_v52, %s7645_s23  ;;  %v14386_v52 = vld [vmem:[#allocation52_spill] sm:$0xff] }
 0x10b   : > { %v8868_v2 = vpop.permute.xlu1 %5782  ;;  %v6081_v36 = vpack.i.bf16 %v14387_v23, %v14386_v52  ;;  %v6101_v23 = vpack.i.bf16 %v8450_v6, %v8487_v3  ;;  %v14394_v52 = vld [vmem:[#allocation67_spill] sm:$0xff]  ;;  %v14410_v3 = vld [vmem:[#allocation85_spill] sm:$0xff] }
 0x10c   : > { %v8866_v53 = vpop.permute.xlu0 %5787  ;;  %14383 = vst [vmem:[#allocation21_spill] sm:$0xff] %v8868_v2 }
 0x10d   : > { %14382 = vst [vmem:[#allocation14_spill] sm:$0xff] %v8866_v53  ;;  %6072 = vrot.lane.b32.xlu1 %v6071_v38, %s7645_s23 }
 0x10e   : > { %6077 = vrot.lane.b32.xlu0 %v6076_v14, %s7645_s23  ;;  %v14391_v14 = vld [vmem:[#allocation60_spill] sm:$0xff] }
 0x10f   : > { %v8878_v12 = vpop.permute.xlu1 %5792  ;;  %v6091_v38 = vpack.i.bf16 %v14392_v56, %v14391_v14  ;;  %v14397_v14 = vld [vmem:[#allocation74_spill] sm:$0xff]  ;;  %v14398_v56 = vld [vmem:[#allocation72_spill] sm:$0xff] }
 0x110   : > { %v8876_v13 = vpop.permute.xlu0 %5797  ;;  %14389 = vst [vmem:[#allocation26_spill] sm:$0xff] %v8878_v12 }
 0x111   : > { %14388 = vst [vmem:[#allocation28_spill] sm:$0xff] %v8876_v13  ;;  %6082 = vrot.lane.b32.xlu1 %v6081_v36, %s7645_s23  ;;  %v14395_v36 = vld [vmem:[#allocation63_spill] sm:$0xff] }
 0x112   : > { %6087 = vrot.lane.b32.xlu0 %v6086_v34, %s7645_s23  ;;  %v14396_v47 = vpack.i.bf16 %v14394_v52, %v14395_v36  ;;  %v6126_v52 = vpack.i.bf16 %v14402_v19, %v14401_v29  ;;  %v14403_v36 = vld [vmem:[#allocation71_spill] sm:$0xff]  ;;  %v14412_v29 = vld [vmem:[#allocation92_spill] sm:$0xff] }
 0x113   : > { %v8888_v35 = vpop.permute.xlu1 %5802 }
 0x114   : > { %v8886_v2 = vpop.permute.xlu0 %5807  ;;  %14393 = vst [vmem:[#allocation24_spill] sm:$0xff] %v8888_v35  ;;  %v14399_v35 = vld [vmem:[#allocation68_spill] sm:$0xff] }
 0x115   : > { %6092 = vrot.lane.b32.xlu1 %v6091_v38, %s7645_s23  ;;  %v14400_v38 = vld [vmem:[#allocation70_spill] sm:$0xff] }
 0x116   : > { %6097 = vrot.lane.b32.xlu0 %v6096_v50, %s7645_s23  ;;  %v6116_v50 = vpack.i.bf16 %v14398_v56, %v14397_v14  ;;  %v6111_v12 = vpack.i.bf16 %v14400_v38, %v14399_v35  ;;  %v14407_v35 = vld [vmem:[#allocation79_spill] sm:$0xff] }
 0x117   : > { %v8896_v34 = vpop.permute.xlu1 %5812  ;;  %v14408_v56 = vld [vmem:[#allocation83_spill] sm:$0xff] }
 0x118   : > { %v8894_v57 = vpop.permute.xlu0 %5817  ;;  %v6136_v38 = vpack.i.bf16 %v14408_v56, %v14407_v35 }
 0x119   : > { %6102 = vrot.lane.b32.xlu1 %v6101_v23, %s7645_s23 }
 0x11a   : > { %6107 = vrot.lane.b32.xlu0 %v14396_v47, %s7646_s29  ;;  %v14404_v47 = vld [vmem:[#allocation78_spill] sm:$0xff] }
 0x11b   : > { %v8909_v53 = vpop.permute.xlu1 %5822  ;;  %v6121_v23 = vpack.i.bf16 %v14404_v47, %v14403_v36  ;;  %v14413_v36 = vld [vmem:[#allocation91_spill] sm:$0xff] }
 0x11c   : > { %v8907_v13 = vpop.permute.xlu0 %5827  ;;  %v6146_v47 = vpack.i.bf16 %v14413_v36, %v14412_v29  ;;  %v14424_v36 = vld [vmem:[#allocation103_spill] sm:$0xff] }
 0x11d   : > { %6112 = vrot.lane.b32.xlu1 %v6111_v12, %s7646_s29 }
 0x11e   : > { %6117 = vrot.lane.b32.xlu0 %v6116_v50, %s7646_s29  ;;  %v14409_v50 = vld [vmem:[#allocation77_spill] sm:$0xff] }
 0x11f   : > { %v8919_v14 = vpop.permute.xlu1 %5832  ;;  %v6131_v12 = vpack.i.bf16 %v14410_v3, %v14409_v50  ;;  %v14418_v3 = vld [vmem:[#allocation88_spill] sm:$0xff]  ;;  %v14420_v50 = vld [vmem:[#allocation99_spill] sm:$0xff] }
 0x120   : > { %v8917_v33 = vpop.permute.xlu0 %5837  ;;  %14406 = vst [vmem:[#allocation33_spill] sm:$0xff] %v8919_v14  ;;  %v14415_v14 = vld [vmem:[#allocation86_spill] sm:$0xff]  ;;  %v6156_v56 = vpack.i.bf16 %v14418_v3, %v8482_v18  ;;  %v14429_v3 = vld [vmem:[#allocation111_spill] sm:$0xff] }
 0x121   : > { %14405 = vst [vmem:[#allocation32_spill] sm:$0xff] %v8917_v33  ;;  %6122 = vrot.lane.b32.xlu1 %v6121_v23, %s7646_s29 }
 0x122   : > { %6127 = vrot.lane.b32.xlu0 %v6126_v52, %s7646_s29  ;;  %v14414_v52 = vld [vmem:[#allocation84_spill] sm:$0xff] }
 0x123   : > { %v8929_v19 = vpop.permute.xlu1 %5842  ;;  %v6141_v23 = vpack.i.bf16 %v14415_v14, %v14414_v52  ;;  %v14423_v14 = vld [vmem:[#allocation98_spill] sm:$0xff] }
 0x124   : > { %v8927_v6 = vpop.permute.xlu0 %5847  ;;  %14411 = vst [vmem:[#allocation37_spill] sm:$0xff] %v8929_v19  ;;  %v6166_v52 = vpack.i.bf16 %v14424_v36, %v14423_v14  ;;  %v14435_v36 = vld [vmem:[#allocation108_spill] sm:$0xff] }
 0x125   : > { %6132 = vrot.lane.b32.xlu1 %v6131_v12, %s7646_s29 }
 0x126   : > { %6137 = vrot.lane.b32.xlu0 %v6136_v38, %s7646_s29  ;;  %v14419_v38 = vld [vmem:[#allocation87_spill] sm:$0xff] }
 0x127   : > { %v8939_v35 = vpop.permute.xlu1 %5852  ;;  %v6151_v12 = vpack.i.bf16 %v14420_v50, %v14419_v38  ;;  %v14430_v38 = vld [vmem:[#allocation110_spill] sm:$0xff] }
 0x128   : > { %v8937_v33 = vpop.permute.xlu0 %5857  ;;  %14417 = vst [vmem:[#allocation27_spill] sm:$0xff] %v8939_v35  ;;  %v14426_v35 = vld [vmem:[#allocation105_spill] sm:$0xff]  ;;  %v6176_v50 = vpack.i.bf16 %v14430_v38, %v14429_v3  ;;  %v14439_v38 = vld [vmem:[#allocation114_spill] sm:$0xff] }
 0x129   : > { %14416 = vst [vmem:[#allocation31_spill] sm:$0xff] %v8937_v33  ;;  %6142 = vrot.lane.b32.xlu1 %v6141_v23, %s7646_s29 }
 0x12a   : > { %6147 = vrot.lane.b32.xlu0 %v6146_v47, %s7646_s29  ;;  %v14425_v47 = vld [vmem:[#allocation97_spill] sm:$0xff] }
 0x12b   : > { %v8949_v29 = vpop.permute.xlu1 %5862  ;;  %v6161_v23 = vpack.i.bf16 %v14426_v35, %v14425_v47  ;;  %v6186_v35 = vpack.i.bf16 %v8536_v55, %v8569_v8  ;;  %v476_v55 = vld [vmem:[#allocation2 + $0x218] sm:$0xff] }
 0x12c   : > { %v8947_v19 = vpop.permute.xlu0 %5867  ;;  %14422 = vst [vmem:[#allocation38_spill] sm:$0xff] %v8949_v29 }
 0x12d   : > { %14421 = vst [vmem:[#allocation45_spill] sm:$0xff] %v8947_v19  ;;  %6152 = vrot.lane.b32.xlu1 %v6151_v12, %s7646_s29  ;;  %v14432_v19 = vld [vmem:[#allocation106_spill] sm:$0xff] }
 0x12e   : > { %6157 = vrot.lane.b32.xlu0 %v6156_v56, %s7646_s29  ;;  %v14431_v56 = vld [vmem:[#allocation104_spill] sm:$0xff] }
 0x12f   : > { %v8959_v18 = vpop.permute.xlu1 %5872  ;;  %v6171_v12 = vpack.i.bf16 %v14432_v19, %v14431_v56  ;;  %v6196_v19 = vpack.i.bf16 %v8585_v16, %v8561_v62  ;;  %v6206_v62 = vpack.i.bf16 %v8613_v25, %v8617_v15  ;;  %v14443_v16 = vld [vmem:[#allocation118_spill] sm:$0xff]  ;;  %v6211_v15 = vpack.i.bf16 %v8634_v9, %v8610_v20 }
 0x130   : > { %v8957_v33 = vpop.permute.xlu0 %5877  ;;  %14428 = vst [vmem:[#allocation39_spill] sm:$0xff] %v8959_v18 }
 0x131   : > { %14427 = vst [vmem:[#allocation34_spill] sm:$0xff] %v8957_v33  ;;  %6162 = vrot.lane.b32.xlu1 %v6161_v23, %s7646_s29 }
 0x132   : > { %6167 = vrot.lane.b32.xlu0 %v6166_v52, %s7646_s29  ;;  %v14436_v52 = vld [vmem:[#allocation115_spill] sm:$0xff] }
 0x133   : > { %v8969_v14 = vpop.permute.xlu1 %5882  ;;  %v6181_v47 = vpack.i.bf16 %v14436_v52, %v14435_v36  ;;  %v9006_v36 = vrot.slane %v8355_v51, 2  ;;  %v1258_v52 = vrot.slane %v8438_v54, 2 }
 0x134   : > { %v8967_v29 = vpop.permute.xlu0 %5887  ;;  %14434 = vst [vmem:[#allocation43_spill] sm:$0xff] %v8969_v14  ;;  %v7463_v14 = vld [vmem:[#allocation2 + $0x150] sm:$0xff] }
 0x135   : > { %14433 = vst [vmem:[#allocation46_spill] sm:$0xff] %v8967_v29  ;;  %6172 = vrot.lane.b32.xlu1 %v6171_v12, %s7646_s29  ;;  %v14442_v12 = vmov 0.0   ;;  %14445 = vst [vmem:[#allocation50_spill] sm:$0xff] %v9006_v36  ;;  %v6216_v25 = vpack.i.bf16 %v9006_v36, %v8637_v32  ;;  %v6291_v29 = vpack.i.bf16 %v8717_v40, %v7463_v14 }
 0x136   : > { %6177 = vrot.lane.b32.xlu0 %v6176_v50, %s7646_s29  ;;  %v6191_v50 = vpack.i.bf16 %v8592_v27, %v14439_v38  ;;  %3033 = vst.msk [vmem:[#allocation3 + $0x7] sm:$0xff] %vm2094_vm5, %v14442_v12  ;;  %3034 = vst.msk [vmem:[#allocation3 + $0xf] sm:$0xff] %vm2094_vm5, %v14442_v12  ;;  %v14444_v27 = vld [vmem:[#allocation119_spill] sm:$0xff] }
 0x137   : > { %v8979_v3 = vpop.permute.xlu1 %5892  ;;  %3038 = vst.msk [vmem:[#allocation3 + $0x227] sm:$0xff] %vm2094_vm5, %v14442_v12  ;;  %3039 = vst.msk [vmem:[#allocation3 + $0x22f] sm:$0xff] %vm2094_vm5, %v14442_v12 }
 0x138   : > { %v8977_v23 = vpop.permute.xlu0 %5897  ;;  %14438 = vst [vmem:[#allocation51_spill] sm:$0xff] %v8979_v3 }
 0x139   : > { %14437 = vst [vmem:[#allocation40_spill] sm:$0xff] %v8977_v23  ;;  %6182 = vrot.lane.b32.xlu1 %v6181_v47, %s7646_s29  ;;  %v1260_v47 = vrot.slane %v476_v55, 2 }
 0x13a   : > { %6187 = vrot.lane.b32.xlu0 %v6186_v35, %s7646_s29  ;;  %v6201_v35 = vpack.i.bf16 %v14444_v27, %v14443_v16 }
 0x13b   : > { %v8989_v8 = vpop.permute.xlu1 %5902 }
 0x13c   : > { %v8987_v56 = vpop.permute.xlu0 %5907  ;;  %14441 = vst [vmem:[#allocation55_spill] sm:$0xff] %v8989_v8 }
 0x13d   : > { %14440 = vst [vmem:[#allocation49_spill] sm:$0xff] %v8987_v56  ;;  %6192 = vrot.lane.b32.xlu1 %v6191_v50, %s7646_s29  ;;  %v9024_v50 = vsel %vm722_vm4, %v1258_v52, %v1260_v47 }
 0x13e   : > { %6197 = vrot.lane.b32.xlu0 %v6196_v19, %s7646_s29  ;;  %v9021_v19 = vsel %vm722_vm4, %v9006_v36, %v1258_v52  ;;  %14449 = vst [vmem:[#allocation52_spill] sm:$0xff] %v9024_v50  ;;  %v7446_v52 = vld [vmem:[#allocation2 + $0x70] sm:$0xff] }
 0x13f   : > { %v9011_v8 = vpop.permute.xlu1 %5912  ;;  %14448 = vst [vmem:[#allocation56_spill] sm:$0xff] %v9021_v19  ;;  %v6221_v20 = vpack.i.bf16 %v9024_v50, %v9021_v19 }
 0x140   : > { %v9009_v38 = vpop.permute.xlu0 %5917  ;;  %14447 = vst [vmem:[#allocation61_spill] sm:$0xff] %v9011_v8 }
 0x141   : > { %14446 = vst [vmem:[#allocation44_spill] sm:$0xff] %v9009_v38  ;;  %6202 = vrot.lane.b32.xlu1 %v6201_v35, %s7646_s29  ;;  %v7445_v35 = vld [vmem:[#allocation2 + $0x68] sm:$0xff] }
 0x142   : > { %6207 = vrot.lane.b32.xlu0 %v6206_v62, %s7646_s29  ;;  %v7444_v62 = vld [vmem:[#allocation2 + $0x48] sm:$0xff]  ;;  %v6236_v47 = vpack.i.bf16 %v7446_v52, %v7445_v35 }
 0x143   : > { %v9028_v16 = vpop.permute.xlu1 %5922  ;;  %v6226_v32 = vpack.i.bf16 %v7444_v62, %v8648_v5  ;;  %v7448_v62 = vld [vmem:[#allocation2 + $0x90] sm:$0xff] }
 0x144   : > { %v9026_v55 = vpop.permute.xlu0 %5927  ;;  %14450 = vst [vmem:[#allocation57_spill] sm:$0xff] %v9028_v16  ;;  %v6246_v16 = vpack.i.bf16 %v8667_v42, %v7448_v62  ;;  %v7454_v62 = vld [vmem:[#allocation2 + $0xf0] sm:$0xff] }
 0x145   : > { %6212 = vrot.lane.b32.xlu1 %v6211_v15, %s7646_s29 }
 0x146   : > { %6217 = vrot.lane.b32.xlu0 %v6216_v25, %s7646_s29  ;;  %v7447_v25 = vld [vmem:[#allocation2 + $0x50] sm:$0xff] }
 0x147   : > { %v9037_v27 = vpop.permute.xlu1 %5932  ;;  %v6231_v15 = vpack.i.bf16 %v8659_v31, %v7447_v25  ;;  %v7450_v31 = vld [vmem:[#allocation2 + $0xc8] sm:$0xff]  ;;  %v7452_v25 = vld [vmem:[#allocation2 + $0xb0] sm:$0xff] }
 0x148   : > { %v9035_v9 = vpop.permute.xlu0 %5937  ;;  %v6256_v52 = vpack.i.bf16 %v7450_v31, %v8675_v46  ;;  %v9070_v31 = vld [vmem:[#allocation2 + $0x110] sm:$0xff] }
 0x149   : > { %6222 = vrot.lane.b32.xlu1 %v6221_v20, %s7646_s29  ;;  %s7652_s29 = smov 80  }
 0x14a   : > { %6227 = vrot.lane.b32.xlu0 %v6226_v32, %s7647_s19  ;;  %v7449_v32 = vld [vmem:[#allocation2 + $0x88] sm:$0xff] }
 0x14b   : > { %v9044_v5 = vpop.permute.xlu1 %5942  ;;  %v6241_v20 = vpack.i.bf16 %v7449_v32, %v8657_v21  ;;  %v7453_v21 = vld [vmem:[#allocation2 + $0xe8] sm:$0xff] }
 0x14c   : > { %v9042_v12 = vpop.permute.xlu0 %5947  ;;  %v6266_v32 = vpack.i.bf16 %v7454_v62, %v7453_v21  ;;  %v9084_v21 = vld [vmem:[#allocation2 + $0x148] sm:$0xff] }
 0x14d   : > { %6232 = vrot.lane.b32.xlu1 %v6231_v15, %s7647_s19  ;;  %v6286_v62 = vpack.i.bf16 %v9084_v21, %v8703_v7 }
 0x14e   : > { %6237 = vrot.lane.b32.xlu0 %v6236_v47, %s7647_s19  ;;  %v7451_v47 = vld [vmem:[#allocation2 + $0xa8] sm:$0xff] }
 0x14f   : > { %v9052_v35 = vpop.permute.xlu1 %5952  ;;  %v6251_v15 = vpack.i.bf16 %v7452_v25, %v7451_v47  ;;  %v9074_v47 = vld [vmem:[#allocation2 + $0x108] sm:$0xff] }
 0x150   : > { %v9050_v8 = vpop.permute.xlu0 %5957  ;;  %v6271_v25 = vpack.i.bf16 %v9074_v47, %v8683_v26 }
 0x151   : > { %6242 = vrot.lane.b32.xlu1 %v6241_v20, %s7647_s19 }
 0x152   : > { %6247 = vrot.lane.b32.xlu0 %v6246_v16, %s7647_s19  ;;  %v7455_v16 = vld [vmem:[#allocation2 + $0xd0] sm:$0xff] }
 0x153   : > { %v9059_v42 = vpop.permute.xlu1 %5962  ;;  %v6261_v20 = vpack.i.bf16 %v8685_v4, %v7455_v16  ;;  %v7460_v16 = vld [vmem:[#allocation2 + $0x130] sm:$0xff] }
 0x154   : > { %v9057_v38 = vpop.permute.xlu0 %5967  ;;  %14451 = vst [vmem:[#allocation62_spill] sm:$0xff] %v9059_v42  ;;  %v13891_v42 = vmov 0  }
 0x155   : > { %6252 = vrot.lane.b32.xlu1 %v6251_v15, %s7647_s19  ;;  %2762 = vmatprep.subr.bf16.mxu0 %v13891_v42 }
 0x156   : > { %6257 = vrot.lane.b32.xlu0 %v6256_v52, %s7647_s19  ;;  %v6276_v52 = vpack.i.bf16 %v8695_v58, %v9070_v31  ;;  %5176 = vmatprep.subr.bf16.mxu1 %v13891_v42 }
 0x157   : > { %v9066_v46 = vpop.permute.xlu1 %5972 }
 0x158   : > { %v9064_v56 = vpop.permute.xlu0 %5977  ;;  %14453 = vst [vmem:[#allocation66_spill] sm:$0xff] %v9066_v46  ;;  %v5700_v46 = vunpack.i.h.bf16 %v8773_v41 }
 0x159   : > { %14452 = vst [vmem:[#allocation60_spill] sm:$0xff] %v9064_v56  ;;  %6262 = vrot.lane.b32.xlu1 %v6261_v20, %s7647_s19  ;;  %v9162_v56 = vld [vmem:[#allocation2 + $0x228] sm:$0xff] }
 0x15a   : > { %6267 = vrot.lane.b32.xlu0 %v6266_v32, %s7647_s19  ;;  %v9088_v32 = vld [vmem:[#allocation2 + $0x128] sm:$0xff]  ;;  %14466 = vst [vmem:[#allocation77_spill] sm:$0xff] %v9162_v56 }
 0x15b   : > { %v9080_v4 = vpop.permute.xlu1 %5982  ;;  %v6281_v20 = vpack.i.bf16 %v7460_v16, %v9088_v32 }
 0x15c   : > { %v9078_v15 = vpop.permute.xlu0 %5987  ;;  %14455 = vst [vmem:[#allocation63_spill] sm:$0xff] %v9080_v4 }
 0x15d   : > { %14454 = vst [vmem:[#allocation67_spill] sm:$0xff] %v9078_v15  ;;  %6272 = vrot.lane.b32.xlu1 %v6271_v25, %s7647_s19  ;;  %v9099_v25 = vld [vmem:[#allocation2 + $0x170] sm:$0xff] }
 0x15e   : > { %6277 = vrot.lane.b32.xlu0 %v6276_v52, %s7647_s19  ;;  %v9097_v52 = vld [vmem:[#allocation2 + $0x168] sm:$0xff] }
 0x15f   : > { %v9093_v23 = vpop.permute.xlu1 %5992  ;;  %v6296_v15 = vpack.i.bf16 %v9099_v25, %v9097_v52 }
 0x160   : > { %v9091_v3 = vpop.permute.xlu0 %5997  ;;  %14457 = vst [vmem:[#allocation72_spill] sm:$0xff] %v9093_v23  ;;  %v9114_v23 = vld [vmem:[#allocation2 + $0x188] sm:$0xff] }
 0x161   : > { %14456 = vst [vmem:[#allocation74_spill] sm:$0xff] %v9091_v3  ;;  %6282 = vrot.lane.b32.xlu1 %v6281_v20, %s7647_s19  ;;  %v6301_v3 = vpack.i.bf16 %v9114_v23, %v8715_v22 }
 0x162   : > { %6287 = vrot.lane.b32.xlu0 %v6286_v62, %s7647_s19  ;;  %v9110_v62 = vld [vmem:[#allocation2 + $0x190] sm:$0xff] }
 0x163   : > { %v9106_v33 = vpop.permute.xlu1 %6002  ;;  %v6306_v20 = vpack.i.bf16 %v8729_v43, %v9110_v62 }
 0x164   : > { %v9104_v18 = vpop.permute.xlu0 %6007  ;;  %14459 = vst [vmem:[#allocation70_spill] sm:$0xff] %v9106_v33  ;;  %v9128_v33 = vld [vmem:[#allocation2 + $0x1b0] sm:$0xff] }
 0x165   : > { %14458 = vst [vmem:[#allocation68_spill] sm:$0xff] %v9104_v18  ;;  %6292 = vrot.lane.b32.xlu1 %v6291_v29, %s7647_s19  ;;  %v6316_v29 = vpack.i.bf16 %v8244_v11, %v8741_v24  ;;  %v6321_v11 = vpack.i.bf16 %v8753_v63, %v8242_v10  ;;  %v7421_v10 = vld [vmem:[%s13705_s1] sm:$0xff]  }
 0x166   : > { %6297 = vrot.lane.b32.xlu0 %v6296_v15, %s7647_s19  ;;  %v9126_v15 = vld [vmem:[#allocation2 + $0x1a8] sm:$0xff]  ;;  %2763 = vmatpush1.bf16.msra.mxu0 %v7421_v10  ;;  %v5734_v10 = vunpack.i.l.bf16 %v8818_v45 }
 0x167   : > { %v9120_v36 = vpop.permute.xlu1 %6012  ;;  %v6311_v18 = vpack.i.bf16 %v9128_v33, %v9126_v15  ;;  %2764 = vmatprep.subr.bf16.mxu0 %v13891_v42 }
 0x168   : > { %v9118_v19 = vpop.permute.xlu0 %6017  ;;  %14461 = vst [vmem:[#allocation73_spill] sm:$0xff] %v9120_v36  ;;  %v5690_v36 = vunpack.i.h.bf16 %v8765_v37 }
 0x169   : > { %14460 = vst [vmem:[#allocation80_spill] sm:$0xff] %v9118_v19  ;;  %6302 = vrot.lane.b32.xlu1 %v6301_v3, %s7647_s19  ;;  %v6326_v3 = vpack.i.bf16 %v8271_v17, %v8258_v28  ;;  %v5689_v19 = vunpack.i.l.bf16 %v8765_v37  ;;  %v5694_v17 = vunpack.i.l.bf16 %v8775_v59  ;;  %v5710_v28 = vunpack.i.h.bf16 %v8786_v30 }
 0x16a   : > { %6307 = vrot.lane.b32.xlu0 %v6306_v20, %s7647_s19  ;;  %v477_v20 = vld [vmem:[#allocation2 + $0x220] sm:$0xff]  ;;  %v5709_v37 = vunpack.i.l.bf16 %v8786_v30  ;;  %v9169_v30 = vsel %vm330_vm0, %v9074_v47, %v5690_v36 }
 0x16b   : > { %v9134_v4 = vpop.permute.xlu1 %6022 }
 0x16c   : > { %v9132_v50 = vpop.permute.xlu0 %6027  ;;  %14463 = vst [vmem:[#allocation78_spill] sm:$0xff] %v9134_v4  ;;  %v9204_v47 = vsel %vm330_vm0, %v7463_v14, %v5709_v37 }
 0x16d   : > { %14462 = vst [vmem:[#allocation71_spill] sm:$0xff] %v9132_v50  ;;  %6312 = vrot.lane.b32.xlu1 %v6311_v18, %s7647_s19  ;;  %v5695_v18 = vunpack.i.h.bf16 %v8775_v59  ;;  %v9164_v59 = vld [vmem:[#allocation2 + $0x230] sm:$0xff] }
 0x16e   : > { %6317 = vrot.lane.b32.xlu0 %v6316_v29, %s7647_s19  ;;  %v5699_v29 = vunpack.i.l.bf16 %v8773_v41  ;;  %v5705_v41 = vunpack.i.h.bf16 %v8788_v0  ;;  %14467 = vst [vmem:[#allocation85_spill] sm:$0xff] %v9164_v59 }
 0x16f   : > { %v9147_v4 = vpop.permute.xlu1 %6032  ;;  %v9189_v36 = vsel %vm330_vm0, %v8695_v58, %v5695_v18  ;;  %v5720_v58 = vunpack.i.h.bf16 %v8796_v1  ;;  %v5725_v18 = vunpack.i.h.bf16 %v8808_v49 }
 0x170   : > { %v9145_v50 = vpop.permute.xlu0 %6037  ;;  %14465 = vst [vmem:[#allocation83_spill] sm:$0xff] %v9147_v4  ;;  %v6336_v4 = vpack.i.bf16 %v477_v20, %v8438_v54  ;;  %v9176_v54 = vsel %vm330_vm0, %v7460_v16, %v5700_v46  ;;  %v9185_v20 = vsel %vm330_vm0, %v9088_v32, %v5699_v29  ;;  %v7422_v46 = vld [vmem:[%s13705_s1 + $0x8] sm:$0xff]   ;;  %v9216_v32 = vsel %vm330_vm0, %v9084_v21, %v5705_v41 }
 0x171   : > { %14464 = vst [vmem:[#allocation79_spill] sm:$0xff] %v9145_v50  ;;  %6322 = vrot.lane.b32.xlu1 %v6321_v11, %s7647_s19  ;;  %v5704_v50 = vunpack.i.l.bf16 %v8788_v0  ;;  %v5719_v16 = vunpack.i.l.bf16 %v8796_v1  ;;  %v5714_v29 = vunpack.i.l.bf16 %v8798_v39  ;;  %2765 = vmatpush1.bf16.msra.mxu0 %v7422_v46  ;;  %v5739_v1 = vunpack.i.l.bf16 %v8816_v48 }
 0x172   : > { %6327 = vrot.lane.b32.xlu0 %v6326_v3, %s7647_s19  ;;  %v9173_v3 = vsel %vm330_vm0, %v8683_v26, %v5689_v19  ;;  %v9193_v26 = vsel %vm330_vm0, %v9070_v31, %v5694_v17  ;;  %v9197_v19 = vsel %vm330_vm0, %v8717_v40, %v5710_v28  ;;  %v14469_v31 = vpack.i.bf16 %v8355_v51, %v8353_v60 }
 0x173   : > { %v9180_v0 = vpop.permute.xlu1 %6042  ;;  %v6341_v40 = vpack.i.bf16 %v9164_v59, %v9162_v56  ;;  %v9220_v14 = vsel %vm330_vm0, %v8703_v7, %v5704_v50  ;;  %v5730_v51 = vunpack.i.h.bf16 %v8806_v61  ;;  %v5729_v60 = vunpack.i.l.bf16 %v8806_v61  ;;  %2766 = vmatprep.subr.bf16.mxu0 %v13891_v42  ;;  %v7423_v61 = vld [vmem:[%s13705_s1 + $0x10] sm:$0xff]  }
 0x174   : > { %v9178_v11 = vpop.permute.xlu0 %6047  ;;  %14468 = vst [vmem:[#allocation92_spill] sm:$0xff] %v9180_v0  ;;  %v5724_v7 = vunpack.i.l.bf16 %v8808_v49  ;;  %v5740_v50 = vunpack.i.h.bf16 %v8816_v48  ;;  %v5735_v28 = vunpack.i.h.bf16 %v8818_v45  ;;  %v14470_v49 = vld [vmem:[#allocation17_spill] sm:$0xff]  ;;  %v9250_v48 = vsel %vm330_vm0, %v8715_v22, %v5719_v16  ;;  %v14485_v0 = vld [vmem:[#allocation27_spill] sm:$0xff] }
 0x175   : > { %6332 = vrot.lane.b32.xlu1 %v14469_v31, %s7647_s19  ;;  %v5745_v41 = vunpack.i.h.bf16 %v8828_v44  ;;  %v9260_v45 = vsel %vm330_vm0, %v9097_v52, %v5714_v29  ;;  %v9264_v46 = vsel %vm330_vm0, %v9128_v33, %v5730_v51  ;;  %v9268_v22 = vsel %vm330_vm0, %v9126_v15, %v5729_v60  ;;  %2767 = vmatpush1.bf16.msra.mxu0 %v7423_v61  ;;  %v7468_v52 = vld [vmem:[#allocation2 + $0x1d0] sm:$0xff]  ;;  %v7424_v16 = vld [vmem:[%s13705_s1 + $0x18] sm:$0xff]   ;;  %v7471_v60 = vld [vmem:[#allocation2 + $0x1e8] sm:$0xff] }
 0x176   : > { %6337 = vrot.lane.b32.xlu0 %v6336_v4, %s7647_s19  ;;  %v5715_v4 = vunpack.i.h.bf16 %v8798_v39  ;;  %v9242_v39 = vsel %vm330_vm0, %v9114_v23, %v5720_v58  ;;  %v5744_v23 = vunpack.i.l.bf16 %v8828_v44  ;;  %v9280_v44 = vsel %vm330_vm0, %v9110_v62, %v5724_v7  ;;  %2768 = vmatprep.subr.bf16.mxu0 %v13891_v42  ;;  %v7470_v29 = vld [vmem:[#allocation2 + $0x1f0] sm:$0xff] }
 0x177   : > { %v9230_v21 = vpop.permute.xlu1 %6052  ;;  %v9284_v33 = vsel %vm330_vm0, %v8753_v63, %v5740_v50  ;;  %v9287_v15 = vsel %vm330_vm0, %v7468_v52, %v5739_v1  ;;  %v9298_v62 = vsel %vm330_vm0, %v8741_v24, %v5734_v10  ;;  %v14471_v63 = vld [vmem:[#allocation23_spill] sm:$0xff]  ;;  %v9305_v51 = vsel %vm330_vm0, %v7470_v29, %v5745_v41  ;;  %v7425_v10 = vld [vmem:[%s13705_s1 + $0x20] sm:$0xff]  }
 0x178   : > { %v9228_v17 = vpop.permute.xlu0 %6057  ;;  %v9254_v37 = vsel %vm330_vm0, %v9099_v25, %v5715_v4  ;;  %v9272_v25 = vsel %vm330_vm0, %v8729_v43, %v5725_v18  ;;  %v14472_v4 = vld [vmem:[#allocation13_spill] sm:$0xff]  ;;  %v9308_v18 = vsel %vm330_vm0, %v7471_v60, %v5744_v23  ;;  %v5809_v7 = vunpack.i.l.bf16 %v8886_v2  ;;  %v14474_v23 = vld [vmem:[#allocation16_spill] sm:$0xff] }
 0x179   : > { %6342 = vrot.lane.b32.xlu1 %v6341_v40, %s7647_s19  ;;  %v7469_v40 = vld [vmem:[#allocation2 + $0x1c8] sm:$0xff]  ;;  %v5810_v24 = vunpack.i.h.bf16 %v8886_v2  ;;  %2769 = vmatpush1.bf16.msra.mxu0 %v7424_v16  ;;  %v5819_v61 = vunpack.i.l.bf16 %v8894_v57  ;;  %v5814_v41 = vunpack.i.l.bf16 %v8896_v34  ;;  %v14473_v2 = vld [vmem:[#allocation12_spill] sm:$0xff]  ;;  %v5830_v16 = vunpack.i.h.bf16 %v8907_v13 }
 0x17a   : > { %6347 = vrot.lane.b32.xlu0 %v14470_v49, %s7649_s12  ;;  %v9290_v43 = vsel %vm330_vm0, %v7469_v40, %v5735_v28  ;;  %v5820_v28 = vunpack.i.h.bf16 %v8894_v57  ;;  %2770 = vmatprep.subr.bf16.mxu0 %v13891_v42  ;;  %v5815_v49 = vunpack.i.h.bf16 %v8896_v34  ;;  %v9330_v52 = vsel %vm1898_vm6, %v9173_v3, %v5809_v7 }
 0x17b   : > { %v9276_v31 = vpop.permute.xlu1 %6062  ;;  %v5829_v57 = vunpack.i.l.bf16 %v8907_v13  ;;  %v9335_v40 = vsel %vm1898_vm6, %v9169_v30, %v5810_v24  ;;  %v5825_v34 = vunpack.i.h.bf16 %v8909_v53  ;;  %v9346_v3 = vsel %vm1898_vm6, %v9185_v20, %v5819_v61  ;;  %v7426_v13 = vld [vmem:[%s13705_s1 + $0x28] sm:$0xff]   ;;  %v14475_v20 = vld [vmem:[#allocation32_spill] sm:$0xff]  ;;  %v14476_v24 = vld [vmem:[#allocation30_spill] sm:$0xff] }
 0x17c   : > { %v9274_v58 = vpop.permute.xlu0 %6067  ;;  %v9350_v60 = vsel %vm1898_vm6, %v9176_v54, %v5820_v28  ;;  %v9362_v30 = vsel %vm1898_vm6, %v9189_v36, %v5815_v49  ;;  %v5839_v7 = vunpack.i.l.bf16 %v14475_v20  ;;  %v14477_v54 = vld [vmem:[#allocation22_spill] sm:$0xff]  ;;  %v5840_v61 = vunpack.i.h.bf16 %v14475_v20  ;;  %v14482_v20 = vld [vmem:[#allocation36_spill] sm:$0xff] }
 0x17d   : > { %6352 = vrot.lane.b32.xlu1 %v14472_v4, %s7649_s12  ;;  %2771 = vmatpush1.bf16.msra.mxu0 %v7425_v10  ;;  %v9371_v28 = vsel %vm1898_vm6, %v9204_v47, %v5829_v57  ;;  %v9377_v36 = vsel %vm1898_vm6, %v9197_v19, %v5830_v16  ;;  %v1553_v19 = vrot.slane %v9162_v56, 1  ;;  %v5850_v16 = vunpack.i.h.bf16 %v8927_v6 }
 0x17e   : > { %6357 = vrot.lane.b32.xlu0 %v14471_v63, %s7649_s12  ;;  %v5824_v63 = vunpack.i.l.bf16 %v8909_v53  ;;  %2772 = vmatprep.subr.bf16.mxu0 %v13891_v42  ;;  %v9358_v53 = vsel %vm1898_vm6, %v9193_v26, %v5814_v41  ;;  %v14478_v26 = vld [vmem:[#allocation33_spill] sm:$0xff]  ;;  %v9385_v41 = vsel %vm1898_vm6, %v9216_v32, %v5825_v34  ;;  %v9400_v32 = vsel %vm1898_vm6, %v9250_v48, %v5839_v7 }
 0x17f   : > { %v9314_v1 = vpop.permute.xlu1 %6072  ;;  %v5834_v10 = vunpack.i.l.bf16 %v14478_v26  ;;  %v5835_v57 = vunpack.i.h.bf16 %v14478_v26  ;;  %v5849_v34 = vunpack.i.l.bf16 %v8927_v6  ;;  %v14484_v26 = vld [vmem:[#allocation31_spill] sm:$0xff] }
 0x180   : > { %v9312_v50 = vpop.permute.xlu0 %6077  ;;  %v9381_v49 = vsel %vm1898_vm6, %v9220_v14, %v5824_v63  ;;  %v7427_v14 = vld [vmem:[%s13705_s1 + $0x30] sm:$0xff]   ;;  %v14481_v63 = vld [vmem:[#allocation37_spill] sm:$0xff]  ;;  %v5859_v6 = vunpack.i.l.bf16 %v14484_v26 }
 0x181   : > { %6362 = vrot.lane.b32.xlu1 %v14474_v23, %s7649_s12  ;;  %v1554_v23 = vrot.slane %v9164_v59, 1  ;;  %2773 = vmatpush1.bf16.msra.mxu0 %v7426_v13  ;;  %v5844_v13 = vunpack.i.l.bf16 %v14481_v63  ;;  %v9415_v48 = vsel %vm1898_vm6, %v9260_v45, %v5834_v10  ;;  %v5845_v7 = vunpack.i.h.bf16 %v14481_v63 }
 0x182   : > { %6367 = vrot.lane.b32.xlu0 %v14473_v2, %s7649_s12  ;;  %2774 = vmatprep.subr.bf16.mxu0 %v13891_v42  ;;  %v5860_v42 = vunpack.i.h.bf16 %v14484_v26  ;;  %v5855_v59 = vunpack.i.h.bf16 %v14485_v0  ;;  %v9429_v45 = vsel %vm1898_vm6, %v9254_v37, %v5835_v57  ;;  %v14487_v26 = vld [vmem:[#allocation93_spill] sm:$0xff]  ;;  %v9446_v37 = vsel %vm1898_vm6, %v9264_v46, %v5850_v16 }
 0x183   : > { %v9342_v29 = vpop.permute.xlu1 %6082  ;;  %v9450_v57 = vsel %vm1898_vm6, %v9280_v44, %v5844_v13 }
 0x184   : > { %v9340_v4 = vpop.permute.xlu0 %6087  ;;  %v9468_v44 = vsel %vm1898_vm6, %v9284_v33, %v5860_v42  ;;  %v5930_v33 = vunpack.i.h.bf16 %v9026_v55 }
 0x185   : > { %6372 = vrot.lane.b32.xlu1 %v14477_v54, %s7649_s12  ;;  %v9411_v54 = vsel %vm1898_vm6, %v9242_v39, %v5840_v61  ;;  %v1555_v39 = vsel %vm513_vm3, %v1553_v19, %v1554_v23  ;;  %2775 = vmatpush1.bf16.msra.mxu0 %v7427_v14  ;;  %v14486_v61 = vld [vmem:[#allocation38_spill] sm:$0xff]  ;;  %v9442_v14 = vsel %vm1898_vm6, %v9268_v22, %v5849_v34 }
 0x186   : > { %6377 = vrot.lane.b32.xlu0 %v14476_v24, %s7649_s12  ;;  %v14483_v24 = vld [vmem:[#allocation29_spill] sm:$0xff]  ;;  %v5865_v10 = vunpack.i.h.bf16 %v14486_v61  ;;  %v5864_v63 = vunpack.i.l.bf16 %v14486_v61  ;;  %v14490_v61 = vld [vmem:[#allocation35_spill] sm:$0xff]  ;;  %v9462_v22 = vsel %vm1898_vm6, %v9287_v15, %v5859_v6  ;;  %v9464_v46 = vpack.i.bf16 %v1554_v23, %v1555_v39 }
 0x187   : > { %v9389_v47 = vpop.permute.xlu1 %6092  ;;  %v9476_v34 = vsel %vm1898_vm6, %v9290_v43, %v5855_v59  ;;  %v7429_v59 = vld [vmem:[%s13705_s1 + $0x40] sm:$0xff]   ;;  %v5929_v43 = vunpack.i.l.bf16 %v9026_v55  ;;  %v5939_v23 = vunpack.i.l.bf16 %v9035_v9  ;;  %v5935_v39 = vunpack.i.h.bf16 %v9037_v27 }
 0x188   : > { %v9387_v2 = vpop.permute.xlu0 %6097  ;;  %14480 = vst [vmem:[#allocation84_spill] sm:$0xff] %v9389_v47  ;;  %v9434_v47 = vpack.i.bf16 %v1553_v19, %v14487_v26  ;;  %v14489_v19 = vld [vmem:[#allocation42_spill] sm:$0xff]  ;;  %v9458_v26 = vsel %vm1898_vm6, %v9272_v25, %v5845_v7  ;;  %v9484_v15 = vsel %vm1898_vm6, %v9308_v18, %v5864_v63  ;;  %v9488_v42 = vsel %vm1898_vm6, %v9305_v51, %v5865_v10  ;;  %v14492_v18 = vld [vmem:[#allocation41_spill] sm:$0xff]  ;;  %v7430_v10 = vld [vmem:[%s13705_s1 + $0x48] sm:$0xff]  }
 0x189   : > { %14479 = vst [vmem:[#allocation91_spill] sm:$0xff] %v9387_v2  ;;  %6382 = vrot.lane.b32.xlu1 %v14483_v24, %s7649_s12  ;;  %v14488_v2 = vmov 0   ;;  %v5940_v51 = vunpack.i.h.bf16 %v9035_v9  ;;  %v5934_v7 = vunpack.i.l.bf16 %v9037_v27  ;;  %v5949_v55 = vunpack.i.l.bf16 %v9042_v12 }
 0x18a   : > { %6387 = vrot.lane.b32.xlu0 %v14482_v20, %s7649_s12  ;;  %v5854_v20 = vunpack.i.l.bf16 %v14485_v0  ;;  %2776 = vmatprep.subr.bf16.mxu0 %v14488_v2  ;;  %v7428_v0 = vld [vmem:[%s13705_s1 + $0x38] sm:$0xff]   ;;  %v9515_v9 = vsel %vm1947_vm7, %v9330_v52, %v5929_v43  ;;  %v9519_v63 = vsel %vm1947_vm7, %v9335_v40, %v5930_v33  ;;  %v5944_v27 = vunpack.i.l.bf16 %v9044_v5 }
 0x18b   : > { %v9424_v24 = vpop.permute.xlu1 %6102  ;;  %2777 = vmatpush1.bf16.msra.mxu0 %v7428_v0  ;;  %v5950_v0 = vunpack.i.h.bf16 %v9042_v12  ;;  %v5945_v52 = vunpack.i.h.bf16 %v9044_v5  ;;  %v5960_v43 = vunpack.i.h.bf16 %v9050_v8  ;;  %v5959_v40 = vunpack.i.l.bf16 %v9050_v8 }
 0x18c   : > { %v9422_v56 = vpop.permute.xlu0 %6107  ;;  %v9472_v16 = vsel %vm1898_vm6, %v9298_v62, %v5854_v20  ;;  %2778 = vmatprep.subr.bf16.mxu0 %v14488_v2  ;;  %v14491_v62 = vld [vmem:[#allocation48_spill] sm:$0xff]  ;;  %v9536_v12 = vsel %vm1947_vm7, %v9350_v60, %v5940_v51  ;;  %v9540_v33 = vsel %vm1947_vm7, %v9358_v53, %v5934_v7  ;;  %v9550_v8 = vsel %vm1947_vm7, %v9362_v30, %v5935_v39 }
 0x18d   : > { %6392 = vrot.lane.b32.xlu1 %v14490_v61, %s7649_s12  ;;  %v14494_v61 = vld [vmem:[#allocation47_spill] sm:$0xff]  ;;  %v9554_v5 = vsel %vm1947_vm7, %v9371_v28, %v5949_v55  ;;  %v5970_v60 = vunpack.i.h.bf16 %v9057_v38  ;;  %v5969_v53 = vunpack.i.l.bf16 %v9057_v38  ;;  %v9564_v51 = vsel %vm1947_vm7, %v9377_v36, %v5950_v0  ;;  %v14495_v28 = vld [vmem:[#allocation62_spill] sm:$0xff]  ;;  %v14497_v55 = vld [vmem:[#allocation53_spill] sm:$0xff] }
 0x18e   : > { %6397 = vrot.lane.b32.xlu0 %v14489_v19, %s7649_s12  ;;  %v14493_v19 = vld [vmem:[#allocation54_spill] sm:$0xff]  ;;  %v9568_v30 = vsel %vm1947_vm7, %v9381_v49, %v5944_v27  ;;  %v5965_v7 = vunpack.i.h.bf16 %v14495_v28  ;;  %v5964_v39 = vunpack.i.l.bf16 %v14495_v28  ;;  %v14496_v38 = vld [vmem:[#allocation59_spill] sm:$0xff]  ;;  %v9582_v36 = vsel %vm1947_vm7, %v9400_v32, %v5959_v40  ;;  %v14498_v0 = vld [vmem:[#allocation60_spill] sm:$0xff] }
 0x18f   : > { %v9480_v13 = vpop.permute.xlu1 %6112  ;;  %2779 = vmatpush1.bf16.msra.mxu0 %v7429_v59  ;;  %v9529_v59 = vsel %vm1947_vm7, %v9346_v3, %v5939_v23  ;;  %v9586_v49 = vsel %vm1947_vm7, %v9411_v54, %v5960_v43  ;;  %v5979_v27 = vunpack.i.l.bf16 %v14498_v0  ;;  %v9605_v54 = vsel %vm1947_vm7, %v9442_v14, %v5969_v53  ;;  %v14502_v43 = vld [vmem:[#allocation63_spill] sm:$0xff]  ;;  %v14503_v53 = vld [vmem:[#allocation65_spill] sm:$0xff] }
 0x190   : > { %v9478_v25 = vpop.permute.xlu0 %6117  ;;  %2780 = vmatprep.subr.bf16.mxu0 %v14488_v2  ;;  %v9623_v14 = vsel %vm1947_vm7, %v9458_v26, %v5965_v7  ;;  %v6060_v26 = vunpack.i.h.bf16 %v9228_v17  ;;  %v6059_v7 = vunpack.i.l.bf16 %v9228_v17 }
 0x191   : > { %6402 = vrot.lane.b32.xlu1 %v14492_v18, %s7649_s12  ;;  %v5954_v18 = vunpack.i.l.bf16 %v9052_v35 }
 0x192   : > { %6407 = vrot.lane.b32.xlu0 %v14491_v62, %s7649_s12  ;;  %v5955_v62 = vunpack.i.h.bf16 %v9052_v35  ;;  %v7431_v35 = vld [vmem:[%s13705_s1 + $0x50] sm:$0xff]  }
 0x193   : > { %v9505_v20 = vpop.permute.xlu1 %6122  ;;  %2781 = vmatpush1.bf16.msra.mxu0 %v7430_v10  ;;  %v9578_v10 = vsel %vm1947_vm7, %v9385_v41, %v5945_v52  ;;  %v5980_v41 = vunpack.i.h.bf16 %v14498_v0  ;;  %v14499_v52 = vld [vmem:[#allocation66_spill] sm:$0xff] }
 0x194   : > { %v9503_v6 = vpop.permute.xlu0 %6127  ;;  %2782 = vmatprep.subr.bf16.mxu0 %v14488_v2  ;;  %v5974_v28 = vunpack.i.l.bf16 %v14499_v52 }
 0x195   : > { %6412 = vrot.lane.b32.xlu1 %v14494_v61, %s7649_s12  ;;  %v9595_v61 = vsel %vm1947_vm7, %v9429_v45, %v5955_v62  ;;  %v5975_v45 = vunpack.i.h.bf16 %v14499_v52  ;;  %v5984_v62 = vunpack.i.l.bf16 %v14502_v43  ;;  %v6055_v52 = vunpack.i.h.bf16 %v9230_v21 }
 0x196   : > { %6417 = vrot.lane.b32.xlu0 %v14493_v19, %s7649_s12  ;;  %v9591_v19 = vsel %vm1947_vm7, %v9415_v48, %v5954_v18  ;;  %v9609_v48 = vsel %vm1947_vm7, %v9446_v37, %v5970_v60  ;;  %v7432_v18 = vld [vmem:[%s13705_s1 + $0x58] sm:$0xff]   ;;  %v5985_v37 = vunpack.i.h.bf16 %v14502_v43  ;;  %v6050_v60 = vunpack.i.h.bf16 %v9178_v11 }
 0x197   : > { %v9546_v23 = vpop.permute.xlu1 %6132  ;;  %2783 = vmatpush1.bf16.msra.mxu0 %v7431_v35  ;;  %v9619_v35 = vsel %vm1947_vm7, %v9450_v57, %v5964_v39  ;;  %v6049_v57 = vunpack.i.l.bf16 %v9178_v11  ;;  %v9640_v39 = vsel %vm1947_vm7, %v9468_v44, %v5980_v41  ;;  %v9644_v0 = vsel %vm1947_vm7, %v9472_v16, %v5974_v28 }
 0x198   : > { %v9544_v3 = vpop.permute.xlu0 %6137  ;;  %2784 = vmatprep.subr.bf16.mxu0 %v14488_v2  ;;  %v6054_v43 = vunpack.i.l.bf16 %v9230_v21  ;;  %v9654_v11 = vsel %vm1947_vm7, %v9476_v34, %v5975_v45  ;;  %v9658_v17 = vsel %vm1947_vm7, %v9484_v15, %v5984_v62  ;;  %v6070_v44 = vunpack.i.h.bf16 %v9274_v58  ;;  %v7433_v21 = vld [vmem:[%s13705_s1 + $0x60] sm:$0xff]   ;;  %v14507_v45 = vld [vmem:[#allocation69_spill] sm:$0xff] }
 0x199   : > { %6422 = vrot.lane.b32.xlu1 %v14497_v55, %s7649_s12  ;;  %v9633_v55 = vsel %vm1947_vm7, %v9462_v22, %v5979_v27  ;;  %v6069_v16 = vunpack.i.l.bf16 %v9274_v58  ;;  %v9668_v41 = vsel %vm1947_vm7, %v9488_v42, %v5985_v37  ;;  %v2022_v34 = vsel %vm1996_vm8, %v9519_v63, %v6050_v60  ;;  %v14508_v58 = vld [vmem:[#allocation64_spill] sm:$0xff] }
 0x19a   : > { %6427 = vrot.lane.b32.xlu0 %v14496_v38, %s7649_s12  ;;  %v14504_v38 = vld [vmem:[#allocation58_spill] sm:$0xff]  ;;  %v6065_v15 = vunpack.i.h.bf16 %v9276_v31  ;;  %v6064_v28 = vunpack.i.l.bf16 %v9276_v31  ;;  %v2021_v62 = vsel %vm1996_vm8, %v9515_v9, %v6049_v57  ;;  %v2026_v42 = vsel %vm1996_vm8, %v9536_v12, %v6060_v26 }
 0x19b   : > { %v9601_v40 = vpop.permute.xlu1 %6142  ;;  %2785 = vmatpush1.bf16.msra.mxu0 %v7432_v18  ;;  %v2025_v18 = vsel %vm1996_vm8, %v9529_v59, %v6059_v7  ;;  %v6080_v63 = vunpack.i.h.bf16 %v9312_v50  ;;  %v2023_v31 = vsel %vm1996_vm8, %v9540_v33, %v6054_v43  ;;  %v2024_v37 = vsel %vm1996_vm8, %v9550_v8, %v6055_v52  ;;  %v7434_v43 = vld [vmem:[%s13705_s1 + $0x68] ss:$0 sps:$4 sm:$0xff]  }
 0x19c   : > { %v9599_v32 = vpop.permute.xlu0 %6147  ;;  %14501 = vst [vmem:[#allocation88_spill] sm:$0xff] %v9601_v40  ;;  %2786 = vmatprep.subr.bf16.mxu0 %v14488_v2  ;;  %v6079_v60 = vunpack.i.l.bf16 %v9312_v50  ;;  %v2030_v59 = vsel %vm1996_vm8, %v9564_v51, %v6070_v44  ;;  %v2029_v12 = vsel %vm1996_vm8, %v9554_v5, %v6069_v16  ;;  %v2027_v50 = vsel %vm1996_vm8, %v9568_v30, %v6064_v28  ;;  %v14511_v5 = vld [vmem:[#allocation100_spill] sm:$0xff]  ;;  %v14512_v51 = vld [vmem:[#allocation95_spill] sm:$0xff] }
 0x19d   : > { %14500 = vst [vmem:[#allocation86_spill] sm:$0xff] %v9599_v32  ;;  %6432 = vrot.lane.b32.xlu1 %v14504_v38, %s7649_s12  ;;  %v2028_v8 = vsel %vm1996_vm8, %v9578_v10, %v6065_v15  ;;  %v6075_v26 = vunpack.i.h.bf16 %v9314_v1  ;;  %v6090_v7 = vunpack.i.h.bf16 %v9340_v4  ;;  %v14513_v52 = vpack.i.bf16 %v14511_v5, %v14512_v51 }
 0x19e   : > { %6437 = vrot.lane.b32.xlu0 %v14503_v53, %s7649_s12  ;;  %v6074_v53 = vunpack.i.l.bf16 %v9314_v1  ;;  %v9719_v30 = vsel %vm1996_vm8, %v9586_v49, %v6080_v63  ;;  %v2033_v10 = vsel %vm1996_vm8, %v9582_v36, %v6079_v60  ;;  %v6089_v49 = vunpack.i.l.bf16 %v9340_v4 }
 0x19f   : > { %v9650_v27 = vpop.permute.xlu1 %6152  ;;  %2787 = vmatpush1.bf16.msra.mxu0 %v7433_v21  ;;  %v6084_v16 = vunpack.i.l.bf16 %v9342_v29  ;;  %v2032_v36 = vsel %vm1996_vm8, %v9595_v61, %v6075_v26  ;;  %v9749_v4 = vsel %vm1996_vm8, %v9609_v48, %v6090_v7  ;;  %v2760_v63 = vsel %vm2758_vm10, %v7434_v43, 0 }
 0x1a0   : > { %v9648_v22 = vpop.permute.xlu0 %6157  ;;  %14506 = vst [vmem:[#allocation99_spill] sm:$0xff] %v9650_v27  ;;  %2788 = vmatprep.subr.bf16.mxu0 %v14488_v2  ;;  %v2031_v44 = vsel %vm1996_vm8, %v9591_v19, %v6074_v53  ;;  %v6085_v19 = vunpack.i.h.bf16 %v9342_v29  ;;  %v14574_v2 = vld [vmem:[#allocation56_spill] sm:$0xff] }
 0x1a1   : > { %14505 = vst [vmem:[#allocation87_spill] sm:$0xff] %v9648_v22  ;;  %6442 = vrot.lane.b32.xlu1 %v14508_v58, %s7649_s12  ;;  %v2035_v53 = vsel %vm1996_vm8, %v9619_v35, %v6084_v16  ;;  %v14520_v35 = vld [vmem:[#allocation84_spill] sm:$0xff]  ;;  %v14605_v22 = vld [vmem:[#allocation25_spill] sm:$0xff] }
 0x1a2   : > { %6447 = vrot.lane.b32.xlu0 %v14507_v45, %s7649_s12  ;;  %v6095_v43 = vunpack.i.h.bf16 %v14520_v35 }
 0x1a3   : > { %v9693_v9 = vpop.permute.xlu1 %6162  ;;  %2789 = vmatpush1.bf16.msra.mxu0 %v2760_v63  ;;  %v14522_v63 = vld [vmem:[#allocation75_spill] sm:$0xff] }
 0x1a4   : > { %v9691_v38 = vpop.permute.xlu0 %6167  ;;  %14510 = vst [vmem:[#allocation103_spill] sm:$0xff] %v9693_v9 }
 0x1a5   : > { %14509 = vst [vmem:[#allocation98_spill] sm:$0xff] %v9691_v38  ;;  %v13919_v33 = vunpack.i.h.bf16 %v9691_v38  ;;  %v13920_v57 = vunpack.i.l.bf16 %v9691_v38  ;;  %6452 = vrot.lane.b32.xlu1 %v14513_v52, %s7649_s12  ;;  %v14600_v38 = vld [vmem:[#allocation11_spill] sm:$0xff] }
 0x1a6   : > { %6457 = vrot.lane.b32.xlu0 %v9434_v47, %s7649_s12 }
 0x1a7   : > { %v9724_v1 = vsel %vm2045_vm9, %v2021_v62, %v13920_v57  ;;  %v9729_v47 = vsel %vm2045_vm9, %v2022_v34, %v13919_v33  ;;  %v9739_v15 = vpop.permute.xlu1 %6172  ;;  %v14516_v62 = vld [vmem:[#allocation76_spill] sm:$0xff]  ;;  %v14571_v33 = vld [vmem:[#allocation122_spill] sm:$0xff] }
 0x1a8   : > { %v9737_v21 = vpop.permute.xlu0 %6177  ;;  %14515 = vst [vmem:[#allocation105_spill] sm:$0xff] %v9739_v15  ;;  %v13906_v45 = vunpack.i.h.bf16 %v9739_v15  ;;  %v13921_v58 = vunpack.i.l.bf16 %v9739_v15  ;;  %v2419_v16 = vrot.slane %v9729_v47, 7  ;;  %v14572_v57 = vld [vmem:[#allocation52_spill] sm:$0xff]  ;;  %v5760_v15 = vunpack.i.h.bf16 %v14600_v38 }
 0x1a9   : > { %14514 = vst [vmem:[#allocation97_spill] sm:$0xff] %v9737_v21  ;;  %v13917_v28 = vunpack.i.h.bf16 %v9737_v21  ;;  %v13918_v34 = vunpack.i.l.bf16 %v9737_v21  ;;  %6462 = vrot.lane.b32.xlu1 %v9464_v46, %s7649_s12  ;;  %v2037_v46 = vsel %vm1996_vm8, %v9605_v54, %v6089_v49  ;;  %v2036_v54 = vsel %vm1996_vm8, %v9623_v14, %v6085_v19  ;;  %v7489_v21 = vld [vmem:[#allocation2 + $0xe0] sm:$0xff] }
 0x1aa   : > { %6467 = vrot.lane.b32.xlu0 %v14516_v62, %s7650_s18  ;;  %v2072_v29 = vsel %vm2045_vm9, %v2023_v31, %v13921_v58  ;;  %v2073_v48 = vsel %vm2045_vm9, %v2024_v37, %v13906_v45  ;;  %v2418_v49 = vrot.slane %v9724_v1, 7  ;;  %v14521_v62 = vld [vmem:[#allocation82_spill] sm:$0xff] }
 0x1ab   : > { %v2074_v60 = vsel %vm2045_vm9, %v2025_v18, %v13918_v34  ;;  %v2075_v61 = vsel %vm2045_vm9, %v2026_v42, %v13917_v28  ;;  %v14517_v18 = vld [vmem:[#allocation91_spill] sm:$0xff]  ;;  %v9777_v5 = vpop.permute.xlu1 %6182  ;;  %v14573_v58 = vld [vmem:[#allocation50_spill] sm:$0xff] }
 0x1ac   : > { %v6100_v26 = vunpack.i.h.bf16 %v14517_v18  ;;  %v6099_v7 = vunpack.i.l.bf16 %v14517_v18  ;;  %v9775_v42 = vpop.permute.xlu0 %6187  ;;  %14519 = vst [vmem:[#allocation110_spill] sm:$0xff] %v9777_v5  ;;  %v13900_v37 = vunpack.i.h.bf16 %v9777_v5  ;;  %v13899_v52 = vunpack.i.l.bf16 %v9777_v5  ;;  %v7484_v5 = vld [vmem:[#allocation2 + $0x40] sm:$0xff] }
 0x1ad   : > { %14518 = vst [vmem:[#allocation111_spill] sm:$0xff] %v9775_v42  ;;  %v13898_v31 = vunpack.i.h.bf16 %v9775_v42  ;;  %v13901_v51 = vunpack.i.l.bf16 %v9775_v42  ;;  %6472 = vrot.lane.b32.xlu1 %v14522_v63, %s7650_s18  ;;  %v2429_v63 = vrot.slane %v2074_v60, 7  ;;  %v14526_v60 = vld [vmem:[#allocation81_spill] sm:$0xff]  ;;  %v7485_v42 = vld [vmem:[#allocation2 + $0xb0] sm:$0xff] }
 0x1ae   : > { %6477 = vrot.lane.b32.xlu0 %v14521_v62, %s7650_s18  ;;  %v2076_v1 = vsel %vm2045_vm9, %v2027_v50, %v13899_v52  ;;  %v9808_v47 = vsel %vm2045_vm9, %v2028_v8, %v13900_v37  ;;  %v2042_v19 = vsel %vm1996_vm8, %v9640_v39, %v6100_v26  ;;  %v6094_v62 = vunpack.i.l.bf16 %v14520_v35 }
 0x1af   : > { %v9795_v18 = vsel %vm2045_vm9, %v2029_v12, %v13901_v51  ;;  %v9800_v14 = vsel %vm2045_vm9, %v2030_v59, %v13898_v31  ;;  %v2041_v12 = vsel %vm1996_vm8, %v9633_v55, %v6099_v7  ;;  %v9817_v31 = vpop.permute.xlu1 %6192  ;;  %v2434_v51 = vrot.slane %v2075_v61, 7  ;;  %v14525_v55 = vld [vmem:[#allocation90_spill] sm:$0xff] }
 0x1b0   : > { %v9815_v59 = vpop.permute.xlu0 %6197  ;;  %14524 = vst [vmem:[#allocation106_spill] sm:$0xff] %v9817_v31  ;;  %v13905_v8 = vunpack.i.h.bf16 %v9817_v31  ;;  %v13904_v37 = vunpack.i.l.bf16 %v9817_v31  ;;  %v2424_v39 = vrot.slane %v2072_v29, 7  ;;  %v2428_v26 = vrot.slane %v2073_v48, 7 }
 0x1b1   : > { %14523 = vst [vmem:[#allocation104_spill] sm:$0xff] %v9815_v59  ;;  %v13903_v50 = vunpack.i.h.bf16 %v9815_v59  ;;  %v13902_v52 = vunpack.i.l.bf16 %v9815_v59  ;;  %6482 = vrot.lane.b32.xlu1 %v14526_v60, %s7650_s18  ;;  %v9828_v7 = vsel %vm2337_vm11, %v2418_v49, %v2419_v16  ;;  %v2039_v49 = vsel %vm1996_vm8, %v9644_v0, %v6094_v62  ;;  %v14530_v62 = vld [vmem:[#allocation96_spill] sm:$0xff] }
 0x1b2   : > { %6487 = vrot.lane.b32.xlu0 %v14525_v55, %s7650_s18  ;;  %14527 = vst [vmem:[#allocation108_spill] sm:$0xff] %v9828_v7  ;;  %v2080_v29 = vsel %vm2045_vm9, %v2031_v44, %v13904_v37  ;;  %v2081_v48 = vsel %vm2045_vm9, %v2032_v36, %v13905_v8  ;;  %v6104_v55 = vunpack.i.l.bf16 %v9424_v24  ;;  %v2438_v60 = vrot.slane %v2076_v1, 7 }
 0x1b3   : > { %v9833_v35 = vsel %vm2045_vm9, %v2033_v10, %v13902_v52  ;;  %v9839_v61 = vsel %vm2045_vm9, %v9719_v30, %v13903_v50  ;;  %v2040_v10 = vsel %vm1996_vm8, %v9654_v11, %v6095_v43  ;;  %v9854_v30 = vpop.permute.xlu1 %6202  ;;  %v2439_v0 = vrot.slane %v9808_v47, 7  ;;  %v14531_v11 = vld [vmem:[#allocation89_spill] sm:$0xff] }
 0x1b4   : > { %v9852_v52 = vpop.permute.xlu0 %6207  ;;  %14529 = vst [vmem:[#allocation114_spill] sm:$0xff] %v9854_v30  ;;  %v13908_v37 = vunpack.i.h.bf16 %v9854_v30  ;;  %v13910_v36 = vunpack.i.l.bf16 %v9854_v30  ;;  %v9866_v43 = vsel %vm2337_vm11, %v2419_v16, %v2424_v39  ;;  %v9869_v1 = vsel %vm2337_vm11, %v2428_v26, %v2429_v63 }
 0x1b5   : > { %14528 = vst [vmem:[#allocation115_spill] sm:$0xff] %v9852_v52  ;;  %v13907_v50 = vunpack.i.h.bf16 %v9852_v52  ;;  %v13909_v44 = vunpack.i.l.bf16 %v9852_v52  ;;  %6492 = vrot.lane.b32.xlu1 %v14531_v11, %s7650_s18  ;;  %14532 = vst [vmem:[#allocation118_spill] sm:$0xff] %v9866_v43  ;;  %v9872_v8 = vsel %vm2337_vm11, %v2429_v63, %v2434_v51  ;;  %v6105_v51 = vunpack.i.h.bf16 %v9424_v24  ;;  %v14537_v24 = vld [vmem:[#allocation102_spill] sm:$0xff]  ;;  %v7474_v52 = vld [vmem:[#allocation2 + $0x90] sm:$0xff] }
 0x1b6   : > { %6497 = vrot.lane.b32.xlu0 %v14530_v62, %s7650_s18  ;;  %14533 = vst [vmem:[#allocation119_spill] sm:$0xff] %v9869_v1  ;;  %14534 = vst [vmem:[#allocation17_spill] sm:$0xff] %v9872_v8  ;;  %v2084_v16 = vsel %vm2045_vm9, %v2035_v53, %v13910_v36  ;;  %v2085_v39 = vsel %vm2045_vm9, %v2036_v54, %v13908_v37  ;;  %v2043_v63 = vsel %vm1996_vm8, %v9658_v17, %v6104_v55  ;;  %v14538_v17 = vld [vmem:[#allocation94_spill] sm:$0xff]  ;;  %v7479_v8 = vld [vmem:[#allocation2 + $0x30] sm:$0xff] }
 0x1b7   : > { %v9877_v45 = vsel %vm2045_vm9, %v2037_v46, %v13909_v44  ;;  %v2087_v47 = vsel %vm2045_vm9, %v9749_v4, %v13907_v50  ;;  %v2444_v46 = vrot.slane %v9795_v18, 7  ;;  %v2449_v26 = vrot.slane %v2080_v29, 7  ;;  %v9895_v11 = vpop.permute.xlu1 %6212  ;;  %v7477_v1 = vld [vmem:[#allocation2 + $0x60] sm:$0xff] }
 0x1b8   : > { %v9893_v62 = vpop.permute.xlu0 %6217  ;;  %14536 = vst [vmem:[#allocation13_spill] sm:$0xff] %v9895_v11  ;;  %v13914_v50 = vunpack.i.h.bf16 %v9895_v11  ;;  %v13913_v54 = vunpack.i.l.bf16 %v9895_v11  ;;  %v2454_v37 = vrot.slane %v2081_v48, 7  ;;  %v9910_v55 = vsel %vm2337_vm11, %v2438_v60, %v2439_v0  ;;  %v14594_v43 = vld [vmem:[#allocation134_spill] sm:$0xff] }
 0x1b9   : > { %14535 = vst [vmem:[#allocation23_spill] sm:$0xff] %v9893_v62  ;;  %v13912_v4 = vunpack.i.h.bf16 %v9893_v62  ;;  %v13911_v53 = vunpack.i.l.bf16 %v9893_v62  ;;  %6502 = vrot.lane.b32.xlu1 %v14538_v17, %s7650_s18  ;;  %14539 = vst [vmem:[#allocation12_spill] sm:$0xff] %v9910_v55  ;;  %v2044_v60 = vsel %vm1996_vm8, %v9668_v41, %v6105_v51  ;;  %v2448_v36 = vrot.slane %v9800_v14, 7  ;;  %v14541_v41 = vld [vmem:[#allocation109_spill] sm:$0xff] }
 0x1ba   : > { %6507 = vrot.lane.b32.xlu0 %v14537_v24, %s7650_s18  ;;  %v2088_v24 = vsel %vm2045_vm9, %v2039_v49, %v13913_v54  ;;  %v2089_v17 = vsel %vm2045_vm9, %v2040_v10, %v13914_v50  ;;  %v2458_v29 = vrot.slane %v9833_v35, 7  ;;  %v2464_v49 = vrot.slane %v2084_v16, 7  ;;  %v14542_v14 = vld [vmem:[#allocation101_spill] sm:$0xff] }
 0x1bb   : > { %v2090_v44 = vsel %vm2045_vm9, %v2041_v12, %v13911_v53  ;;  %v2091_v48 = vsel %vm2045_vm9, %v2042_v19, %v13912_v4  ;;  %v2459_v12 = vrot.slane %v9839_v61, 7  ;;  %v9931_v19 = vpop.permute.xlu1 %6222  ;;  %v2469_v4 = vrot.slane %v9877_v45, 7 }
 0x1bc   : > { %v9929_v53 = vpop.permute.xlu0 %6227  ;;  %14540 = vst [vmem:[#allocation16_spill] sm:$0xff] %v9931_v19  ;;  %v13915_v54 = vunpack.i.h.bf16 %v9931_v19  ;;  %v13916_v10 = vunpack.i.l.bf16 %v9931_v19  ;;  %v2468_v50 = vrot.slane %v2085_v39, 7  ;;  %v9941_v35 = vsel %vm2337_vm11, %v2439_v0, %v2444_v46 }
 0x1bd   : > { %6512 = vrot.lane.b32.xlu1 %v14542_v14, %s7650_s18  ;;  %14543 = vst [vmem:[#allocation32_spill] sm:$0xff] %v9941_v35  ;;  %v9944_v61 = vsel %vm2337_vm11, %v2448_v36, %v2449_v26  ;;  %v9947_v45 = vsel %vm2337_vm11, %v2449_v26, %v2454_v37  ;;  %v2474_v16 = vrot.slane %v2087_v47, 7  ;;  %v2484_v51 = vrot.slane %v2090_v44, 7  ;;  %v14546_v47 = vld [vmem:[#allocation113_spill] sm:$0xff] }
 0x1be   : > { %6517 = vrot.lane.b32.xlu0 %v14541_v41, %s7650_s18  ;;  %14544 = vst [vmem:[#allocation30_spill] sm:$0xff] %v9944_v61  ;;  %14545 = vst [vmem:[#allocation22_spill] sm:$0xff] %v9947_v45  ;;  %v2092_v39 = vsel %vm2045_vm9, %v2043_v63, %v13916_v10  ;;  %v2093_v41 = vsel %vm2045_vm9, %v2044_v60, %v13915_v54  ;;  %v2478_v14 = vrot.slane %v2088_v24, 7  ;;  %v2479_v18 = vrot.slane %v2089_v17, 7  ;;  %v14547_v63 = vld [vmem:[#allocation107_spill] sm:$0xff]  ;;  %v14587_v61 = vld [vmem:[#allocation129_spill] sm:$0xff] }
 0x1bf   : > { %v9957_v46 = vpop.permute.xlu1 %6232  ;;  %v2489_v36 = vrot.slane %v2092_v39, 7  ;;  %v9968_v26 = vsel %vm2337_vm11, %v2458_v29, %v2459_v12  ;;  %v9971_v24 = vsel %vm2337_vm11, %v2459_v12, %v2464_v49  ;;  %v9974_v17 = vsel %vm2337_vm11, %v2468_v50, %v2469_v4  ;;  %v14554_v50 = vld [vmem:[#allocation117_spill] sm:$0xff] }
 0x1c0   : > { %v9955_v0 = vpop.permute.xlu0 %6237  ;;  %14548 = vst [vmem:[#allocation33_spill] sm:$0xff] %v9968_v26  ;;  %14549 = vst [vmem:[#allocation37_spill] sm:$0xff] %v9971_v24  ;;  %v2488_v60 = vrot.slane %v2091_v48, 7  ;;  %v2494_v54 = vrot.slane %v2093_v41, 7  ;;  %v9986_v29 = vsel %vm2337_vm11, %v2478_v14, %v2479_v18  ;;  %v9989_v12 = vsel %vm2337_vm11, %v2479_v18, %v2484_v51  ;;  %v14555_v48 = vld [vmem:[#allocation112_spill] sm:$0xff]  ;;  %v14560_v51 = vld [vmem:[#allocation121_spill] sm:$0xff] }
 0x1c1   : > { %6522 = vrot.lane.b32.xlu1 %v14547_v63, %s7650_s18  ;;  %14550 = vst [vmem:[#allocation36_spill] sm:$0xff] %v9974_v17  ;;  %v9983_v63 = vsel %vm2337_vm11, %v2469_v4, %v2474_v16  ;;  %14552 = vst [vmem:[#allocation31_spill] sm:$0xff] %v9986_v29  ;;  %v480_v49 = vld [vmem:[#allocation2 + $0x238] sm:$0xff]  ;;  %v7472_v24 = vld [vmem:[#allocation2 + $0x8] sm:$0xff]  ;;  %v5650_v45 = vunpack.i.h.bf16 %v14587_v61  ;;  %v5649_v55 = vunpack.i.l.bf16 %v14587_v61 }
 0x1c2   : > { %6527 = vrot.lane.b32.xlu0 %v14546_v47, %s7650_s18  ;;  %14551 = vst [vmem:[#allocation29_spill] sm:$0xff] %v9983_v63  ;;  %14553 = vst [vmem:[#allocation27_spill] sm:$0xff] %v9989_v12  ;;  %v10000_v4 = vsel %vm2337_vm11, %v2488_v60, %v2489_v36  ;;  %v10007_v18 = vsel %vm2337_vm11, %v2489_v36, %v2494_v54  ;;  %v14564_v47 = vld [vmem:[#allocation123_spill] sm:$0xff]  ;;  %v14565_v54 = vld [vmem:[#allocation120_spill] sm:$0xff]  ;;  %v1704_v28 = vrot.slane %v480_v49, 2 }
 0x1c3   : > { %v9978_v39 = vpop.permute.xlu1 %6242  ;;  %14556 = vst [vmem:[#allocation38_spill] sm:$0xff] %v10000_v4  ;;  %14559 = vst [vmem:[#allocation35_spill] sm:$0xff] %v10007_v18  ;;  %v14566_v36 = vld [vmem:[#allocation77_spill] sm:$0xff]  ;;  %v14586_v63 = vld [vmem:[#allocation128_spill] sm:$0xff]  ;;  %v1855_v31 = vsel %vm330_vm0, %v7479_v8, %v5650_v45 }
 0x1c4   : > { %v9976_v10 = vpop.permute.xlu0 %6247  ;;  %v1701_v44 = vrot.slane %v14566_v36, 2  ;;  %v5640_v19 = vunpack.i.h.bf16 %v14586_v63  ;;  %v5639_v26 = vunpack.i.l.bf16 %v14586_v63  ;;  %v14588_v63 = vld [vmem:[#allocation130_spill] sm:$0xff]  ;;  %v7483_v8 = vld [vmem:[#allocation2 + $0x48] sm:$0xff] }
 0x1c5   : > { %6532 = vrot.lane.b32.xlu1 %v14555_v48, %s7650_s18  ;;  %v14570_v48 = vld [vmem:[#allocation124_spill] sm:$0xff]  ;;  %v5665_v35 = vunpack.i.h.bf16 %v14588_v63 }
 0x1c6   : > { %6537 = vrot.lane.b32.xlu0 %v14554_v50, %s7650_s18  ;;  %v14561_v50 = vld [vmem:[#allocation116_spill] sm:$0xff] }
 0x1c7   : > { %v10004_v14 = vpop.permute.xlu1 %6252 }
 0x1c8   : > { %v10002_v16 = vpop.permute.xlu0 %6257  ;;  %14558 = vst [vmem:[#allocation42_spill] sm:$0xff] %v10004_v14 }
 0x1c9   : > { %14557 = vst [vmem:[#allocation93_spill] sm:$0xff] %v10002_v16  ;;  %6542 = vrot.lane.b32.xlu1 %v14561_v50, %s7650_s18 }
 0x1ca   : > { %6547 = vrot.lane.b32.xlu0 %v14560_v51, %s7650_s18  ;;  %v14567_v51 = vld [vmem:[#allocation85_spill] sm:$0xff] }
 0x1cb   : > { %v10017_v60 = vpop.permute.xlu1 %6262  ;;  %v1702_v37 = vrot.slane %v14567_v51, 2 }
 0x1cc   : > { %v10015_v41 = vpop.permute.xlu0 %6267  ;;  %14563 = vst [vmem:[#allocation41_spill] sm:$0xff] %v10017_v60  ;;  %v14613_v60 = vld [vmem:[#allocation34_spill] sm:$0xff] }
 0x1cd   : > { %14562 = vst [vmem:[#allocation48_spill] sm:$0xff] %v10015_v41  ;;  %6552 = vrot.lane.b32.xlu1 %v14565_v54, %s7650_s18  ;;  %v6571_v54 = vpack.i.bf16 %v14574_v2, %v14573_v58  ;;  %v1703_v36 = vsel %vm722_vm4, %v1701_v44, %v1702_v37  ;;  %v1705_v51 = vsel %vm722_vm4, %v1702_v37, %v1704_v28  ;;  %v14581_v28 = vld [vmem:[#allocation125_spill] sm:$0xff]  ;;  %v14610_v41 = vld [vmem:[#allocation26_spill] sm:$0xff]  ;;  %v5879_v40 = vunpack.i.l.bf16 %v14613_v60 }
 0x1ce   : > { %6557 = vrot.lane.b32.xlu0 %v14564_v47, %s7650_s18  ;;  %v6576_v47 = vpack.i.bf16 %v1701_v44, %v14572_v57  ;;  %v5630_v58 = vunpack.i.h.bf16 %v14581_v28  ;;  %v5629_v37 = vunpack.i.l.bf16 %v14581_v28  ;;  %v14582_v44 = vld [vmem:[#allocation126_spill] sm:$0xff] }
 0x1cf   : > { %v10027_v34 = vpop.permute.xlu1 %6272  ;;  %v5645_v29 = vunpack.i.h.bf16 %v14582_v44 }
 0x1d0   : > { %v10025_v50 = vpop.permute.xlu0 %6277  ;;  %14569 = vst [vmem:[#allocation47_spill] sm:$0xff] %v10027_v34  ;;  %v10066_v28 = vsel %vm330_vm0, %v7472_v24, %v5630_v58  ;;  %v5664_v24 = vunpack.i.l.bf16 %v14588_v63  ;;  %v7475_v58 = vld [vmem:[#allocation2 + $0x20] sm:$0xff]  ;;  %v10095_v63 = vsel %vm330_vm0, %v7477_v1, %v5640_v19  ;;  %v7481_v1 = vld [vmem:[#allocation2 + $0x88] sm:$0xff] }
 0x1d1   : > { %14568 = vst [vmem:[#allocation54_spill] sm:$0xff] %v10025_v50  ;;  %6562 = vrot.lane.b32.xlu1 %v14571_v33, %s7650_s18  ;;  %v10107_v19 = vsel %vm330_vm0, %v7481_v1, %v5665_v35 }
 0x1d2   : > { %6567 = vrot.lane.b32.xlu0 %v14570_v48, %s7650_s18  ;;  %v6581_v48 = vpack.i.bf16 %v1705_v51, %v1703_v36  ;;  %v14583_v36 = vld [vmem:[#allocation127_spill] sm:$0xff] }
 0x1d3   : > { %v10040_v4 = vpop.permute.xlu1 %6282  ;;  %v5635_v51 = vunpack.i.h.bf16 %v14583_v36 }
 0x1d4   : > { %v10038_v49 = vpop.permute.xlu0 %6287  ;;  %14576 = vst [vmem:[#allocation59_spill] sm:$0xff] %v10040_v4 }
 0x1d5   : > { %14575 = vst [vmem:[#allocation62_spill] sm:$0xff] %v10038_v49  ;;  %6572 = vrot.lane.b32.xlu1 %v6571_v54, %s7650_s18  ;;  %v5644_v54 = vunpack.i.l.bf16 %v14582_v44  ;;  %v7473_v44 = vld [vmem:[#allocation2 + $0xa0] sm:$0xff]  ;;  %v7491_v49 = vld [vmem:[#allocation2 + $0xc8] sm:$0xff] }
 0x1d6   : > { %6577 = vrot.lane.b32.xlu0 %v6576_v47, %s7650_s18  ;;  %v409_v47 = vld [vmem:[#allocation2] sm:$0xff]  ;;  %v10072_v62 = vsel %vm330_vm0, %v7473_v44, %v5645_v29  ;;  %v14590_v44 = vld [vmem:[#allocation132_spill] sm:$0xff] }
 0x1d7   : > { %v10046_v33 = vpop.permute.xlu1 %6292  ;;  %v10069_v11 = vsel %vm330_vm0, %v409_v47, %v5629_v37  ;;  %v10082_v37 = vsel %vm330_vm0, %v7475_v58, %v5635_v51  ;;  %v14589_v47 = vld [vmem:[#allocation131_spill] sm:$0xff]  ;;  %v5670_v30 = vunpack.i.h.bf16 %v14590_v44  ;;  %v7478_v51 = vld [vmem:[#allocation2 + $0x50] sm:$0xff] }
 0x1d8   : > { %v10044_v18 = vpop.permute.xlu0 %6297  ;;  %14578 = vst [vmem:[#allocation60_spill] sm:$0xff] %v10046_v33  ;;  %v5655_v59 = vunpack.i.h.bf16 %v14589_v47  ;;  %v5654_v29 = vunpack.i.l.bf16 %v14589_v47  ;;  %v10098_v58 = vsel %vm330_vm0, %v7478_v51, %v5639_v26  ;;  %v5669_v47 = vunpack.i.l.bf16 %v14590_v44  ;;  %v7482_v26 = vld [vmem:[#allocation2 + $0x80] sm:$0xff] }
 0x1d9   : > { %14577 = vst [vmem:[#allocation53_spill] sm:$0xff] %v10044_v18  ;;  %6582 = vrot.lane.b32.xlu1 %v6581_v48, %s7650_s18  ;;  %v5634_v48 = vunpack.i.l.bf16 %v14583_v36  ;;  %v10076_v36 = vsel %vm330_vm0, %v7474_v52, %v5644_v54  ;;  %v7476_v54 = vld [vmem:[#allocation2 + $0x10] sm:$0xff]  ;;  %v10110_v51 = vsel %vm330_vm0, %v7482_v26, %v5664_v24  ;;  %v5674_v44 = vunpack.i.l.bf16 %v14594_v43  ;;  %v7486_v24 = vld [vmem:[#allocation2 + $0xa8] sm:$0xff] }
 0x1da   : > { %v1857_v45 = vsel %vm330_vm0, %v7483_v8, %v5655_v59  ;;  %v10124_v26 = vsel %vm330_vm0, %v7486_v24, %v5669_v47  ;;  %v14598_v59 = vld [vmem:[#allocation136_spill] sm:$0xff] }
 0x1db   : > { %v10051_v57 = vpop.permute.xlu1 %6302  ;;  %v10092_v61 = vsel %vm330_vm0, %v7476_v54, %v5634_v48  ;;  %v5675_v48 = vunpack.i.h.bf16 %v14594_v43  ;;  %v7480_v54 = vld [vmem:[#allocation2 + $0x28] sm:$0xff]  ;;  %v5685_v8 = vunpack.i.h.bf16 %v14598_v59  ;;  %v7490_v47 = vld [vmem:[#allocation2 + $0xd0] sm:$0xff] }
 0x1dc   : > { %v10049_v2 = vpop.permute.xlu0 %6307  ;;  %14580 = vst [vmem:[#allocation63_spill] sm:$0xff] %v10051_v57  ;;  %v10116_v57 = vsel %vm330_vm0, %v7485_v42, %v5670_v30  ;;  %v7488_v30 = vld [vmem:[#allocation2 + $0x68] sm:$0xff]  ;;  %v1870_v24 = vsel %vm330_vm0, %v7490_v47, %v5674_v44  ;;  %v7492_v44 = vld [vmem:[#allocation2 + $0xc0] sm:$0xff]  ;;  %v7493_v47 = vld [vmem:[#allocation2 + $0xf0] sm:$0xff] }
 0x1dd   : > { %14579 = vst [vmem:[#allocation66_spill] sm:$0xff] %v10049_v2  ;;  %v1873_v9 = vsel %vm330_vm0, %v7493_v47, %v5685_v8  ;;  %v1904_v8 = vsel %vm1898_vm6, %v1855_v31, %v5760_v15  ;;  %v14606_v47 = vld [vmem:[#allocation20_spill] sm:$0xff]  ;;  %v14607_v31 = vld [vmem:[#allocation14_spill] sm:$0xff] }
 0x1df   : > { %v10060_v17 = vpop.permute.xlu1 %6312 }
 0x1e0   : > { %v10058_v12 = vpop.permute.xlu0 %6317  ;;  %14585 = vst [vmem:[#allocation58_spill] sm:$0xff] %v10060_v17  ;;  %v1854_v17 = vsel %vm330_vm0, %v7480_v54, %v5649_v55  ;;  %v14595_v55 = vld [vmem:[#allocation135_spill] sm:$0xff] }
 0x1e1   : > { %14584 = vst [vmem:[#allocation65_spill] sm:$0xff] %v10058_v12  ;;  %v5680_v54 = vunpack.i.h.bf16 %v14595_v55  ;;  %v5679_v43 = vunpack.i.l.bf16 %v14595_v55 }
 0x1e3   : > { %v10089_v52 = vpop.permute.xlu1 %6322 }
 0x1e4   : > { %v10087_v12 = vpop.permute.xlu0 %6327  ;;  %14592 = vst [vmem:[#allocation64_spill] sm:$0xff] %v10089_v52 }
 0x1e5   : > { %14591 = vst [vmem:[#allocation69_spill] sm:$0xff] %v10087_v12  ;;  %v14593_v12 = vld [vmem:[#allocation133_spill] sm:$0xff] }
 0x1e6   : > { %v5660_v7 = vunpack.i.h.bf16 %v14593_v12  ;;  %v5659_v52 = vunpack.i.l.bf16 %v14593_v12  ;;  %v1856_v12 = vsel %vm330_vm0, %v7484_v5, %v5654_v29  ;;  %v5684_v5 = vunpack.i.l.bf16 %v14598_v59  ;;  %v7487_v29 = vld [vmem:[#allocation2 + $0x70] sm:$0xff] }
 0x1e7   : > { %v10121_v1 = vpop.permute.xlu1 %6332  ;;  %v5759_v59 = vunpack.i.l.bf16 %v14600_v38  ;;  %v7494_v38 = vld [vmem:[#allocation2 + $0xe8] sm:$0xff] }
 0x1e8   : > { %v10119_v35 = vpop.permute.xlu0 %6337  ;;  %14597 = vst [vmem:[#allocation95_spill] sm:$0xff] %v10121_v1  ;;  %v1861_v42 = vsel %vm330_vm0, %v7487_v29, %v5660_v7  ;;  %v1860_v2 = vsel %vm330_vm0, %v7488_v30, %v5659_v52  ;;  %v14599_v1 = vld [vmem:[#allocation19_spill] sm:$0xff]  ;;  %v1869_v7 = vsel %vm330_vm0, %v7491_v49, %v5680_v54  ;;  %v14601_v29 = vld [vmem:[#allocation18_spill] sm:$0xff]  ;;  %v1872_v34 = vsel %vm330_vm0, %v7494_v38, %v5684_v5 }
 0x1e9   : > { %14596 = vst [vmem:[#allocation100_spill] sm:$0xff] %v10119_v35  ;;  %v10132_v35 = vsel %vm330_vm0, %v7489_v21, %v5675_v48  ;;  %v5750_v18 = vunpack.i.h.bf16 %v14599_v1  ;;  %v5749_v55 = vunpack.i.l.bf16 %v14599_v1  ;;  %v5755_v52 = vunpack.i.h.bf16 %v14601_v29  ;;  %v14602_v21 = vld [vmem:[#allocation15_spill] sm:$0xff] }
 0x1ea   : > { %v5754_v30 = vunpack.i.l.bf16 %v14601_v29  ;;  %v5769_v48 = vunpack.i.l.bf16 %v14602_v21  ;;  %v1868_v1 = vsel %vm330_vm0, %v7492_v44, %v5679_v43  ;;  %v5770_v49 = vunpack.i.h.bf16 %v14602_v21  ;;  %v14604_v29 = vld [vmem:[#allocation10_spill] sm:$0xff] }
 0x1eb   : > { %v10145_v4 = vpop.permute.xlu1 %6342  ;;  %v1900_v54 = vsel %vm1898_vm6, %v10066_v28, %v5750_v18  ;;  %v5765_v50 = vunpack.i.h.bf16 %v14604_v29  ;;  %v5764_v27 = vunpack.i.l.bf16 %v14604_v29  ;;  %v1899_v43 = vsel %vm1898_vm6, %v10069_v11, %v5749_v55 }
 0x1ec   : > { %v10143_v33 = vpop.permute.xlu0 %6347  ;;  %14603 = vst [vmem:[#allocation76_spill] sm:$0xff] %v10145_v4  ;;  %v5779_v4 = vunpack.i.l.bf16 %v14605_v22  ;;  %v1903_v44 = vsel %vm1898_vm6, %v1854_v17, %v5759_v59  ;;  %v5780_v5 = vunpack.i.h.bf16 %v14605_v22  ;;  %v1902_v21 = vsel %vm1898_vm6, %v10082_v37, %v5755_v52  ;;  %v14608_v59 = vld [vmem:[#allocation21_spill] sm:$0xff] }
 0x1ed   : > { %v1901_v18 = vsel %vm1898_vm6, %v10092_v61, %v5754_v30  ;;  %v1907_v28 = vsel %vm1898_vm6, %v10098_v58, %v5769_v48  ;;  %v5774_v38 = vunpack.i.l.bf16 %v14606_v47  ;;  %v1908_v15 = vsel %vm1898_vm6, %v10095_v63, %v5770_v49  ;;  %v14609_v48 = vld [vmem:[#allocation28_spill] sm:$0xff] }
 0x1ee   : > { %v5775_v22 = vunpack.i.h.bf16 %v14606_v47  ;;  %v5790_v17 = vunpack.i.h.bf16 %v14607_v31  ;;  %v5789_v37 = vunpack.i.l.bf16 %v14607_v31  ;;  %v1905_v61 = vsel %vm1898_vm6, %v1856_v12, %v5764_v27 }
 0x1ef   : > { %v10170_v11 = vpop.permute.xlu1 %6352  ;;  %v1906_v55 = vsel %vm1898_vm6, %v1857_v45, %v5765_v50  ;;  %v1911_v58 = vsel %vm1898_vm6, %v10110_v51, %v5779_v4  ;;  %v5785_v52 = vunpack.i.h.bf16 %v14608_v59  ;;  %v1912_v30 = vsel %vm1898_vm6, %v10107_v19, %v5780_v5  ;;  %v14611_v45 = vld [vmem:[#allocation24_spill] sm:$0xff] }
 0x1f0   : > { %v10168_v29 = vpop.permute.xlu0 %6357  ;;  %v5784_v63 = vunpack.i.l.bf16 %v14608_v59  ;;  %v5800_v49 = vunpack.i.h.bf16 %v14609_v48  ;;  %v5799_v47 = vunpack.i.l.bf16 %v14609_v48  ;;  %v1909_v31 = vsel %vm1898_vm6, %v1860_v2, %v5774_v38 }
 0x1f1   : > { %v5795_v27 = vunpack.i.h.bf16 %v14610_v41  ;;  %v5794_v50 = vunpack.i.l.bf16 %v14610_v41  ;;  %v5804_v12 = vunpack.i.l.bf16 %v14611_v45  ;;  %v1910_v19 = vsel %vm1898_vm6, %v1861_v42, %v5775_v22  ;;  %v14612_v41 = vld [vmem:[#allocation45_spill] sm:$0xff] }
 0x1f2   : > { %v1915_v5 = vsel %vm1898_vm6, %v10124_v26, %v5789_v37  ;;  %v1916_v59 = vsel %vm1898_vm6, %v10116_v57, %v5790_v17  ;;  %v5805_v2 = vunpack.i.h.bf16 %v14611_v45  ;;  %v1914_v38 = vsel %vm1898_vm6, %v10072_v62, %v5785_v52  ;;  %v14614_v52 = vld [vmem:[#allocation39_spill] sm:$0xff] }
 0x1f3   : > { %v10193_v51 = vpop.permute.xlu1 %6362  ;;  %v5870_v48 = vunpack.i.h.bf16 %v14612_v41  ;;  %v5869_v16 = vunpack.i.l.bf16 %v14612_v41  ;;  %v1913_v42 = vsel %vm1898_vm6, %v10076_v36, %v5784_v63  ;;  %v1919_v22 = vsel %vm1898_vm6, %v1870_v24, %v5799_v47  ;;  %v14617_v63 = vld [vmem:[#allocation46_spill] sm:$0xff] }
 0x1f4   : > { %v10191_v4 = vpop.permute.xlu0 %6367  ;;  %v1920_v26 = vsel %vm1898_vm6, %v10132_v35, %v5800_v49  ;;  %v5880_v57 = vunpack.i.h.bf16 %v14613_v60  ;;  %v1917_v17 = vsel %vm1898_vm6, %v1868_v1, %v5794_v50  ;;  %v1918_v62 = vsel %vm1898_vm6, %v1869_v7, %v5795_v27  ;;  %v14618_v49 = vld [vmem:[#allocation43_spill] sm:$0xff] }
 0x1f5   : > { %v1921_v37 = vsel %vm1898_vm6, %v1872_v34, %v5804_v12  ;;  %v5874_v45 = vunpack.i.l.bf16 %v14614_v52  ;;  %v1922_v36 = vsel %vm1898_vm6, %v1873_v9, %v5805_v2  ;;  %v5875_v24 = vunpack.i.h.bf16 %v14614_v52  ;;  %v14619_v12 = vld [vmem:[#allocation40_spill] sm:$0xff] }
 0x1f6   : > { %v5890_v35 = vunpack.i.h.bf16 %v14617_v63  ;;  %v5889_v60 = vunpack.i.l.bf16 %v14617_v63  ;;  %v1948_v1 = vsel %vm1947_vm7, %v1899_v43, %v5869_v16  ;;  %v1949_v7 = vsel %vm1947_vm7, %v1900_v54, %v5870_v48  ;;  %v14621_v43 = vld [vmem:[#allocation49_spill] sm:$0xff] }
 0x1f7   : > { %v10218_v32 = vpop.permute.xlu1 %6372  ;;  %v1952_v34 = vsel %vm1947_vm7, %v1903_v44, %v5879_v40  ;;  %v5884_v47 = vunpack.i.l.bf16 %v14618_v49  ;;  %v1953_v27 = vsel %vm1947_vm7, %v1904_v8, %v5880_v57  ;;  %v5885_v50 = vunpack.i.h.bf16 %v14618_v49 }
 0x1f8   : > { %v10216_v41 = vpop.permute.xlu0 %6377  ;;  %14616 = vst [vmem:[#allocation84_spill] sm:$0xff] %v10218_v32  ;;  %v5900_v9 = vunpack.i.h.bf16 %v14619_v12  ;;  %v5899_v2 = vunpack.i.l.bf16 %v14619_v12  ;;  %v1950_v52 = vsel %vm1947_vm7, %v1901_v18, %v5874_v45  ;;  %v5909_v54 = vunpack.i.l.bf16 %v14621_v43  ;;  %v14624_v45 = vld [vmem:[#allocation55_spill] sm:$0xff]  ;;  %v14625_v32 = vld [vmem:[#allocation44_spill] sm:$0xff] }
 0x1f9   : > { %14615 = vst [vmem:[#allocation91_spill] sm:$0xff] %v10216_v41  ;;  %v14620_v41 = vld [vmem:[#allocation51_spill] sm:$0xff]  ;;  %v1951_v44 = vsel %vm1947_vm7, %v1902_v21, %v5875_v24  ;;  %v1956_v8 = vsel %vm1947_vm7, %v1907_v28, %v5889_v60  ;;  %v1957_v57 = vsel %vm1947_vm7, %v1908_v15, %v5890_v35  ;;  %v5910_v49 = vunpack.i.h.bf16 %v14621_v43  ;;  %v14626_v35 = vld [vmem:[#allocation61_spill] sm:$0xff] }
 0x1fa   : > { %v5895_v63 = vunpack.i.h.bf16 %v14620_v41  ;;  %v5894_v16 = vunpack.i.l.bf16 %v14620_v41  ;;  %v1954_v18 = vsel %vm1947_vm7, %v1905_v61, %v5884_v47  ;;  %v5905_v12 = vunpack.i.h.bf16 %v14624_v45 }
 0x1fb   : > { %v10238_v40 = vpop.permute.xlu1 %6382  ;;  %v5904_v41 = vunpack.i.l.bf16 %v14624_v45  ;;  %v5919_v14 = vunpack.i.l.bf16 %v14625_v32  ;;  %v1961_v21 = vsel %vm1947_vm7, %v1912_v30, %v5900_v9  ;;  %v5920_v28 = vunpack.i.h.bf16 %v14625_v32  ;;  %v14629_v9 = vld [vmem:[#allocation67_spill] sm:$0xff] }
 0x1fc   : > { %v10236_v48 = vpop.permute.xlu0 %6387  ;;  %14623 = vst [vmem:[#allocation75_spill] sm:$0xff] %v10238_v40  ;;  %v1960_v40 = vsel %vm1947_vm7, %v1911_v58, %v5899_v2  ;;  %v1958_v15 = vsel %vm1947_vm7, %v1909_v31, %v5894_v16  ;;  %v1959_v24 = vsel %vm1947_vm7, %v1910_v19, %v5895_v63  ;;  %v1964_v61 = vsel %vm1947_vm7, %v1915_v5, %v5909_v54  ;;  %v14630_v16 = vld [vmem:[#allocation74_spill] sm:$0xff] }
 0x1fd   : > { %14622 = vst [vmem:[#allocation82_spill] sm:$0xff] %v10236_v48  ;;  %v1955_v48 = vsel %vm1947_vm7, %v1906_v55, %v5885_v50  ;;  %v5914_v60 = vunpack.i.l.bf16 %v14626_v35  ;;  %v1965_v55 = vsel %vm1947_vm7, %v1916_v59, %v5910_v49  ;;  %v5915_v58 = vunpack.i.h.bf16 %v14626_v35  ;;  %v14628_v50 = vld [vmem:[#allocation57_spill] sm:$0xff] }
 0x1fe   : > { %v5925_v30 = vunpack.i.h.bf16 %v14628_v50  ;;  %v5924_v32 = vunpack.i.l.bf16 %v14628_v50  ;;  %v1962_v31 = vsel %vm1947_vm7, %v1913_v42, %v5904_v41  ;;  %v10266_v19 = vsel %vm1947_vm7, %v1914_v38, %v5905_v12  ;;  %v14631_v42 = vld [vmem:[#allocation72_spill] sm:$0xff] }
 0x1ff   : > { %v10258_v43 = vpop.permute.xlu1 %6392  ;;  %v10269_v5 = vsel %vm1947_vm7, %v1919_v22, %v5919_v14  ;;  %v5990_v2 = vunpack.i.h.bf16 %v14629_v9  ;;  %v10273_v63 = vsel %vm1947_vm7, %v1920_v26, %v5920_v28  ;;  %v5989_v59 = vunpack.i.l.bf16 %v14629_v9  ;;  %v14632_v14 = vld [vmem:[#allocation68_spill] sm:$0xff]  ;;  %v14635_v9 = vld [vmem:[#allocation70_spill] sm:$0xff] }
 0x200   : > { %v10256_v47 = vpop.permute.xlu0 %6397  ;;  %14627 = vst [vmem:[#allocation90_spill] sm:$0xff] %v10258_v43  ;;  %v6000_v54 = vunpack.i.h.bf16 %v14630_v16  ;;  %v5999_v49 = vunpack.i.l.bf16 %v14630_v16  ;;  %v10279_v45 = vsel %vm1947_vm7, %v1917_v17, %v5914_v60  ;;  %v5995_v38 = vunpack.i.h.bf16 %v14631_v42 }
 0x201   : > { %v5994_v12 = vunpack.i.l.bf16 %v14631_v42  ;;  %v6010_v22 = vunpack.i.h.bf16 %v14632_v14  ;;  %v10289_v26 = vsel %vm1947_vm7, %v1918_v62, %v5915_v58  ;;  %v10292_v28 = vsel %vm1947_vm7, %v1921_v37, %v5924_v32  ;;  %v14637_v32 = vld [vmem:[#allocation73_spill] sm:$0xff] }
 0x202   : > { %v10295_v50 = vsel %vm1947_vm7, %v1922_v36, %v5925_v30  ;;  %v6009_v17 = vunpack.i.l.bf16 %v14632_v14  ;;  %v1998_v60 = vsel %vm1996_vm8, %v1949_v7, %v5990_v2  ;;  %v6005_v16 = vunpack.i.h.bf16 %v14635_v9 }
 0x203   : > { %v10286_v35 = vpop.permute.xlu1 %6402  ;;  %v6004_v42 = vunpack.i.l.bf16 %v14635_v9  ;;  %v2001_v62 = vsel %vm1996_vm8, %v1952_v34, %v5999_v49  ;;  %v2002_v37 = vsel %vm1996_vm8, %v1953_v27, %v6000_v54  ;;  %v1999_v36 = vsel %vm1996_vm8, %v1950_v52, %v5994_v12  ;;  %v14639_v49 = vld [vmem:[#allocation78_spill] sm:$0xff] }
 0x204   : > { %v10284_v41 = vpop.permute.xlu0 %6407  ;;  %14634 = vst [vmem:[#allocation96_spill] sm:$0xff] %v10286_v35  ;;  %v1997_v35 = vsel %vm1996_vm8, %v1948_v1, %v5989_v59  ;;  %v2000_v30 = vsel %vm1996_vm8, %v1951_v44, %v5995_v38  ;;  %v2006_v7 = vsel %vm1996_vm8, %v1957_v57, %v6010_v22  ;;  %v6014_v2 = vunpack.i.l.bf16 %v14637_v32  ;;  %v14638_v59 = vld [vmem:[#allocation71_spill] sm:$0xff] }
 0x205   : > { %14633 = vst [vmem:[#allocation81_spill] sm:$0xff] %v10284_v41  ;;  %v14636_v41 = vld [vmem:[#allocation80_spill] sm:$0xff]  ;;  %v2005_v1 = vsel %vm1996_vm8, %v1956_v8, %v6009_v17  ;;  %v6015_v34 = vunpack.i.h.bf16 %v14637_v32  ;;  %v6030_v27 = vunpack.i.h.bf16 %v14638_v59  ;;  %v6029_v54 = vunpack.i.l.bf16 %v14638_v59 }
 0x206   : > { %v6020_v43 = vunpack.i.h.bf16 %v14636_v41  ;;  %v6019_v58 = vunpack.i.l.bf16 %v14636_v41  ;;  %v2003_v52 = vsel %vm1996_vm8, %v1954_v18, %v6004_v42  ;;  %v2004_v44 = vsel %vm1996_vm8, %v1955_v48, %v6005_v16  ;;  %v14642_v18 = vld [vmem:[#allocation83_spill] sm:$0xff] }
 0x207   : > { %v10312_v9 = vpop.permute.xlu1 %6412  ;;  %v6024_v38 = vunpack.i.l.bf16 %v14639_v49  ;;  %v13994_v8 = vunpack.i.h.bf16 %v9422_v56  ;;  %v13996_v22 = vunpack.i.l.bf16 %v9422_v56  ;;  %v13995_v41 = vunpack.i.l.bf16 %v9480_v13 }
 0x208   : > { %v10310_v14 = vpop.permute.xlu0 %6417  ;;  %v10321_v57 = vsel %vm1996_vm8, %v1961_v21, %v6020_v43  ;;  %v10325_v12 = vsel %vm1996_vm8, %v1960_v40, %v6019_v58  ;;  %v10331_v17 = vsel %vm1996_vm8, %v1958_v15, %v6014_v2  ;;  %v10341_v40 = vsel %vm1996_vm8, %v1959_v24, %v6015_v34  ;;  %v14641_v2 = vld [vmem:[#allocation79_spill] sm:$0xff] }
 0x209   : > { %v10344_v42 = vsel %vm1996_vm8, %v1965_v55, %v6030_v27  ;;  %v10347_v58 = vsel %vm1996_vm8, %v1964_v61, %v6029_v54  ;;  %v6025_v15 = vunpack.i.h.bf16 %v14639_v49  ;;  %v10351_v32 = vsel %vm1996_vm8, %v1962_v31, %v6024_v38 }
 0x20a   : > { %v6040_v59 = vunpack.i.h.bf16 %v14641_v2  ;;  %v6039_v21 = vunpack.i.l.bf16 %v14641_v2  ;;  %v6035_v48 = vunpack.i.h.bf16 %v14642_v18  ;;  %v6034_v24 = vunpack.i.l.bf16 %v14642_v18 }
 0x20b   : > { %v10338_v16 = vpop.permute.xlu1 %6422  ;;  %v2046_v55 = vsel %vm2045_vm9, %v1997_v35, %v13996_v22  ;;  %v2047_v61 = vsel %vm2045_vm9, %v1998_v60, %v13994_v8  ;;  %v2048_v31 = vsel %vm2045_vm9, %v1999_v36, %v13995_v41  ;;  %v14643_v34 = vunpack.i.l.bf16 %v9478_v25  ;;  %v14648_v8 = vld [vmem:[#allocation92_spill] sm:$0xff] }
 0x20c   : > { %v10336_v43 = vpop.permute.xlu0 %6427  ;;  %14640 = vst [vmem:[#allocation89_spill] sm:$0xff] %v10338_v16  ;;  %v14644_v54 = vunpack.i.h.bf16 %v9478_v25  ;;  %v14645_v38 = vunpack.i.h.bf16 %v9480_v13  ;;  %v6045_v36 = vunpack.i.h.bf16 %v14648_v8  ;;  %v14000_v41 = vunpack.i.h.bf16 %v9503_v6 }
 0x20d   : > { %v2050_v27 = vsel %vm2045_vm9, %v2001_v62, %v14643_v34  ;;  %v14001_v34 = vunpack.i.l.bf16 %v9505_v20  ;;  %v2339_v22 = vrot.slane %v2047_v61, 7  ;;  %v2344_v16 = vrot.slane %v2048_v31, 7 }
 0x20e   : > { %v2051_v49 = vsel %vm2045_vm9, %v2002_v37, %v14644_v54  ;;  %v2049_v35 = vsel %vm2045_vm9, %v2000_v30, %v14645_v38  ;;  %v6044_v37 = vunpack.i.l.bf16 %v14648_v8  ;;  %v2338_v54 = vrot.slane %v2046_v55, 7 }
 0x20f   : > { %v10378_v60 = vpop.permute.xlu1 %6432  ;;  %v10387_v30 = vsel %vm1996_vm8, %v10266_v19, %v6025_v15  ;;  %v2349_v38 = vrot.slane %v2050_v27, 7  ;;  %v2354_v18 = vrot.slane %v2051_v49, 7  ;;  %v10395_v62 = vsel %vm1996_vm8, %v10269_v5, %v6039_v21 }
 0x210   : > { %v10376_v2 = vpop.permute.xlu0 %6437  ;;  %14647 = vst [vmem:[#allocation94_spill] sm:$0xff] %v10378_v60  ;;  %v10391_v60 = vsel %vm1996_vm8, %v10273_v63, %v6040_v59  ;;  %v10399_v8 = vsel %vm1996_vm8, %v10279_v45, %v6034_v24  ;;  %v14649_v55 = vunpack.i.l.bf16 %v9503_v6  ;;  %v10412_v63 = vsel %vm1996_vm8, %v10289_v26, %v6035_v48 }
 0x211   : > { %14646 = vst [vmem:[#allocation102_spill] sm:$0xff] %v10376_v2  ;;  %v2348_v2 = vrot.slane %v2049_v35, 7  ;;  %v10417_v5 = vsel %vm2045_vm9, %v2006_v7, %v14000_v41  ;;  %v10422_v45 = vsel %vm2045_vm9, %v2003_v52, %v14001_v34  ;;  %v10431_v59 = vsel %vm1996_vm8, %v10292_v28, %v6044_v37 }
 0x212   : > { %v10404_v19 = vsel %vm2045_vm9, %v2005_v1, %v14649_v55  ;;  %v14651_v1 = vunpack.i.h.bf16 %v9505_v20  ;;  %v10435_v26 = vsel %vm1996_vm8, %v10295_v50, %v6045_v36  ;;  %v10438_v7 = vsel %vm2337_vm11, %v2338_v54, %v2339_v22 }
 0x213   : > { %v10408_v61 = vpop.permute.xlu1 %6442  ;;  %v10441_v48 = vsel %vm2337_vm11, %v2339_v22, %v2344_v16  ;;  %v6229_v24 = vunpack.i.l.bf16 %v9929_v53  ;;  %v10449_v28 = vsel %vm2337_vm11, %v2349_v38, %v2354_v18  ;;  %v6230_v49 = vunpack.i.h.bf16 %v9929_v53 }
 0x214   : > { %v10406_v15 = vpop.permute.xlu0 %6447  ;;  %v10427_v21 = vsel %vm2045_vm9, %v2004_v44, %v14651_v1  ;;  %v10446_v44 = vsel %vm2337_vm11, %v2348_v2, %v2349_v38  ;;  %v6240_v2 = vunpack.i.h.bf16 %v9955_v0  ;;  %v6239_v36 = vunpack.i.l.bf16 %v9955_v0 }
 0x215   : > { %14650 = vst [vmem:[#allocation109_spill] sm:$0xff] %v10406_v15  ;;  %v6234_v18 = vunpack.i.l.bf16 %v9957_v46  ;;  %v6235_v53 = vunpack.i.h.bf16 %v9957_v46  ;;  %v14654_v55 = vunpack.i.l.bf16 %v9422_v56  ;;  %v6349_v31 = vunpack.i.l.bf16 %v10143_v33 }
 0x216   : > { %v14655_v52 = vunpack.i.h.bf16 %v9422_v56  ;;  %v6350_v54 = vunpack.i.h.bf16 %v10143_v33  ;;  %v6360_v38 = vunpack.i.h.bf16 %v10168_v29  ;;  %v6359_v46 = vunpack.i.l.bf16 %v10168_v29 }
 0x217   : > { %v10457_v16 = vpop.permute.xlu1 %6452  ;;  %v2095_v1 = vsel %vm2094_vm5, %v14654_v55, %v6229_v24  ;;  %v14657_v24 = vunpack.i.l.bf16 %v9478_v25  ;;  %v14658_v50 = vunpack.i.h.bf16 %v9478_v25  ;;  %v14659_v56 = vunpack.i.l.bf16 %v9480_v13 }
 0x218   : > { %v10455_v22 = vpop.permute.xlu0 %6457  ;;  %14653 = vst [vmem:[#allocation113_spill] sm:$0xff] %v10457_v16  ;;  %v2096_v41 = vsel %vm2094_vm5, %v14655_v52, %v6230_v49  ;;  %v14660_v49 = vunpack.i.h.bf16 %v9480_v13  ;;  %v6355_v27 = vunpack.i.h.bf16 %v10170_v11  ;;  %v6354_v34 = vunpack.i.l.bf16 %v10170_v11 }
 0x219   : > { %14652 = vst [vmem:[#allocation101_spill] sm:$0xff] %v10455_v22  ;;  %v2099_v55 = vsel %vm2094_vm5, %v14657_v24, %v6239_v36  ;;  %v2100_v0 = vsel %vm2094_vm5, %v14658_v50, %v6240_v2  ;;  %v2097_v52 = vsel %vm2094_vm5, %v14659_v56, %v6234_v18  ;;  %v6249_v36 = vunpack.i.l.bf16 %v9976_v10 }
 0x21a   : > { %v2098_v29 = vsel %vm2094_vm5, %v14660_v49, %v6235_v53  ;;  %v6245_v25 = vunpack.i.h.bf16 %v9978_v39  ;;  %v6244_v50 = vunpack.i.l.bf16 %v9978_v39  ;;  %v2144_v2 = vsel %vm2143_vm12, %v2095_v1, %v6349_v31 }
 0x21b   : > { %v10479_v37 = vpop.permute.xlu1 %6462  ;;  %v2145_v18 = vsel %vm2143_vm12, %v2096_v41, %v6350_v54  ;;  %v2148_v24 = vsel %vm2143_vm12, %v2099_v55, %v6359_v46  ;;  %v2149_v13 = vsel %vm2143_vm12, %v2100_v0, %v6360_v38  ;;  %v2146_v15 = vsel %vm2143_vm12, %v2097_v52, %v6354_v34 }
 0x21c   : > { %v6468_v35 = vpop.permute.xlu0 %6467  ;;  %14656 = vst [vmem:[#allocation107_spill] sm:$0xff] %v10479_v37  ;;  %v2147_v39 = vsel %vm2143_vm12, %v2098_v29, %v6355_v27  ;;  %v6369_v31 = vunpack.i.l.bf16 %v10191_v4  ;;  %v6365_v46 = vunpack.i.h.bf16 %v10193_v51  ;;  %v6364_v55 = vunpack.i.l.bf16 %v10193_v51 }
 0x21d   : > { %v6469_v33 = vunpack.i.l.bf16 %v6468_v35  ;;  %v6470_v37 = vunpack.i.h.bf16 %v6468_v35  ;;  %vm3041_vm0 = vcmask 122880   ;;  %vm4696_vm7 = vcmask 916480  }
 0x21f   : > { %v6473_v56 = vpop.permute.xlu1 %6472  ;;  %v2193_v49 = vsel %vm2192_vm13, %v2144_v2, %v6469_v33  ;;  %v2194_v41 = vsel %vm2192_vm13, %v2145_v18, %v6470_v37 }
 0x220   : > { %v6478_v53 = vpop.permute.xlu0 %6477  ;;  %v6475_v16 = vunpack.i.h.bf16 %v6473_v56  ;;  %v6474_v22 = vunpack.i.l.bf16 %v6473_v56  ;;  %v2341_v27 = vrot.slane %v2193_v49, 7  ;;  %v2342_v18 = vrot.slane %v2194_v41, 7 }
 0x221   : > { %v6480_v11 = vunpack.i.h.bf16 %v6478_v53  ;;  %v6479_v35 = vunpack.i.l.bf16 %v6478_v53  ;;  %v14665_v41 = vunpack.i.h.bf16 %v9505_v20 }
 0x222   : > { %v2196_v1 = vsel %vm2192_vm13, %v2147_v39, %v6475_v16  ;;  %v2195_v0 = vsel %vm2192_vm13, %v2146_v15, %v6474_v22  ;;  %v2564_v15 = vpack.c.bf16 %v10449_v28, %v10446_v44  ;;  %v14661_v22 = vunpack.i.l.bf16 %v9503_v6  ;;  %v14684_v28 = vld [vmem:[#allocation91_spill] sm:$0xff] }
 0x223   : > { %v2197_v54 = vsel %vm2192_vm13, %v2148_v24, %v6479_v35  ;;  %v2198_v38 = vsel %vm2192_vm13, %v2149_v13, %v6480_v11  ;;  %v6483_v34 = vpop.permute.xlu1 %6482  ;;  %v2346_v52 = vrot.slane %v2195_v0, 7  ;;  %v2351_v37 = vrot.slane %v2196_v1, 7 }
 0x224   : > { %v10513_v33 = vpop.permute.xlu0 %6487  ;;  %v2352_v29 = vrot.slane %v2197_v54, 7  ;;  %v2356_v2 = vrot.slane %v2198_v38, 7  ;;  %v6485_v13 = vunpack.i.h.bf16 %v6483_v34  ;;  %v6484_v53 = vunpack.i.l.bf16 %v6483_v34 }
 0x225   : > { %v6489_v24 = vunpack.i.l.bf16 %v10513_v33  ;;  %v2103_v51 = vsel %vm2094_vm5, %v14661_v22, %v6249_v36  ;;  %v14662_v16 = vunpack.i.l.bf16 %v9505_v20  ;;  %v2347_v49 = vsel %vm2337_vm11, %v2342_v18, %v2346_v52  ;;  %v14671_v22 = vld [vmem:[#allocation84_spill] sm:$0xff] }
 0x226   : > { %v14663_v11 = vrot.slane %v10427_v21, 7  ;;  %v14664_v35 = vrot.slane %v10422_v45, 7  ;;  %v2102_v54 = vsel %vm2094_vm5, %v14665_v41, %v6245_v25  ;;  %v2152_v38 = vsel %vm2143_vm12, %v2103_v51, %v6369_v31 }
 0x227   : > { %v2101_v56 = vsel %vm2094_vm5, %v14662_v16, %v6244_v50  ;;  %v2151_v50 = vsel %vm2143_vm12, %v2102_v54, %v6365_v46  ;;  %v2343_v1 = vsel %vm2337_vm11, %v2341_v27, %v2342_v18  ;;  %v2353_v0 = vsel %vm2337_vm11, %v2351_v37, %v2352_v29 }
 0x228   : > { %v10530_v39 = vsel %vm2337_vm11, %v14664_v35, %v14663_v11  ;;  %v2150_v36 = vsel %vm2143_vm12, %v2101_v56, %v6364_v55  ;;  %v2357_v45 = vsel %vm2337_vm11, %v2352_v29, %v2356_v2  ;;  %v2201_v34 = vsel %vm2192_vm13, %v2152_v38, %v6489_v24  ;;  %v6493_v24 = vpop.permute.xlu1 %6492 }
 0x229   : > { %v2199_v52 = vsel %vm2192_vm13, %v2150_v36, %v6484_v53  ;;  %v2200_v20 = vsel %vm2192_vm13, %v2151_v50, %v6485_v13  ;;  %v2563_v25 = vpack.c.bf16 %v2347_v49, %v2343_v1  ;;  %v14666_v31 = vunpack.i.l.bf16 %v9544_v3  ;;  %v14670_v13 = vld [vmem:[#allocation42_spill] sm:$0xff] }
 0x22a   : > { %v14667_v46 = vunpack.i.h.bf16 %v9544_v3  ;;  %v14668_v29 = vunpack.i.l.bf16 %v9546_v23  ;;  %v14669_v37 = vunpack.i.h.bf16 %v9546_v23  ;;  %v6254_v53 = vunpack.i.l.bf16 %v14670_v13 }
 0x22b   : > { %v10548_v55 = vsel %vm2045_vm9, %v10325_v12, %v14666_v31  ;;  %v6255_v12 = vunpack.i.h.bf16 %v14670_v13  ;;  %v6375_v51 = vunpack.i.h.bf16 %v14671_v22  ;;  %5512 = vmatprep.mubr.msk.bf16.mxu0 %vm2709_vm14, %v2563_v25  ;;  %v6374_v16 = vunpack.i.l.bf16 %v14671_v22 }
 0x22c   : > { %v10554_v27 = vsel %vm2045_vm9, %v10321_v57, %v14667_v46  ;;  %v2056_v2 = vsel %vm2045_vm9, %v10331_v17, %v14668_v29  ;;  %v2057_v18 = vsel %vm2045_vm9, %v10341_v40, %v14669_v37  ;;  %v2565_v57 = vpack.c.bf16 %v2357_v45, %v2353_v0  ;;  %v14673_v0 = vld [vmem:[#allocation86_spill] sm:$0xff] }
 0x22d   : > { %v2366_v56 = vrot.slane %v2201_v34, 7  ;;  %v2361_v49 = vrot.slane %v2199_v52, 7  ;;  %v2362_v17 = vrot.slane %v2200_v20, 7  ;;  %v14672_v11 = vpack.c.bf16 %v10441_v48, %v10438_v7 }
 0x22e   : > { %v2378_v40 = vrot.slane %v10548_v55, 7  ;;  %v6250_v35 = vunpack.i.h.bf16 %v9976_v10  ;;  %v6495_v41 = vunpack.i.h.bf16 %v6493_v24  ;;  %v6494_v54 = vunpack.i.l.bf16 %v6493_v24 }
 0x22f   : > { %2795 = vmatmul.mubr.bf16.vlgmr.msra.gmra.mrb[0].mxu0 %v14672_v11  ;;  %v2379_v38 = vrot.slane %v10554_v27, 7  ;;  %v2369_v36 = vrot.slane %v2056_v2, 7  ;;  %v2374_v50 = vrot.slane %v2057_v18, 7  ;;  %v6370_v1 = vunpack.i.h.bf16 %v10191_v4  ;;  %v14677_v18 = vld [vmem:[#allocation88_spill] sm:$0xff]  ;;  %v14682_v11 = vld [vmem:[#allocation75_spill] sm:$0xff] }
 0x230   : > { %5513 = vmatprep.mubr.msk.bf16.mxu0 %vm2709_vm14, %v2565_v57  ;;  %v6150_v45 = vunpack.i.h.bf16 %v14673_v0  ;;  %v14674_v34 = vmov %v14668_v29  ;;  %v14675_v48 = vmov %v14669_v37  ;;  %v6490_v52 = vunpack.i.h.bf16 %v10513_v33 }
 0x231   : > { %v2105_v7 = vsel %vm2094_vm5, %v14674_v34, %v6254_v53  ;;  %v2106_v10 = vsel %vm2094_vm5, %v14675_v48, %v6255_v12  ;;  %v2363_v31 = vsel %vm2337_vm11, %v2361_v49, %v2362_v17  ;;  %v2367_v4 = vsel %vm2337_vm11, %v2362_v17, %v2366_v56  ;;  %v10598_v12 = vpop.permute.xlu1 %6502 }
 0x232   : > { %v2154_v20 = vsel %vm2143_vm12, %v2105_v7, %v6374_v16  ;;  %v2155_v25 = vsel %vm2143_vm12, %v2106_v10, %v6375_v51  ;;  %v6149_v46 = vunpack.i.l.bf16 %v14673_v0  ;;  %v14676_v29 = vunpack.i.h.bf16 %v9503_v6  ;;  %v14680_v51 = vld [vmem:[#allocation41_spill] sm:$0xff] }
 0x233   : > { %v2203_v23 = vsel %vm2192_vm13, %v2154_v20, %v6494_v54  ;;  %v2204_v37 = vsel %vm2192_vm13, %v2155_v25, %v6495_v41  ;;  %v6145_v33 = vunpack.i.h.bf16 %v14677_v18  ;;  %v6144_v24 = vunpack.i.l.bf16 %v14677_v18  ;;  %v6498_v41 = vpop.permute.xlu0 %6497 }
 0x234   : > { %v2104_v2 = vsel %vm2094_vm5, %v14676_v29, %v6250_v35  ;;  %v14678_v53 = vrot.slane %v10404_v19, 7  ;;  %v14679_v22 = vrot.slane %v10427_v21, 7  ;;  %v6264_v57 = vunpack.i.l.bf16 %v14680_v51  ;;  %v14683_v21 = vld [vmem:[#allocation93_spill] sm:$0xff] }
 0x235   : > { %v2153_v13 = vsel %vm2143_vm12, %v2104_v2, %v6370_v1  ;;  %v2567_v56 = vpack.c.bf16 %v2367_v4, %v2363_v31  ;;  %v14681_v49 = vrot.slane %v10417_v5, 7  ;;  %v6384_v35 = vunpack.i.l.bf16 %v14682_v11 }
 0x236   : > { %v2365_v6 = vsel %vm2337_vm11, %v14679_v22, %v14678_v53  ;;  %v2202_v16 = vsel %vm2192_vm13, %v2153_v13, %v6490_v52  ;;  %v2372_v54 = vrot.slane %v2203_v23, 7  ;;  %v2376_v1 = vrot.slane %v2204_v37, 7 }
 0x237   : > { %v10610_v17 = vsel %vm2337_vm11, %v14681_v49, %v2369_v36  ;;  %2803 = vmatmul.mubr.bf16.gmra.mrb[4].mxu0 %v2564_v15  ;;  %v10617_v19 = vsel %vm2337_vm11, %v2369_v36, %v2374_v50  ;;  %v10623_v5 = vsel %vm2045_vm9, %v10347_v58, %v6149_v46  ;;  %v6260_v34 = vunpack.i.h.bf16 %v14683_v21 }
 0x238   : > { %v6259_v7 = vunpack.i.l.bf16 %v14683_v21  ;;  %v6504_v48 = vunpack.i.l.bf16 %v10598_v12  ;;  %5514 = vmatprep.mubr.msk.bf16.mxu0 %vm2709_vm14, %v2567_v56  ;;  %v10633_v44 = vsel %vm2045_vm9, %v10344_v42, %v6150_v45  ;;  %v6380_v15 = vunpack.i.h.bf16 %v14684_v28 }
 0x239   : > { %v6379_v36 = vunpack.i.l.bf16 %v14684_v28  ;;  %v2371_v58 = vrot.slane %v2202_v16, 7  ;;  %v10639_v50 = vsel %vm2045_vm9, %v10351_v32, %v6144_v24  ;;  %v2109_v10 = vsel %vm2094_vm5, %v6144_v24, %v6264_v57  ;;  %v6508_v16 = vpop.permute.xlu0 %6507 }
 0x23a   : > { %v6500_v52 = vunpack.i.h.bf16 %v6498_v41  ;;  %v6499_v20 = vunpack.i.l.bf16 %v6498_v41  ;;  %v10646_v25 = vsel %vm2045_vm9, %v10387_v30, %v6145_v33  ;;  %v2158_v42 = vsel %vm2143_vm12, %v2109_v10, %v6384_v35  ;;  %v14687_v30 = vld [vmem:[#allocation48_spill] sm:$0xff]  ;;  %v14688_v41 = vld [vmem:[#allocation82_spill] sm:$0xff] }
 0x23b   : > { %v2373_v31 = vsel %vm2337_vm11, %v2371_v58, %v2372_v54  ;;  %v2377_v4 = vsel %vm2337_vm11, %v2372_v54, %v2376_v1  ;;  %v14685_v29 = vunpack.i.l.bf16 %v9544_v3  ;;  %v14686_v2 = vunpack.i.h.bf16 %v9544_v3  ;;  %v14689_v58 = vld [vmem:[#allocation87_spill] sm:$0xff] }
 0x23c   : > { %v2207_v37 = vsel %vm2192_vm13, %v2158_v42, %v6504_v48  ;;  %v2566_v24 = vpack.c.bf16 %v2365_v6, %v10530_v39  ;;  %v6270_v13 = vunpack.i.h.bf16 %v14687_v30  ;;  %v6269_v53 = vunpack.i.l.bf16 %v14687_v30 }
 0x23d   : > { %v2107_v32 = vsel %vm2094_vm5, %v14685_v29, %v6259_v7  ;;  %v2108_v23 = vsel %vm2094_vm5, %v14686_v2, %v6260_v34  ;;  %v6265_v56 = vunpack.i.h.bf16 %v14680_v51  ;;  %v2569_v35 = vpack.c.bf16 %v2377_v4, %v2373_v31  ;;  %v14690_v4 = vld [vmem:[#allocation99_spill] sm:$0xff] }
 0x23e   : > { %v2156_v22 = vsel %vm2143_vm12, %v2107_v32, %v6379_v36  ;;  %v2157_v57 = vsel %vm2143_vm12, %v2108_v23, %v6380_v15  ;;  %v6390_v54 = vunpack.i.h.bf16 %v14688_v41  ;;  %v6389_v39 = vunpack.i.l.bf16 %v14688_v41  ;;  %v14691_v32 = vld [vmem:[#allocation54_spill] sm:$0xff]  ;;  %v14692_v2 = vld [vmem:[#allocation47_spill] sm:$0xff]  ;;  %v10694_v23 = vpop.permute.xlu0 %6517 }
 0x23f   : > { %v2205_v49 = vsel %vm2192_vm13, %v2156_v22, %v6499_v20  ;;  %v2206_v3 = vsel %vm2192_vm13, %v2157_v57, %v6500_v52  ;;  %v6385_v6 = vunpack.i.h.bf16 %v14682_v11  ;;  %v2386_v1 = vrot.slane %v2207_v37, 7  ;;  %2811 = vmatmul.mubr.bf16.gmra.mrb[8].mxu0 %v2566_v24  ;;  %v6513_v37 = vpop.permute.xlu1 %6512  ;;  %v14693_v22 = vld [vmem:[#allocation90_spill] sm:$0xff] }
 0x240   : > { %v2389_v21 = vrot.slane %v10623_v5, 7  ;;  %v6510_v34 = vunpack.i.h.bf16 %v6508_v16  ;;  %v6509_v7 = vunpack.i.l.bf16 %v6508_v16  ;;  %v6505_v48 = vunpack.i.h.bf16 %v10598_v12  ;;  %5515 = vmatprep.mubr.msk.bf16.mxu0 %vm2709_vm14, %v2569_v35 }
 0x241   : > { %v2394_v51 = vrot.slane %v10633_v44, 7  ;;  %v2384_v28 = vrot.slane %v10639_v50, 7  ;;  %v2381_v15 = vrot.slane %v2205_v49, 7  ;;  %v2382_v36 = vrot.slane %v2206_v3, 7 }
 0x242   : > { %v6159_v10 = vunpack.i.l.bf16 %v14689_v58  ;;  %v2111_v11 = vsel %vm2094_vm5, %v6149_v46, %v6269_v53  ;;  %v2112_v52 = vsel %vm2094_vm5, %v6150_v45, %v6270_v13  ;;  %v2110_v12 = vsel %vm2094_vm5, %v6145_v33, %v6265_v56 }
 0x243   : > { %v2160_v20 = vsel %vm2143_vm12, %v2111_v11, %v6389_v39  ;;  %v2161_v50 = vsel %vm2143_vm12, %v2112_v52, %v6390_v54  ;;  %v2159_v42 = vsel %vm2143_vm12, %v2110_v12, %v6385_v6  ;;  %v2387_v31 = vsel %vm2337_vm11, %v2382_v36, %v2386_v1 }
 0x244   : > { %v6155_v29 = vunpack.i.h.bf16 %v14690_v4  ;;  %v2209_v46 = vsel %vm2192_vm13, %v2160_v20, %v6509_v7  ;;  %v2210_v0 = vsel %vm2192_vm13, %v2161_v50, %v6510_v34  ;;  %v2208_v45 = vsel %vm2192_vm13, %v2159_v42, %v6505_v48  ;;  %v14694_v20 = vld [vmem:[#allocation103_spill] sm:$0xff]  ;;  %v6523_v42 = vpop.permute.xlu1 %6522 }
 0x245   : > { %v6279_v18 = vunpack.i.l.bf16 %v14691_v32  ;;  %v6275_v33 = vunpack.i.h.bf16 %v14692_v2  ;;  %v2568_v24 = vpack.c.bf16 %v10617_v19, %v10610_v17  ;;  %v2383_v30 = vsel %vm2337_vm11, %v2381_v15, %v2382_v36 }
 0x246   : > { %v6274_v13 = vunpack.i.l.bf16 %v14692_v2  ;;  %v6399_v53 = vunpack.i.l.bf16 %v10256_v47  ;;  %v6395_v57 = vunpack.i.h.bf16 %v14693_v22  ;;  %v2571_v16 = vpack.c.bf16 %v2387_v31, %v2383_v30 }
 0x247   : > { %v6394_v56 = vunpack.i.l.bf16 %v14693_v22  ;;  %v2392_v49 = vrot.slane %v2209_v46, 7  ;;  %v2396_v3 = vrot.slane %v2210_v0, 7  ;;  %v2391_v35 = vrot.slane %v2208_v45, 7  ;;  %2819 = vmatmul.mubr.bf16.gmra.mrb[12].mxu0 %v2568_v24  ;;  %v14696_v46 = vld [vmem:[#allocation96_spill] sm:$0xff] }
 0x248   : > { %v6154_v41 = vunpack.i.l.bf16 %v14690_v4  ;;  %v6519_v54 = vunpack.i.l.bf16 %v10694_v23  ;;  %v6515_v17 = vunpack.i.h.bf16 %v6513_v37  ;;  %v6514_v19 = vunpack.i.l.bf16 %v6513_v37  ;;  %5516 = vmatprep.mubr.msk.bf16.mxu0 %vm2709_vm14, %v2571_v16  ;;  %v14695_v4 = vld [vmem:[#allocation59_spill] sm:$0xff] }
 0x249   : > { %v2388_v39 = vrot.slane %v10646_v25, 7  ;;  %v6160_v6 = vunpack.i.h.bf16 %v14689_v58  ;;  %v2115_v1 = vsel %vm2094_vm5, %v6159_v10, %v6279_v18  ;;  %v2380_v34 = vsel %vm2337_vm11, %v2378_v40, %v2379_v38 }
 0x24a   : > { %v2113_v7 = vsel %vm2094_vm5, %v6154_v41, %v6274_v13  ;;  %v2114_v48 = vsel %vm2094_vm5, %v6155_v29, %v6275_v33  ;;  %v2164_v15 = vsel %vm2143_vm12, %v2115_v1, %v6399_v53  ;;  %v2385_v25 = vsel %vm2337_vm11, %v2379_v38, %v2384_v28 }
 0x24b   : > { %v2162_v36 = vsel %vm2143_vm12, %v2113_v7, %v6394_v56  ;;  %v2163_v58 = vsel %vm2143_vm12, %v2114_v48, %v6395_v57  ;;  %v2393_v11 = vsel %vm2337_vm11, %v2391_v35, %v2392_v49  ;;  %v2397_v55 = vsel %vm2337_vm11, %v2392_v49, %v2396_v3 }
 0x24c   : > { %v10726_v40 = vsel %vm2045_vm9, %v10395_v62, %v6159_v10  ;;  %v2213_v52 = vsel %vm2192_vm13, %v2164_v15, %v6519_v54  ;;  %v2211_v12 = vsel %vm2192_vm13, %v2162_v36, %v6514_v19  ;;  %v2212_v27 = vsel %vm2192_vm13, %v2163_v58, %v6515_v17  ;;  %v6528_v15 = vpop.permute.xlu0 %6527  ;;  %v14698_v58 = vld [vmem:[#allocation62_spill] sm:$0xff] }
 0x24d   : > { %v10733_v38 = vsel %vm2045_vm9, %v10391_v60, %v6160_v6  ;;  %v2064_v28 = vsel %vm2045_vm9, %v10399_v8, %v6154_v41  ;;  %v6165_v50 = vunpack.i.h.bf16 %v14694_v20  ;;  %v2570_v31 = vpack.c.bf16 %v2385_v25, %v2380_v34 }
 0x24e   : > { %v6285_v62 = vunpack.i.h.bf16 %v14695_v4  ;;  %v6284_v10 = vunpack.i.l.bf16 %v14695_v4  ;;  %v6405_v0 = vunpack.i.h.bf16 %v14696_v46  ;;  %v2573_v45 = vpack.c.bf16 %v2397_v55, %v2393_v11 }
 0x24f   : > { %v6404_v18 = vunpack.i.l.bf16 %v14696_v46  ;;  %v2406_v2 = vrot.slane %v2213_v52, 7  ;;  %v2401_v33 = vrot.slane %v2211_v12, 7  ;;  %v2402_v60 = vrot.slane %v2212_v27, 7  ;;  %2827 = vmatmul.mubr.bf16.gmra.mrb[16].mxu0 %v2570_v31  ;;  %v14699_v52 = vld [vmem:[#allocation81_spill] sm:$0xff] }
 0x250   : > { %v6164_v37 = vunpack.i.l.bf16 %v14694_v20  ;;  %v6280_v8 = vunpack.i.h.bf16 %v14691_v32  ;;  %v6525_v24 = vunpack.i.h.bf16 %v6523_v42  ;;  %v6524_v30 = vunpack.i.l.bf16 %v6523_v42  ;;  %5517 = vmatprep.mubr.msk.bf16.mxu0 %vm2709_vm14, %v2573_v45  ;;  %v14700_v20 = vld [vmem:[#allocation105_spill] sm:$0xff]  ;;  %v14702_v45 = vld [vmem:[#allocation98_spill] sm:$0xff] }
 0x251   : > { %v2065_v13 = vsel %vm2045_vm9, %v10412_v63, %v6155_v29  ;;  %v2398_v53 = vrot.slane %v2064_v28, 7  ;;  %v6400_v22 = vunpack.i.h.bf16 %v10256_v47  ;;  %v2390_v57 = vsel %vm2337_vm11, %v2388_v39, %v2389_v21  ;;  %v14697_v39 = vld [vmem:[#allocation60_spill] sm:$0xff] }
 0x252   : > { %v2117_v16 = vsel %vm2094_vm5, %v6164_v37, %v6284_v10  ;;  %v2118_v56 = vsel %vm2094_vm5, %v6165_v50, %v6285_v62  ;;  %v6520_v32 = vunpack.i.h.bf16 %v10694_v23  ;;  %v2395_v49 = vsel %vm2337_vm11, %v2389_v21, %v2394_v51  ;;  %v10769_v51 = vpop.permute.xlu1 %6532 }
 0x253   : > { %v2166_v63 = vsel %vm2143_vm12, %v2117_v16, %v6404_v18  ;;  %v2167_v47 = vsel %vm2143_vm12, %v2118_v56, %v6405_v0  ;;  %v2403_v29 = vsel %vm2337_vm11, %v2401_v33, %v2402_v60  ;;  %v2407_v3 = vsel %vm2337_vm11, %v2402_v60, %v2406_v2 }
 0x254   : > { %v2399_v35 = vrot.slane %v2065_v13, 7  ;;  %v2116_v41 = vsel %vm2094_vm5, %v6160_v6, %v6280_v8  ;;  %v2215_v54 = vsel %vm2192_vm13, %v2166_v63, %v6524_v30  ;;  %v2216_v23 = vsel %vm2192_vm13, %v2167_v47, %v6525_v24  ;;  %v14705_v24 = vld [vmem:[#allocation53_spill] sm:$0xff] }
 0x255   : > { %v2404_v44 = vrot.slane %v10726_v40, 7  ;;  %v2408_v5 = vrot.slane %v10733_v38, 7  ;;  %v2165_v21 = vsel %vm2143_vm12, %v2116_v41, %v6400_v22  ;;  %v2572_v17 = vpack.c.bf16 %v2395_v49, %v2390_v57  ;;  %v6538_v57 = vpop.permute.xlu0 %6537 }
 0x256   : > { %v2068_v19 = vsel %vm2045_vm9, %v10431_v59, %v6164_v37  ;;  %v6294_v1 = vunpack.i.l.bf16 %v14697_v39  ;;  %v2214_v6 = vsel %vm2192_vm13, %v2165_v21, %v6520_v32  ;;  %v2575_v34 = vpack.c.bf16 %v2407_v3, %v2403_v29 }
 0x257   : > { %v2069_v7 = vsel %vm2045_vm9, %v10435_v26, %v6165_v50  ;;  %v6414_v48 = vunpack.i.l.bf16 %v10312_v9  ;;  %v2412_v25 = vrot.slane %v2215_v54, 7  ;;  %v2416_v36 = vrot.slane %v2216_v23, 7  ;;  %2835 = vmatmul.mubr.bf16.gmra.mrb[20].mxu0 %v2572_v17  ;;  %v14706_v17 = vld [vmem:[#allocation97_spill] sm:$0xff] }
 0x258   : > { %v6290_v11 = vunpack.i.h.bf16 %v14698_v58  ;;  %v6289_v55 = vunpack.i.l.bf16 %v14698_v58  ;;  %v6534_v59 = vunpack.i.l.bf16 %v10769_v51  ;;  %5518 = vmatprep.mubr.msk.bf16.mxu0 %vm2709_vm14, %v2575_v34  ;;  %v2400_v40 = vsel %vm2337_vm11, %v2398_v53, %v2399_v35  ;;  %v14710_v58 = vld [vmem:[#allocation66_spill] sm:$0xff] }
 0x259   : > { %v6410_v12 = vunpack.i.h.bf16 %v14699_v52  ;;  %v6409_v26 = vunpack.i.l.bf16 %v14699_v52  ;;  %v2411_v27 = vrot.slane %v2214_v6, 7  ;;  %v2405_v38 = vsel %vm2337_vm11, %v2399_v35, %v2404_v44  ;;  %v6543_v52 = vpop.permute.xlu1 %6542 }
 0x25a   : > { %v2409_v28 = vrot.slane %v2068_v19, 7  ;;  %v14701_v50 = vunpack.i.l.bf16 %v14700_v20  ;;  %v6530_v31 = vunpack.i.h.bf16 %v6528_v15  ;;  %v6529_v4 = vunpack.i.l.bf16 %v6528_v15 }
 0x25b   : > { %v2414_v62 = vrot.slane %v2069_v7, 7  ;;  %v2413_v46 = vsel %vm2337_vm11, %v2411_v27, %v2412_v25  ;;  %v2417_v0 = vsel %vm2337_vm11, %v2412_v25, %v2416_v36  ;;  %v14703_v18 = vunpack.i.l.bf16 %v14702_v45 }
 0x25c   : > { %v2121_v42 = vsel %vm2094_vm5, %v14701_v50, %v6294_v1  ;;  %v14704_v33 = vunpack.i.h.bf16 %v14702_v45  ;;  %v2574_v8 = vpack.c.bf16 %v2405_v38, %v2400_v40  ;;  %v6300_v30 = vunpack.i.h.bf16 %v14705_v24  ;;  %v6548_v40 = vpop.permute.xlu0 %6547  ;;  %v14713_v45 = vld [vmem:[#allocation111_spill] sm:$0xff] }
 0x25d   : > { %v2170_v10 = vsel %vm2143_vm12, %v2121_v42, %v6414_v48  ;;  %v2119_v2 = vsel %vm2094_vm5, %v14703_v18, %v6289_v55  ;;  %v6299_v13 = vunpack.i.l.bf16 %v14705_v24  ;;  %v6295_v16 = vunpack.i.h.bf16 %v14697_v39  ;;  %v14711_v55 = vld [vmem:[#allocation63_spill] sm:$0xff] }
 0x25e   : > { %v2120_v60 = vsel %vm2094_vm5, %v14704_v33, %v6290_v11  ;;  %v2219_v37 = vsel %vm2192_vm13, %v2170_v10, %v6534_v59  ;;  %v2168_v53 = vsel %vm2143_vm12, %v2119_v2, %v6409_v26  ;;  %v2577_v49 = vpack.c.bf16 %v2417_v0, %v2413_v46  ;;  %v14715_v33 = vld [vmem:[#allocation110_spill] sm:$0xff] }
 0x25f   : > { %v2169_v22 = vsel %vm2143_vm12, %v2120_v60, %v6410_v12  ;;  %v2217_v56 = vsel %vm2192_vm13, %v2168_v53, %v6529_v4  ;;  %v6420_v63 = vunpack.i.h.bf16 %v10310_v14  ;;  %v6419_v47 = vunpack.i.l.bf16 %v10310_v14  ;;  %2843 = vmatmul.mubr.bf16.gmra.mrb[24].mxu0 %v2574_v8 }
 0x260   : > { %v2218_v32 = vsel %vm2192_vm13, %v2169_v22, %v6530_v31  ;;  %v6415_v29 = vunpack.i.h.bf16 %v10312_v9  ;;  %v2426_v3 = vrot.slane %v2219_v37, 7  ;;  %v6540_v35 = vunpack.i.h.bf16 %v6538_v57  ;;  %5519 = vmatprep.mubr.msk.bf16.mxu0 %vm2709_vm14, %v2577_v49  ;;  %v6553_v49 = vpop.permute.xlu1 %6552 }
 0x261   : > { %v6539_v41 = vunpack.i.l.bf16 %v6538_v57  ;;  %v6535_v54 = vunpack.i.h.bf16 %v10769_v51  ;;  %v2421_v23 = vrot.slane %v2217_v56, 7  ;;  %v2422_v44 = vrot.slane %v2218_v32, 7 }
 0x262   : > { %v2410_v21 = vsel %vm2337_vm11, %v2408_v5, %v2409_v28  ;;  %v14707_v19 = vunpack.i.l.bf16 %v14706_v17  ;;  %v14708_v14 = vunpack.i.h.bf16 %v14706_v17  ;;  %v14709_v1 = vunpack.i.h.bf16 %v14700_v20  ;;  %v14720_v17 = vld [vmem:[#allocation118_spill] sm:$0xff] }
 0x263   : > { %v2415_v51 = vsel %vm2337_vm11, %v2409_v28, %v2414_v62  ;;  %v2427_v48 = vsel %vm2337_vm11, %v2422_v44, %v2426_v3  ;;  %v6309_v11 = vunpack.i.l.bf16 %v14710_v58  ;;  %v6305_v59 = vunpack.i.h.bf16 %v14711_v55  ;;  %v14712_v28 = vld [vmem:[#allocation89_spill] sm:$0xff]  ;;  %v14719_v3 = vld [vmem:[#allocation94_spill] sm:$0xff] }
 0x264   : > { %v2123_v39 = vsel %vm2094_vm5, %v14707_v19, %v6299_v13  ;;  %v2124_v9 = vsel %vm2094_vm5, %v14708_v14, %v6300_v30  ;;  %v2122_v6 = vsel %vm2094_vm5, %v14709_v1, %v6295_v16  ;;  %v2576_v12 = vpack.c.bf16 %v2415_v51, %v2410_v21  ;;  %v14721_v19 = vld [vmem:[#allocation108_spill] sm:$0xff]  ;;  %v14723_v51 = vld [vmem:[#allocation106_spill] sm:$0xff] }
 0x265   : > { %v2172_v34 = vsel %vm2143_vm12, %v2123_v39, %v6419_v47  ;;  %v2173_v7 = vsel %vm2143_vm12, %v2124_v9, %v6420_v63  ;;  %v2171_v5 = vsel %vm2143_vm12, %v2122_v6, %v6415_v29  ;;  %v2423_v26 = vsel %vm2337_vm11, %v2421_v23, %v2422_v44  ;;  %v14718_v63 = vld [vmem:[#allocation58_spill] sm:$0xff] }
 0x266   : > { %v2221_v15 = vsel %vm2192_vm13, %v2172_v34, %v6539_v41  ;;  %v2222_v25 = vsel %vm2192_vm13, %v2173_v7, %v6540_v35  ;;  %v2220_v36 = vsel %vm2192_vm13, %v2171_v5, %v6535_v54  ;;  %v6304_v27 = vunpack.i.l.bf16 %v14711_v55 }
 0x267   : > { %v6429_v38 = vunpack.i.l.bf16 %v10336_v43  ;;  %v6425_v20 = vunpack.i.h.bf16 %v14712_v28  ;;  %v2579_v50 = vpack.c.bf16 %v2427_v48, %v2423_v26  ;;  %v6424_v42 = vunpack.i.l.bf16 %v14712_v28  ;;  %2851 = vmatmul.mubr.bf16.gmra.mrb[28].mxu0 %v2576_v12  ;;  %v6563_v26 = vpop.permute.xlu1 %6562 }
 0x268   : > { %v2432_v31 = vrot.slane %v2221_v15, 7  ;;  %v2436_v4 = vrot.slane %v2222_v25, 7  ;;  %v2431_v62 = vrot.slane %v2220_v36, 7  ;;  %v6549_v10 = vunpack.i.l.bf16 %v6548_v40 }
 0x269   : > { %v6545_v46 = vunpack.i.h.bf16 %v6543_v52  ;;  %v6544_v0 = vunpack.i.l.bf16 %v6543_v52  ;;  %5520 = vmatprep.mubr.msk.bf16.mxu0 %vm2709_vm14, %v2579_v50  ;;  %v14714_v18 = vunpack.i.l.bf16 %v14713_v45  ;;  %v14716_v60 = vunpack.i.l.bf16 %v14715_v33  ;;  %v6558_v50 = vpop.permute.xlu0 %6557 }
 0x26a   : > { %v14717_v8 = vunpack.i.h.bf16 %v14715_v33  ;;  %v2433_v22 = vsel %vm2337_vm11, %v2431_v62, %v2432_v31  ;;  %v2437_v57 = vsel %vm2337_vm11, %v2432_v31, %v2436_v4  ;;  %v6315_v47 = vunpack.i.h.bf16 %v14718_v63  ;;  %v14728_v4 = vld [vmem:[#allocation17_spill] sm:$0xff]  ;;  %v14729_v62 = vld [vmem:[#allocation119_spill] sm:$0xff] }
 0x26b   : > { %v2127_v2 = vsel %vm2094_vm5, %v14714_v18, %v6309_v11  ;;  %v2125_v37 = vsel %vm2094_vm5, %v14716_v60, %v6304_v27  ;;  %v6314_v29 = vunpack.i.l.bf16 %v14718_v63  ;;  %v6435_v35 = vunpack.i.h.bf16 %v14719_v3 }
 0x26c   : > { %v2126_v24 = vsel %vm2094_vm5, %v14717_v8, %v6305_v59  ;;  %v2176_v30 = vsel %vm2143_vm12, %v2127_v2, %v6429_v38  ;;  %v2174_v13 = vsel %vm2143_vm12, %v2125_v37, %v6424_v42  ;;  %v2581_v41 = vpack.c.bf16 %v2437_v57, %v2433_v22  ;;  %v14732_v2 = vld [vmem:[#allocation102_spill] sm:$0xff] }
 0x26d   : > { %v2175_v53 = vsel %vm2143_vm12, %v2126_v24, %v6425_v20  ;;  %v2225_v16 = vsel %vm2192_vm13, %v2176_v30, %v6549_v10  ;;  %v2223_v56 = vsel %vm2192_vm13, %v2174_v13, %v6544_v0  ;;  %v6434_v54 = vunpack.i.l.bf16 %v14719_v3  ;;  %v14733_v8 = vld [vmem:[#allocation114_spill] sm:$0xff]  ;;  %v14738_v3 = vld [vmem:[#allocation69_spill] sm:$0xff] }
 0x26e   : > { %v2224_v32 = vsel %vm2192_vm13, %v2175_v53, %v6545_v46  ;;  %v2446_v23 = vrot.slane %v2225_v16, 7  ;;  %v2441_v44 = vrot.slane %v2223_v56, 7  ;;  %v14722_v39 = vpack.c.bf16 %v14720_v17, %v14721_v19  ;;  %v14731_v46 = vld [vmem:[#allocation65_spill] sm:$0xff]  ;;  %v14735_v56 = vld [vmem:[#allocation104_spill] sm:$0xff] }
 0x26f   : > { %v2442_v21 = vrot.slane %v2224_v32, 7  ;;  %v6310_v14 = vunpack.i.h.bf16 %v14710_v58  ;;  %v6555_v9 = vunpack.i.h.bf16 %v6553_v49  ;;  %v6554_v1 = vunpack.i.l.bf16 %v6553_v49 }
 0x270   : > { %2859 = vmatmul.mubr.bf16.gmra.mrb[32].mxu0 %v14722_v39  ;;  %v6430_v6 = vunpack.i.h.bf16 %v10336_v43  ;;  %v14724_v34 = vunpack.i.l.bf16 %v14723_v51  ;;  %v14725_v5 = vunpack.i.h.bf16 %v14723_v51  ;;  %v6550_v15 = vunpack.i.h.bf16 %v6548_v40  ;;  %v14727_v40 = vld [vmem:[#allocation64_spill] sm:$0xff] }
 0x271   : > { %5521 = vmatprep.mubr.msk.bf16.mxu0 %vm2709_vm14, %v2581_v41  ;;  %v2443_v58 = vsel %vm2337_vm11, %v2441_v44, %v2442_v21  ;;  %v2447_v11 = vsel %vm2337_vm11, %v2442_v21, %v2446_v23  ;;  %v14726_v55 = vunpack.i.h.bf16 %v14713_v45  ;;  %v6324_v27 = vunpack.i.l.bf16 %v14727_v40  ;;  %v6568_v44 = vpop.permute.xlu0 %6567 }
 0x272   : > { %v2129_v7 = vsel %vm2094_vm5, %v14724_v34, %v6314_v29  ;;  %v2130_v48 = vsel %vm2094_vm5, %v14725_v5, %v6315_v47  ;;  %v2583_v28 = vpack.c.bf16 %v2447_v11, %v2443_v58  ;;  %v6444_v20 = vunpack.i.l.bf16 %v10408_v61  ;;  %v14740_v34 = vld [vmem:[#allocation32_spill] sm:$0xff]  ;;  %v14743_v11 = vld [vmem:[#allocation115_spill] sm:$0xff] }
 0x273   : > { %v2178_v25 = vsel %vm2143_vm12, %v2129_v7, %v6434_v54  ;;  %v2179_v36 = vsel %vm2143_vm12, %v2130_v48, %v6435_v35  ;;  %v2128_v43 = vsel %vm2094_vm5, %v14726_v55, %v6310_v14  ;;  %v14730_v10 = vpack.c.bf16 %v14728_v4, %v14729_v62  ;;  %v14739_v14 = vld [vmem:[#allocation109_spill] sm:$0xff]  ;;  %v14741_v7 = vld [vmem:[#allocation12_spill] sm:$0xff]  ;;  %v14748_v4 = vld [vmem:[#allocation95_spill] sm:$0xff] }
 0x274   : > { %v2227_v59 = vsel %vm2192_vm13, %v2178_v25, %v6554_v1  ;;  %v2228_v52 = vsel %vm2192_vm13, %v2179_v36, %v6555_v9  ;;  %v2177_v12 = vsel %vm2143_vm12, %v2128_v43, %v6430_v6  ;;  %v6320_v0 = vunpack.i.h.bf16 %v14731_v46 }
 0x275   : > { %v2226_v38 = vsel %vm2192_vm13, %v2177_v12, %v6550_v15  ;;  %v2452_v42 = vrot.slane %v2227_v59, 7  ;;  %v2456_v31 = vrot.slane %v2228_v52, 7  ;;  %v6319_v45 = vunpack.i.l.bf16 %v14731_v46  ;;  %v6573_v46 = vpop.permute.xlu1 %6572 }
 0x276   : > { %v6564_v18 = vunpack.i.l.bf16 %v6563_v26  ;;  %v6440_v33 = vunpack.i.h.bf16 %v14732_v2  ;;  %v6439_v60 = vunpack.i.l.bf16 %v14732_v2  ;;  %v2451_v37 = vrot.slane %v2226_v38, 7 }
 0x277   : > { %v14734_v24 = vunpack.i.l.bf16 %v14733_v8  ;;  %v6560_v13 = vunpack.i.h.bf16 %v6558_v50  ;;  %v6559_v53 = vunpack.i.l.bf16 %v6558_v50  ;;  %v2457_v16 = vsel %vm2337_vm11, %v2452_v42, %v2456_v31 }
 0x278   : > { %2867 = vmatmul.mubr.bf16.gmra.mrb[36].mxu0 %v14730_v10  ;;  %v2453_v57 = vsel %vm2337_vm11, %v2451_v37, %v2452_v42  ;;  %v14736_v32 = vunpack.i.l.bf16 %v14735_v56  ;;  %v14737_v63 = vunpack.i.h.bf16 %v14735_v56  ;;  %v6330_v35 = vunpack.i.h.bf16 %v14738_v3  ;;  %v14747_v42 = vld [vmem:[#allocation100_spill] sm:$0xff]  ;;  %v10936_v10 = vpop.permute.xlu0 %6577 }
 0x279   : > { %5522 = vmatprep.mubr.msk.bf16.mxu0 %vm2709_vm14, %v2583_v28  ;;  %v2133_v30 = vsel %vm2094_vm5, %v14734_v24, %v6324_v27  ;;  %v6329_v41 = vunpack.i.l.bf16 %v14738_v3  ;;  %v6325_v21 = vunpack.i.h.bf16 %v14727_v40  ;;  %v2585_v39 = vpack.c.bf16 %v2457_v16, %v2453_v57 }
 0x27a   : > { %v2182_v22 = vsel %vm2143_vm12, %v2133_v30, %v6444_v20  ;;  %v2131_v49 = vsel %vm2094_vm5, %v14736_v32, %v6319_v45  ;;  %v2132_v47 = vsel %vm2094_vm5, %v14737_v63, %v6320_v0  ;;  %v6450_v9 = vunpack.i.h.bf16 %v14739_v14 }
 0x27b   : > { %v2231_v29 = vsel %vm2192_vm13, %v2182_v22, %v6564_v18  ;;  %v2180_v54 = vsel %vm2143_vm12, %v2131_v49, %v6439_v60  ;;  %v2181_v23 = vsel %vm2143_vm12, %v2132_v47, %v6440_v33  ;;  %v6449_v1 = vunpack.i.l.bf16 %v14739_v14  ;;  %v14749_v18 = vld [vmem:[#allocation101_spill] sm:$0xff]  ;;  %v14752_v22 = vld [vmem:[#allocation30_spill] sm:$0xff]  ;;  %v14754_v49 = vld [vmem:[#allocation23_spill] sm:$0xff] }
 0x27c   : > { %v2229_v17 = vsel %vm2192_vm13, %v2180_v54, %v6559_v53  ;;  %v2230_v19 = vsel %vm2192_vm13, %v2181_v23, %v6560_v13  ;;  %v6445_v6 = vunpack.i.h.bf16 %v10408_v61  ;;  %v2466_v51 = vrot.slane %v2231_v29, 7  ;;  %v14750_v33 = vld [vmem:[#allocation113_spill] sm:$0xff]  ;;  %v14751_v53 = vld [vmem:[#allocation22_spill] sm:$0xff] }
 0x27d   : > { %v14742_v5 = vpack.c.bf16 %v14740_v34, %v14741_v7  ;;  %v6570_v48 = vunpack.i.h.bf16 %v6568_v44  ;;  %v6569_v15 = vunpack.i.l.bf16 %v6568_v44  ;;  %v6565_v25 = vunpack.i.h.bf16 %v6563_v26  ;;  %v14756_v29 = vld [vmem:[#allocation13_spill] sm:$0xff]  ;;  %v14760_v7 = vld [vmem:[#allocation107_spill] sm:$0xff] }
 0x27e   : > { %v2461_v36 = vrot.slane %v2229_v17, 7  ;;  %v2462_v58 = vrot.slane %v2230_v19, 7  ;;  %v14744_v55 = vunpack.i.l.bf16 %v14743_v11  ;;  %v14745_v59 = vunpack.i.h.bf16 %v14743_v11  ;;  %v14761_v11 = vld [vmem:[#allocation37_spill] sm:$0xff] }
 0x27f   : > { %v14746_v52 = vunpack.i.h.bf16 %v14733_v8  ;;  %v6339_v31 = vunpack.i.l.bf16 %v14747_v42  ;;  %v6335_v62 = vunpack.i.h.bf16 %v14748_v4  ;;  %v6334_v45 = vunpack.i.l.bf16 %v14748_v4 }
 0x280   : > { %2875 = vmatmul.mubr.bf16.gmra.mrb[40].mxu0 %v14742_v5  ;;  %v2135_v43 = vsel %vm2094_vm5, %v14744_v55, %v6329_v41  ;;  %v2136_v61 = vsel %vm2094_vm5, %v14745_v59, %v6330_v35  ;;  %v2467_v38 = vsel %vm2337_vm11, %v2462_v58, %v2466_v51  ;;  %v2463_v0 = vsel %vm2337_vm11, %v2461_v36, %v2462_v58  ;;  %v6583_v51 = vpop.permute.xlu1 %6582  ;;  %v14762_v55 = vld [vmem:[#allocation33_spill] sm:$0xff] }
 0x281   : > { %5523 = vmatprep.mubr.msk.bf16.mxu0 %vm2709_vm14, %v2585_v39  ;;  %v2134_v12 = vsel %vm2094_vm5, %v14746_v52, %v6325_v21  ;;  %v2184_v40 = vsel %vm2143_vm12, %v2135_v43, %v6449_v1  ;;  %v2185_v26 = vsel %vm2143_vm12, %v2136_v61, %v6450_v9  ;;  %v6459_v2 = vunpack.i.l.bf16 %v14749_v18  ;;  %v14759_v1 = vld [vmem:[#allocation76_spill] sm:$0xff] }
 0x282   : > { %v2183_v27 = vsel %vm2143_vm12, %v2134_v12, %v6445_v6  ;;  %v2233_v28 = vsel %vm2192_vm13, %v2184_v40, %v6569_v15  ;;  %v2234_v20 = vsel %vm2192_vm13, %v2185_v26, %v6570_v48  ;;  %v6455_v60 = vunpack.i.h.bf16 %v14750_v33  ;;  %v14764_v12 = vld [vmem:[#allocation16_spill] sm:$0xff] }
 0x283   : > { %v2232_v50 = vsel %vm2192_vm13, %v2183_v27, %v6565_v25  ;;  %v2587_v37 = vpack.c.bf16 %v2467_v38, %v2463_v0  ;;  %v6454_v8 = vunpack.i.l.bf16 %v14750_v33  ;;  %v2472_v24 = vrot.slane %v2233_v28, 7 }
 0x284   : > { %v2476_v30 = vrot.slane %v2234_v20, 7  ;;  %v2471_v13 = vrot.slane %v2232_v50, 7  ;;  %v14753_v57 = vpack.c.bf16 %v14751_v53, %v14752_v22  ;;  %v6579_v16 = vunpack.i.l.bf16 %v10936_v10  ;;  %v11071_v53 = vld [vmem:[#allocation3 + $0x8] sm:$0xff] }
 0x285   : > { %v6575_v56 = vunpack.i.h.bf16 %v6573_v46  ;;  %v6574_v32 = vunpack.i.l.bf16 %v6573_v46  ;;  %v14755_v63 = vunpack.i.l.bf16 %v14754_v49  ;;  %v14757_v3 = vunpack.i.l.bf16 %v14756_v29 }
 0x286   : > { %v14758_v41 = vunpack.i.h.bf16 %v14756_v29  ;;  %v2473_v17 = vsel %vm2337_vm11, %v2471_v13, %v2472_v24  ;;  %v2477_v19 = vsel %vm2337_vm11, %v2472_v24, %v2476_v30  ;;  %v6344_v6 = vunpack.i.l.bf16 %v14759_v1  ;;  %v14770_v24 = vld [vmem:[#allocation36_spill] sm:$0xff]  ;;  %v14772_v29 = vld [vmem:[#allocation27_spill] sm:$0xff] }
 0x287   : > { %v2139_v47 = vsel %vm2094_vm5, %v14755_v63, %v6339_v31  ;;  %v2137_v35 = vsel %vm2094_vm5, %v14757_v3, %v6334_v45  ;;  %v6345_v34 = vunpack.i.h.bf16 %v14759_v1  ;;  %v6464_v5 = vunpack.i.l.bf16 %v14760_v7  ;;  %v14773_v3 = vld [vmem:[#allocation31_spill] sm:$0xff] }
 0x288   : > { %2883 = vmatmul.mubr.bf16.gmra.mrb[44].mxu0 %v14753_v57  ;;  %v2138_v54 = vsel %vm2094_vm5, %v14758_v41, %v6335_v62  ;;  %v2188_v23 = vsel %vm2143_vm12, %v2139_v47, %v6459_v2  ;;  %v2186_v44 = vsel %vm2143_vm12, %v2137_v35, %v6454_v8  ;;  %v2589_v48 = vpack.c.bf16 %v2477_v19, %v2473_v17  ;;  %v14769_v8 = vld [vmem:[#allocation29_spill] sm:$0xff]  ;;  %v14775_v41 = vld [vmem:[#allocation35_spill] sm:$0xff] }
 0x289   : > { %5524 = vmatprep.mubr.msk.bf16.mxu0 %vm2709_vm14, %v2587_v37  ;;  %v2187_v21 = vsel %vm2143_vm12, %v2138_v54, %v6455_v60  ;;  %v2237_v39 = vsel %vm2192_vm13, %v2188_v23, %v6579_v16  ;;  %v2235_v14 = vsel %vm2192_vm13, %v2186_v44, %v6574_v32  ;;  %v6465_v15 = vunpack.i.h.bf16 %v14760_v7  ;;  %v14776_v54 = vld [vmem:[#allocation38_spill] sm:$0xff] }
 0x28a   : > { %v2236_v9 = vsel %vm2192_vm13, %v2187_v21, %v6575_v56  ;;  %v2486_v25 = vrot.slane %v2237_v39, 7  ;;  %v2481_v36 = vrot.slane %v2235_v14, 7  ;;  %v14763_v43 = vpack.c.bf16 %v14761_v11, %v14762_v55  ;;  %v11091_v44 = vld [vmem:[%s13706_s2] ss:$0 sm:$0xff] }
 0x28b   : > { %v2482_v58 = vrot.slane %v2236_v9, 7  ;;  %v6340_v59 = vunpack.i.h.bf16 %v14747_v42  ;;  %v6585_v61 = vunpack.i.h.bf16 %v6583_v51  ;;  %v6584_v52 = vunpack.i.l.bf16 %v6583_v51  ;;  %v11097_v39 = vld [vmem:[%s13707_s3] ss:$0 sm:$0xff] }
 0x28c   : > { %v14765_v40 = vunpack.i.l.bf16 %v14764_v12  ;;  %v6460_v27 = vunpack.i.h.bf16 %v14749_v18  ;;  %v14766_v38 = vunpack.i.h.bf16 %v14764_v12  ;;  %v6580_v50 = vunpack.i.h.bf16 %v10936_v10  ;;  %v11103_v51 = vld [vmem:[%s13708_s4] ss:$0 sm:$0xff] }
 0x28d   : > { %v2483_v31 = vsel %vm2337_vm11, %v2481_v36, %v2482_v58  ;;  %v2487_v4 = vsel %vm2337_vm11, %v2482_v58, %v2486_v25  ;;  %v14767_v62 = vmov 0.0   ;;  %v14768_v46 = vunpack.i.h.bf16 %v14754_v49 }
 0x28e   : > { %v2141_v26 = vsel %vm2094_vm5, %v14765_v40, %v6344_v6  ;;  %v2142_v28 = vsel %vm2094_vm5, %v14766_v38, %v6345_v34  ;;  %3036 = vst.msk [vmem:[#allocation3 + $0x17] sm:$0x3] %vm3035_vm15, %v14767_v62  ;;  %3040 = vst.msk [vmem:[#allocation3 + $0x237] sm:$0x3] %vm3035_vm15, %v14767_v62  ;;  %v2591_v33 = vpack.c.bf16 %v2487_v4, %v2483_v31  ;;  %v3215_v56 = vrot.slane %v11071_v53, 1 }
 0x28f   : > { %v2190_v20 = vsel %vm2143_vm12, %v2141_v26, %v6464_v5  ;;  %v2191_v42 = vsel %vm2143_vm12, %v2142_v28, %v6465_v15  ;;  %v2140_v0 = vsel %vm2094_vm5, %v14768_v46, %v6340_v59  ;;  %3062 = vst.msk [vmem:[#allocation3 + $0x58] sm:$0x1] %vm3041_vm0, %v14767_v62  ;;  %3042 = vst.msk [vmem:[#allocation3 + $0x7] sm:$0x1] %vm3041_vm0, %v14767_v62 }
 0x290   : > { %2891 = vmatmul.mubr.bf16.gmra.mrb[48].mxu0 %v14763_v43  ;;  %v2239_v45 = vsel %vm2192_vm13, %v2190_v20, %v6584_v52  ;;  %v2240_v10 = vsel %vm2192_vm13, %v2191_v42, %v6585_v61  ;;  %3043 = vst.msk [vmem:[#allocation3 + $0x27] sm:$0x1] %vm3041_vm0, %v14767_v62  ;;  %3044 = vst.msk [vmem:[#allocation3 + $0x47] sm:$0x1] %vm3041_vm0, %v14767_v62  ;;  %v2189_v18 = vsel %vm2143_vm12, %v2140_v0, %v6460_v27 }
 0x291   : > { %5525 = vmatprep.mubr.msk.bf16.mxu0 %vm2709_vm14, %v2589_v48  ;;  %3045 = vst.msk [vmem:[#allocation3 + $0x67] sm:$0x1] %vm3041_vm0, %v14767_v62  ;;  %3046 = vst.msk [vmem:[#allocation3 + $0x87] sm:$0x1] %vm3041_vm0, %v14767_v62  ;;  %v2238_v2 = vsel %vm2192_vm13, %v2189_v18, %v6580_v50  ;;  %v2492_v60 = vrot.slane %v2239_v45, 7  ;;  %v2496_v37 = vrot.slane %v2240_v10, 7  ;;  %v14771_v30 = vpack.c.bf16 %v14769_v8, %v14770_v24 }
 0x292   : > { %3047 = vst.msk [vmem:[#allocation3 + $0xa7] sm:$0x1] %vm3041_vm0, %v14767_v62  ;;  %3048 = vst.msk [vmem:[#allocation3 + $0xc7] sm:$0x1] %vm3041_vm0, %v14767_v62  ;;  %v2491_v13 = vrot.slane %v2238_v2, 7  ;;  %v14774_v35 = vpack.c.bf16 %v14772_v29, %v14773_v3  ;;  %v14777_v23 = vpack.c.bf16 %v14775_v41, %v14776_v54 }
 0x293   : > { %3049 = vst.msk [vmem:[#allocation3 + $0xe7] sm:$0x1] %vm3041_vm0, %v14767_v62  ;;  %3050 = vst.msk [vmem:[#allocation3 + $0x107] sm:$0x1] %vm3041_vm0, %v14767_v62  ;;  %v2497_v16 = vsel %vm2337_vm11, %v2492_v60, %v2496_v37 }
 0x294   : > { %3051 = vst.msk [vmem:[#allocation3 + $0x127] sm:$0x1] %vm3041_vm0, %v14767_v62  ;;  %3052 = vst.msk [vmem:[#allocation3 + $0x147] sm:$0x1] %vm3041_vm0, %v14767_v62  ;;  %v2493_v57 = vsel %vm2337_vm11, %v2491_v13, %v2492_v60 }
 0x295   : > { %3053 = vst.msk [vmem:[#allocation3 + $0x167] sm:$0x1] %vm3041_vm0, %v14767_v62  ;;  %3054 = vst.msk [vmem:[#allocation3 + $0x187] sm:$0x1] %vm3041_vm0, %v14767_v62  ;;  %v11073_v22 = vld [vmem:[#allocation3 + $0x10] sm:$0xff]  ;;  %v2593_v63 = vpack.c.bf16 %v2497_v16, %v2493_v57 }
 0x296   : > { %3055 = vst.msk [vmem:[#allocation3 + $0x1a7] sm:$0x1] %vm3041_vm0, %v14767_v62  ;;  %3056 = vst.msk [vmem:[#allocation3 + $0x1c7] sm:$0x1] %vm3041_vm0, %v14767_v62  ;;  %v3216_v32 = vrot.slane %v11073_v22, 1 }
 0x297   : > { %3057 = vst.msk [vmem:[#allocation3 + $0x1e7] sm:$0x1] %vm3041_vm0, %v14767_v62  ;;  %3058 = vst.msk [vmem:[#allocation3 + $0x207] sm:$0x1] %vm3041_vm0, %v14767_v62 }
 0x298   : > { %3059 = vst.msk [vmem:[#allocation3 + $0x227] sm:$0x1] %vm3041_vm0, %v14767_v62  ;;  %3060 = vst.msk [vmem:[#allocation3 + $0x18] sm:$0x1] %vm3041_vm0, %v14767_v62  ;;  %2899 = vmatmul.mubr.bf16.gmra.mrb[52].mxu0 %v14771_v30  ;;  %v3217_v49 = vsel %vm513_vm3, %v3215_v56, %v3216_v32 }
 0x299   : > { %3061 = vst.msk [vmem:[#allocation3 + $0x38] sm:$0x1] %vm3041_vm0, %v14767_v62  ;;  %3063 = vst.msk [vmem:[#allocation3 + $0x78] sm:$0x1] %vm3041_vm0, %v14767_v62  ;;  %5526 = vmatprep.mubr.msk.bf16.mxu0 %vm2709_vm14, %v2591_v33  ;;  %v6586_v47 = vpack.i.bf16 %v3217_v49, %v3215_v56  ;;  %v3122_v56 = vld [vmem:[#allocation3 + $0x58] sm:$0xff] }
 0x29a   : > { %3064 = vst.msk [vmem:[#allocation3 + $0x98] sm:$0x1] %vm3041_vm0, %v14767_v62  ;;  %3065 = vst.msk [vmem:[#allocation3 + $0xb8] sm:$0x1] %vm3041_vm0, %v14767_v62 }
 0x29b   : > { %3066 = vst.msk [vmem:[#allocation3 + $0xd8] sm:$0x1] %vm3041_vm0, %v14767_v62  ;;  %3067 = vst.msk [vmem:[#allocation3 + $0xf8] sm:$0x1] %vm3041_vm0, %v14767_v62  ;;  %6587 = vrot.lane.b32.xlu0 %v6586_v47, %s7647_s19 }
 0x29c   : > { %3068 = vst.msk [vmem:[#allocation3 + $0x118] sm:$0x1] %vm3041_vm0, %v14767_v62  ;;  %3069 = vst.msk [vmem:[#allocation3 + $0x138] sm:$0x1] %vm3041_vm0, %v14767_v62 }
 0x29d   : > { %3070 = vst.msk [vmem:[#allocation3 + $0x158] sm:$0x1] %vm3041_vm0, %v14767_v62  ;;  %3071 = vst.msk [vmem:[#allocation3 + $0x178] sm:$0x1] %vm3041_vm0, %v14767_v62 }
 0x29e   : > { %3072 = vst.msk [vmem:[#allocation3 + $0x198] sm:$0x1] %vm3041_vm0, %v14767_v62  ;;  %3073 = vst.msk [vmem:[#allocation3 + $0x1b8] sm:$0x1] %vm3041_vm0, %v14767_v62 }
 0x29f   : > { %3074 = vst.msk [vmem:[#allocation3 + $0x1d8] sm:$0x1] %vm3041_vm0, %v14767_v62  ;;  %3075 = vst.msk [vmem:[#allocation3 + $0x1f8] sm:$0x1] %vm3041_vm0, %v14767_v62 }
 0x2a0   : > { %3076 = vst.msk [vmem:[#allocation3 + $0x218] sm:$0x1] %vm3041_vm0, %v14767_v62  ;;  %3077 = vst.msk [vmem:[#allocation3 + $0x238] sm:$0x1] %vm3041_vm0, %v14767_v62  ;;  %2907 = vmatmul.mubr.bf16.gmra.mrb[56].mxu0 %v14774_v35  ;;  %v3118_v10 = vld [vmem:[#allocation3 + $0x38] sm:$0xff] }
 0x2a1   : > { %5527 = vmatprep.mubr.msk.bf16.mxu0 %vm2709_vm14, %v2593_v63  ;;  %v3431_v30 = vrot.slane %v3118_v10, 2 }
 0x2a8   : > { %2915 = vmatmul.mubr.bf16.gmra.mrb[60].mxu0 %v14777_v23 }
 0x302   : > { %v2796_v21 = vpop.f32.mrb[0].mxu0 }
 0x303   : > { %v2797_v17 = vadd.f32 %v11091_v44, %v2796_v21  ;;  %v2798_v19 = vpop.f32.mrb[1].mxu0  ;;  %v3436_v21 = vrot.slane %v3122_v56, 2 }
 0x304   : > { %v2799_v14 = vpop.f32.mrb[2].mxu0 }
 0x305   : > { %v2923_v9 = vmax.f32 %v2797_v17, 0.0  ;;  %v2800_v1 = vadd.f32 %v11091_v44, %v2799_v14  ;;  %v2801_v6 = vpop.f32.mrb[3].mxu0 }
 0x307   : > { %v2962_v34 = vmul.f32 %v11097_v39, %v2923_v9  ;;  %v2924_v7 = vmax.f32 %v2800_v1, 0.0 }
 0x309   : > { %v3001_v5 = vadd.f32 %v11103_v51, %v2962_v34  ;;  %v2963_v48 = vmul.f32 %v11097_v39, %v2924_v7  ;;  %v3423_v34 = vrot.slane %v11071_v53, 2 }
 0x30a   : > { %v2804_v15 = vpop.f32.mrb[4].mxu0 }
 0x30b   : > { %3079 = vst.msk [vmem:[#allocation3 + $0x28] sm:$0xff] %vm2094_vm5, %v3001_v5  ;;  %v3002_v25 = vadd.f32 %v11103_v51, %v2963_v48  ;;  %v2805_v36 = vadd.f32 %v11091_v44, %v2804_v15  ;;  %v2806_v58 = vpop.f32.mrb[5].mxu0 }
 0x30c   : > { %v2807_v11 = vpop.f32.mrb[6].mxu0  ;;  %v3114_v58 = vld [vmem:[#allocation3 + $0x18] sm:$0xff] }
 0x30d   : > { %3080 = vst.msk [vmem:[#allocation3 + $0x30] sm:$0xff] %vm2094_vm5, %v3002_v25  ;;  %v2925_v55 = vmax.f32 %v2805_v36, 0.0  ;;  %v2808_v43 = vadd.f32 %v11091_v44, %v2807_v11  ;;  %v2809_v59 = vpop.f32.mrb[7].mxu0 }
 0x30f   : > { %v2964_v61 = vmul.f32 %v11097_v39, %v2925_v55  ;;  %v2926_v52 = vmax.f32 %v2808_v43, 0.0 }
 0x311   : > { %v3003_v12 = vadd.f32 %v11103_v51, %v2964_v61  ;;  %v2965_v40 = vmul.f32 %v11097_v39, %v2926_v52 }
 0x312   : > { %v2812_v26 = vpop.f32.mrb[8].mxu0  ;;  %v11116_v27 = vld [vmem:[#allocation3 + $0x28] sm:$0xff] }
 0x313   : > { %3081 = vst.msk [vmem:[#allocation3 + $0x48] sm:$0xff] %vm2094_vm5, %v3003_v12  ;;  %v3004_v38 = vadd.f32 %v11103_v51, %v2965_v40  ;;  %v2813_v28 = vadd.f32 %v11091_v44, %v2812_v26  ;;  %v2814_v20 = vpop.f32.mrb[9].mxu0  ;;  %v11122_v50 = vrot.slane %v11116_v27, 1  ;;  %v11133_v18 = vrot.slane %v11116_v27, 2  ;;  %v3126_v40 = vld [vmem:[#allocation3 + $0x78] sm:$0xff] }
 0x314   : > { %v2815_v42 = vpop.f32.mrb[10].mxu0  ;;  %v11124_v31 = vld [vmem:[#allocation3 + $0x30] sm:$0xff]  ;;  %v3424_v12 = vrot.slane %v11073_v22, 2  ;;  %v3426_v20 = vrot.slane %v3114_v58, 2 }
 0x315   : > { %3082 = vst.msk [vmem:[#allocation3 + $0x50] sm:$0xff] %vm2094_vm5, %v3004_v38  ;;  %v2927_v4 = vmax.f32 %v2813_v28, 0.0  ;;  %v2816_v62 = vadd.f32 %v11091_v44, %v2815_v42  ;;  %v2817_v46 = vpop.f32.mrb[11].mxu0  ;;  %v6591_v0 = vpack.i.bf16 %v11122_v50, %v3216_v32  ;;  %v11130_v45 = vrot.slane %v11124_v31, 1 }
 0x316   : > { %v3429_v2 = vrot.slane %v11124_v31, 2 }
 0x317   : > { %v2966_v33 = vmul.f32 %v11097_v39, %v2927_v4  ;;  %v2928_v60 = vmax.f32 %v2816_v62, 0.0  ;;  %6592 = vrot.lane.b32.xlu1 %v6591_v0, %s7647_s19  ;;  %v11141_v37 = vsel %vm513_vm3, %v11122_v50, %v11130_v45 }
 0x318   : > { %v6596_v8 = vpack.i.bf16 %v11130_v45, %v11141_v37  ;;  %v11147_v24 = vsel %vm722_vm4, %v11133_v18, %v3429_v2  ;;  %v11164_v17 = vsel %vm722_vm4, %v3429_v2, %v3431_v30  ;;  %v3138_v30 = vld [vmem:[#allocation3 + $0xd8] sm:$0xff] }
 0x319   : > { %v3005_v57 = vadd.f32 %v11103_v51, %v2966_v33  ;;  %v2967_v16 = vmul.f32 %v11097_v39, %v2928_v60  ;;  %v3425_v60 = vsel %vm722_vm4, %v3423_v34, %v3424_v12 }
 0x31a   : > { %6597 = vrot.lane.b32.xlu0 %v6596_v8, %s7647_s19  ;;  %v2820_v49 = vpop.f32.mrb[12].mxu0  ;;  %v3120_v63 = vld [vmem:[#allocation3 + $0x48] sm:$0xff]  ;;  %v3441_v8 = vrot.slane %v3126_v40, 2 }
 0x31b   : > { %3083 = vst.msk [vmem:[#allocation3 + $0x68] sm:$0xff] %vm2094_vm5, %v3005_v57  ;;  %v3006_v47 = vadd.f32 %v11103_v51, %v2967_v16  ;;  %v2821_v29 = vadd.f32 %v11091_v44, %v2820_v49  ;;  %v2822_v3 = vpop.f32.mrb[13].mxu0  ;;  %v11159_v35 = vrot.slane %v3120_v63, 1  ;;  %v11161_v41 = vrot.slane %v3120_v63, 2 }
 0x31c   : > { %v2823_v54 = vpop.f32.mrb[14].mxu0  ;;  %v3121_v23 = vld [vmem:[#allocation3 + $0x50] sm:$0xff] }
 0x31d   : > { %3084 = vst.msk [vmem:[#allocation3 + $0x70] sm:$0xff] %vm2094_vm5, %v3006_v47  ;;  %v2929_v19 = vmax.f32 %v2821_v29, 0.0  ;;  %v2824_v14 = vadd.f32 %v11091_v44, %v2823_v54  ;;  %v2825_v9 = vpop.f32.mrb[15].mxu0  ;;  %v11168_v1 = vrot.slane %v3121_v23, 1  ;;  %v3434_v6 = vrot.slane %v3121_v23, 2  ;;  %v3130_v54 = vld [vmem:[#allocation3 + $0x98] sm:$0xff] }
 0x31e   : > { %v4796_v55 = vrot.slane %v11161_v41, 7  ;;  %v3427_v47 = vsel %vm722_vm4, %v3424_v12, %v3426_v20 }
 0x31f   : > { %v2968_v48 = vmul.f32 %v11097_v39, %v2929_v19  ;;  %v2930_v15 = vmax.f32 %v2824_v14, 0.0  ;;  %v11179_v25 = vsel %vm513_vm3, %v11159_v35, %v11168_v1  ;;  %v11183_v36 = vsel %vm722_vm4, %v11161_v41, %v3434_v6 }
 0x320   : > { %v11187_v53 = vpack.i.bf16 %v11179_v25, %v11159_v35  ;;  %v11190_v11 = vsel %vm722_vm4, %v3434_v6, %v3436_v21  ;;  %v4797_v43 = vrot.slane %v11183_v36, 7  ;;  %v6611_v14 = vpack.i.bf16 %v3425_v60, %v3423_v34 }
 0x321   : > { %v3007_v59 = vadd.f32 %v11103_v51, %v2968_v48  ;;  %v2969_v61 = vmul.f32 %v11097_v39, %v2930_v15  ;;  %v4801_v52 = vrot.slane %v11190_v11, 7 }
 0x322   : > { %v2828_v26 = vpop.f32.mrb[16].mxu0  ;;  %6602 = vrot.lane.b32.xlu1 %v11187_v53, %s7647_s19  ;;  %v4798_v38 = vsel %vm2337_vm11, %v4796_v55, %v4797_v43  ;;  %v11201_v28 = vld [vmem:[#allocation3 + $0x68] sm:$0xff] }
 0x323   : > { %3085 = vst.msk [vmem:[#allocation3 + $0x88] sm:$0xff] %vm2094_vm5, %v3007_v59  ;;  %v3008_v4 = vadd.f32 %v11103_v51, %v2969_v61  ;;  %v2829_v62 = vadd.f32 %v11091_v44, %v2828_v26  ;;  %v2830_v22 = vpop.f32.mrb[17].mxu0  ;;  %v4802_v46 = vsel %vm2337_vm11, %v4797_v43, %v4801_v52  ;;  %v11210_v0 = vrot.slane %v11201_v28, 1 }
 0x324   : > { %v2831_v10 = vpop.f32.mrb[18].mxu0  ;;  %v5018_v2 = vpack.c.bf16 %v4802_v46, %v4798_v38  ;;  %v3125_v33 = vld [vmem:[#allocation3 + $0x70] sm:$0xff]  ;;  %v11226_v29 = vrot.slane %v11201_v28, 2  ;;  %v3446_v43 = vrot.slane %v3130_v54, 2  ;;  %v6621_v46 = vpack.i.bf16 %v11133_v18, %v3427_v47 }
 0x325   : > { %14778 = vst [vmem:[#allocation117_spill] sm:$0xff] %v11210_v0  ;;  %3086 = vst.msk [vmem:[#allocation3 + $0x90] sm:$0xff] %vm2094_vm5, %v3008_v4  ;;  %v2931_v57 = vmax.f32 %v2829_v62, 0.0  ;;  %v2832_v16 = vadd.f32 %v11091_v44, %v2831_v10  ;;  %v2833_v56 = vpop.f32.mrb[19].mxu0  ;;  %v11219_v49 = vpack.i.bf16 %v11210_v0, %v11168_v1  ;;  %v11221_v63 = vrot.slane %v3125_v33, 1 }
 0x326   : > { %5540 = vmatprep.mubr.msk.bf16.mxu1 %vm2094_vm5, %v5018_v2  ;;  %14780 = vst [vmem:[#allocation121_spill] sm:$0xff] %v11226_v29  ;;  %v3439_v3 = vrot.slane %v3125_v33, 2  ;;  %v4806_v40 = vrot.slane %v11226_v29, 7  ;;  %v6636_v47 = vpack.i.bf16 %v11183_v36, %v11161_v41 }
 0x327   : > { %14779 = vst [vmem:[#allocation112_spill] sm:$0xff] %v11221_v63  ;;  %v2970_v23 = vmul.f32 %v11097_v39, %v2931_v57  ;;  %v2932_v21 = vmax.f32 %v2832_v16, 0.0  ;;  %6607 = vrot.lane.b32.xlu0 %v11219_v49, %s7647_s19  ;;  %v11234_v19 = vsel %vm513_vm3, %v11210_v0, %v11221_v63 }
 0x328   : > { %14781 = vst [vmem:[#allocation116_spill] sm:$0xff] %v11234_v19  ;;  %v11238_v9 = vpack.i.bf16 %v11221_v63, %v11234_v19  ;;  %v11242_v6 = vsel %vm722_vm4, %v11226_v29, %v3439_v3  ;;  %v11245_v48 = vsel %vm722_vm4, %v3439_v3, %v3441_v8  ;;  %v11945_v63 = vld [vmem:[#allocation3 + $0x60] sm:$0xff] }
 0x329   : > { %14782 = vst [vmem:[#allocation123_spill] sm:$0xff] %v11242_v6  ;;  %14783 = vst [vmem:[#allocation120_spill] sm:$0xff] %v11245_v48  ;;  %v3009_v15 = vadd.f32 %v11103_v51, %v2970_v23  ;;  %v2971_v58 = vmul.f32 %v11097_v39, %v2932_v21  ;;  %v4811_v55 = vrot.slane %v11245_v48, 7  ;;  %v4807_v61 = vrot.slane %v11242_v6, 7 }
 0x32a   : > { %v2836_v59 = vpop.f32.mrb[20].mxu0  ;;  %6617 = vrot.lane.b32.xlu1 %v11238_v9, %s7647_s19  ;;  %v11252_v34 = vld [vmem:[#allocation3 + $0x88] sm:$0xff] }
 0x32b   : > { %3087 = vst.msk [vmem:[#allocation3 + $0xa8] sm:$0xff] %vm2094_vm5, %v3009_v15  ;;  %v3010_v26 = vadd.f32 %v11103_v51, %v2971_v58  ;;  %v2837_v38 = vadd.f32 %v11091_v44, %v2836_v59  ;;  %v2838_v20 = vpop.f32.mrb[21].mxu0  ;;  %6612 = vrot.lane.b32.xlu0 %v6611_v14, %s7651_s8  ;;  %v11265_v4 = vrot.slane %v11252_v34, 1  ;;  %v11268_v62 = vrot.slane %v11252_v34, 2 }
 0x32c   : > { %v2839_v22 = vpop.f32.mrb[22].mxu0  ;;  %v11271_v10 = vld [vmem:[#allocation3 + $0x90] sm:$0xff]  ;;  %v11274_v2 = vsel %vm2337_vm11, %v4806_v40, %v4807_v61  ;;  %v11277_v33 = vsel %vm2337_vm11, %v4807_v61, %v4811_v55 }
 0x32d   : > { %14784 = vst [vmem:[#allocation77_spill] sm:$0xff] %v11268_v62  ;;  %14785 = vst [vmem:[#allocation85_spill] sm:$0xff] %v11274_v2  ;;  %v2933_v60 = vmax.f32 %v2837_v38, 0.0  ;;  %v2840_v8 = vadd.f32 %v11091_v44, %v2839_v22  ;;  %v2841_v57 = vpop.f32.mrb[23].mxu0  ;;  %v11282_v16 = vrot.slane %v11271_v10, 1  ;;  %v3444_v56 = vrot.slane %v11271_v10, 2 }
 0x32e   : > { %14786 = vst [vmem:[#allocation124_spill] sm:$0xff] %v11277_v33  ;;  %3088 = vst.msk [vmem:[#allocation3 + $0xb0] sm:$0xff] %vm2094_vm5, %v3010_v26  ;;  %6622 = vrot.lane.b32.xlu1 %v6621_v46, %s7651_s8  ;;  %v3134_v38 = vld [vmem:[#allocation3 + $0xb8] sm:$0xff]  ;;  %v6631_v22 = vpack.i.bf16 %v11164_v17, %v11147_v24 }
 0x32f   : > { %14787 = vst [vmem:[#allocation122_spill] sm:$0xff] %v11282_v16  ;;  %v2972_v23 = vmul.f32 %v11097_v39, %v2933_v60  ;;  %v2934_v21 = vmax.f32 %v2840_v8, 0.0  ;;  %v11296_v14 = vsel %vm513_vm3, %v11265_v4, %v11282_v16  ;;  %v11299_v15 = vsel %vm722_vm4, %v3444_v56, %v3446_v43 }
 0x330   : > { %14788 = vst [vmem:[#allocation52_spill] sm:$0xff] %v11296_v14  ;;  %14789 = vst [vmem:[#allocation50_spill] sm:$0xff] %v11299_v15  ;;  %v11303_v58 = vpack.i.bf16 %v11296_v14, %v11265_v4  ;;  %v4821_v55 = vrot.slane %v11299_v15, 7  ;;  %v11308_v59 = vsel %vm722_vm4, %v11268_v62, %v3444_v56  ;;  %v4816_v8 = vrot.slane %v11268_v62, 7 }
 0x331   : > { %14791 = vst [vmem:[#allocation125_spill] sm:$0xff] %v11308_v59  ;;  %v3011_v61 = vadd.f32 %v11103_v51, %v2972_v23  ;;  %v2973_v40 = vmul.f32 %v11097_v39, %v2934_v21  ;;  %v4817_v26 = vrot.slane %v11308_v59, 7  ;;  %v3451_v12 = vrot.slane %v3134_v38, 2 }
 0x332   : > { %14790 = vst [vmem:[#allocation56_spill] sm:$0xff] %v11303_v58  ;;  %v2844_v20 = vpop.f32.mrb[24].mxu0  ;;  %6627 = vrot.lane.b32.xlu0 %v11303_v58, %s7647_s19  ;;  %6637 = vrot.lane.b32.xlu1 %v6636_v47, %s7651_s8  ;;  %v11316_v43 = vld [vmem:[#allocation3 + $0xa8] sm:$0xff] }
 0x333   : > { %3089 = vst.msk [vmem:[#allocation3 + $0xc8] sm:$0xff] %vm2094_vm5, %v3011_v61  ;;  %v3012_v57 = vadd.f32 %v11103_v51, %v2973_v40  ;;  %v2845_v56 = vadd.f32 %v11091_v44, %v2844_v20  ;;  %v2846_v47 = vpop.f32.mrb[25].mxu0  ;;  %v11329_v23 = vrot.slane %v11316_v43, 1  ;;  %v11336_v60 = vsel %vm2337_vm11, %v4816_v8, %v4817_v26 }
 0x334   : > { %v2847_v21 = vpop.f32.mrb[26].mxu0  ;;  %14793 = vst [vmem:[#allocation127_spill] sm:$0xff] %v11336_v60  ;;  %v11339_v61 = vsel %vm2337_vm11, %v4817_v26, %v4821_v55  ;;  %v11352_v38 = vrot.slane %v11316_v43, 2 }
 0x335   : > { %14792 = vst [vmem:[#allocation126_spill] sm:$0xff] %v11329_v23  ;;  %v11333_v46 = vld [vmem:[#allocation3 + $0xb0] sm:$0xff]  ;;  %14794 = vst [vmem:[#allocation128_spill] sm:$0xff] %v11339_v61  ;;  %v2935_v40 = vmax.f32 %v2845_v56, 0.0  ;;  %v2848_v20 = vadd.f32 %v11091_v44, %v2847_v21  ;;  %v2849_v47 = vpop.f32.mrb[27].mxu0  ;;  %v11345_v54 = vpack.i.bf16 %v11329_v23, %v11282_v16 }
 0x336   : > { %3090 = vst.msk [vmem:[#allocation3 + $0xd0] sm:$0xff] %vm2094_vm5, %v3012_v57  ;;  %v11348_v52 = vrot.slane %v11333_v46, 1  ;;  %6632 = vrot.lane.b32.xlu0 %v6631_v22, %s7651_s8  ;;  %14797 = vst [vmem:[#allocation131_spill] sm:$0xff] %v11352_v38  ;;  %v3449_v55 = vrot.slane %v11333_v46, 2  ;;  %v6656_v47 = vpack.i.bf16 %v11245_v48, %v11242_v6 }
 0x337   : > { %14795 = vst [vmem:[#allocation129_spill] sm:$0xff] %v11345_v54  ;;  %v2974_v26 = vmul.f32 %v11097_v39, %v2935_v40  ;;  %v2936_v8 = vmax.f32 %v2848_v20, 0.0  ;;  %6642 = vrot.lane.b32.xlu1 %v11345_v54, %s7647_s19 }
 0x338   : > { %14796 = vst [vmem:[#allocation130_spill] sm:$0xff] %v11348_v52  ;;  %v11361_v57 = vsel %vm513_vm3, %v11329_v23, %v11348_v52  ;;  %v11369_v22 = vsel %vm722_vm4, %v11352_v38, %v3449_v55  ;;  %v11372_v21 = vsel %vm722_vm4, %v3449_v55, %v3451_v12  ;;  %v6651_v55 = vpack.i.bf16 %v11226_v29, %v11190_v11  ;;  %v11728_v29 = vld [vmem:[#allocation3 + $0x198] sm:$0xff] }
 0x339   : > { %14798 = vst [vmem:[#allocation132_spill] sm:$0xff] %v11361_v57  ;;  %v11365_v56 = vpack.i.bf16 %v11348_v52, %v11361_v57  ;;  %14800 = vst [vmem:[#allocation134_spill] sm:$0xff] %v11369_v22  ;;  %v3013_v40 = vadd.f32 %v11103_v51, %v2974_v26  ;;  %v2975_v20 = vmul.f32 %v11097_v39, %v2936_v8  ;;  %v4831_v3 = vrot.slane %v11372_v21, 7 }
 0x33a   : > { %14801 = vst [vmem:[#allocation135_spill] sm:$0xff] %v11372_v21  ;;  %v2852_v42 = vpop.f32.mrb[28].mxu0  ;;  %v11381_v32 = vld [vmem:[#allocation3 + $0xc8] sm:$0xff]  ;;  %v4827_v5 = vrot.slane %v11369_v22, 7  ;;  %v6661_v57 = vpack.i.bf16 %v11308_v59, %v11268_v62 }
 0x33b   : > { %14799 = vst [vmem:[#allocation133_spill] sm:$0xff] %v11365_v56  ;;  %6647 = vrot.lane.b32.xlu0 %v11365_v56, %s7647_s19  ;;  %3091 = vst.msk [vmem:[#allocation3 + $0xe8] sm:$0xff] %vm2094_vm5, %v3013_v40  ;;  %v3014_v8 = vadd.f32 %v11103_v51, %v2975_v20  ;;  %v2853_v13 = vadd.f32 %v11091_v44, %v2852_v42  ;;  %v2854_v7 = vpop.f32.mrb[29].mxu0  ;;  %6657 = vrot.lane.b32.xlu1 %v6656_v47, %s7651_s8  ;;  %v11395_v2 = vrot.slane %v11381_v32, 1 }
 0x33c   : > { %v11398_v12 = vrot.slane %v11381_v32, 2  ;;  %v2855_v33 = vpop.f32.mrb[30].mxu0  ;;  %v6666_v40 = vpack.i.bf16 %v11352_v38, %v11299_v15  ;;  %v3456_v20 = vrot.slane %v3138_v30, 2  ;;  %v11407_v7 = vsel %vm2337_vm11, %v4827_v5, %v4831_v3 }
 0x33d   : > { %14802 = vst [vmem:[#allocation136_spill] sm:$0xff] %v11395_v2  ;;  %v11404_v26 = vld [vmem:[#allocation3 + $0xd0] sm:$0xff]  ;;  %14804 = vst [vmem:[#allocation11_spill] sm:$0xff] %v11407_v7  ;;  %v2937_v42 = vmax.f32 %v2853_v13, 0.0  ;;  %v2856_v47 = vadd.f32 %v11091_v44, %v2855_v33  ;;  %v2857_v60 = vpop.f32.mrb[31].mxu0  ;;  %v3146_v7 = vld [vmem:[#allocation3 + $0x118] sm:$0xff] }
 0x33e   : > { %14803 = vst [vmem:[#allocation19_spill] sm:$0xff] %v11398_v12  ;;  %3092 = vst.msk [vmem:[#allocation3 + $0xf0] sm:$0xff] %vm2094_vm5, %v3014_v8  ;;  %v11412_v61 = vrot.slane %v11404_v26, 1  ;;  %v3454_v23 = vrot.slane %v11404_v26, 2 }
 0x33f   : > { %6652 = vrot.lane.b32.xlu0 %v6651_v55, %s7651_s8  ;;  %v2976_v13 = vmul.f32 %v11097_v39, %v2937_v42  ;;  %v2938_v33 = vmax.f32 %v2856_v47, 0.0  ;;  %6667 = vrot.lane.b32.xlu1 %v6666_v40, %s7651_s8  ;;  %v3142_v47 = vld [vmem:[#allocation3 + $0xf8] sm:$0xff]  ;;  %v4826_v40 = vrot.slane %v11352_v38, 7 }
 0x340   : > { %14805 = vst [vmem:[#allocation18_spill] sm:$0xff] %v11412_v61  ;;  %v11427_v60 = vsel %vm513_vm3, %v11395_v2, %v11412_v61  ;;  %v11431_v55 = vsel %vm722_vm4, %v11398_v12, %v3454_v23  ;;  %v11439_v42 = vsel %vm722_vm4, %v3454_v23, %v3456_v20  ;;  %v3461_v59 = vrot.slane %v3142_v47, 2 }
 0x341   : > { %14806 = vst [vmem:[#allocation15_spill] sm:$0xff] %v11427_v60  ;;  %14807 = vst [vmem:[#allocation10_spill] sm:$0xff] %v11431_v55  ;;  %v11435_v8 = vpack.i.bf16 %v11427_v60, %v11395_v2  ;;  %v4837_v3 = vrot.slane %v11431_v55, 7  ;;  %v3015_v30 = vadd.f32 %v11103_v51, %v2976_v13  ;;  %v2977_v52 = vmul.f32 %v11097_v39, %v2938_v33 }
 0x342   : > { %14809 = vst [vmem:[#allocation20_spill] sm:$0xff] %v11439_v42  ;;  %v4841_v56 = vrot.slane %v11439_v42, 7  ;;  %v11446_v16 = vld [vmem:[#allocation3 + $0xe8] sm:$0xff]  ;;  %v11453_v20 = vsel %vm2337_vm11, %v4826_v40, %v4827_v5  ;;  %v4836_v13 = vrot.slane %v11398_v12, 7  ;;  %v6686_v5 = vpack.i.bf16 %v11431_v55, %v11398_v12 }
 0x343   : > { %14808 = vst [vmem:[#allocation25_spill] sm:$0xff] %v11435_v8  ;;  %v2860_v14 = vpop.f32.mrb[32].mxu0  ;;  %6662 = vrot.lane.b32.xlu0 %v6661_v57, %s7651_s8  ;;  %14810 = vst [vmem:[#allocation14_spill] sm:$0xff] %v11453_v20  ;;  %v3016_v33 = vadd.f32 %v11103_v51, %v2977_v52  ;;  %6672 = vrot.lane.b32.xlu1 %v11435_v8, %s7647_s19  ;;  %v11462_v2 = vrot.slane %v11446_v16, 1 }
 0x344   : > { %3093 = vst.msk [vmem:[#allocation3 + $0x108] sm:$0xff] %vm2094_vm5, %v3015_v30  ;;  %v2861_v38 = vadd.f32 %v11091_v44, %v2860_v14  ;;  %v2862_v57 = vpop.f32.mrb[33].mxu0  ;;  %v11471_v52 = vsel %vm2337_vm11, %v4836_v13, %v4837_v3  ;;  %v11474_v14 = vsel %vm2337_vm11, %v4837_v3, %v4841_v56  ;;  %v11486_v30 = vrot.slane %v11446_v16, 2 }
 0x345   : > { %14811 = vst [vmem:[#allocation21_spill] sm:$0xff] %v11462_v2  ;;  %v2863_v23 = vpop.f32.mrb[34].mxu0  ;;  %v11466_v40 = vld [vmem:[#allocation3 + $0xf0] sm:$0xff]  ;;  %14812 = vst [vmem:[#allocation28_spill] sm:$0xff] %v11471_v52  ;;  %v11480_v55 = vpack.i.bf16 %v11462_v2, %v11412_v61 }
 0x346   : > { %14813 = vst [vmem:[#allocation26_spill] sm:$0xff] %v11474_v14  ;;  %3094 = vst.msk [vmem:[#allocation3 + $0x110] sm:$0xff] %vm2094_vm5, %v3016_v33  ;;  %v2939_v57 = vmax.f32 %v2861_v38, 0.0  ;;  %v2864_v47 = vadd.f32 %v11091_v44, %v2863_v23  ;;  %v2865_v60 = vpop.f32.mrb[35].mxu0  ;;  %v11483_v8 = vrot.slane %v11466_v40, 1  ;;  %v3459_v13 = vrot.slane %v11466_v40, 2 }
 0x347   : > { %14814 = vst [vmem:[#allocation24_spill] sm:$0xff] %v11480_v55  ;;  %14816 = vst [vmem:[#allocation34_spill] sm:$0xff] %v11486_v30  ;;  %6677 = vrot.lane.b32.xlu0 %v11480_v55, %s7647_s19  ;;  %6687 = vrot.lane.b32.xlu1 %v6686_v5, %s7651_s8 }
 0x348   : > { %14815 = vst [vmem:[#allocation45_spill] sm:$0xff] %v11483_v8  ;;  %v2978_v56 = vmul.f32 %v11097_v39, %v2939_v57  ;;  %v2940_v3 = vmax.f32 %v2864_v47, 0.0  ;;  %v11496_v38 = vsel %vm513_vm3, %v11462_v2, %v11483_v8  ;;  %v11504_v23 = vsel %vm722_vm4, %v11486_v30, %v3459_v13  ;;  %v11535_v2 = vld [vmem:[#allocation3 + $0x138] sm:$0xff] }
 0x349   : > { %14817 = vst [vmem:[#allocation39_spill] sm:$0xff] %v11496_v38  ;;  %v11500_v60 = vpack.i.bf16 %v11483_v8, %v11496_v38  ;;  %14819 = vst [vmem:[#allocation43_spill] sm:$0xff] %v11504_v23  ;;  %v11507_v33 = vsel %vm722_vm4, %v3459_v13, %v3461_v59  ;;  %v6681_v47 = vpack.i.bf16 %v11372_v21, %v11369_v22  ;;  %v4847_v55 = vrot.slane %v11504_v23, 7 }
 0x34a   : > { %14820 = vst [vmem:[#allocation40_spill] sm:$0xff] %v11507_v33  ;;  %v3017_v57 = vadd.f32 %v11103_v51, %v2978_v56  ;;  %v2979_v5 = vmul.f32 %v11097_v39, %v2940_v3  ;;  %v4851_v20 = vrot.slane %v11507_v33, 7  ;;  %v3471_v21 = vrot.slane %v11535_v2, 2 }
 0x34b   : > { %14818 = vst [vmem:[#allocation46_spill] sm:$0xff] %v11500_v60  ;;  %v2868_v61 = vpop.f32.mrb[36].mxu0  ;;  %v11515_v12 = vld [vmem:[#allocation3 + $0x108] sm:$0xff]  ;;  %6682 = vrot.lane.b32.xlu0 %v6681_v47, %s7651_s8  ;;  %6697 = vrot.lane.b32.xlu1 %v11500_v60, %s7647_s19 }
 0x34c   : > { %3095 = vst.msk [vmem:[#allocation3 + $0x128] sm:$0xff] %vm2094_vm5, %v3017_v57  ;;  %v3018_v56 = vadd.f32 %v11103_v51, %v2979_v5  ;;  %v2869_v3 = vadd.f32 %v11091_v44, %v2868_v61  ;;  %v2870_v22 = vpop.f32.mrb[37].mxu0  ;;  %v11530_v15 = vrot.slane %v11515_v12, 1  ;;  %v11533_v59 = vrot.slane %v11515_v12, 2 }
 0x34d   : > { %v2871_v13 = vpop.f32.mrb[38].mxu0  ;;  %v6691_v57 = vpack.i.bf16 %v11486_v30, %v11439_v42  ;;  %v6701_v61 = vpack.i.bf16 %v11507_v33, %v11504_v23  ;;  %v11541_v22 = vld [vmem:[#allocation3 + $0x110] sm:$0xff]  ;;  %v3466_v5 = vrot.slane %v3146_v7, 2  ;;  %v11544_v47 = vsel %vm2337_vm11, %v4847_v55, %v4851_v20 }
 0x34e   : > { %14821 = vst [vmem:[#allocation51_spill] sm:$0xff] %v11530_v15  ;;  %14822 = vst [vmem:[#allocation49_spill] sm:$0xff] %v11533_v59  ;;  %v2941_v52 = vmax.f32 %v2869_v3, 0.0  ;;  %v2872_v14 = vadd.f32 %v11091_v44, %v2871_v13  ;;  %v2873_v38 = vpop.f32.mrb[39].mxu0  ;;  %v11549_v60 = vrot.slane %v11541_v22, 1  ;;  %v3464_v42 = vrot.slane %v11541_v22, 2 }
 0x34f   : > { %14823 = vst [vmem:[#allocation55_spill] sm:$0xff] %v11544_v47  ;;  %3096 = vst.msk [vmem:[#allocation3 + $0x130] sm:$0xff] %vm2094_vm5, %v3018_v56  ;;  %6692 = vrot.lane.b32.xlu0 %v6691_v57, %s7651_s8  ;;  %6702 = vrot.lane.b32.xlu1 %v6701_v61, %s7651_s8  ;;  %v4846_v3 = vrot.slane %v11486_v30, 7 }
 0x350   : > { %14824 = vst [vmem:[#allocation44_spill] sm:$0xff] %v11549_v60  ;;  %v2980_v20 = vmul.f32 %v11097_v39, %v2941_v52  ;;  %v2942_v56 = vmax.f32 %v2872_v14, 0.0  ;;  %v11563_v38 = vsel %vm513_vm3, %v11530_v15, %v11549_v60  ;;  %v11567_v2 = vsel %vm722_vm4, %v11533_v59, %v3464_v42 }
 0x351   : > { %14825 = vst [vmem:[#allocation61_spill] sm:$0xff] %v11563_v38  ;;  %14826 = vst [vmem:[#allocation57_spill] sm:$0xff] %v11567_v2  ;;  %v11571_v13 = vpack.i.bf16 %v11563_v38, %v11530_v15  ;;  %v4857_v52 = vrot.slane %v11567_v2, 7  ;;  %v11575_v14 = vsel %vm722_vm4, %v3464_v42, %v3466_v5  ;;  %v11588_v42 = vsel %vm2337_vm11, %v4846_v3, %v4847_v55 }
 0x352   : > { %14828 = vst [vmem:[#allocation74_spill] sm:$0xff] %v11575_v14  ;;  %v3019_v57 = vadd.f32 %v11103_v51, %v2980_v20  ;;  %v2981_v61 = vmul.f32 %v11097_v39, %v2942_v56  ;;  %v4861_v7 = vrot.slane %v11575_v14, 7  ;;  %14829 = vst [vmem:[#allocation72_spill] sm:$0xff] %v11588_v42  ;;  %v4856_v5 = vrot.slane %v11533_v59, 7 }
 0x353   : > { %14827 = vst [vmem:[#allocation67_spill] sm:$0xff] %v11571_v13  ;;  %v2876_v23 = vpop.f32.mrb[40].mxu0  ;;  %v11581_v33 = vld [vmem:[#allocation3 + $0x128] sm:$0xff]  ;;  %6707 = vrot.lane.b32.xlu0 %v11571_v13, %s7647_s19  ;;  %v6711_v8 = vpack.i.bf16 %v11567_v2, %v11533_v59 }
 0x354   : > { %3097 = vst.msk [vmem:[#allocation3 + $0x148] sm:$0xff] %vm2094_vm5, %v3019_v57  ;;  %v3020_v20 = vadd.f32 %v11103_v51, %v2981_v61  ;;  %v2877_v56 = vadd.f32 %v11091_v44, %v2876_v23  ;;  %v2878_v30 = vpop.f32.mrb[41].mxu0  ;;  %v11599_v15 = vrot.slane %v11581_v33, 1  ;;  %v11604_v38 = vrot.slane %v11581_v33, 2 }
 0x355   : > { %v2879_v55 = vpop.f32.mrb[42].mxu0  ;;  %v11609_v30 = vsel %vm2337_vm11, %v4856_v5, %v4857_v52  ;;  %v11612_v23 = vsel %vm2337_vm11, %v4857_v52, %v4861_v7 }
 0x356   : > { %14830 = vst [vmem:[#allocation68_spill] sm:$0xff] %v11599_v15  ;;  %v11601_v3 = vld [vmem:[#allocation3 + $0x130] sm:$0xff]  ;;  %14831 = vst [vmem:[#allocation70_spill] sm:$0xff] %v11604_v38  ;;  %v2943_v61 = vmax.f32 %v2877_v56, 0.0  ;;  %v2880_v2 = vadd.f32 %v11091_v44, %v2879_v55  ;;  %v2881_v13 = vpop.f32.mrb[43].mxu0  ;;  %v11618_v59 = vpack.i.bf16 %v11599_v15, %v11549_v60  ;;  %v6721_v56 = vpack.i.bf16 %v11604_v38, %v11575_v14 }
 0x357   : > { %14832 = vst [vmem:[#allocation80_spill] sm:$0xff] %v11609_v30  ;;  %14833 = vst [vmem:[#allocation73_spill] sm:$0xff] %v11612_v23  ;;  %v11621_v58 = vrot.slane %v11601_v3, 1  ;;  %v3469_v57 = vrot.slane %v11601_v3, 2  ;;  %6712 = vrot.lane.b32.xlu0 %v6711_v8, %s7651_s8 }
 0x358   : > { %3098 = vst.msk [vmem:[#allocation3 + $0x150] sm:$0xff] %vm2094_vm5, %v3020_v20  ;;  %14834 = vst [vmem:[#allocation71_spill] sm:$0xff] %v11618_v59  ;;  %v2982_v5 = vmul.f32 %v11097_v39, %v2943_v61  ;;  %v2944_v42 = vmax.f32 %v2880_v2, 0.0  ;;  %6717 = vrot.lane.b32.xlu1 %v11618_v59, %s7647_s19  ;;  %v3154_v61 = vld [vmem:[#allocation3 + $0x158] sm:$0xff] }
 0x359   : > { %14835 = vst [vmem:[#allocation78_spill] sm:$0xff] %v11621_v58  ;;  %v11631_v7 = vsel %vm513_vm3, %v11599_v15, %v11621_v58  ;;  %v11639_v52 = vsel %vm722_vm4, %v11604_v38, %v3469_v57  ;;  %v11642_v2 = vsel %vm722_vm4, %v3469_v57, %v3471_v21 }
 0x35a   : > { %14836 = vst [vmem:[#allocation79_spill] sm:$0xff] %v11631_v7  ;;  %v11635_v13 = vpack.i.bf16 %v11621_v58, %v11631_v7  ;;  %14838 = vst [vmem:[#allocation92_spill] sm:$0xff] %v11639_v52  ;;  %v3021_v8 = vadd.f32 %v11103_v51, %v2982_v5  ;;  %v2983_v20 = vmul.f32 %v11097_v39, %v2944_v42  ;;  %v4871_v55 = vrot.slane %v11642_v2, 7 }
 0x35b   : > { %14839 = vst [vmem:[#allocation42_spill] sm:$0xff] %v11642_v2  ;;  %v2884_v47 = vpop.f32.mrb[44].mxu0  ;;  %v4867_v60 = vrot.slane %v11639_v52, 7  ;;  %v11650_v59 = vld [vmem:[#allocation3 + $0x148] sm:$0xff] }
 0x35c   : > { %14837 = vst [vmem:[#allocation83_spill] sm:$0xff] %v11635_v13  ;;  %3099 = vst.msk [vmem:[#allocation3 + $0x168] sm:$0xff] %vm2094_vm5, %v3021_v8  ;;  %v3022_v57 = vadd.f32 %v11103_v51, %v2983_v20  ;;  %v2885_v5 = vadd.f32 %v11091_v44, %v2884_v47  ;;  %v2886_v14 = vpop.f32.mrb[45].mxu0  ;;  %6727 = vrot.lane.b32.xlu0 %v11635_v13, %s7647_s19  ;;  %6722 = vrot.lane.b32.xlu1 %v6721_v56, %s7651_s8  ;;  %v11665_v54 = vrot.slane %v11650_v59, 1 }
 0x35d   : > { %v11668_v21 = vrot.slane %v11650_v59, 2  ;;  %v2887_v15 = vpop.f32.mrb[46].mxu0  ;;  %v6731_v8 = vpack.i.bf16 %v11642_v2, %v11639_v52  ;;  %v3476_v20 = vrot.slane %v3154_v61, 2  ;;  %v11675_v47 = vsel %vm2337_vm11, %v4867_v60, %v4871_v55 }
 0x35e   : > { %14840 = vst [vmem:[#allocation84_spill] sm:$0xff] %v11665_v54  ;;  %14842 = vst [vmem:[#allocation88_spill] sm:$0xff] %v11675_v47  ;;  %v2945_v14 = vmax.f32 %v2885_v5, 0.0  ;;  %v2888_v56 = vadd.f32 %v11091_v44, %v2887_v15  ;;  %v2889_v30 = vpop.f32.mrb[47].mxu0 }
 0x35f   : > { %14841 = vst [vmem:[#allocation86_spill] sm:$0xff] %v11668_v21  ;;  %v11672_v42 = vld [vmem:[#allocation3 + $0x150] sm:$0xff]  ;;  %3100 = vst.msk [vmem:[#allocation3 + $0x170] sm:$0xff] %vm2094_vm5, %v3022_v57 }
 0x360   : > { %v11680_v23 = vrot.slane %v11672_v42, 1  ;;  %v3474_v7 = vrot.slane %v11672_v42, 2  ;;  %v2984_v55 = vmul.f32 %v11097_v39, %v2945_v14  ;;  %v2946_v13 = vmax.f32 %v2888_v56, 0.0  ;;  %6732 = vrot.lane.b32.xlu0 %v6731_v8, %s7651_s8  ;;  %v3158_v56 = vld [vmem:[#allocation3 + $0x178] sm:$0xff] }
 0x361   : > { %v4866_v8 = vrot.slane %v11604_v38, 7  ;;  %v3481_v48 = vrot.slane %v3158_v56, 2 }
 0x362   : > { %14843 = vst [vmem:[#allocation41_spill] sm:$0xff] %v11680_v23  ;;  %v11692_v15 = vsel %vm513_vm3, %v11665_v54, %v11680_v23  ;;  %v11696_v30 = vsel %vm722_vm4, %v11668_v21, %v3474_v7  ;;  %v11704_v14 = vsel %vm722_vm4, %v3474_v7, %v3476_v20  ;;  %v3023_v61 = vadd.f32 %v11103_v51, %v2984_v55  ;;  %v11734_v7 = vld [vmem:[#allocation3 + $0x20] sm:$0xff] }
 0x363   : > { %14844 = vst [vmem:[#allocation75_spill] sm:$0xff] %v11692_v15  ;;  %14845 = vst [vmem:[#allocation93_spill] sm:$0xff] %v11696_v30  ;;  %v11700_v57 = vpack.i.bf16 %v11692_v15, %v11665_v54  ;;  %v4877_v5 = vrot.slane %v11696_v30, 7  ;;  %v2985_v52 = vmul.f32 %v11097_v39, %v2946_v13  ;;  %v4881_v2 = vrot.slane %v11704_v14, 7  ;;  %v2892_v58 = vpop.f32.mrb[48].mxu0  ;;  %v11712_v54 = vld [vmem:[#allocation3 + $0x168] sm:$0xff] }
 0x364   : > { %14847 = vst [vmem:[#allocation48_spill] sm:$0xff] %v11704_v14  ;;  %v11719_v20 = vsel %vm2337_vm11, %v4866_v8, %v4867_v60  ;;  %v4876_v55 = vrot.slane %v11668_v21, 7  ;;  %3101 = vst.msk [vmem:[#allocation3 + $0x188] sm:$0xff] %vm2094_vm5, %v3023_v61  ;;  %v2893_v38 = vadd.f32 %v11091_v44, %v2892_v58  ;;  %v11726_v6 = vrot.slane %v11712_v54, 1 }
 0x365   : > { %14846 = vst [vmem:[#allocation91_spill] sm:$0xff] %v11700_v57  ;;  %6737 = vrot.lane.b32.xlu1 %v11700_v57, %s7647_s19  ;;  %14848 = vst [vmem:[#allocation82_spill] sm:$0xff] %v11719_v20  ;;  %v3024_v13 = vadd.f32 %v11103_v51, %v2985_v52  ;;  %v2894_v57 = vpop.f32.mrb[49].mxu0  ;;  %v6741_v60 = vpack.i.bf16 %v11696_v30, %v11668_v21  ;;  %v11742_v61 = vsel %vm2337_vm11, %v4877_v5, %v4881_v2  ;;  %v11750_v21 = vld [vmem:[#allocation3 + $0x40] sm:$0xff] }
 0x366   : > { %14849 = vst [vmem:[#allocation87_spill] sm:$0xff] %v11726_v6  ;;  %v2895_v62 = vpop.f32.mrb[50].mxu0  ;;  %v11732_v8 = vld [vmem:[#allocation3 + $0x170] sm:$0xff]  ;;  %14850 = vst [vmem:[#allocation99_spill] sm:$0xff] %v11734_v7  ;;  %v11739_v58 = vsel %vm2337_vm11, %v4876_v55, %v4877_v5  ;;  %v2947_v57 = vmax.f32 %v2893_v38, 0.0  ;;  %v11748_v30 = vpack.i.bf16 %v11726_v6, %v11680_v23  ;;  %v11753_v52 = vrot.slane %v11712_v54, 2 }
 0x367   : > { %14851 = vst [vmem:[#allocation54_spill] sm:$0xff] %v11739_v58  ;;  %14852 = vst [vmem:[#allocation47_spill] sm:$0xff] %v11742_v61  ;;  %v2896_v56 = vadd.f32 %v11091_v44, %v2895_v62  ;;  %v2897_v15 = vpop.f32.mrb[51].mxu0  ;;  %v11757_v2 = vrot.slane %v11732_v8, 1  ;;  %v3479_v5 = vrot.slane %v11732_v8, 2  ;;  %v3486_v38 = vrot.slane %v11728_v29, 2 }
 0x368   : > { %3102 = vst.msk [vmem:[#allocation3 + $0x190] sm:$0xff] %vm2094_vm5, %v3024_v13  ;;  %14853 = vst [vmem:[#allocation90_spill] sm:$0xff] %v11748_v30  ;;  %v2986_v62 = vmul.f32 %v11097_v39, %v2947_v57  ;;  %6747 = vrot.lane.b32.xlu0 %v11748_v30, %s7647_s19  ;;  %v6756_v55 = vpack.i.bf16 %v11116_v27, %v11734_v7  ;;  %v6751_v13 = vpack.i.bf16 %v11753_v52, %v11704_v14 }
 0x369   : > { %14854 = vst [vmem:[#allocation103_spill] sm:$0xff] %v11753_v52  ;;  %6742 = vrot.lane.b32.xlu1 %v6741_v60, %s7651_s8  ;;  %14855 = vst [vmem:[#allocation59_spill] sm:$0xff] %v11757_v2  ;;  %v2948_v15 = vmax.f32 %v2896_v56, 0.0  ;;  %v6761_v60 = vpack.i.bf16 %v11750_v21, %v11124_v31  ;;  %v11773_v20 = vsel %vm513_vm3, %v11726_v6, %v11757_v2 }
 0x36a   : > { %14856 = vst [vmem:[#allocation96_spill] sm:$0xff] %v11773_v20  ;;  %v11777_v29 = vsel %vm722_vm4, %v11753_v52, %v3479_v5  ;;  %v11780_v57 = vsel %vm722_vm4, %v3479_v5, %v3481_v48  ;;  %v3025_v27 = vadd.f32 %v11103_v51, %v2986_v62  ;;  %v11793_v48 = vpack.i.bf16 %v11757_v2, %v11773_v20  ;;  %v11855_v5 = vld [vmem:[%s13707_s3] ss:$0 sm:$0xff] }
 0x36b   : > { %14857 = vst [vmem:[#allocation60_spill] sm:$0xff] %v11777_v29  ;;  %14858 = vst [vmem:[#allocation62_spill] sm:$0xff] %v11780_v57  ;;  %v2987_v56 = vmul.f32 %v11097_v39, %v2948_v15  ;;  %v4891_v31 = vrot.slane %v11780_v57, 7  ;;  %v2900_v58 = vpop.f32.mrb[52].mxu0  ;;  %v4887_v61 = vrot.slane %v11777_v29, 7  ;;  %v11789_v47 = vld [vmem:[#allocation3 + $0x188] sm:$0xff] }
 0x36c   : > { %14859 = vst [vmem:[#allocation81_spill] sm:$0xff] %v11793_v48  ;;  %v4886_v62 = vrot.slane %v11753_v52, 7  ;;  %3103 = vst.msk [vmem:[#allocation3 + $0x1a8] sm:$0xff] %vm2094_vm5, %v3025_v27  ;;  %v2901_v23 = vadd.f32 %v11091_v44, %v2900_v58  ;;  %6752 = vrot.lane.b32.xlu0 %v6751_v13, %s7651_s8  ;;  %v11803_v14 = vrot.slane %v11789_v47, 1  ;;  %v11806_v7 = vrot.slane %v11789_v47, 2 }
 0x36d   : > { %6762 = vrot.lane.b32.xlu1 %v6761_v60, %s7643_s20  ;;  %v3026_v15 = vadd.f32 %v11103_v51, %v2987_v56  ;;  %v2902_v60 = vpop.f32.mrb[53].mxu0  ;;  %v11816_v58 = vsel %vm2337_vm11, %v4887_v61, %v4891_v31 }
 0x36e   : > { %14860 = vst [vmem:[#allocation105_spill] sm:$0xff] %v11803_v14  ;;  %14861 = vst [vmem:[#allocation98_spill] sm:$0xff] %v11806_v7  ;;  %v2903_v30 = vpop.f32.mrb[54].mxu0  ;;  %v11813_v27 = vsel %vm2337_vm11, %v4886_v62, %v4887_v61  ;;  %v2949_v13 = vmax.f32 %v2901_v23, 0.0 }
 0x36f   : > { %v11808_v0 = vld [vmem:[#allocation3 + $0x190] sm:$0xff]  ;;  %14862 = vst [vmem:[#allocation53_spill] sm:$0xff] %v11813_v27  ;;  %14863 = vst [vmem:[#allocation97_spill] sm:$0xff] %v11816_v58  ;;  %v2904_v56 = vadd.f32 %v11091_v44, %v2903_v30  ;;  %v2905_v60 = vpop.f32.mrb[55].mxu0 }
 0x370   : > { %3104 = vst.msk [vmem:[#allocation3 + $0x1b0] sm:$0xff] %vm2094_vm5, %v3026_v15  ;;  %v11821_v6 = vrot.slane %v11808_v0, 1  ;;  %v3484_v20 = vrot.slane %v11808_v0, 2  ;;  %v2988_v31 = vmul.f32 %v11097_v39, %v2949_v13  ;;  %6757 = vrot.lane.b32.xlu0 %v6756_v55, %s7643_s20  ;;  %v6771_v15 = vpack.i.bf16 %v11780_v57, %v11777_v29  ;;  %v3166_v13 = vld [vmem:[#allocation3 + $0x1b8] sm:$0xff] }
 0x371   : > { %6767 = vrot.lane.b32.xlu1 %v11793_v48, %s7647_s19  ;;  %v2950_v23 = vmax.f32 %v2904_v56, 0.0 }
 0x372   : > { %14864 = vst [vmem:[#allocation66_spill] sm:$0xff] %v11821_v6  ;;  %v11835_v44 = vsel %vm513_vm3, %v11803_v14, %v11821_v6  ;;  %v11839_v30 = vsel %vm722_vm4, %v11806_v7, %v3484_v20  ;;  %v11849_v55 = vsel %vm722_vm4, %v3484_v20, %v3486_v38  ;;  %v3027_v56 = vadd.f32 %v11103_v51, %v2988_v31  ;;  %v7497_v20 = vld [vmem:[%s13706_s2] ss:$0 sm:$0xff] }
 0x373   : > { %14865 = vst [vmem:[#allocation63_spill] sm:$0xff] %v11835_v44  ;;  %14866 = vst [vmem:[#allocation89_spill] sm:$0xff] %v11839_v30  ;;  %v11845_v60 = vpack.i.bf16 %v11835_v44, %v11803_v14  ;;  %v4897_v39 = vrot.slane %v11839_v30, 7  ;;  %v2989_v61 = vmul.f32 %v11855_v5, %v2950_v23  ;;  %v4901_v62 = vrot.slane %v11849_v55, 7  ;;  %v2908_v52 = vpop.f32.mrb[56].mxu0  ;;  %v11860_v29 = vld [vmem:[#allocation3 + $0x1a8] sm:$0xff] }
 0x374   : > { %14868 = vst [vmem:[#allocation110_spill] sm:$0xff] %v11849_v55  ;;  %v4896_v31 = vrot.slane %v11806_v7, 7  ;;  %3105 = vst.msk [vmem:[#allocation3 + $0x1c8] sm:$0xff] %vm2094_vm5, %v3027_v56  ;;  %v11873_v23 = vld [vmem:[%s13708_s4] ss:$0 sm:$0xff]  ;;  %v2909_v57 = vadd.f32 %v7497_v20, %v2908_v52  ;;  %v2910_v51 = vpop.f32.mrb[57].mxu0  ;;  %v6781_v58 = vpack.i.bf16 %v11839_v30, %v11806_v7 }
 0x375   : > { %14867 = vst [vmem:[#allocation111_spill] sm:$0xff] %v11845_v60  ;;  %6772 = vrot.lane.b32.xlu1 %v6771_v15, %s7651_s8  ;;  %v3028_v15 = vadd.f32 %v11873_v23, %v2989_v61  ;;  %6777 = vrot.lane.b32.xlu0 %v11845_v60, %s7647_s19  ;;  %v11882_v38 = vrot.slane %v11860_v29, 1  ;;  %v3491_v56 = vrot.slane %v3166_v13, 2  ;;  %v2911_v27 = vpop.f32.mrb[58].mxu0  ;;  %v11889_v61 = vrot.slane %v11860_v29, 2 }
 0x376   : > { %v11892_v2 = vsel %vm2337_vm11, %v4896_v31, %v4897_v39  ;;  %v11895_v52 = vsel %vm2337_vm11, %v4897_v39, %v4901_v62  ;;  %v2951_v51 = vmax.f32 %v2909_v57, 0.0  ;;  %v2912_v60 = vadd.f32 %v7497_v20, %v2911_v27  ;;  %v2913_v13 = vpop.f32.mrb[59].mxu0 }
 0x377   : > { %14869 = vst [vmem:[#allocation58_spill] sm:$0xff] %v11882_v38  ;;  %v11886_v44 = vld [vmem:[#allocation3 + $0x1b0] sm:$0xff]  ;;  %14871 = vst [vmem:[#allocation118_spill] sm:$0xff] %v11889_v61  ;;  %v11900_v14 = vpack.i.bf16 %v11882_v38, %v11821_v6  ;;  %v3170_v13 = vld [vmem:[#allocation3 + $0x1d8] sm:$0xff] }
 0x378   : > { %14870 = vst [vmem:[#allocation94_spill] sm:$0xff] %v11886_v44  ;;  %14872 = vst [vmem:[#allocation108_spill] sm:$0xff] %v11892_v2  ;;  %v11903_v30 = vrot.slane %v11886_v44, 1  ;;  %v3489_v7 = vrot.slane %v11886_v44, 2  ;;  %v2990_v31 = vmul.f32 %v11855_v5, %v2951_v51  ;;  %v2952_v48 = vmax.f32 %v2912_v60, 0.0 }
 0x379   : > { %14873 = vst [vmem:[#allocation106_spill] sm:$0xff] %v11895_v52  ;;  %3106 = vst.msk [vmem:[#allocation3 + $0x1d0] sm:$0xff] %vm2094_vm5, %v3028_v15  ;;  %6782 = vrot.lane.b32.xlu0 %v6781_v58, %s7651_s8  ;;  %6787 = vrot.lane.b32.xlu1 %v11900_v14, %s7647_s19  ;;  %v6791_v15 = vpack.i.bf16 %v11889_v61, %v11849_v55 }
 0x37a   : > { %14874 = vst [vmem:[#allocation64_spill] sm:$0xff] %v11900_v14  ;;  %14875 = vst [vmem:[#allocation17_spill] sm:$0xff] %v11903_v30  ;;  %v11913_v57 = vsel %vm513_vm3, %v11882_v38, %v11903_v30  ;;  %v11921_v62 = vsel %vm722_vm4, %v11889_v61, %v3489_v7  ;;  %v11924_v60 = vsel %vm722_vm4, %v3489_v7, %v3491_v56 }
 0x37b   : > { %14876 = vst [vmem:[#allocation119_spill] sm:$0xff] %v11913_v57  ;;  %v11917_v27 = vpack.i.bf16 %v11903_v30, %v11913_v57  ;;  %14878 = vst [vmem:[#allocation102_spill] sm:$0xff] %v11921_v62  ;;  %v3029_v58 = vadd.f32 %v11873_v23, %v2990_v31  ;;  %v2991_v39 = vmul.f32 %v11855_v5, %v2952_v48  ;;  %v4911_v51 = vrot.slane %v11924_v60, 7  ;;  %v2916_v6 = vpop.f32.mrb[60].mxu0  ;;  %v11932_v44 = vld [vmem:[#allocation3 + $0x1c8] sm:$0xff] }
 0x37c   : > { %14879 = vst [vmem:[#allocation114_spill] sm:$0xff] %v11924_v60  ;;  %v4907_v14 = vrot.slane %v11921_v62, 7  ;;  %14880 = vst [vmem:[#allocation104_spill] sm:$0xff] %v11932_v44  ;;  %v2917_v31 = vadd.f32 %v7497_v20, %v2916_v6  ;;  %v2918_v55 = vpop.f32.mrb[61].mxu0  ;;  %v11948_v19 = vrot.slane %v11932_v44, 1  ;;  %v11951_v7 = vrot.slane %v11932_v44, 2 }
 0x37d   : > { %14877 = vst [vmem:[#allocation65_spill] sm:$0xff] %v11917_v27  ;;  %3107 = vst.msk [vmem:[#allocation3 + $0x1e8] sm:$0xff] %vm2094_vm5, %v3029_v58  ;;  %v3030_v56 = vadd.f32 %v11873_v23, %v2991_v39  ;;  %6797 = vrot.lane.b32.xlu0 %v11917_v27, %s7647_s19  ;;  %6792 = vrot.lane.b32.xlu1 %v6791_v15, %s7651_s8  ;;  %v2919_v48 = vpop.f32.mrb[62].mxu0  ;;  %v6801_v58 = vpack.i.bf16 %v11924_v60, %v11921_v62  ;;  %v3496_v39 = vrot.slane %v3170_v13, 2  ;;  %v11967_v62 = vld [vmem:[#allocation3 + $0x48] sm:$0xff]  ;;  %v11969_v44 = vld [vmem:[#allocation3 + $0x50] sm:$0xff] }
 0x37e   : > { %14881 = vst [vmem:[#allocation69_spill] sm:$0xff] %v11948_v19  ;;  %14882 = vst [vmem:[#allocation109_spill] sm:$0xff] %v11951_v7  ;;  %v6811_v6 = vpack.i.bf16 %v11201_v28, %v11945_v63  ;;  %v11960_v15 = vsel %vm2337_vm11, %v4907_v14, %v4911_v51  ;;  %v2953_v2 = vmax.f32 %v2917_v31, 0.0  ;;  %v2920_v52 = vadd.f32 %v7497_v20, %v2919_v48  ;;  %v2921_v38 = vpop.f32.mrb[63].mxu0 }
 0x37f   : > { %14884 = vst [vmem:[#allocation12_spill] sm:$0xff] %v11960_v15  ;;  %3108 = vst.msk [vmem:[#allocation3 + $0x1f0] sm:$0xff] %vm2094_vm5, %v3030_v56  ;;  %v6806_v28 = vpack.i.bf16 %v11969_v44, %v11967_v62 }
 0x380   : > { %v11957_v55 = vld [vmem:[#allocation3 + $0x1d0] sm:$0xff]  ;;  %v2992_v20 = vmul.f32 %v11855_v5, %v2953_v2  ;;  %v2954_v38 = vmax.f32 %v2920_v52, 0.0 }
 0x381   : > { %14883 = vst [vmem:[#allocation32_spill] sm:$0xff] %v11957_v55  ;;  %v11964_v57 = vrot.slane %v11957_v55, 1  ;;  %v3494_v27 = vrot.slane %v11957_v55, 2  ;;  %6802 = vrot.lane.b32.xlu0 %v6801_v58, %s7651_s8  ;;  %6812 = vrot.lane.b32.xlu1 %v6811_v6, %s7643_s20  ;;  %v3174_v58 = vld [vmem:[#allocation3 + $0x1f8] sm:$0xff]  ;;  %v4906_v6 = vrot.slane %v11889_v61, 7  ;;  %v12201_v61 = vld [vmem:[#allocation3 + $0x160] sm:$0xff] }
 0x382   : > { %v3031_v13 = vadd.f32 %v11873_v23, %v2992_v20  ;;  %v2993_v51 = vmul.f32 %v11855_v5, %v2954_v38  ;;  %v3501_v38 = vrot.slane %v3174_v58, 2 }
 0x383   : > { %14885 = vst [vmem:[#allocation115_spill] sm:$0xff] %v11964_v57  ;;  %v11983_v48 = vsel %vm513_vm3, %v11948_v19, %v11964_v57  ;;  %v11987_v56 = vsel %vm722_vm4, %v11951_v7, %v3494_v27  ;;  %v11995_v52 = vsel %vm722_vm4, %v3494_v27, %v3496_v39  ;;  %v12008_v27 = vsel %vm2337_vm11, %v4906_v6, %v4907_v14 }
 0x384   : > { %14886 = vst [vmem:[#allocation100_spill] sm:$0xff] %v11983_v48  ;;  %14887 = vst [vmem:[#allocation95_spill] sm:$0xff] %v11987_v56  ;;  %v11991_v31 = vpack.i.bf16 %v11983_v48, %v11948_v19  ;;  %v4917_v2 = vrot.slane %v11987_v56, 7  ;;  %v4921_v60 = vrot.slane %v11995_v52, 7  ;;  %v12001_v30 = vld [vmem:[#allocation3 + $0x1e8] sm:$0xff]  ;;  %v4916_v39 = vrot.slane %v11951_v7, 7 }
 0x385   : > { %14889 = vst [vmem:[#allocation113_spill] sm:$0xff] %v11995_v52  ;;  %14890 = vst [vmem:[#allocation22_spill] sm:$0xff] %v12001_v30  ;;  %v3032_v20 = vadd.f32 %v11873_v23, %v2993_v51  ;;  %6807 = vrot.lane.b32.xlu0 %v6806_v28, %s7643_s20  ;;  %v12017_v5 = vrot.slane %v12001_v30, 1  ;;  %v12020_v55 = vrot.slane %v12001_v30, 2  ;;  %v6821_v51 = vpack.i.bf16 %v11987_v56, %v11951_v7 }
 0x386   : > { %14888 = vst [vmem:[#allocation101_spill] sm:$0xff] %v11991_v31  ;;  %14891 = vst [vmem:[#allocation30_spill] sm:$0xff] %v12008_v27  ;;  %6817 = vrot.lane.b32.xlu1 %v11991_v31, %s7647_s19  ;;  %v12022_v14 = vld [vmem:[#allocation3 + $0x1f0] sm:$0xff]  ;;  %v12030_v23 = vsel %vm2337_vm11, %v4917_v2, %v4921_v60  ;;  %v12143_v31 = vld [vmem:[#allocation3 + $0x100] sm:$0xff] }
 0x387   : > { %3109 = vst.msk [vmem:[#allocation3 + $0x208] sm:$0xff] %vm2094_vm5, %v3031_v13  ;;  %14892 = vst [vmem:[#allocation23_spill] sm:$0xff] %v12017_v5  ;;  %v12027_v13 = vsel %vm2337_vm11, %v4916_v39, %v4917_v2  ;;  %v12035_v28 = vpack.i.bf16 %v12017_v5, %v11964_v57  ;;  %v12040_v58 = vrot.slane %v12022_v14, 1  ;;  %v3499_v6 = vrot.slane %v12022_v14, 2 }
 0x388   : > { %14893 = vst [vmem:[#allocation13_spill] sm:$0xff] %v12020_v55  ;;  %14894 = vst [vmem:[#allocation76_spill] sm:$0xff] %v12022_v14  ;;  %v6841_v39 = vpack.i.bf16 %v11271_v10, %v11252_v34  ;;  %v3178_v34 = vld [vmem:[#allocation3 + $0x218] sm:$0xff]  ;;  %v12075_v10 = vld [vmem:[#allocation3 + $0x80] sm:$0xff] }
 0x389   : > { %14895 = vst [vmem:[#allocation107_spill] sm:$0xff] %v12027_v13  ;;  %14896 = vst [vmem:[#allocation37_spill] sm:$0xff] %v12030_v23  ;;  %6827 = vrot.lane.b32.xlu0 %v12035_v28, %s7647_s19  ;;  %v12051_v60 = vsel %vm513_vm3, %v12017_v5, %v12040_v58  ;;  %v12055_v2 = vsel %vm722_vm4, %v12020_v55, %v3499_v6  ;;  %v6831_v23 = vpack.i.bf16 %v12020_v55, %v11995_v52  ;;  %v15081_v14 = vld [vmem:[#allocation103_spill] sm:$0xff] }
 0x38a   : > { %3110 = vst.msk [vmem:[#allocation3 + $0x210] sm:$0xff] %vm2094_vm5, %v3032_v20  ;;  %14897 = vst [vmem:[#allocation33_spill] sm:$0xff] %v12035_v28  ;;  %6822 = vrot.lane.b32.xlu1 %v6821_v51, %s7651_s8  ;;  %v12058_v20 = vsel %vm722_vm4, %v3499_v6, %v3501_v38  ;;  %v4927_v13 = vrot.slane %v12055_v2, 7  ;;  %v4926_v51 = vrot.slane %v12020_v55, 7  ;;  %v12069_v27 = vpack.i.bf16 %v12040_v58, %v12051_v60  ;;  %v12091_v55 = vld [vmem:[#allocation3 + $0x70] sm:$0xff] }
 0x38b   : > { %14898 = vst [vmem:[#allocation16_spill] sm:$0xff] %v12040_v58  ;;  %14899 = vst [vmem:[#allocation29_spill] sm:$0xff] %v12051_v60  ;;  %v4931_v19 = vrot.slane %v12058_v20, 7  ;;  %v3960_v6 = vrot.slane %v3178_v34, 2  ;;  %v12118_v60 = vld [vmem:[#allocation3 + $0xc0] sm:$0xff]  ;;  %v6866_v52 = vpack.i.bf16 %v11404_v26, %v11381_v32  ;;  %v14913_v32 = vmov 0  }
 0x38c   : > { %14900 = vst [vmem:[#allocation36_spill] sm:$0xff] %v12055_v2  ;;  %14901 = vst [vmem:[#allocation27_spill] sm:$0xff] %v12058_v20  ;;  %v12078_v15 = vsel %vm2337_vm11, %v4926_v51, %v4927_v13  ;;  %v6836_v51 = vpack.i.bf16 %v12075_v10, %v12091_v55  ;;  %v6876_v26 = vpack.i.bf16 %v12143_v31, %v11466_v40 }
 0x38d   : > { %14902 = vst [vmem:[#allocation31_spill] sm:$0xff] %v12069_v27  ;;  %14903 = vst [vmem:[#allocation35_spill] sm:$0xff] %v12078_v15  ;;  %v12081_v48 = vsel %vm2337_vm11, %v4927_v13, %v4931_v19  ;;  %6832 = vrot.lane.b32.xlu0 %v6831_v23, %s7651_s8  ;;  %v12102_v23 = vpop.permute.xlu0 %6587  ;;  %v6881_v40 = vpack.i.bf16 %v11541_v22, %v11515_v12 }
 0x38e   : > { %14904 = vst [vmem:[#allocation38_spill] sm:$0xff] %v12081_v48  ;;  %6842 = vrot.lane.b32.xlu1 %v6841_v39, %s7643_s20  ;;  %v12085_v57 = vld [vmem:[#allocation3 + $0x208] sm:$0xff]  ;;  %v12104_v39 = vld [vmem:[#allocation3 + $0xa0] sm:$0xff] }
 0x38f   : > { %14905 = vst [vmem:[#allocation137_spill] sm:$0xff] %v12085_v57  ;;  %v12096_v19 = vrot.slane %v12085_v57, 2  ;;  %v6846_v15 = vpack.i.bf16 %v11316_v43, %v12104_v39  ;;  %v7435_v43 = vld [vmem:[%s13709_s5] sm:$0xff]  }
 0x390   : > { %5177 = vmatpush1.bf16.msra.mxu1 %v7435_v43 }
 0x391   : > { %v12089_v5 = vld [vmem:[#allocation3 + $0x210] sm:$0xff]  ;;  %14907 = vst [vmem:[#allocation139_spill] sm:$0xff] %v12096_v19  ;;  %6837 = vrot.lane.b32.xlu0 %v6836_v51, %s7643_s20  ;;  %v6856_v51 = vpack.i.bf16 %v12058_v20, %v12055_v2  ;;  %v4936_v56 = vrot.slane %v12096_v19, 7  ;;  %v12141_v28 = vpop.permute.xlu0 %6597  ;;  %5178 = vmatprep.subr.bf16.mxu1 %v14913_v32 }
 0x392   : > { %14906 = vst [vmem:[#allocation138_spill] sm:$0xff] %v12089_v5  ;;  %v3958_v13 = vrot.slane %v12089_v5, 2  ;;  %6852 = vrot.lane.b32.xlu1 %v12069_v27, %s7647_s19 }
 0x394   : > { %v12108_v34 = vsel %vm722_vm4, %v12096_v19, %v3958_v13  ;;  %v12111_v38 = vsel %vm722_vm4, %v3958_v13, %v3960_v6  ;;  %v12124_v6 = vpop.permute.xlu1 %6592 }
 0x395   : > { %14908 = vst [vmem:[#allocation140_spill] sm:$0xff] %v12108_v34  ;;  %14909 = vst [vmem:[#allocation141_spill] sm:$0xff] %v12111_v38  ;;  %v4941_v48 = vrot.slane %v12111_v38, 7  ;;  %v4937_v27 = vrot.slane %v12108_v34, 7  ;;  %6847 = vrot.lane.b32.xlu0 %v6846_v15, %s7643_s20  ;;  %v6861_v15 = vpack.i.bf16 %v12118_v60, %v11333_v46  ;;  %v7436_v46 = vld [vmem:[%s13709_s5 + $0x8] sm:$0xff]   ;;  %v7439_v38 = vld [vmem:[%s13709_s5 + $0x20] sm:$0xff]  }
 0x396   : > { %6857 = vrot.lane.b32.xlu1 %v6856_v51, %s7651_s8  ;;  %5179 = vmatpush1.bf16.msra.mxu1 %v7436_v46  ;;  %v12175_v46 = vld [vmem:[#allocation3 + $0x140] sm:$0xff]  ;;  %v7440_v34 = vld [vmem:[%s13709_s5 + $0x28] sm:$0xff]  }
 0x397   : > { %v12130_v13 = vsel %vm2337_vm11, %v4936_v56, %v4937_v27  ;;  %v12133_v2 = vsel %vm2337_vm11, %v4937_v27, %v4941_v48  ;;  %v12149_v56 = vld [vmem:[#allocation3 + $0xe0] sm:$0xff]  ;;  %5180 = vmatprep.subr.bf16.mxu1 %v14913_v32  ;;  %v6891_v12 = vpack.i.bf16 %v12175_v46, %v11601_v3 }
 0x398   : > { %14910 = vst [vmem:[#allocation142_spill] sm:$0xff] %v12130_v13  ;;  %14911 = vst [vmem:[#allocation143_spill] sm:$0xff] %v12133_v2  ;;  %v12147_v48 = vpop.permute.xlu1 %6602  ;;  %v6871_v27 = vpack.i.bf16 %v11446_v16, %v12149_v56  ;;  %v7437_v16 = vld [vmem:[%s13709_s5 + $0x10] sm:$0xff]   ;;  %v6896_v13 = vpack.i.bf16 %v11672_v42, %v11650_v59  ;;  %v7438_v2 = vld [vmem:[%s13709_s5 + $0x18] sm:$0xff]  }
 0x399   : > { %6867 = vrot.lane.b32.xlu0 %v6866_v52, %s7643_s20  ;;  %14912 = vst [vmem:[#allocation144_spill] sm:$0xff] %v12149_v56  ;;  %v12159_v43 = vpop.permute.xlu0 %6607 }
 0x39a   : > { %6862 = vrot.lane.b32.xlu1 %v6861_v15, %s7643_s20  ;;  %v12165_v15 = vld [vmem:[#allocation3 + $0x120] sm:$0xff]  ;;  %5181 = vmatpush1.bf16.msra.mxu1 %v7437_v16 }
 0x39b   : > { %v6886_v51 = vpack.i.bf16 %v11581_v33, %v12165_v15  ;;  %5182 = vmatprep.subr.bf16.mxu1 %v14913_v32 }
 0x39c   : > { %v12163_v52 = vpop.permute.xlu1 %6617 }
 0x39d   : > { %6877 = vrot.lane.b32.xlu0 %v6876_v26, %s7643_s20  ;;  %v12179_v26 = vpop.permute.xlu0 %6612  ;;  %v6619_v20 = vunpack.i.l.bf16 %v12163_v52 }
 0x39e   : > { %6872 = vrot.lane.b32.xlu1 %v6871_v27, %s7643_s20  ;;  %5183 = vmatpush1.bf16.msra.mxu1 %v7438_v2  ;;  %v12213_v2 = vld [vmem:[#allocation3 + $0x1a0] sm:$0xff] }
 0x39f   : > { %5184 = vmatprep.subr.bf16.mxu1 %v14913_v32 }
 0x3a0   : > { %v12181_v27 = vpop.permute.xlu1 %6622 }
 0x3a1   : > { %6887 = vrot.lane.b32.xlu0 %v6886_v51, %s7643_s20  ;;  %v12191_v51 = vld [vmem:[#allocation3 + $0x180] sm:$0xff]  ;;  %v6625_v19 = vunpack.i.h.bf16 %v12181_v27 }
 0x3a2   : > { %6882 = vrot.lane.b32.xlu1 %v6881_v40, %s7643_s20  ;;  %v6906_v7 = vpack.i.bf16 %v12191_v51, %v11732_v8  ;;  %5185 = vmatpush1.bf16.msra.mxu1 %v7439_v38 }
 0x3a3   : > { %5186 = vmatprep.subr.bf16.mxu1 %v14913_v32 }
 0x3a4   : > { %v12195_v40 = vpop.permute.xlu0 %6627  ;;  %v12197_v16 = vpop.permute.xlu1 %6637 }
 0x3a5   : > { %6897 = vrot.lane.b32.xlu0 %v6896_v13, %s7643_s20  ;;  %14914 = vst [vmem:[#allocation145_spill] sm:$0xff] %v12195_v40  ;;  %14915 = vst [vmem:[#allocation146_spill] sm:$0xff] %v12197_v16  ;;  %v6901_v13 = vpack.i.bf16 %v11712_v54, %v12201_v61  ;;  %v6916_v40 = vpack.i.bf16 %v11860_v29, %v12213_v2 }
 0x3a6   : > { %6892 = vrot.lane.b32.xlu1 %v6891_v12, %s7643_s20  ;;  %5187 = vmatpush1.bf16.msra.mxu1 %v7440_v34 }
 0x3a7   : > { %5188 = vmatprep.subr.bf16.mxu1 %v14913_v32 }
 0x3a8   : > { %v12211_v12 = vpop.permute.xlu0 %6632 }
 0x3a9   : > { %6907 = vrot.lane.b32.xlu0 %v6906_v7, %s7643_s20  ;;  %14916 = vst [vmem:[#allocation147_spill] sm:$0xff] %v12211_v12  ;;  %v12215_v16 = vpop.permute.xlu1 %6642  ;;  %v6911_v7 = vpack.i.bf16 %v11808_v0, %v11789_v47  ;;  %v14919_v12 = vpack.i.bf16 %v11159_v35, %v11130_v45  ;;  %v14921_v45 = vpack.i.bf16 %v11161_v41, %v11164_v17  ;;  %v7443_v41 = vld [vmem:[%s13709_s5 + $0x40] sm:$0xff]  }
 0x3aa   : > { %6902 = vrot.lane.b32.xlu1 %v6901_v13, %s7643_s20  ;;  %14917 = vst [vmem:[#allocation148_spill] sm:$0xff] %v12215_v16  ;;  %v7441_v16 = vld [vmem:[%s13709_s5 + $0x30] sm:$0xff]   ;;  %v6941_v17 = vpack.i.bf16 %v11967_v62, %v11750_v21 }
 0x3ab   : > { %5189 = vmatpush1.bf16.msra.mxu1 %v7441_v16  ;;  %v6946_v16 = vpack.i.bf16 %v11945_v63, %v11969_v44 }
 0x3ac   : > { %5190 = vmatprep.subr.bf16.mxu1 %v14913_v32 }
 0x3ad   : > { %6917 = vrot.lane.b32.xlu0 %v6916_v40, %s7643_s20  ;;  %v12227_v13 = vpop.permute.xlu0 %6647  ;;  %v12229_v38 = vpop.permute.xlu1 %6657  ;;  %v14920_v40 = vpack.i.bf16 %v11141_v37, %v11122_v50  ;;  %v14922_v50 = vpack.i.bf16 %v11147_v24, %v11133_v18 }
 0x3ae   : > { %6912 = vrot.lane.b32.xlu1 %v6911_v7, %s7643_s20  ;;  %14918 = vst [vmem:[#allocation149_spill] sm:$0xff] %v12229_v38  ;;  %v7442_v38 = vld [vmem:[%s13709_s5 + $0x38] sm:$0xff]  }
 0x3af   : > { %5191 = vmatpush1.bf16.msra.mxu1 %v7442_v38 }
 0x3b0   : > { %5192 = vmatprep.subr.bf16.mxu1 %v14913_v32 }
 0x3b1   : > { %6927 = vrot.lane.b32.xlu0 %v14919_v12, %s7650_s18  ;;  %v12243_v7 = vpop.permute.xlu0 %6652  ;;  %v12245_v34 = vpop.permute.xlu1 %6667  ;;  %v14928_v12 = vpack.i.bf16 %v11190_v11, %v11183_v36 }
 0x3b2   : > { %6922 = vrot.lane.b32.xlu1 %v14920_v40, %s7650_s18  ;;  %v14930_v40 = vpack.i.bf16 %v11168_v1, %v11179_v25  ;;  %v14934_v1 = vld [vmem:[#allocation112_spill] sm:$0xff] }
 0x3b3   : > { %5193 = vmatpush1.bf16.msra.mxu1 %v7443_v41  ;;  %v14935_v25 = vpack.i.bf16 %v11265_v4, %v14934_v1  ;;  %v12326_v4 = vld [vmem:[#allocation3 + $0x90] sm:$0xff] }
 0x3b4   : > { %v7006_v1 = vpack.i.bf16 %v12104_v39, %v12326_v4 }
 0x3b5   : > { %6937 = vrot.lane.b32.xlu0 %v14921_v45, %s7652_s29  ;;  %v12259_v37 = vpop.permute.xlu0 %6662  ;;  %v12261_v35 = vpop.permute.xlu1 %6672 }
 0x3b6   : > { %6932 = vrot.lane.b32.xlu1 %v14922_v50, %s7652_s29  ;;  %14923 = vst [vmem:[#allocation150_spill] sm:$0xff] %v12259_v37  ;;  %14924 = vst [vmem:[#allocation151_spill] sm:$0xff] %v12261_v35  ;;  %v14936_v50 = vld [vmem:[#allocation116_spill] sm:$0xff] }
 0x3b9   : > { %6947 = vrot.lane.b32.xlu0 %v6946_v16, %s7645_s23  ;;  %v12273_v18 = vpop.permute.xlu0 %6677  ;;  %v12275_v24 = vpop.permute.xlu1 %6687  ;;  %v14937_v16 = vld [vmem:[#allocation117_spill] sm:$0xff] }
 0x3ba   : > { %6942 = vrot.lane.b32.xlu1 %v6941_v17, %s7645_s23  ;;  %14925 = vst [vmem:[#allocation152_spill] sm:$0xff] %v12273_v18  ;;  %14926 = vst [vmem:[#allocation153_spill] sm:$0xff] %v12275_v24  ;;  %v14938_v41 = vpack.i.bf16 %v14936_v50, %v14937_v16  ;;  %v14974_v18 = vld [vmem:[#allocation131_spill] sm:$0xff] }
 0x3bd   : > { %6957 = vrot.lane.b32.xlu0 %v11219_v49, %s7653_s9  ;;  %v12281_v32 = vpop.permute.xlu0 %6682  ;;  %v12287_v38 = vpop.permute.xlu1 %6697  ;;  %v12295_v49 = vld [vmem:[#allocation3 + $0x68] sm:$0xff] }
 0x3be   : > { %6952 = vrot.lane.b32.xlu1 %v11187_v53, %s7653_s9  ;;  %14927 = vst [vmem:[#allocation154_spill] sm:$0xff] %v12281_v32  ;;  %14929 = vst [vmem:[#allocation155_spill] sm:$0xff] %v12287_v38  ;;  %v6971_v53 = vpack.i.bf16 %v12091_v55, %v12295_v49 }
 0x3c1   : > { %6967 = vrot.lane.b32.xlu0 %v14928_v12, %s7652_s29  ;;  %v12293_v45 = vpop.permute.xlu0 %6692  ;;  %v12304_v11 = vpop.permute.xlu1 %6702 }
 0x3c2   : > { %6962 = vrot.lane.b32.xlu1 %v14930_v40, %s7650_s18  ;;  %14931 = vst [vmem:[#allocation156_spill] sm:$0xff] %v12293_v45  ;;  %14933 = vst [vmem:[#allocation158_spill] sm:$0xff] %v12304_v11  ;;  %v14942_v40 = vld [vmem:[#allocation120_spill] sm:$0xff]  ;;  %v14945_v11 = vld [vmem:[#allocation121_spill] sm:$0xff] }
 0x3c5   : > { %6977 = vrot.lane.b32.xlu0 %v11238_v9, %s7653_s9  ;;  %v12302_v36 = vpop.permute.xlu0 %6707  ;;  %v14941_v9 = vld [vmem:[#allocation77_spill] sm:$0xff] }
 0x3c6   : > { %6972 = vrot.lane.b32.xlu1 %v6971_v53, %s7645_s23  ;;  %14932 = vst [vmem:[#allocation157_spill] sm:$0xff] %v12302_v36  ;;  %v14943_v53 = vpack.i.bf16 %v14941_v9, %v14942_v40  ;;  %v14944_v36 = vld [vmem:[#allocation123_spill] sm:$0xff]  ;;  %v14953_v40 = vld [vmem:[#allocation50_spill] sm:$0xff] }
 0x3c7   : > { %v14946_v45 = vpack.i.bf16 %v14944_v36, %v14945_v11  ;;  %v14950_v36 = vld [vmem:[#allocation56_spill] sm:$0xff] }
 0x3c9   : > { %6987 = vrot.lane.b32.xlu0 %v14935_v25, %s7650_s18  ;;  %v12314_v17 = vpop.permute.xlu0 %6712  ;;  %v12330_v25 = vld [vmem:[#allocation3 + $0x88] sm:$0xff] }
 0x3ca   : > { %6982 = vrot.lane.b32.xlu1 %v14938_v41, %s7650_s18  ;;  %14939 = vst [vmem:[#allocation112_spill] sm:$0xff] %v12314_v17  ;;  %v12316_v12 = vpop.permute.xlu1 %6717  ;;  %v7001_v50 = vpack.i.bf16 %v12330_v25, %v12075_v10  ;;  %v12360_v17 = vld [vmem:[#allocation3 + $0xa8] sm:$0xff] }
 0x3cb   : > { %14940 = vst [vmem:[#allocation116_spill] sm:$0xff] %v12316_v12 }
 0x3cd   : > { %6997 = vrot.lane.b32.xlu0 %v14943_v53, %s7652_s29  ;;  %v14954_v53 = vld [vmem:[#allocation125_spill] sm:$0xff] }
 0x3ce   : > { %6992 = vrot.lane.b32.xlu1 %v14946_v45, %s7652_s29  ;;  %v12334_v16 = vpop.permute.xlu0 %6727  ;;  %v12337_v41 = vpop.permute.xlu1 %6722  ;;  %v14949_v45 = vld [vmem:[#allocation129_spill] sm:$0xff] }
 0x3cf   : > { %14947 = vst [vmem:[#allocation117_spill] sm:$0xff] %v12334_v16  ;;  %14948 = vst [vmem:[#allocation77_spill] sm:$0xff] %v12337_v41  ;;  %v14955_v16 = vpack.i.bf16 %v14953_v40, %v14954_v53  ;;  %v14957_v41 = vld [vmem:[#allocation52_spill] sm:$0xff]  ;;  %v14964_v40 = vld [vmem:[#allocation130_spill] sm:$0xff] }
 0x3d1   : > { %7007 = vrot.lane.b32.xlu0 %v7006_v1, %s7645_s23  ;;  %v14956_v1 = vld [vmem:[#allocation122_spill] sm:$0xff] }
 0x3d2   : > { %7002 = vrot.lane.b32.xlu1 %v7001_v50, %s7645_s23  ;;  %v12346_v9 = vpop.permute.xlu0 %6732  ;;  %v14958_v12 = vpack.i.bf16 %v14956_v1, %v14957_v41  ;;  %v14966_v1 = vld [vmem:[#allocation132_spill] sm:$0xff] }
 0x3d3   : > { %14952 = vst [vmem:[#allocation123_spill] sm:$0xff] %v12346_v9  ;;  %v14961_v9 = vld [vmem:[#allocation133_spill] sm:$0xff] }
 0x3d5   : > { %7017 = vrot.lane.b32.xlu0 %v14949_v45, %s7653_s9 }
 0x3d6   : > { %7012 = vrot.lane.b32.xlu1 %v14950_v36, %s7653_s9  ;;  %v12362_v36 = vld [vmem:[#allocation3 + $0xb0] sm:$0xff] }
 0x3d7   : > { %v12344_v11 = vpop.permute.xlu1 %6737 }
 0x3d8   : > { %14951 = vst [vmem:[#allocation120_spill] sm:$0xff] %v12344_v11  ;;  %v7031_v11 = vpack.i.bf16 %v12362_v36, %v12360_v17 }
 0x3d9   : > { %7027 = vrot.lane.b32.xlu0 %v14955_v16, %s7652_s29 }
 0x3da   : > { %7022 = vrot.lane.b32.xlu1 %v14958_v12, %s7650_s18  ;;  %v12358_v45 = vpop.permute.xlu0 %6747  ;;  %v14963_v12 = vld [vmem:[#allocation136_spill] sm:$0xff] }
 0x3db   : > { %v12356_v50 = vpop.permute.xlu1 %6742  ;;  %14960 = vst [vmem:[#allocation129_spill] sm:$0xff] %v12358_v45  ;;  %v14965_v53 = vpack.i.bf16 %v14963_v12, %v14964_v40  ;;  %v14967_v45 = vld [vmem:[#allocation126_spill] sm:$0xff] }
 0x3dc   : > { %14959 = vst [vmem:[#allocation121_spill] sm:$0xff] %v12356_v50  ;;  %v14968_v50 = vpack.i.bf16 %v14966_v1, %v14967_v45  ;;  %v12397_v45 = vld [vmem:[#allocation3 + $0xd0] sm:$0xff] }
 0x3dd   : > { %7037 = vrot.lane.b32.xlu0 %v14961_v9, %s7653_s9  ;;  %v14971_v9 = vld [vmem:[#allocation135_spill] sm:$0xff]  ;;  %14978 = vst [vmem:[#allocation52_spill] sm:$0xff] %v12397_v45 }
 0x3de   : > { %7032 = vrot.lane.b32.xlu1 %v7031_v11, %s7645_s23  ;;  %v12371_v41 = vpop.permute.xlu0 %6752  ;;  %v14970_v11 = vld [vmem:[#allocation19_spill] sm:$0xff] }
 0x3df   : > { %v12369_v16 = vpop.permute.xlu1 %6762  ;;  %14962 = vst [vmem:[#allocation56_spill] sm:$0xff] %v12371_v41  ;;  %v14972_v24 = vpack.i.bf16 %v14970_v11, %v14971_v9  ;;  %v14973_v41 = vld [vmem:[#allocation134_spill] sm:$0xff] }
 0x3e0   : > { %v14975_v35 = vpack.i.bf16 %v14973_v41, %v14974_v18  ;;  %v14983_v41 = vld [vmem:[#allocation25_spill] sm:$0xff] }
 0x3e1   : > { %7047 = vrot.lane.b32.xlu0 %v14965_v53, %s7650_s18  ;;  %v12401_v53 = vld [vmem:[#allocation3 + $0xc8] sm:$0xff] }
 0x3e2   : > { %7042 = vrot.lane.b32.xlu1 %v14968_v50, %s7650_s18  ;;  %v12383_v32 = vpop.permute.xlu0 %6757  ;;  %v7066_v50 = vpack.i.bf16 %v12149_v56, %v12397_v45  ;;  %14979 = vst [vmem:[#allocation133_spill] sm:$0xff] %v12401_v53  ;;  %v7061_v1 = vpack.i.bf16 %v12401_v53, %v12118_v60  ;;  %v14986_v60 = vld [vmem:[#allocation20_spill] sm:$0xff]  ;;  %v15009_v53 = vld [vmem:[#allocation34_spill] sm:$0xff] }
 0x3e3   : > { %v12381_v38 = vpop.permute.xlu1 %6767 }
 0x3e4   : > { %14969 = vst [vmem:[#allocation50_spill] sm:$0xff] %v12381_v38  ;;  %v12431_v38 = vld [vmem:[#allocation3 + $0xe8] sm:$0xff] }
 0x3e5   : > { %7057 = vrot.lane.b32.xlu0 %v14972_v24, %s7652_s29  ;;  %v14982_v24 = vld [vmem:[#allocation24_spill] sm:$0xff]  ;;  %14993 = vst [vmem:[#allocation135_spill] sm:$0xff] %v12431_v38 }
 0x3e6   : > { %7052 = vrot.lane.b32.xlu1 %v14975_v35, %s7652_s29 }
 0x3e7   : > { %v12393_v12 = vpop.permute.xlu1 %6772  ;;  %v12395_v40 = vpop.permute.xlu0 %6777 }
 0x3e8   : > { %14976 = vst [vmem:[#allocation125_spill] sm:$0xff] %v12393_v12  ;;  %14977 = vst [vmem:[#allocation122_spill] sm:$0xff] %v12395_v40  ;;  %v14987_v40 = vld [vmem:[#allocation10_spill] sm:$0xff] }
 0x3e9   : > { %7067 = vrot.lane.b32.xlu0 %v7066_v50, %s7645_s23  ;;  %v14988_v50 = vpack.i.bf16 %v14986_v60, %v14987_v40  ;;  %v14998_v60 = vld [vmem:[#allocation45_spill] sm:$0xff] }
 0x3ea   : > { %7062 = vrot.lane.b32.xlu1 %v7061_v1, %s7645_s23  ;;  %v14989_v1 = vld [vmem:[#allocation18_spill] sm:$0xff] }
 0x3eb   : > { %v12407_v18 = vpop.permute.xlu0 %6782  ;;  %v12409_v35 = vpop.permute.xlu1 %6787 }
 0x3ec   : > { %14980 = vst [vmem:[#allocation136_spill] sm:$0xff] %v12407_v18  ;;  %14981 = vst [vmem:[#allocation130_spill] sm:$0xff] %v12409_v35  ;;  %v14990_v18 = vld [vmem:[#allocation15_spill] sm:$0xff] }
 0x3ed   : > { %7077 = vrot.lane.b32.xlu0 %v14982_v24, %s7653_s9  ;;  %v14991_v12 = vpack.i.bf16 %v14989_v1, %v14990_v18  ;;  %v15000_v1 = vld [vmem:[#allocation39_spill] sm:$0xff] }
 0x3ee   : > { %7072 = vrot.lane.b32.xlu1 %v14983_v41, %s7653_s9  ;;  %v12433_v41 = vld [vmem:[#allocation3 + $0xf0] sm:$0xff] }
 0x3ef   : > { %v12415_v11 = vpop.permute.xlu0 %6797  ;;  %v12417_v9 = vpop.permute.xlu1 %6792  ;;  %14994 = vst [vmem:[#allocation134_spill] sm:$0xff] %v12433_v41 }
 0x3f0   : > { %14984 = vst [vmem:[#allocation132_spill] sm:$0xff] %v12415_v11  ;;  %14985 = vst [vmem:[#allocation126_spill] sm:$0xff] %v12417_v9  ;;  %v7091_v9 = vpack.i.bf16 %v12433_v41, %v12431_v38  ;;  %v14995_v11 = vld [vmem:[#allocation46_spill] sm:$0xff] }
 0x3f1   : > { %7087 = vrot.lane.b32.xlu0 %v14988_v50, %s7652_s29 }
 0x3f2   : > { %7082 = vrot.lane.b32.xlu1 %v14991_v12, %s7650_s18  ;;  %v14997_v12 = vld [vmem:[#allocation51_spill] sm:$0xff] }
 0x3f3   : > { %v12427_v35 = vpop.permute.xlu0 %6802  ;;  %v12429_v24 = vpop.permute.xlu1 %6812  ;;  %v14999_v50 = vpack.i.bf16 %v14997_v12, %v14998_v60 }
 0x3f4   : > { %14992 = vst [vmem:[#allocation19_spill] sm:$0xff] %v12427_v35  ;;  %v15001_v35 = vld [vmem:[#allocation21_spill] sm:$0xff] }
 0x3f5   : > { %7097 = vrot.lane.b32.xlu0 %v14995_v11, %s7653_s9  ;;  %v15002_v45 = vpack.i.bf16 %v15000_v1, %v15001_v35  ;;  %v15005_v11 = vld [vmem:[#allocation49_spill] sm:$0xff]  ;;  %v7510_v35 = vld [vmem:[#allocation3 + $0x108] sm:$0xff] }
 0x3f6   : > { %7092 = vrot.lane.b32.xlu1 %v7091_v9, %s7645_s23  ;;  %v15006_v9 = vld [vmem:[#allocation40_spill] sm:$0xff] }
 0x3f7   : > { %v12440_v40 = vpop.permute.xlu0 %6807  ;;  %v15007_v56 = vpack.i.bf16 %v15005_v11, %v15006_v9  ;;  %v15020_v9 = vld [vmem:[#allocation44_spill] sm:$0xff] }
 0x3f8   : > { %v12442_v18 = vpop.permute.xlu1 %6817 }
 0x3f9   : > { %14996 = vst [vmem:[#allocation131_spill] sm:$0xff] %v12442_v18  ;;  %7107 = vrot.lane.b32.xlu0 %v14999_v50, %s7650_s18  ;;  %v15008_v18 = vld [vmem:[#allocation43_spill] sm:$0xff]  ;;  %v7121_v50 = vpack.i.bf16 %v7510_v35, %v12143_v31  ;;  %v15017_v31 = vld [vmem:[#allocation74_spill] sm:$0xff] }
 0x3fa   : > { %7102 = vrot.lane.b32.xlu1 %v15002_v45, %s7650_s18  ;;  %v15010_v37 = vpack.i.bf16 %v15008_v18, %v15009_v53  ;;  %v7126_v45 = vpack.i.bf16 %v12165_v15, %v11541_v22  ;;  %v15014_v53 = vld [vmem:[#allocation67_spill] sm:$0xff]  ;;  %v15018_v15 = vld [vmem:[#allocation57_spill] sm:$0xff] }
 0x3fb   : > { %v12452_v38 = vpop.permute.xlu0 %6827  ;;  %v15019_v11 = vpack.i.bf16 %v15017_v31, %v15018_v15  ;;  %v15028_v15 = vld [vmem:[#allocation84_spill] sm:$0xff] }
 0x3fc   : > { %15003 = vst [vmem:[#allocation24_spill] sm:$0xff] %v12452_v38  ;;  %v12454_v41 = vpop.permute.xlu1 %6822  ;;  %v15039_v38 = vld [vmem:[#allocation92_spill] sm:$0xff] }
 0x3fd   : > { %15004 = vst [vmem:[#allocation25_spill] sm:$0xff] %v12454_v41  ;;  %7117 = vrot.lane.b32.xlu0 %v15007_v56, %s7652_s29 }
 0x3fe   : > { %7112 = vrot.lane.b32.xlu1 %v15010_v37, %s7652_s29  ;;  %v15013_v37 = vld [vmem:[#allocation71_spill] sm:$0xff] }
 0x3ff   : > { %v12464_v12 = vpop.permute.xlu0 %6832 }
 0x400   : > { %15011 = vst [vmem:[#allocation20_spill] sm:$0xff] %v12464_v12  ;;  %v12466_v60 = vpop.permute.xlu1 %6842 }
 0x401   : > { %7127 = vrot.lane.b32.xlu0 %v7126_v45, %s7645_s23  ;;  %v15021_v45 = vld [vmem:[#allocation61_spill] sm:$0xff] }
 0x402   : > { %7122 = vrot.lane.b32.xlu1 %v7121_v50, %s7645_s23  ;;  %v15022_v35 = vpack.i.bf16 %v15020_v9, %v15021_v45  ;;  %v15031_v45 = vld [vmem:[#allocation79_spill] sm:$0xff] }
 0x403   : > { %v12473_v56 = vpop.permute.xlu0 %6837 }
 0x404   : > { %v12475_v1 = vpop.permute.xlu1 %6852 }
 0x405   : > { %15012 = vst [vmem:[#allocation10_spill] sm:$0xff] %v12475_v1  ;;  %7137 = vrot.lane.b32.xlu0 %v15013_v37, %s7653_s9  ;;  %v15025_v1 = vld [vmem:[#allocation83_spill] sm:$0xff] }
 0x406   : > { %7132 = vrot.lane.b32.xlu1 %v15014_v53, %s7653_s9  ;;  %v7151_v53 = vpack.i.bf16 %v11601_v3, %v11581_v33 }
 0x407   : > { %v12481_v18 = vpop.permute.xlu0 %6847 }
 0x408   : > { %15015 = vst [vmem:[#allocation18_spill] sm:$0xff] %v12481_v18  ;;  %v12483_v22 = vpop.permute.xlu1 %6857 }
 0x409   : > { %15016 = vst [vmem:[#allocation15_spill] sm:$0xff] %v12483_v22  ;;  %7147 = vrot.lane.b32.xlu0 %v15019_v11, %s7652_s29  ;;  %v15029_v11 = vld [vmem:[#allocation78_spill] sm:$0xff] }
 0x40a   : > { %7142 = vrot.lane.b32.xlu1 %v15022_v35, %s7650_s18  ;;  %v15030_v9 = vpack.i.bf16 %v15028_v15, %v15029_v11  ;;  %v15032_v35 = vld [vmem:[#allocation68_spill] sm:$0xff]  ;;  %v6590_v15 = vunpack.i.h.bf16 %v12102_v23  ;;  %v6589_v11 = vunpack.i.l.bf16 %v12102_v23 }
 0x40b   : > { %v12493_v50 = vpop.permute.xlu0 %6867  ;;  %v15033_v41 = vpack.i.bf16 %v15031_v45, %v15032_v35  ;;  %v7186_v45 = vpack.i.bf16 %v12201_v61, %v11672_v42  ;;  %v3111_v35 = vld [vmem:[#allocation3] sm:$0xff]  ;;  %v6599_v61 = vunpack.i.l.bf16 %v12141_v28 }
 0x40c   : > { %15023 = vst [vmem:[#allocation46_spill] sm:$0xff] %v12493_v50  ;;  %v12495_v37 = vpop.permute.xlu1 %6862  ;;  %v15056_v50 = vld [vmem:[#allocation99_spill] sm:$0xff] }
 0x40d   : > { %15024 = vst [vmem:[#allocation51_spill] sm:$0xff] %v12495_v37  ;;  %7157 = vrot.lane.b32.xlu0 %v15025_v1, %s7653_s9  ;;  %v15036_v1 = vld [vmem:[#allocation86_spill] sm:$0xff]  ;;  %v7512_v37 = vld [vmem:[#allocation3 + $0x10] sm:$0xff] }
 0x40e   : > { %7152 = vrot.lane.b32.xlu1 %v7151_v53, %s7645_s23  ;;  %v15037_v53 = vld [vmem:[#allocation42_spill] sm:$0xff] }
 0x40f   : > { %v12502_v22 = vpop.permute.xlu0 %6877  ;;  %v15038_v12 = vpack.i.bf16 %v15036_v1, %v15037_v53  ;;  %v12537_v1 = vld [vmem:[#allocation3 + $0x1c0] sm:$0xff]  ;;  %v6594_v53 = vunpack.i.l.bf16 %v12124_v6 }
 0x410   : > { %15026 = vst [vmem:[#allocation45_spill] sm:$0xff] %v12502_v22  ;;  %v12504_v31 = vpop.permute.xlu1 %6872 }
 0x411   : > { %15027 = vst [vmem:[#allocation39_spill] sm:$0xff] %v12504_v31  ;;  %7167 = vrot.lane.b32.xlu0 %v15030_v9, %s7650_s18  ;;  %v15040_v31 = vld [vmem:[#allocation70_spill] sm:$0xff] }
 0x412   : > { %7162 = vrot.lane.b32.xlu1 %v15033_v41, %s7650_s18  ;;  %v15041_v22 = vpack.i.bf16 %v15039_v38, %v15040_v31  ;;  %v7511_v38 = vld [vmem:[#allocation3 + $0x8] sm:$0xff]  ;;  %v12546_v31 = vld [vmem:[#allocation3 + $0x1e0] sm:$0xff] }
 0x413   : > { %v12514_v33 = vpop.permute.xlu0 %6887  ;;  %v12541_v23 = vsel %vm2094_vm5, %v7511_v38, %v6590_v15  ;;  %v15050_v38 = vld [vmem:[#allocation104_spill] sm:$0xff] }
 0x414   : > { %15034 = vst [vmem:[#allocation21_spill] sm:$0xff] %v12514_v33  ;;  %v12516_v3 = vpop.permute.xlu1 %6882 }
 0x415   : > { %15035 = vst [vmem:[#allocation49_spill] sm:$0xff] %v12516_v3  ;;  %7177 = vrot.lane.b32.xlu0 %v15038_v12, %s7652_s29  ;;  %v7181_v12 = vpack.i.bf16 %v11650_v59, %v12175_v46  ;;  %v7211_v59 = vpack.i.bf16 %v11732_v8, %v11712_v54  ;;  %v6595_v46 = vunpack.i.h.bf16 %v12124_v6  ;;  %v15048_v54 = vld [vmem:[#allocation90_spill] sm:$0xff]  ;;  %v4408_v6 = vsel %vm2094_vm5, %v7512_v37, %v6594_v53 }
 0x416   : > { %7172 = vrot.lane.b32.xlu1 %v15041_v22, %s7652_s29  ;;  %v12544_v22 = vsel %vm2094_vm5, %v3111_v35, %v6589_v11  ;;  %v12563_v35 = vrot.slane %v12085_v57, 1  ;;  %v15049_v8 = vld [vmem:[#allocation94_spill] sm:$0xff]  ;;  %v6600_v11 = vunpack.i.h.bf16 %v12141_v28  ;;  %v6610_v3 = vunpack.i.h.bf16 %v12159_v43  ;;  %v15062_v28 = vld [vmem:[#allocation41_spill] sm:$0xff] }
 0x417   : > { %v12528_v9 = vpop.permute.xlu0 %6897  ;;  %v12669_v57 = vsel %vm2094_vm5, %v12295_v49, %v6619_v20  ;;  %v6760_v20 = vunpack.i.h.bf16 %v12383_v32 }
 0x418   : > { %15042 = vst [vmem:[#allocation40_spill] sm:$0xff] %v12528_v9  ;;  %v12530_v41 = vpop.permute.xlu1 %6892  ;;  %15047 = vst [vmem:[#allocation74_spill] sm:$0xff] %v12563_v35  ;;  %v15053_v9 = vld [vmem:[#allocation32_spill] sm:$0xff] }
 0x419   : > { %15043 = vst [vmem:[#allocation43_spill] sm:$0xff] %v12530_v41  ;;  %7187 = vrot.lane.b32.xlu0 %v7186_v45, %s7645_s23  ;;  %v12560_v45 = vld [vmem:[#allocation3 + $0x200] sm:$0xff] }
 0x41a   : > { %7182 = vrot.lane.b32.xlu1 %v7181_v12, %s7645_s23  ;;  %15046 = vst [vmem:[#allocation67_spill] sm:$0xff] %v12560_v45  ;;  %v12585_v41 = vld [vmem:[#allocation3 + $0x220] sm:$0xff]  ;;  %v4409_v12 = vsel %vm2094_vm5, %v15056_v50, %v6595_v46  ;;  %v15059_v45 = vld [vmem:[#allocation93_spill] sm:$0xff]  ;;  %v7513_v46 = vld [vmem:[#allocation3 + $0x30] sm:$0xff] }
 0x41b   : > { %v12548_v42 = vpop.permute.xlu0 %6907  ;;  %15054 = vst [vmem:[#allocation44_spill] sm:$0xff] %v12585_v41  ;;  %v4411_v53 = vsel %vm2094_vm5, %v7513_v46, %v6600_v11  ;;  %v6620_v41 = vunpack.i.h.bf16 %v12163_v52  ;;  %v6615_v11 = vunpack.i.h.bf16 %v12179_v26 }
 0x41c   : > { %15044 = vst [vmem:[#allocation34_spill] sm:$0xff] %v12548_v42  ;;  %v12556_v15 = vpop.permute.xlu1 %6902  ;;  %v15052_v42 = vld [vmem:[#allocation91_spill] sm:$0xff] }
 0x41d   : > { %15045 = vst [vmem:[#allocation71_spill] sm:$0xff] %v12556_v15  ;;  %7197 = vrot.lane.b32.xlu0 %v15048_v54, %s7653_s9  ;;  %v12574_v15 = vrot.slane %v12089_v5, 1  ;;  %v15058_v54 = vld [vmem:[#allocation48_spill] sm:$0xff] }
 0x41e   : > { %7192 = vrot.lane.b32.xlu1 %v15052_v42, %s7653_s9  ;;  %v6604_v42 = vunpack.i.l.bf16 %v12147_v48  ;;  %v15060_v30 = vpack.i.bf16 %v15058_v54, %v15059_v45  ;;  %v7514_v54 = vld [vmem:[#allocation3 + $0x28] sm:$0xff] }
 0x41f   : > { %15051 = vst [vmem:[#allocation57_spill] sm:$0xff] %v12574_v15  ;;  %v12588_v33 = vpop.permute.xlu0 %6917  ;;  %v12616_v37 = vsel %vm513_vm3, %v12563_v35, %v12574_v15  ;;  %v4410_v50 = vsel %vm2094_vm5, %v7514_v54, %v6599_v61  ;;  %v15065_v54 = vld [vmem:[#allocation81_spill] sm:$0xff]  ;;  %v15080_v35 = vld [vmem:[#allocation60_spill] sm:$0xff] }
 0x420   : > { %15055 = vst [vmem:[#allocation61_spill] sm:$0xff] %v12588_v33  ;;  %v12599_v18 = vpop.permute.xlu1 %6912  ;;  %v6605_v33 = vunpack.i.h.bf16 %v12147_v48  ;;  %15061 = vst [vmem:[#allocation84_spill] sm:$0xff] %v12616_v37  ;;  %v6609_v48 = vunpack.i.l.bf16 %v12159_v43  ;;  %v6614_v43 = vunpack.i.l.bf16 %v12179_v26  ;;  %v12644_v52 = vsel %vm2094_vm5, %v11750_v21, %v6604_v42  ;;  %v15069_v42 = vld [vmem:[#allocation147_spill] sm:$0xff] }
 0x421   : > { %15057 = vst [vmem:[#allocation83_spill] sm:$0xff] %v12599_v18  ;;  %7207 = vrot.lane.b32.xlu0 %v15060_v30, %s7652_s29  ;;  %v15063_v18 = vld [vmem:[#allocation75_spill] sm:$0xff]  ;;  %v6635_v5 = vunpack.i.h.bf16 %v15069_v42  ;;  %v15070_v30 = vld [vmem:[#allocation146_spill] sm:$0xff] }
 0x422   : > { %v15064_v45 = vpack.i.bf16 %v15062_v28, %v15063_v18  ;;  %v6624_v18 = vunpack.i.l.bf16 %v12181_v27  ;;  %v12640_v61 = vsel %vm2094_vm5, %v11967_v62, %v6605_v33  ;;  %v12658_v62 = vsel %vm2094_vm5, %v11969_v44, %v6609_v48  ;;  %v15068_v33 = vld [vmem:[#allocation145_spill] sm:$0xff]  ;;  %v15072_v27 = vld [vmem:[#allocation59_spill] sm:$0xff] }
 0x423   : > { %v12631_v46 = vpop.permute.xlu0 %6927  ;;  %v6630_v21 = vunpack.i.h.bf16 %v15068_v33  ;;  %v6634_v44 = vunpack.i.l.bf16 %v15069_v42  ;;  %v4455_v48 = vsel %vm4454_vm1, %v12544_v22, %v6614_v43  ;;  %v15071_v42 = vld [vmem:[#allocation105_spill] sm:$0xff]  ;;  %v4460_v22 = vsel %vm4454_vm1, %v4411_v53, %v6635_v5  ;;  %v15075_v43 = vld [vmem:[#allocation87_spill] sm:$0xff] }
 0x424   : > { %7202 = vrot.lane.b32.xlu1 %v15064_v45, %s7650_s18  ;;  %v6923_v28 = vpop.permute.xlu1 %6922  ;;  %v12654_v45 = vsel %vm2094_vm5, %v11945_v63, %v6610_v3  ;;  %v4456_v63 = vsel %vm4454_vm1, %v12541_v23, %v6615_v11  ;;  %v4457_v26 = vsel %vm4454_vm1, %v4408_v6, %v6624_v18  ;;  %v6765_v23 = vunpack.i.h.bf16 %v12369_v16  ;;  %v15074_v6 = vld [vmem:[#allocation96_spill] sm:$0xff] }
 0x425   : > { %7217 = vrot.lane.b32.xlu0 %v15065_v54, %s7653_s9  ;;  %v12665_v54 = vsel %vm2094_vm5, %v12091_v55, %v6620_v41  ;;  %v6764_v11 = vunpack.i.l.bf16 %v12369_v16  ;;  %v15073_v37 = vpack.i.bf16 %v15071_v42, %v15072_v27  ;;  %v15076_v18 = vpack.i.bf16 %v15074_v6, %v15075_v43 }
 0x426   : > { %v4459_v16 = vsel %vm4454_vm1, %v4410_v50, %v6634_v44  ;;  %v6924_v27 = vunpack.i.l.bf16 %v6923_v28  ;;  %v15078_v44 = vld [vmem:[#allocation62_spill] sm:$0xff] }
 0x427   : > { %v12674_v3 = vpop.permute.xlu0 %6937  ;;  %v4505_v49 = vsel %vm1898_vm6, %v4457_v26, %v6764_v11  ;;  %v15082_v26 = vpack.i.bf16 %v15080_v35, %v15081_v14 }
 0x428   : > { %7212 = vrot.lane.b32.xlu1 %v7211_v59, %s7645_s23  ;;  %v4458_v59 = vsel %vm4454_vm1, %v4409_v12, %v6625_v19  ;;  %v6933_v41 = vpop.permute.xlu1 %6932  ;;  %v12691_v19 = vsel %vm2094_vm5, %v12330_v25, %v6630_v21  ;;  %v6759_v12 = vunpack.i.l.bf16 %v12383_v32  ;;  %v6925_v25 = vunpack.i.h.bf16 %v6923_v28  ;;  %v15077_v32 = vld [vmem:[#allocation98_spill] sm:$0xff] }
 0x429   : > { %7227 = vrot.lane.b32.xlu0 %v15073_v37, %s7650_s18  ;;  %v6929_v37 = vunpack.i.l.bf16 %v12631_v46  ;;  %v6939_v5 = vunpack.i.l.bf16 %v12674_v3  ;;  %v6934_v53 = vunpack.i.l.bf16 %v6933_v41  ;;  %v4506_v6 = vsel %vm1898_vm6, %v4458_v59, %v6765_v23 }
 0x42a   : > { %v6935_v43 = vunpack.i.h.bf16 %v6933_v41  ;;  %v4503_v55 = vsel %vm1898_vm6, %v4455_v48, %v6759_v12  ;;  %v6810_v28 = vunpack.i.h.bf16 %v12440_v40  ;;  %v4504_v59 = vsel %vm1898_vm6, %v4456_v63, %v6760_v20 }
 0x42b   : > { %v12702_v42 = vpop.permute.xlu0 %6947  ;;  %v6809_v41 = vunpack.i.l.bf16 %v12440_v40  ;;  %v4553_v23 = vsel %vm2192_vm13, %v4505_v49, %v6929_v37  ;;  %v4551_v11 = vsel %vm2192_vm13, %v4503_v55, %v6924_v27  ;;  %v4552_v48 = vsel %vm2192_vm13, %v4504_v59, %v6925_v25 }
 0x42c   : > { %7222 = vrot.lane.b32.xlu1 %v15076_v18, %s7650_s18  ;;  %v6943_v21 = vpop.permute.xlu1 %6942  ;;  %v6949_v50 = vunpack.i.l.bf16 %v12702_v42  ;;  %v15079_v18 = vpack.i.bf16 %v15077_v32, %v15078_v44  ;;  %v4602_v12 = vsel %vm4599_vm2, %v4553_v23, %v6939_v5  ;;  %v4601_v14 = vsel %vm4599_vm2, %v4552_v48, %v6935_v43  ;;  %v15086_v48 = vld [vmem:[#allocation111_spill] sm:$0xff] }
 0x42d   : > { %v6945_v15 = vunpack.i.h.bf16 %v6943_v21  ;;  %v6944_v58 = vunpack.i.l.bf16 %v6943_v21  ;;  %v4600_v21 = vsel %vm4599_vm2, %v4551_v11, %v6934_v53  ;;  %v15083_v40 = vpack.i.bf16 %v12213_v2, %v11808_v0 }
 0x42e   : > { %7237 = vrot.lane.b32.xlu0 %v15079_v18, %s7652_s29  ;;  %v4650_v35 = vsel %vm1996_vm8, %v4602_v12, %v6949_v50  ;;  %v4508_v55 = vsel %vm1898_vm6, %v4460_v22, %v6810_v28  ;;  %v15084_v25 = vpack.i.bf16 %v11789_v47, %v12191_v51  ;;  %v6930_v5 = vunpack.i.h.bf16 %v12631_v46  ;;  %v15085_v46 = vld [vmem:[#allocation64_spill] sm:$0xff] }
 0x42f   : > { %v6958_v32 = vpop.permute.xlu0 %6957  ;;  %v4648_v49 = vsel %vm1996_vm8, %v4600_v21, %v6944_v58  ;;  %v4649_v37 = vsel %vm1996_vm8, %v4601_v14, %v6945_v15  ;;  %v4507_v22 = vsel %vm1898_vm6, %v4459_v16, %v6809_v41  ;;  %v6940_v58 = vunpack.i.h.bf16 %v12674_v3 }
 0x430   : > { %7232 = vrot.lane.b32.xlu1 %v15082_v26, %s7652_s29  ;;  %v6959_v44 = vunpack.i.l.bf16 %v6958_v32  ;;  %v6953_v18 = vpop.permute.xlu1 %6952  ;;  %v6950_v26 = vunpack.i.h.bf16 %v12702_v42  ;;  %v6960_v59 = vunpack.i.h.bf16 %v6958_v32  ;;  %v4554_v41 = vsel %vm2192_vm13, %v4506_v6, %v6930_v5 }
 0x431   : > { %v6955_v63 = vunpack.i.h.bf16 %v6953_v18  ;;  %v6954_v20 = vunpack.i.l.bf16 %v6953_v18  ;;  %v4603_v14 = vsel %vm4599_vm2, %v4554_v41, %v6940_v58  ;;  %v15096_v58 = vld [vmem:[#allocation124_spill] sm:$0xff] }
 0x432   : > { %7247 = vrot.lane.b32.xlu0 %v15083_v40, %s7645_s23  ;;  %v4699_v27 = vsel %vm4696_vm7, %v4650_v35, %v6959_v44  ;;  %v15087_v44 = vunpack.i.l.bf16 %v15068_v33  ;;  %v15088_v40 = vunpack.i.l.bf16 %v15070_v30  ;;  %v15089_v33 = vld [vmem:[#allocation110_spill] sm:$0xff] }
 0x433   : > { %v4799_v53 = vrot.slane %v4699_v27, 7  ;;  %v4697_v43 = vsel %vm4696_vm7, %v4648_v49, %v6954_v20  ;;  %v4698_v0 = vsel %vm4696_vm7, %v4649_v37, %v6955_v63  ;;  %v6968_v2 = vpop.permute.xlu0 %6967 }
 0x434   : > { %7242 = vrot.lane.b32.xlu1 %v15084_v25, %s7645_s23  ;;  %v4793_v15 = vrot.slane %v4697_v43, 7  ;;  %v4794_v50 = vrot.slane %v4698_v0, 7  ;;  %v6963_v28 = vpop.permute.xlu1 %6962  ;;  %v6970_v23 = vunpack.i.h.bf16 %v6968_v2  ;;  %v6969_v11 = vunpack.i.l.bf16 %v6968_v2  ;;  %v15092_v25 = vld [vmem:[#allocation148_spill] sm:$0xff]  ;;  %v15094_v2 = vld [vmem:[#allocation63_spill] sm:$0xff] }
 0x435   : > { %v6965_v47 = vunpack.i.h.bf16 %v6963_v28  ;;  %v6964_v51 = vunpack.i.l.bf16 %v6963_v28  ;;  %v12758_v18 = vsel %vm2094_vm5, %v12075_v10, %v15087_v44  ;;  %v12765_v6 = vsel %vm4454_vm1, %v12644_v52, %v15088_v40  ;;  %v15090_v10 = vld [vmem:[#allocation89_spill] sm:$0xff]  ;;  %v15093_v52 = vld [vmem:[#allocation66_spill] sm:$0xff] }
 0x436   : > { %7257 = vrot.lane.b32.xlu0 %v15085_v46, %s7653_s9  ;;  %v4795_v16 = vsel %vm2337_vm11, %v4793_v15, %v4794_v50  ;;  %v4800_v3 = vsel %vm2337_vm11, %v4794_v50, %v4799_v53  ;;  %v15091_v27 = vpack.i.bf16 %v15089_v33, %v15090_v10  ;;  %v6645_v5 = vunpack.i.h.bf16 %v15092_v25  ;;  %v15097_v15 = vld [vmem:[#allocation85_spill] sm:$0xff] }
 0x437   : > { %v4556_v12 = vsel %vm2192_vm13, %v4508_v55, %v6965_v47  ;;  %v4555_v42 = vsel %vm2192_vm13, %v4507_v22, %v6964_v51  ;;  %v6978_v32 = vpop.permute.xlu0 %6977  ;;  %v5017_v21 = vpack.c.bf16 %v4800_v3, %v4795_v16  ;;  %v4651_v55 = vsel %vm1996_vm8, %v4603_v14, %v6950_v26 }
 0x438   : > { %7252 = vrot.lane.b32.xlu1 %v15086_v48, %s7653_s9  ;;  %v6980_v35 = vunpack.i.h.bf16 %v6978_v32  ;;  %v6979_v63 = vunpack.i.l.bf16 %v6978_v32  ;;  %v6973_v20 = vpop.permute.xlu1 %6972  ;;  %v4700_v53 = vsel %vm4696_vm7, %v4651_v55, %v6960_v59  ;;  %v4604_v43 = vsel %vm4599_vm2, %v4555_v42, %v6969_v11 }
 0x439   : > { %v6975_v49 = vunpack.i.h.bf16 %v6973_v20  ;;  %v6974_v37 = vunpack.i.l.bf16 %v6973_v20  ;;  %5209 = vmatmul.mubr.bf16.vlgmr.msra.gmra.mrb[0].mxu1 %v5017_v21  ;;  %v4605_v0 = vsel %vm4599_vm2, %v4556_v12, %v6970_v23  ;;  %v15095_v22 = vpack.i.bf16 %v15093_v52, %v15094_v2  ;;  %v15099_v23 = vld [vmem:[#allocation149_spill] sm:$0xff]  ;;  %v15108_v2 = vld [vmem:[#allocation127_spill] sm:$0xff] }
 0x43a   : > { %7267 = vrot.lane.b32.xlu0 %v15091_v27, %s7652_s29  ;;  %v15098_v50 = vpack.c.bf16 %v15096_v58, %v15097_v15  ;;  %v6644_v28 = vunpack.i.l.bf16 %v15092_v25  ;;  %v6650_v26 = vunpack.i.h.bf16 %v12227_v13  ;;  %v6649_v46 = vunpack.i.l.bf16 %v12227_v13  ;;  %v15100_v21 = vld [vmem:[#allocation65_spill] sm:$0xff]  ;;  %v15103_v25 = vld [vmem:[#allocation119_spill] sm:$0xff]  ;;  %v15110_v15 = vld [vmem:[#allocation150_spill] sm:$0xff] }
 0x43b   : > { %v4652_v59 = vsel %vm1996_vm8, %v4604_v43, %v6974_v37  ;;  %v4653_v47 = vsel %vm1996_vm8, %v4605_v0, %v6975_v49  ;;  %v12788_v51 = vpop.permute.xlu0 %6987  ;;  %v6660_v11 = vunpack.i.h.bf16 %v15099_v23  ;;  %v6659_v41 = vunpack.i.l.bf16 %v15099_v23 }
 0x43c   : > { %7262 = vrot.lane.b32.xlu1 %v15095_v22, %s7650_s18  ;;  %5541 = vmatprep.mubr.msk.bf16.mxu1 %vm2094_vm5, %v15098_v50  ;;  %v4701_v48 = vsel %vm4696_vm7, %v4652_v59, %v6979_v63  ;;  %v4702_v16 = vsel %vm4696_vm7, %v4653_v47, %v6980_v35  ;;  %v6983_v3 = vpop.permute.xlu1 %6982  ;;  %v4803_v12 = vrot.slane %v4700_v53, 7  ;;  %v15101_v44 = vunpack.i.h.bf16 %v15070_v30 }
 0x43d   : > { %v4804_v42 = vrot.slane %v4701_v48, 7  ;;  %v4809_v32 = vrot.slane %v4702_v16, 7  ;;  %v6655_v14 = vunpack.i.h.bf16 %v12243_v7  ;;  %v6654_v63 = vunpack.i.l.bf16 %v12243_v7  ;;  %v15111_v48 = vld [vmem:[#allocation102_spill] sm:$0xff] }
 0x43e   : > { %7277 = vrot.lane.b32.xlu0 %v15100_v21, %s7653_s9  ;;  %v4462_v13 = vsel %vm4454_vm1, %v12640_v61, %v15101_v44  ;;  %v6669_v35 = vunpack.i.l.bf16 %v12245_v34  ;;  %v15102_v20 = vpack.i.bf16 %v15049_v8, %v11860_v29  ;;  %v4421_v40 = vsel %vm2094_vm5, %v12104_v39, %v6645_v5  ;;  %v15112_v16 = vld [vmem:[#allocation118_spill] sm:$0xff]  ;;  %v15114_v21 = vld [vmem:[#allocation69_spill] sm:$0xff] }
 0x43f   : > { %v6670_v55 = vunpack.i.h.bf16 %v12245_v34  ;;  %v12811_v30 = vpop.permute.xlu0 %6997  ;;  %v4805_v61 = vsel %vm2337_vm11, %v4803_v12, %v4804_v42  ;;  %v4810_v49 = vsel %vm2337_vm11, %v4804_v42, %v4809_v32  ;;  %v4420_v7 = vsel %vm2094_vm5, %v12326_v4, %v6644_v28  ;;  %v15115_v44 = vld [vmem:[#allocation17_spill] sm:$0xff] }
 0x440   : > { %7272 = vrot.lane.b32.xlu1 %v15102_v20, %s7645_s23  ;;  %v12819_v37 = vsel %vm2094_vm5, %v12362_v36, %v6650_v26  ;;  %v12823_v29 = vsel %vm2094_vm5, %v12360_v17, %v6649_v46  ;;  %v6993_v39 = vpop.permute.xlu1 %6992  ;;  %v5019_v33 = vpack.c.bf16 %v4810_v49, %v4805_v61  ;;  %v4465_v34 = vsel %vm4454_vm1, %v12669_v57, %v6659_v41  ;;  %v15104_v36 = vld [vmem:[#allocation58_spill] sm:$0xff] }
 0x441   : > { %v4466_v10 = vsel %vm4454_vm1, %v12665_v54, %v6660_v11  ;;  %v6815_v27 = vunpack.i.h.bf16 %v12429_v24  ;;  %v6814_v4 = vunpack.i.l.bf16 %v12429_v24  ;;  %v15105_v5 = vpack.i.bf16 %v15103_v25, %v15104_v36 }
 0x442   : > { %v4463_v17 = vsel %vm4454_vm1, %v12658_v62, %v6654_v63  ;;  %v4464_v53 = vsel %vm4454_vm1, %v12654_v45, %v6655_v14  ;;  %v12840_v57 = vsel %vm4454_vm1, %v4420_v7, %v6669_v35  ;;  %v6839_v54 = vunpack.i.l.bf16 %v12473_v56  ;;  %5217 = vmatmul.mubr.bf16.gmra.mrb[4].mxu1 %v5019_v33  ;;  %v15107_v45 = vld [vmem:[#allocation128_spill] sm:$0xff] }
 0x443   : > { %7287 = vrot.lane.b32.xlu0 %v15105_v5, %s7650_s18  ;;  %v15106_v24 = vpack.i.bf16 %v12537_v1, %v15049_v8  ;;  %v12848_v43 = vsel %vm4454_vm1, %v4421_v40, %v6670_v55  ;;  %v6844_v0 = vunpack.i.l.bf16 %v12466_v60  ;;  %v6989_v62 = vunpack.i.l.bf16 %v12788_v51  ;;  %v12856_v58 = vpop.permute.xlu0 %7007  ;;  %v15118_v5 = vld [vmem:[#allocation109_spill] sm:$0xff] }
 0x444   : > { %v6984_v52 = vunpack.i.l.bf16 %v6983_v3  ;;  %v15109_v22 = vpack.c.bf16 %v15107_v45, %v15108_v2  ;;  %v6664_v50 = vunpack.i.l.bf16 %v15110_v15  ;;  %v6985_v8 = vunpack.i.h.bf16 %v6983_v3  ;;  %v7003_v59 = vpop.permute.xlu1 %7002 }
 0x445   : > { %7282 = vrot.lane.b32.xlu1 %v15106_v24, %s7643_s20  ;;  %v6999_v28 = vunpack.i.l.bf16 %v12811_v30  ;;  %v6994_v26 = vunpack.i.l.bf16 %v6993_v39  ;;  %v4509_v47 = vsel %vm1898_vm6, %v12765_v6, %v6814_v4  ;;  %v4510_v46 = vsel %vm1898_vm6, %v4462_v13, %v6815_v27 }
 0x446   : > { %5542 = vmatprep.mubr.msk.bf16.mxu1 %vm2094_vm5, %v15109_v22  ;;  %v6995_v23 = vunpack.i.h.bf16 %v6993_v39  ;;  %v7009_v11 = vunpack.i.l.bf16 %v12856_v58  ;;  %v15113_v41 = vpack.i.bf16 %v15111_v48, %v15112_v16  ;;  %v6845_v12 = vunpack.i.h.bf16 %v12466_v60 }
 0x447   : > { %v4511_v3 = vsel %vm1898_vm6, %v4463_v17, %v6839_v54  ;;  %v7005_v42 = vunpack.i.h.bf16 %v7003_v59  ;;  %v7004_v32 = vunpack.i.l.bf16 %v7003_v59  ;;  %v15116_v6 = vpack.i.bf16 %v15114_v21, %v15115_v44  ;;  %v7018_v20 = vpop.permute.xlu0 %7017  ;;  %v15119_v17 = vld [vmem:[#allocation114_spill] sm:$0xff] }
 0x448   : > { %7297 = vrot.lane.b32.xlu0 %v15113_v41, %s7652_s29  ;;  %v4513_v13 = vsel %vm1898_vm6, %v4465_v34, %v6844_v0  ;;  %v6840_v14 = vunpack.i.h.bf16 %v12473_v56  ;;  %v4559_v63 = vsel %vm2192_vm13, %v4511_v3, %v6989_v62  ;;  %v4557_v35 = vsel %vm2192_vm13, %v4509_v47, %v6984_v52  ;;  %v7013_v49 = vpop.permute.xlu1 %7012 }
 0x449   : > { %7292 = vrot.lane.b32.xlu1 %v15116_v6, %s7650_s18  ;;  %v4558_v60 = vsel %vm2192_vm13, %v4510_v46, %v6985_v8  ;;  %v4608_v40 = vsel %vm4599_vm2, %v4559_v63, %v6999_v28  ;;  %v4606_v55 = vsel %vm4599_vm2, %v4557_v35, %v6994_v26  ;;  %v7019_v61 = vunpack.i.l.bf16 %v7018_v20  ;;  %v15123_v6 = vld [vmem:[#allocation151_spill] sm:$0xff] }
 0x44a   : > { %v4607_v7 = vsel %vm4599_vm2, %v4558_v60, %v6995_v23  ;;  %v4656_v39 = vsel %vm1996_vm8, %v4608_v40, %v7009_v11  ;;  %v7015_v33 = vunpack.i.h.bf16 %v7013_v49  ;;  %v7014_v34 = vunpack.i.l.bf16 %v7013_v49  ;;  %v15125_v49 = vld [vmem:[#allocation33_spill] sm:$0xff] }
 0x44b   : > { %v15117_v56 = vpack.i.bf16 %v15050_v38, %v12537_v1  ;;  %v4514_v27 = vsel %vm1898_vm6, %v4466_v10, %v6845_v12  ;;  %v4654_v4 = vsel %vm1996_vm8, %v4606_v55, %v7004_v32  ;;  %v4655_v25 = vsel %vm1996_vm8, %v4607_v7, %v7005_v42  ;;  %v7028_v52 = vpop.permute.xlu0 %7027  ;;  %v15126_v7 = vld [vmem:[#allocation11_spill] sm:$0xff] }
 0x44c   : > { %v4705_v36 = vsel %vm4696_vm7, %v4656_v39, %v7019_v61  ;;  %v15120_v54 = vpack.i.bf16 %v15118_v5, %v15119_v17  ;;  %v6990_v24 = vunpack.i.h.bf16 %v12788_v51  ;;  %v4703_v62 = vsel %vm4696_vm7, %v4654_v4, %v7014_v34  ;;  %v7023_v8 = vpop.permute.xlu1 %7022  ;;  %v15121_v51 = vld [vmem:[#allocation101_spill] sm:$0xff]  ;;  %v15127_v39 = vld [vmem:[#allocation14_spill] sm:$0xff] }
 0x44d   : > { %7307 = vrot.lane.b32.xlu0 %v15117_v56, %s7645_s23  ;;  %v4819_v0 = vrot.slane %v4705_v36, 7  ;;  %v4704_v1 = vsel %vm4696_vm7, %v4655_v25, %v7015_v33  ;;  %v4512_v10 = vsel %vm1898_vm6, %v4464_v53, %v6840_v14  ;;  %v7000_v45 = vunpack.i.h.bf16 %v12811_v30  ;;  %v15130_v36 = vld [vmem:[#allocation153_spill] sm:$0xff] }
 0x44e   : > { %7302 = vrot.lane.b32.xlu1 %v15120_v54, %s7652_s29  ;;  %v4813_v2 = vrot.slane %v4703_v62, 7  ;;  %v4814_v22 = vrot.slane %v4704_v1, 7  ;;  %v7010_v28 = vunpack.i.h.bf16 %v12856_v58  ;;  %v7020_v26 = vunpack.i.h.bf16 %v7018_v20  ;;  %v15131_v62 = vld [vmem:[#allocation113_spill] sm:$0xff]  ;;  %v15132_v1 = vld [vmem:[#allocation95_spill] sm:$0xff] }
 0x44f   : > { %v7025_v59 = vunpack.i.h.bf16 %v7023_v8  ;;  %v7024_v47 = vunpack.i.l.bf16 %v7023_v8  ;;  %v7030_v46 = vunpack.i.h.bf16 %v7028_v52  ;;  %v7029_v23 = vunpack.i.l.bf16 %v7028_v52  ;;  %v7038_v41 = vpop.permute.xlu0 %7037  ;;  %v15135_v8 = vld [vmem:[#allocation155_spill] sm:$0xff] }
 0x450   : > { %v15122_v11 = vpack.i.bf16 %v12546_v31, %v15053_v9  ;;  %v4815_v30 = vsel %vm2337_vm11, %v4813_v2, %v4814_v22  ;;  %v4820_v53 = vsel %vm2337_vm11, %v4814_v22, %v4819_v0  ;;  %v4560_v48 = vsel %vm2192_vm13, %v4512_v10, %v6990_v24  ;;  %v7033_v44 = vpop.permute.xlu1 %7032 }
 0x451   : > { %7317 = vrot.lane.b32.xlu0 %v15121_v51, %s7653_s9  ;;  %v4561_v58 = vsel %vm2192_vm13, %v4513_v13, %v7024_v47  ;;  %v4562_v16 = vsel %vm2192_vm13, %v4514_v27, %v7025_v59  ;;  %v5021_v12 = vpack.c.bf16 %v4820_v53, %v4815_v30  ;;  %v6665_v3 = vunpack.i.h.bf16 %v15110_v15  ;;  %v15137_v59 = vld [vmem:[#allocation100_spill] sm:$0xff]  ;;  %v15139_v51 = vld [vmem:[#allocation133_spill] sm:$0xff]  ;;  %v7515_v53 = vld [vmem:[#allocation3 + $0xc0] sm:$0xff] }
 0x452   : > { %7312 = vrot.lane.b32.xlu1 %v15122_v11, %s7645_s23  ;;  %v4609_v42 = vsel %vm4599_vm2, %v4560_v48, %v7000_v45  ;;  %v7040_v32 = vunpack.i.h.bf16 %v7038_v41  ;;  %v7039_v21 = vunpack.i.l.bf16 %v7038_v41  ;;  %v6675_v14 = vunpack.i.h.bf16 %v15123_v6  ;;  %v15134_v45 = vld [vmem:[#allocation154_spill] sm:$0xff]  ;;  %v15141_v41 = vld [vmem:[#allocation52_spill] sm:$0xff] }
 0x453   : > { %v4657_v63 = vsel %vm1996_vm8, %v4609_v42, %v7010_v28  ;;  %v7035_v35 = vunpack.i.h.bf16 %v7033_v44  ;;  %v7034_v20 = vunpack.i.l.bf16 %v7033_v44  ;;  %5225 = vmatmul.mubr.bf16.gmra.mrb[8].mxu1 %v5021_v12  ;;  %v15124_v13 = vpack.i.bf16 %v15053_v9, %v15050_v38  ;;  %v15129_v38 = vld [vmem:[#allocation152_spill] sm:$0xff]  ;;  %v12937_v4 = vpop.permute.xlu0 %7047  ;;  %v15142_v44 = vld [vmem:[#allocation18_spill] sm:$0xff] }
 0x454   : > { %v6674_v60 = vunpack.i.l.bf16 %v15123_v6  ;;  %v4706_v40 = vsel %vm4696_vm7, %v4657_v63, %v7020_v26  ;;  %v4610_v55 = vsel %vm4599_vm2, %v4561_v58, %v7029_v23  ;;  %v4611_v61 = vsel %vm4599_vm2, %v4562_v16, %v7030_v46  ;;  %v7043_v15 = vpop.permute.xlu1 %7042  ;;  %v15136_v26 = vld [vmem:[#allocation115_spill] sm:$0xff]  ;;  %v15140_v58 = vld [vmem:[#allocation144_spill] sm:$0xff] }
 0x455   : > { %7327 = vrot.lane.b32.xlu0 %v15124_v13, %s7643_s20  ;;  %v15128_v33 = vpack.c.bf16 %v15126_v7, %v15127_v39  ;;  %v4467_v9 = vsel %vm4454_vm1, %v12758_v18, %v6664_v50  ;;  %v6680_v34 = vunpack.i.h.bf16 %v15129_v38  ;;  %v4658_v56 = vsel %vm1996_vm8, %v4610_v55, %v7034_v20  ;;  %v15143_v63 = vld [vmem:[#allocation31_spill] sm:$0xff]  ;;  %v15144_v13 = vld [vmem:[#allocation134_spill] sm:$0xff] }
 0x456   : > { %7322 = vrot.lane.b32.xlu1 %v15125_v49, %s7653_s9  ;;  %v4659_v27 = vsel %vm1996_vm8, %v4611_v61, %v7035_v35  ;;  %v6679_v25 = vunpack.i.l.bf16 %v15129_v38  ;;  %v6690_v5 = vunpack.i.h.bf16 %v15130_v36  ;;  %v4707_v17 = vsel %vm4696_vm7, %v4658_v56, %v7039_v21  ;;  %v15146_v61 = vld [vmem:[#allocation76_spill] sm:$0xff]  ;;  %v15147_v49 = vld [vmem:[#allocation22_spill] sm:$0xff]  ;;  %v15149_v39 = vld [vmem:[#allocation135_spill] sm:$0xff] }
 0x457   : > { %5543 = vmatprep.mubr.msk.bf16.mxu1 %vm2094_vm5, %v15128_v33  ;;  %v4708_v54 = vsel %vm4696_vm7, %v4659_v27, %v7040_v32  ;;  %v6689_v24 = vunpack.i.l.bf16 %v15130_v36  ;;  %v4823_v18 = vrot.slane %v4706_v40, 7  ;;  %v4824_v50 = vrot.slane %v4707_v17, 7  ;;  %v12960_v11 = vpop.permute.xlu0 %7057  ;;  %v15145_v40 = vld [vmem:[#allocation51_spill] sm:$0xff]  ;;  %v15151_v56 = vld [vmem:[#allocation26_spill] sm:$0xff]  ;;  %v15152_v27 = vld [vmem:[#allocation28_spill] sm:$0xff] }
 0x458   : > { %v4829_v0 = vrot.slane %v4708_v54, 7  ;;  %v15133_v52 = vpack.i.bf16 %v15131_v62, %v15132_v1  ;;  %v4468_v10 = vsel %vm4454_vm1, %v12691_v19, %v6665_v3  ;;  %v6685_v2 = vunpack.i.h.bf16 %v15134_v45  ;;  %v7053_v3 = vpop.permute.xlu1 %7052 }
 0x459   : > { %v6684_v22 = vunpack.i.l.bf16 %v15134_v45  ;;  %v6700_v28 = vunpack.i.h.bf16 %v15135_v8  ;;  %v15138_v47 = vpack.i.bf16 %v15136_v26, %v15137_v59  ;;  %v4425_v46 = vsel %vm2094_vm5, %v15139_v51, %v6675_v14  ;;  %v15155_v45 = vld [vmem:[#allocation67_spill] sm:$0xff] }
 0x45a   : > { %7337 = vrot.lane.b32.xlu0 %v15133_v52, %s7652_s29  ;;  %v6699_v23 = vunpack.i.l.bf16 %v15135_v8  ;;  %v4825_v19 = vsel %vm2337_vm11, %v4823_v18, %v4824_v50  ;;  %v4830_v30 = vsel %vm2337_vm11, %v4824_v50, %v4829_v0  ;;  %v4424_v48 = vsel %vm2094_vm5, %v7515_v53, %v6674_v60 }
 0x45b   : > { %7332 = vrot.lane.b32.xlu1 %v15138_v47, %s7650_s18  ;;  %v12967_v16 = vsel %vm2094_vm5, %v15140_v58, %v6680_v34  ;;  %v12971_v12 = vsel %vm2094_vm5, %v15141_v41, %v6679_v25  ;;  %v5023_v42 = vpack.c.bf16 %v4830_v30, %v4825_v19  ;;  %v12974_v32 = vsel %vm4454_vm1, %v4424_v48, %v6689_v24  ;;  %v13006_v36 = vpop.permute.xlu0 %7067  ;;  %v15158_v41 = vld [vmem:[#allocation74_spill] sm:$0xff] }
 0x45c   : > { %v12977_v21 = vsel %vm4454_vm1, %v4425_v46, %v6690_v5  ;;  %v6850_v6 = vunpack.i.h.bf16 %v15142_v44  ;;  %v6849_v14 = vunpack.i.l.bf16 %v15142_v44  ;;  %v4471_v35 = vsel %vm4454_vm1, %v12823_v29, %v6684_v22  ;;  %v15150_v29 = vld [vmem:[#allocation46_spill] sm:$0xff]  ;;  %v15154_v5 = vld [vmem:[#allocation156_spill] sm:$0xff]  ;;  %v7063_v50 = vpop.permute.xlu1 %7062 }
 0x45d   : > { %v4472_v20 = vsel %vm4454_vm1, %v12819_v37, %v6685_v2  ;;  %v12989_v60 = vsel %vm2094_vm5, %v15144_v13, %v6700_v28  ;;  %v6864_v55 = vunpack.i.l.bf16 %v15145_v40  ;;  %v15148_v7 = vpack.i.bf16 %v15146_v61, %v15147_v49  ;;  %5233 = vmatmul.mubr.bf16.gmra.mrb[12].mxu1 %v5023_v42  ;;  %v15162_v13 = vld [vmem:[#allocation23_spill] sm:$0xff] }
 0x45e   : > { %7347 = vrot.lane.b32.xlu0 %v15143_v63, %s7653_s9  ;;  %v12998_v33 = vsel %vm2094_vm5, %v15149_v39, %v6699_v23  ;;  %v6870_v38 = vunpack.i.h.bf16 %v15150_v29  ;;  %v7049_v37 = vunpack.i.l.bf16 %v12937_v4  ;;  %v7044_v34 = vunpack.i.l.bf16 %v7043_v15 }
 0x45f   : > { %7342 = vrot.lane.b32.xlu1 %v15148_v7, %s7645_s23  ;;  %v15153_v25 = vpack.c.bf16 %v15151_v56, %v15152_v27  ;;  %v6695_v17 = vunpack.i.h.bf16 %v15154_v5  ;;  %v7045_v54 = vunpack.i.h.bf16 %v7043_v15  ;;  %v7059_v24 = vunpack.i.l.bf16 %v12960_v11  ;;  %v7078_v51 = vpop.permute.xlu0 %7077 }
 0x460   : > { %v7054_v18 = vunpack.i.l.bf16 %v7053_v3  ;;  %v4516_v0 = vsel %vm1898_vm6, %v4468_v10, %v6850_v6  ;;  %v4515_v62 = vsel %vm1898_vm6, %v4467_v9, %v6849_v14  ;;  %v7055_v1 = vunpack.i.h.bf16 %v7053_v3  ;;  %v7073_v30 = vpop.permute.xlu1 %7072  ;;  %v15159_v3 = vld [vmem:[#allocation16_spill] sm:$0xff] }
 0x461   : > { %5544 = vmatprep.mubr.msk.bf16.mxu1 %vm2094_vm5, %v15153_v25  ;;  %v7069_v52 = vunpack.i.l.bf16 %v13006_v36  ;;  %v15156_v2 = vpack.i.bf16 %v15155_v45, %v15146_v61  ;;  %v6869_v22 = vunpack.i.l.bf16 %v15150_v29  ;;  %v4517_v15 = vsel %vm1898_vm6, %v12840_v57, %v6864_v55 }
 0x462   : > { %v7065_v8 = vunpack.i.h.bf16 %v7063_v50  ;;  %v7064_v28 = vunpack.i.l.bf16 %v7063_v50  ;;  %v15157_v10 = vpack.i.bf16 %v15147_v49, %v12546_v31  ;;  %v4520_v9 = vsel %vm1898_vm6, %v4472_v20, %v6870_v38  ;;  %v15161_v20 = vld [vmem:[#allocation29_spill] sm:$0xff] }
 0x463   : > { %7357 = vrot.lane.b32.xlu0 %v15156_v2, %s7643_s20  ;;  %v6865_v26 = vunpack.i.h.bf16 %v15145_v40  ;;  %v4565_v59 = vsel %vm2192_vm13, %v4517_v15, %v7049_v37  ;;  %v4563_v47 = vsel %vm2192_vm13, %v4515_v62, %v7044_v34  ;;  %v4564_v46 = vsel %vm2192_vm13, %v4516_v0, %v7045_v54  ;;  %v7088_v39 = vpop.permute.xlu0 %7087  ;;  %v15167_v62 = vld [vmem:[#allocation36_spill] sm:$0xff] }
 0x464   : > { %7352 = vrot.lane.b32.xlu1 %v15157_v10, %s7643_s20  ;;  %v4614_v57 = vsel %vm4599_vm2, %v4565_v59, %v7059_v24  ;;  %v4612_v23 = vsel %vm4599_vm2, %v4563_v47, %v7054_v18  ;;  %v7079_v19 = vunpack.i.l.bf16 %v7078_v51  ;;  %v4613_v31 = vsel %vm4599_vm2, %v4564_v46, %v7055_v1  ;;  %v7083_v34 = vpop.permute.xlu1 %7082  ;;  %v15165_v24 = vld [vmem:[#allocation27_spill] sm:$0xff]  ;;  %v13069_v46 = vld [vmem:[#allocation3 + $0x230] sm:$0xff] }
 0x465   : > { %v4662_v53 = vsel %vm1996_vm8, %v4614_v57, %v7069_v52  ;;  %v7075_v48 = vunpack.i.h.bf16 %v7073_v30  ;;  %v7074_v58 = vunpack.i.l.bf16 %v7073_v30  ;;  %v15160_v42 = vpack.i.bf16 %v15158_v41, %v15159_v3  ;;  %v15170_v57 = vld [vmem:[#allocation158_spill] sm:$0xff] }
 0x466   : > { %v4519_v44 = vsel %vm1898_vm6, %v4471_v35, %v6869_v22  ;;  %v4660_v6 = vsel %vm1996_vm8, %v4612_v23, %v7064_v28  ;;  %v4661_v14 = vsel %vm1996_vm8, %v4613_v31, %v7065_v8  ;;  %v4711_v63 = vsel %vm4696_vm7, %v4662_v53, %v7079_v19  ;;  %v15171_v31 = vld [vmem:[#allocation44_spill] sm:$0xff]  ;;  %v15172_v53 = vld [vmem:[#allocation138_spill] sm:$0xff] }
 0x467   : > { %7367 = vrot.lane.b32.xlu0 %v15160_v42, %s7650_s18  ;;  %v15163_v40 = vpack.i.bf16 %v15161_v20, %v15162_v13  ;;  %v7050_v55 = vunpack.i.h.bf16 %v12937_v4  ;;  %v4839_v61 = vrot.slane %v4711_v63, 7  ;;  %v4709_v49 = vsel %vm4696_vm7, %v4660_v6, %v7074_v58  ;;  %v15164_v4 = vld [vmem:[#allocation139_spill] sm:$0xff]  ;;  %v7098_v15 = vpop.permute.xlu0 %7097  ;;  %v15174_v6 = vld [vmem:[#allocation137_spill] sm:$0xff]  ;;  %v15177_v20 = vld [vmem:[#allocation72_spill] sm:$0xff] }
 0x468   : > { %v4710_v7 = vsel %vm4696_vm7, %v4661_v14, %v7075_v48  ;;  %v4518_v35 = vsel %vm1898_vm6, %v12848_v43, %v6865_v26  ;;  %v7060_v29 = vunpack.i.h.bf16 %v12960_v11  ;;  %v4833_v38 = vrot.slane %v4709_v49, 7  ;;  %v15168_v43 = vld [vmem:[#allocation13_spill] sm:$0xff]  ;;  %v7093_v47 = vpop.permute.xlu1 %7092  ;;  %v15176_v63 = vld [vmem:[#allocation55_spill] sm:$0xff] }
 0x469   : > { %7362 = vrot.lane.b32.xlu1 %v15163_v40, %s7650_s18  ;;  %v4834_v37 = vrot.slane %v4710_v7, 7  ;;  %v7070_v56 = vunpack.i.h.bf16 %v13006_v36  ;;  %v7080_v27 = vunpack.i.h.bf16 %v7078_v51  ;;  %v7085_v25 = vunpack.i.h.bf16 %v7083_v34  ;;  %v13067_v51 = vld [vmem:[#allocation3 + $0x228] sm:$0xff] }
 0x46a   : > { %v7084_v54 = vunpack.i.l.bf16 %v7083_v34  ;;  %v15166_v18 = vpack.i.bf16 %v15164_v4, %v15165_v24  ;;  %v7090_v50 = vunpack.i.h.bf16 %v7088_v39  ;;  %v7089_v0 = vunpack.i.l.bf16 %v7088_v39  ;;  %v15180_v24 = vld [vmem:[#allocation45_spill] sm:$0xff] }
 0x46b   : > { %v15169_v1 = vpack.i.bf16 %v15167_v62, %v15168_v43  ;;  %v4835_v11 = vsel %vm2337_vm11, %v4833_v38, %v4834_v37  ;;  %v4840_v52 = vsel %vm2337_vm11, %v4834_v37, %v4839_v61  ;;  %v4566_v36 = vsel %vm2192_vm13, %v4518_v35, %v7050_v55  ;;  %v13091_v61 = vpop.permute.xlu0 %7107  ;;  %v15183_v43 = vld [vmem:[#allocation157_spill] sm:$0xff] }
 0x46c   : > { %7377 = vrot.lane.b32.xlu0 %v15166_v18, %s7652_s29  ;;  %v4568_v2 = vsel %vm2192_vm13, %v4520_v9, %v7085_v25  ;;  %v4567_v22 = vsel %vm2192_vm13, %v4519_v44, %v7084_v54  ;;  %v5025_v8 = vpack.c.bf16 %v4840_v52, %v4835_v11  ;;  %v6694_v28 = vunpack.i.l.bf16 %v15154_v5  ;;  %v13097_v35 = vpop.permute.xlu1 %7102  ;;  %v15179_v25 = vld [vmem:[#allocation57_spill] sm:$0xff] }
 0x46d   : > { %7372 = vrot.lane.b32.xlu1 %v15169_v1, %s7652_s29  ;;  %v4615_v10 = vsel %vm4599_vm2, %v4566_v36, %v7060_v29  ;;  %v7100_v26 = vunpack.i.h.bf16 %v7098_v15  ;;  %v7099_v59 = vunpack.i.l.bf16 %v7098_v15  ;;  %v6705_v23 = vunpack.i.h.bf16 %v15170_v57  ;;  %v3182_v36 = vld [vmem:[#allocation3 + $0x238] sm:$0xff] }
 0x46e   : > { %v4663_v19 = vsel %vm1996_vm8, %v4615_v10, %v7070_v56  ;;  %v7095_v9 = vunpack.i.h.bf16 %v7093_v47  ;;  %v7094_v30 = vunpack.i.l.bf16 %v7093_v47  ;;  %5241 = vmatmul.mubr.bf16.gmra.mrb[16].mxu1 %v5025_v8  ;;  %v15173_v48 = vpack.i.bf16 %v15171_v31, %v15172_v53  ;;  %v15188_v31 = vld [vmem:[#allocation80_spill] sm:$0xff] }
 0x46f   : > { %v6704_v58 = vunpack.i.l.bf16 %v15170_v57  ;;  %v4712_v3 = vsel %vm4696_vm7, %v4663_v19, %v7080_v27  ;;  %v4616_v42 = vsel %vm4599_vm2, %v4567_v22, %v7089_v0  ;;  %v4617_v44 = vsel %vm4599_vm2, %v4568_v2, %v7090_v50  ;;  %v13123_v5 = vpop.permute.xlu0 %7117  ;;  %v15184_v2 = vld [vmem:[#allocation39_spill] sm:$0xff] }
 0x470   : > { %7387 = vrot.lane.b32.xlu0 %v15173_v48, %s7645_s23  ;;  %v15175_v14 = vpack.i.bf16 %v15174_v6, %v15155_v45  ;;  %v15178_v13 = vpack.c.bf16 %v15176_v63, %v15177_v20  ;;  %v4664_v40 = vsel %vm1996_vm8, %v4616_v42, %v7094_v30  ;;  %v4665_v55 = vsel %vm1996_vm8, %v4617_v44, %v7095_v9  ;;  %v7113_v11 = vpop.permute.xlu1 %7112  ;;  %v15187_v30 = vld [vmem:[#allocation73_spill] sm:$0xff] }
 0x471   : > { %v4254_v49 = vrot.slane %v13069_v46, 1  ;;  %v4253_v7 = vrot.slane %v13067_v51, 1  ;;  %v4713_v39 = vsel %vm4696_vm7, %v4664_v40, %v7099_v59  ;;  %v4714_v45 = vsel %vm4696_vm7, %v4665_v55, %v7100_v26  ;;  %v15190_v55 = vld [vmem:[#allocation49_spill] sm:$0xff] }
 0x472   : > { %7382 = vrot.lane.b32.xlu1 %v15175_v14, %s7645_s23  ;;  %5545 = vmatprep.mubr.msk.bf16.mxu1 %vm2094_vm5, %v15178_v13  ;;  %v4402_v29 = vrot.slane %v13069_v46, 2  ;;  %v4401_v38 = vrot.slane %v13067_v51, 2  ;;  %v4475_v37 = vsel %vm4454_vm1, %v12971_v12, %v6694_v28  ;;  %v4843_v34 = vrot.slane %v4712_v3, 7  ;;  %v15181_v12 = vld [vmem:[#allocation84_spill] sm:$0xff] }
 0x473   : > { %v4844_v56 = vrot.slane %v4713_v39, 7  ;;  %v4849_v27 = vrot.slane %v4714_v45, 7  ;;  %v4476_v54 = vsel %vm4454_vm1, %v12967_v16, %v6695_v17  ;;  %v13111_v4 = vsel %vm4454_vm1, %v12998_v33, %v6704_v58  ;;  %v13155_v58 = vpop.permute.xlu0 %7127 }
 0x474   : > { %4344 = vrot.lane.b32.xlu0 %v15179_v25, %s7653_s9  ;;  %v6880_v18 = vunpack.i.h.bf16 %v15180_v24  ;;  %v6879_v50 = vunpack.i.l.bf16 %v15180_v24  ;;  %v15182_v0 = vpack.i.bf16 %v15181_v12, %v15158_v41  ;;  %v13121_v62 = vsel %vm4454_vm1, %v12989_v60, %v6705_v23  ;;  %v7123_v44 = vpop.permute.xlu1 %7122 }
 0x475   : > { %v4845_v16 = vsel %vm2337_vm11, %v4843_v34, %v4844_v56  ;;  %v4850_v33 = vsel %vm2337_vm11, %v4844_v56, %v4849_v27  ;;  %v4255_v17 = vsel %vm513_vm3, %v4253_v7, %v4254_v49  ;;  %v6710_v1 = vunpack.i.h.bf16 %v15183_v43 }
 0x476   : > { %7392 = vrot.lane.b32.xlu1 %v15182_v0, %s7653_s9  ;;  %v5027_v52 = vpack.c.bf16 %v4850_v33, %v4845_v16  ;;  %v7411_v41 = vpack.i.bf16 %v13069_v46, %v13067_v51  ;;  %v4403_v60 = vsel %vm722_vm4, %v4401_v38, %v4402_v29  ;;  %v6875_v22 = vunpack.i.h.bf16 %v15184_v2 }
 0x477   : > { %v6874_v15 = vunpack.i.l.bf16 %v15184_v2  ;;  %v15185_v8 = vpack.i.bf16 %v15179_v25, %v15181_v12  ;;  %v4404_v28 = vrot.slane %v3182_v36, 2  ;;  %v4946_v10 = vrot.slane %v4401_v38, 7  ;;  %v7138_v56 = vpop.permute.xlu0 %7137 }
 0x478   : > { %v13141_v26 = vsel %vm1898_vm6, %v4476_v54, %v6880_v18  ;;  %v4523_v59 = vsel %vm1898_vm6, %v4475_v37, %v6879_v50  ;;  %v15186_v47 = vpack.i.bf16 %v15172_v53, %v15174_v6  ;;  %5249 = vmatmul.mubr.bf16.gmra.mrb[20].mxu1 %v5027_v52  ;;  %v7416_v51 = vpack.i.bf16 %v4255_v17, %v4253_v7  ;;  %v7133_v50 = vpop.permute.xlu1 %7132 }
 0x479   : > { %7402 = vrot.lane.b32.xlu0 %v15185_v8, %s7650_s18  ;;  %v4947_v57 = vrot.slane %v4403_v60, 7  ;;  %v7109_v23 = vunpack.i.l.bf16 %v13091_v61  ;;  %v7105_v19 = vunpack.i.h.bf16 %v13097_v35  ;;  %v7104_v9 = vunpack.i.l.bf16 %v13097_v35  ;;  %v15191_v35 = vld [vmem:[#allocation141_spill] sm:$0xff]  ;;  %s13557_s18 = scalar_lea.vmem [#allocation7], %s5495_s17  ;;  %s5562_s17 = sshll.u32 %s7718_s28, 12 }
 0x47a   : > { %7397 = vrot.lane.b32.xlu1 %v15186_v47, %s7643_s20  ;;  %v15189_v48 = vpack.c.bf16 %v15187_v30, %v15188_v31  ;;  %v4405_v3 = vsel %vm722_vm4, %v4402_v29, %v4404_v28  ;;  %v7119_v53 = vunpack.i.l.bf16 %v13123_v5  ;;  %v7114_v42 = vunpack.i.l.bf16 %v7113_v11  ;;  %v15192_v29 = vld [vmem:[#allocation140_spill] sm:$0xff]  ;;  %s5415_s8 = sshll.u32 %s13557_s18, 4  ;;  %s13654_s15 = scalar_lea.hbm %s13711_s7, %s5562_s17  ;;  %s13656_s8 = int_to_ptr.vmem [resolvable:$true] %s5415_s8 }
 0x47b   : > { %v13160_v6 = vsel %vm2337_vm11, %v4946_v10, %v4947_v57  ;;  %v4951_v14 = vrot.slane %v4405_v3, 7  ;;  %v4521_v63 = vsel %vm1898_vm6, %v12974_v32, %v6874_v15  ;;  %v4522_v20 = vsel %vm1898_vm6, %v12977_v21, %v6875_v22  ;;  %v7148_v46 = vpop.permute.xlu0 %7147  ;;  %s5402_s28 = scalar_lea.sflag [#allocation6], %s7801_s16  ;;  %s7570_s22 = scalar_lea.vmem %s13656_s8, 4096 }
 0x47c   : > { %5546 = vmatprep.mubr.msk.bf16.mxu1 %vm2094_vm5, %v15189_v48  ;;  %v7115_v13 = vunpack.i.h.bf16 %v7113_v11  ;;  %v7129_v40 = vunpack.i.l.bf16 %v13155_v58  ;;  %v6884_v7 = vunpack.i.l.bf16 %v15190_v55  ;;  %v7125_v39 = vunpack.i.h.bf16 %v7123_v44  ;;  %v7143_v28 = vpop.permute.xlu1 %7142  ;;  %p7571_p6 = scmp.ne.s32.totalorder %s13656_s8, %s7570_s22 }
 0x47d   : > { %7412 = vrot.lane.b32.xlu0 %v7411_v41, %s7645_s23  ;;  %v7124_v45 = vunpack.i.l.bf16 %v7123_v44  ;;  %v15193_v38 = vpack.i.bf16 %v15191_v35, %v15192_v29  ;;  %v13174_v37 = vsel %vm2337_vm11, %v4947_v57, %v4951_v14  ;;  %v6885_v32 = vunpack.i.h.bf16 %v15190_v55  ;;  %v7516_v44 = vld [vmem:[#allocation3 + $0x108] sm:$0xff]  ;;  %v15196_v35 = vld [vmem:[#allocation82_spill] sm:$0xff] }
 0x47e   : > { %v4571_v21 = vsel %vm2192_vm13, %v4523_v59, %v7109_v23  ;;  %v4569_v34 = vsel %vm2192_vm13, %v4521_v63, %v7104_v9  ;;  %v5048_v27 = vpack.c.bf16 %v13174_v37, %v13160_v6  ;;  %v4570_v25 = vsel %vm2192_vm13, %v4522_v20, %v7105_v19  ;;  %p7572_p12 = pnand %p7571_p6, %p15248_p11 }
 0x47f   : > { %7407 = vrot.lane.b32.xlu1 %v15193_v38, %s7652_s29  ;;  %v4620_v54 = vsel %vm4599_vm2, %v4571_v21, %v7119_v53  ;;  %v4618_v24 = vsel %vm4599_vm2, %v4569_v34, %v7114_v42  ;;  %v7139_v18 = vunpack.i.l.bf16 %v7138_v56  ;;  %v4619_v12 = vsel %vm4599_vm2, %v4570_v25, %v7115_v13  ;;  %v7158_v30 = vpop.permute.xlu0 %7157  ;;  %v15194_v13 = vld [vmem:[#allocation112_spill] sm:$0xff]  ;;  %v15199_v25 = vld [vmem:[#allocation117_spill] sm:$0xff]  ;;  %s7654_s29 = smov [#allocation7]  }
 0x480   : > { %v4668_v0 = vsel %vm1996_vm8, %v4620_v54, %v7129_v40  ;;  %v7135_v16 = vunpack.i.h.bf16 %v7133_v50  ;;  %v7134_v33 = vunpack.i.l.bf16 %v7133_v50  ;;  %v4525_v17 = vsel %vm1898_vm6, %v13111_v4, %v6884_v7  ;;  %v7153_v42 = vpop.permute.xlu1 %7152  ;;  %p7573_p13 = pneg %p7572_p12  ;;  %s7574_s21 = sshll.u32 %s7654_s29, 4  ;;  %s7575_s21 = int_to_ptr.vmem [resolvable:$false] %s7574_s21 }
 0x481   : > { %4350 = vrot.lane.b32.xlu0 %v4254_v49, %s7653_s9  ;;  %v4666_v11 = vsel %vm1996_vm8, %v4618_v24, %v7124_v45  ;;  %v4667_v52 = vsel %vm1996_vm8, %v4619_v12, %v7125_v39  ;;  %v4717_v41 = vsel %vm4696_vm7, %v4668_v0, %v7139_v18  ;;  %v7110_v36 = vunpack.i.h.bf16 %v13091_v61  ;;  %v15195_v45 = vld [vmem:[#allocation88_spill] sm:$0xff]  ;;  %s7576_s19 = scalar_lea.vmem %s7575_s21, 8192  ;;  %p7577_p8 = scmp.lt.s32.totalorder %s13656_s8, %s7575_s21 }
 0x482   : > { %v4859_v60 = vrot.slane %v4717_v41, 7  ;;  %v4715_v2 = vsel %vm4696_vm7, %v4666_v11, %v7134_v33  ;;  %v4716_v22 = vsel %vm4696_vm7, %v4667_v52, %v7135_v16  ;;  %v4526_v49 = vsel %vm1898_vm6, %v13121_v62, %v6885_v32  ;;  %v15200_v52 = vld [vmem:[#allocation77_spill] sm:$0xff]  ;;  %p7578_p10 = scmp.lt.s32.totalorder %s7576_s19, %s7570_s22 }
 0x483   : > { %7417 = vrot.lane.b32.xlu1 %v7416_v51, %s7653_s9  ;;  %v7120_v4 = vunpack.i.h.bf16 %v13123_v5  ;;  %v4853_v15 = vrot.slane %v4715_v2, 7  ;;  %v4854_v8 = vrot.slane %v4716_v22, 7  ;;  %v7130_v10 = vunpack.i.h.bf16 %v13155_v58  ;;  %v13226_v34 = vpop.permute.xlu0 %7167 }
 0x484   : > { %v7140_v59 = vunpack.i.h.bf16 %v7138_v56  ;;  %v7145_v47 = vunpack.i.h.bf16 %v7143_v28  ;;  %v7144_v51 = vunpack.i.l.bf16 %v7143_v28  ;;  %v7150_v61 = vunpack.i.h.bf16 %v7148_v46  ;;  %v7163_v50 = vpop.permute.xlu1 %7162  ;;  %v7518_v28 = vld [vmem:[#allocation3 + $0x120] sm:$0xff]  ;;  %p7579_p0 = por %p7578_p10, %p7577_p8 }
 0x485   : > { %v7149_v57 = vunpack.i.l.bf16 %v7148_v46  ;;  %v4855_v23 = vsel %vm2337_vm11, %v4853_v15, %v4854_v8  ;;  %v4860_v19 = vsel %vm2337_vm11, %v4854_v8, %v4859_v60  ;;  %v4572_v9 = vsel %vm2192_vm13, %v13141_v26, %v7110_v36  ;;  %v15201_v60 = vld [vmem:[#allocation123_spill] sm:$0xff] }
 0x486   : > { %v4573_v62 = vsel %vm2192_vm13, %v4525_v17, %v7144_v51  ;;  %v4574_v5 = vsel %vm2192_vm13, %v4526_v49, %v7145_v47  ;;  %v5029_v31 = vpack.c.bf16 %v4860_v19, %v4855_v23  ;;  %v6709_v48 = vunpack.i.l.bf16 %v15183_v43  ;;  %v7517_v17 = vld [vmem:[#allocation3 + $0x100] sm:$0xff]  ;;  %v7521_v19 = vld [vmem:[#allocation3 + $0x128] sm:$0xff]  ;;  %p7580_p2 = pnand %p7579_p0, %p7573_p13 }
 0x487   : > { %v4621_v58 = vsel %vm4599_vm2, %v4572_v9, %v7120_v4  ;;  %v7160_v3 = vunpack.i.h.bf16 %v7158_v30  ;;  %v7159_v53 = vunpack.i.l.bf16 %v7158_v30  ;;  %v4431_v14 = vsel %vm2094_vm5, %v7516_v44, %v6710_v1  ;;  %v15198_v1 = vld [vmem:[#allocation116_spill] sm:$0xff]  ;;  %v13239_v49 = vpop.permute.xlu0 %7177 }
 0x488   : > { %v4669_v26 = vsel %vm1996_vm8, %v4621_v58, %v7130_v10  ;;  %v7155_v63 = vunpack.i.h.bf16 %v7153_v42  ;;  %v7154_v20 = vunpack.i.l.bf16 %v7153_v42  ;;  %5257 = vmatmul.mubr.bf16.gmra.mrb[24].mxu1 %v5029_v31  ;;  %v6715_v40 = vunpack.i.h.bf16 %v15194_v13  ;;  %v7173_v51 = vpop.permute.xlu1 %7172  ;;  %v15204_v44 = vld [vmem:[#allocation40_spill] sm:$0xff] }
 0x489   : > { %v4718_v55 = vsel %vm4696_vm7, %v4669_v26, %v7140_v59  ;;  %v4622_v7 = vsel %vm4599_vm2, %v4573_v62, %v7149_v57  ;;  %v4623_v39 = vsel %vm4599_vm2, %v4574_v5, %v7150_v61  ;;  %v15197_v29 = vpack.c.bf16 %v15195_v45, %v15196_v35  ;;  %v7519_v59 = vld [vmem:[#allocation3 + $0x110] sm:$0xff]  ;;  %v15202_v62 = vld [vmem:[#allocation21_spill] sm:$0xff] }
 0x48a   : > { %v6714_v43 = vunpack.i.l.bf16 %v15194_v13  ;;  %v6720_v38 = vunpack.i.h.bf16 %v15198_v1  ;;  %v4670_v32 = vsel %vm1996_vm8, %v4622_v7, %v7154_v20  ;;  %v4671_v21 = vsel %vm1996_vm8, %v4623_v39, %v7155_v63  ;;  %v7520_v57 = vld [vmem:[#allocation3 + $0x130] sm:$0xff]  ;;  %v15205_v20 = vld [vmem:[#allocation47_spill] sm:$0xff]  ;;  %v15206_v13 = vld [vmem:[#allocation54_spill] sm:$0xff] }
 0x48b   : > { %5547 = vmatprep.mubr.msk.bf16.mxu1 %vm2094_vm5, %v15197_v29  ;;  %v6719_v56 = vunpack.i.l.bf16 %v15198_v1  ;;  %v6730_v54 = vunpack.i.h.bf16 %v15199_v25  ;;  %v4719_v24 = vsel %vm4696_vm7, %v4670_v32, %v7159_v53  ;;  %v4720_v18 = vsel %vm4696_vm7, %v4671_v21, %v7160_v3  ;;  %v15203_v3 = vld [vmem:[#allocation43_spill] sm:$0xff]  ;;  %v15208_v7 = vld [vmem:[#allocation120_spill] sm:$0xff] }
 0x48c   : > { %v6729_v12 = vunpack.i.l.bf16 %v15199_v25  ;;  %v4863_v0 = vrot.slane %v4718_v55, 7  ;;  %v4864_v16 = vrot.slane %v4719_v24, 7  ;;  %v4869_v33 = vrot.slane %v4720_v18, 7  ;;  %v7188_v55 = vpop.permute.xlu0 %7187 }
 0x48d   : > { %v4430_v11 = vsel %vm2094_vm5, %v7517_v17, %v6709_v48  ;;  %v6725_v41 = vunpack.i.h.bf16 %v15200_v52  ;;  %v6724_v36 = vunpack.i.l.bf16 %v15200_v52  ;;  %v6734_v2 = vunpack.i.l.bf16 %v15201_v60 }
 0x48e   : > { %v4479_v22 = vsel %vm4454_vm1, %v4430_v11, %v6714_v43  ;;  %v6735_v46 = vunpack.i.h.bf16 %v15201_v60  ;;  %v4865_v4 = vsel %vm2337_vm11, %v4863_v0, %v4864_v16  ;;  %v4870_v15 = vsel %vm2337_vm11, %v4864_v16, %v4869_v33  ;;  %v7183_v43 = vpop.permute.xlu1 %7182 }
 0x48f   : > { %v4480_v8 = vsel %vm4454_vm1, %v4431_v14, %v6715_v40  ;;  %v4433_v10 = vsel %vm2094_vm5, %v7518_v28, %v6720_v38  ;;  %v4432_v47 = vsel %vm2094_vm5, %v7519_v59, %v6719_v56  ;;  %v5031_v61 = vpack.c.bf16 %v4870_v15, %v4865_v4 }
 0x490   : > { %v4435_v23 = vsel %vm2094_vm5, %v7520_v57, %v6730_v54  ;;  %v4434_v9 = vsel %vm2094_vm5, %v7521_v19, %v6729_v12  ;;  %v6890_v5 = vunpack.i.h.bf16 %v15202_v62  ;;  %v6889_v30 = vunpack.i.l.bf16 %v15202_v62  ;;  %v7198_v16 = vpop.permute.xlu0 %7197 }
 0x491   : > { %v4481_v31 = vsel %vm4454_vm1, %v4432_v47, %v6724_v36  ;;  %v4482_v48 = vsel %vm4454_vm1, %v4433_v10, %v6725_v41  ;;  %v4483_v58 = vsel %vm4454_vm1, %v4434_v9, %v6734_v2  ;;  %v6894_v53 = vunpack.i.l.bf16 %v15203_v3  ;;  %5265 = vmatmul.mubr.bf16.gmra.mrb[28].mxu1 %v5031_v61 }
 0x492   : > { %v4484_v42 = vsel %vm4454_vm1, %v4435_v23, %v6735_v46  ;;  %v6900_v14 = vunpack.i.h.bf16 %v15204_v44  ;;  %v7169_v26 = vunpack.i.l.bf16 %v13226_v34  ;;  %v7164_v63 = vunpack.i.l.bf16 %v7163_v50  ;;  %v7193_v41 = vpop.permute.xlu1 %7192 }
 0x493   : > { %v15207_v40 = vpack.c.bf16 %v15205_v20, %v15206_v13  ;;  %v6740_v39 = vunpack.i.h.bf16 %v15208_v7  ;;  %v7165_v45 = vunpack.i.h.bf16 %v7163_v50  ;;  %v7179_v35 = vunpack.i.l.bf16 %v13239_v49 }
 0x494   : > { %v7174_v29 = vunpack.i.l.bf16 %v7173_v51  ;;  %v4528_v1 = vsel %vm1898_vm6, %v4480_v8, %v6890_v5  ;;  %v4527_v38 = vsel %vm1898_vm6, %v4479_v22, %v6889_v30  ;;  %v7175_v32 = vunpack.i.h.bf16 %v7173_v51  ;;  %v7208_v51 = vpop.permute.xlu0 %7207 }
 0x495   : > { %5548 = vmatprep.mubr.msk.bf16.mxu1 %vm2094_vm5, %v15207_v40  ;;  %v7189_v21 = vunpack.i.l.bf16 %v7188_v55  ;;  %v6899_v56 = vunpack.i.l.bf16 %v15204_v44  ;;  %v4529_v25 = vsel %vm1898_vm6, %v4481_v31, %v6894_v53  ;;  %v7185_v54 = vunpack.i.h.bf16 %v7183_v43 }
 0x496   : > { %v7184_v24 = vunpack.i.l.bf16 %v7183_v43  ;;  %v4532_v18 = vsel %vm1898_vm6, %v4484_v42, %v6900_v14  ;;  %v6895_v50 = vunpack.i.h.bf16 %v15203_v3  ;;  %v4577_v12 = vsel %vm2192_vm13, %v4529_v25, %v7169_v26  ;;  %v7203_v9 = vpop.permute.xlu1 %7202 }
 0x497   : > { %v4575_v0 = vsel %vm2192_vm13, %v4527_v38, %v7164_v63  ;;  %v4576_v33 = vsel %vm2192_vm13, %v4528_v1, %v7165_v45  ;;  %v4626_v17 = vsel %vm4599_vm2, %v4577_v12, %v7179_v35  ;;  %v7199_v52 = vunpack.i.l.bf16 %v7198_v16  ;;  %v15213_v12 = vld [vmem:[#allocation129_spill] sm:$0xff] }
 0x498   : > { %v4624_v11 = vsel %vm4599_vm2, %v4575_v0, %v7174_v29  ;;  %v4625_v36 = vsel %vm4599_vm2, %v4576_v33, %v7175_v32  ;;  %v4674_v60 = vsel %vm1996_vm8, %v4626_v17, %v7189_v21  ;;  %v7195_v2 = vunpack.i.h.bf16 %v7193_v41  ;;  %v7522_v29 = vld [vmem:[#allocation3 + $0x148] sm:$0xff]  ;;  %v15209_v21 = vld [vmem:[#allocation97_spill] sm:$0xff] }
 0x499   : > { %v7194_v22 = vunpack.i.l.bf16 %v7193_v41  ;;  %v4531_v46 = vsel %vm1898_vm6, %v4483_v58, %v6899_v56  ;;  %v4672_v4 = vsel %vm1996_vm8, %v4624_v11, %v7184_v24  ;;  %v4673_v15 = vsel %vm1996_vm8, %v4625_v36, %v7185_v54  ;;  %v15210_v56 = vld [vmem:[#allocation53_spill] sm:$0xff] }
 0x49a   : > { %v4723_v8 = vsel %vm4696_vm7, %v4674_v60, %v7199_v52  ;;  %v7170_v28 = vunpack.i.h.bf16 %v13226_v34  ;;  %v4722_v47 = vsel %vm4696_vm7, %v4673_v15, %v7195_v2  ;;  %v4530_v61 = vsel %vm1898_vm6, %v4482_v48, %v6895_v50  ;;  %v7213_v13 = vpop.permute.xlu1 %7212  ;;  %v15212_v54 = vld [vmem:[#allocation121_spill] sm:$0xff]  ;;  %v15214_v52 = vld [vmem:[#allocation56_spill] sm:$0xff]  ;;  %v15215_v15 = vld [vmem:[#allocation50_spill] sm:$0xff] }
 0x49b   : > { %v4879_v10 = vrot.slane %v4723_v8, 7  ;;  %v4721_v59 = vsel %vm4696_vm7, %v4672_v4, %v7194_v22  ;;  %v7180_v57 = vunpack.i.h.bf16 %v13239_v49  ;;  %v4874_v19 = vrot.slane %v4722_v47, 7  ;;  %v7218_v49 = vpop.permute.xlu0 %7217  ;;  %v7523_v22 = vld [vmem:[#allocation3 + $0x140] sm:$0xff] }
 0x49c   : > { %v4873_v23 = vrot.slane %v4721_v59, 7  ;;  %v7190_v62 = vunpack.i.h.bf16 %v7188_v55  ;;  %v7200_v5 = vunpack.i.h.bf16 %v7198_v16  ;;  %v7205_v30 = vunpack.i.h.bf16 %v7203_v9  ;;  %v15216_v59 = vld [vmem:[#allocation125_spill] sm:$0xff] }
 0x49d   : > { %v7204_v31 = vunpack.i.l.bf16 %v7203_v9  ;;  %v7210_v58 = vunpack.i.h.bf16 %v7208_v51  ;;  %v7209_v3 = vunpack.i.l.bf16 %v7208_v51  ;;  %v4880_v53 = vsel %vm2337_vm11, %v4874_v19, %v4879_v10 }
 0x49e   : > { %v4875_v34 = vsel %vm2337_vm11, %v4873_v23, %v4874_v19  ;;  %v4578_v42 = vsel %vm2192_vm13, %v4530_v61, %v7170_v28  ;;  %v4580_v44 = vsel %vm2192_vm13, %v4532_v18, %v7205_v30  ;;  %v7220_v63 = vunpack.i.h.bf16 %v7218_v49  ;;  %v7223_v11 = vpop.permute.xlu1 %7222  ;;  %v7524_v19 = vld [vmem:[#allocation3 + $0x150] sm:$0xff] }
 0x49f   : > { %v4579_v48 = vsel %vm2192_vm13, %v4531_v46, %v7204_v31  ;;  %v5033_v14 = vpack.c.bf16 %v4880_v53, %v4875_v34  ;;  %v4627_v26 = vsel %vm4599_vm2, %v4578_v42, %v7180_v57  ;;  %v7219_v20 = vunpack.i.l.bf16 %v7218_v49  ;;  %v7525_v31 = vld [vmem:[#allocation3 + $0x160] sm:$0xff] }
 0x4a0   : > { %v6739_v40 = vunpack.i.l.bf16 %v15208_v7  ;;  %v4675_v55 = vsel %vm1996_vm8, %v4627_v26, %v7190_v62  ;;  %v7215_v45 = vunpack.i.h.bf16 %v7213_v13  ;;  %v7214_v35 = vunpack.i.l.bf16 %v7213_v13  ;;  %v15217_v34 = vld [vmem:[#allocation34_spill] sm:$0xff] }
 0x4a1   : > { %5273 = vmatmul.mubr.bf16.gmra.mrb[32].mxu1 %v5033_v14  ;;  %v4437_v43 = vsel %vm2094_vm5, %v7522_v29, %v6740_v39  ;;  %v4724_v1 = vsel %vm4696_vm7, %v4675_v55, %v7200_v5  ;;  %v4628_v38 = vsel %vm4599_vm2, %v4579_v48, %v7209_v3  ;;  %v4629_v32 = vsel %vm4599_vm2, %v4580_v44, %v7210_v58  ;;  %v13307_v39 = vpop.permute.xlu0 %7227  ;;  %v7526_v48 = vld [vmem:[#allocation3 + $0x170] sm:$0xff]  ;;  %v7527_v14 = vld [vmem:[#allocation3 + $0x168] sm:$0xff] }
 0x4a2   : > { %v15211_v25 = vpack.c.bf16 %v15209_v21, %v15210_v56  ;;  %v6745_v24 = vunpack.i.h.bf16 %v15212_v54  ;;  %v6744_v18 = vunpack.i.l.bf16 %v15212_v54  ;;  %v4676_v50 = vsel %vm1996_vm8, %v4628_v38, %v7214_v35  ;;  %v7233_v5 = vpop.permute.xlu1 %7232  ;;  %v15219_v35 = vld [vmem:[#allocation106_spill] sm:$0xff]  ;;  %v15220_v29 = vld [vmem:[#allocation108_spill] sm:$0xff] }
 0x4a3   : > { %v4677_v7 = vsel %vm1996_vm8, %v4629_v32, %v7215_v45  ;;  %v6750_v0 = vunpack.i.h.bf16 %v15213_v12  ;;  %v6749_v16 = vunpack.i.l.bf16 %v15213_v12  ;;  %v4725_v33 = vsel %vm4696_vm7, %v4676_v50, %v7219_v20  ;;  %v15222_v12 = vld [vmem:[#allocation83_spill] sm:$0xff] }
 0x4a4   : > { %5549 = vmatprep.mubr.msk.bf16.mxu1 %vm2094_vm5, %v15211_v25  ;;  %v4726_v17 = vsel %vm4696_vm7, %v4677_v7, %v7220_v63  ;;  %v6754_v41 = vunpack.i.l.bf16 %v15214_v52  ;;  %v4883_v36 = vrot.slane %v4724_v1, 7  ;;  %v4884_v60 = vrot.slane %v4725_v33, 7  ;;  %v15218_v63 = vld [vmem:[#allocation71_spill] sm:$0xff] }
 0x4a5   : > { %v4889_v2 = vrot.slane %v4726_v17, 7  ;;  %v4436_v46 = vsel %vm2094_vm5, %v7523_v22, %v6739_v40  ;;  %v6755_v4 = vunpack.i.h.bf16 %v15214_v52  ;;  %v6770_v8 = vunpack.i.h.bf16 %v15215_v15  ;;  %v13320_v51 = vpop.permute.xlu0 %7237 }
 0x4a6   : > { %v6769_v28 = vunpack.i.l.bf16 %v15215_v15  ;;  %v4485_v10 = vsel %vm4454_vm1, %v4436_v46, %v6744_v18  ;;  %v6774_v47 = vunpack.i.l.bf16 %v15216_v59  ;;  %v4885_v61 = vsel %vm2337_vm11, %v4883_v36, %v4884_v60  ;;  %v7243_v25 = vpop.permute.xlu1 %7242 }
 0x4a7   : > { %v4890_v57 = vsel %vm2337_vm11, %v4884_v60, %v4889_v2  ;;  %v4486_v23 = vsel %vm4454_vm1, %v4437_v43, %v6745_v24  ;;  %v4438_v9 = vsel %vm2094_vm5, %v7524_v19, %v6749_v16  ;;  %v6775_v62 = vunpack.i.h.bf16 %v15216_v59 }
 0x4a8   : > { %v5035_v30 = vpack.c.bf16 %v4890_v57, %v4885_v61  ;;  %v4439_v58 = vsel %vm2094_vm5, %v7525_v31, %v6750_v0  ;;  %v4487_v3 = vsel %vm4454_vm1, %v4438_v9, %v6754_v41  ;;  %v6910_v53 = vunpack.i.h.bf16 %v15217_v34 }
 0x4a9   : > { %v6909_v42 = vunpack.i.l.bf16 %v15217_v34  ;;  %v4488_v44 = vsel %vm4454_vm1, %v4439_v58, %v6755_v4  ;;  %v4441_v49 = vsel %vm2094_vm5, %v7526_v48, %v6770_v8  ;;  %v4440_v26 = vsel %vm2094_vm5, %v7527_v14, %v6769_v28  ;;  %v7248_v1 = vpop.permute.xlu0 %7247 }
 0x4aa   : > { %v6904_v20 = vunpack.i.l.bf16 %v15218_v63  ;;  %5281 = vmatmul.mubr.bf16.gmra.mrb[36].mxu1 %v5035_v30  ;;  %v4489_v13 = vsel %vm4454_vm1, %v4440_v26, %v6774_v47  ;;  %v6905_v40 = vunpack.i.h.bf16 %v15218_v63  ;;  %v7229_v55 = vunpack.i.l.bf16 %v13307_v39  ;;  %v7253_v4 = vpop.permute.xlu1 %7252 }
 0x4ab   : > { %v7224_v45 = vunpack.i.l.bf16 %v7223_v11  ;;  %v15221_v43 = vpack.c.bf16 %v15219_v35, %v15220_v29  ;;  %v4490_v38 = vsel %vm4454_vm1, %v4441_v49, %v6775_v62  ;;  %v7225_v32 = vunpack.i.h.bf16 %v7223_v11 }
 0x4ac   : > { %v7239_v21 = vunpack.i.l.bf16 %v13320_v51  ;;  %v7234_v56 = vunpack.i.l.bf16 %v7233_v5  ;;  %v4536_v54 = vsel %vm1898_vm6, %v4488_v44, %v6910_v53  ;;  %v4535_v24 = vsel %vm1898_vm6, %v4487_v3, %v6909_v42 }
 0x4ad   : > { %5550 = vmatprep.mubr.msk.bf16.mxu1 %vm2094_vm5, %v15221_v43  ;;  %v7235_v18 = vunpack.i.h.bf16 %v7233_v5  ;;  %v7249_v50 = vunpack.i.l.bf16 %v7248_v1  ;;  %v4533_v7 = vsel %vm1898_vm6, %v4485_v10, %v6904_v20  ;;  %v6914_v0 = vunpack.i.l.bf16 %v15222_v12  ;;  %v7258_v36 = vpop.permute.xlu0 %7257 }
 0x4ae   : > { %v7245_v16 = vunpack.i.h.bf16 %v7243_v25  ;;  %v7244_v33 = vunpack.i.l.bf16 %v7243_v25  ;;  %v4534_v17 = vsel %vm1898_vm6, %v4486_v23, %v6905_v40  ;;  %v6915_v11 = vunpack.i.h.bf16 %v15222_v12  ;;  %v7263_v34 = vpop.permute.xlu1 %7262  ;;  %v15223_v25 = vld [vmem:[#allocation12_spill] sm:$0xff] }
 0x4af   : > { %v4583_v52 = vsel %vm2192_vm13, %v4535_v24, %v7229_v55  ;;  %v4581_v41 = vsel %vm2192_vm13, %v4533_v7, %v7224_v45  ;;  %v4582_v60 = vsel %vm2192_vm13, %v4534_v17, %v7225_v32  ;;  %v7259_v46 = vunpack.i.l.bf16 %v7258_v36 }
 0x4b0   : > { %v4632_v2 = vsel %vm4599_vm2, %v4583_v52, %v7239_v21  ;;  %v4630_v22 = vsel %vm4599_vm2, %v4581_v41, %v7234_v56  ;;  %v4631_v15 = vsel %vm4599_vm2, %v4582_v60, %v7235_v18  ;;  %v7255_v28 = vunpack.i.h.bf16 %v7253_v4  ;;  %v15226_v52 = vld [vmem:[#allocation122_spill] sm:$0xff]  ;;  %v15227_v60 = vld [vmem:[#allocation136_spill] sm:$0xff] }
 0x4b1   : > { %v4680_v8 = vsel %vm1996_vm8, %v4632_v2, %v7249_v50  ;;  %v7254_v10 = vunpack.i.l.bf16 %v7253_v4  ;;  %v4537_v59 = vsel %vm1898_vm6, %v4489_v13, %v6914_v0  ;;  %v4678_v47 = vsel %vm1996_vm8, %v4630_v22, %v7244_v33  ;;  %v7268_v5 = vpop.permute.xlu0 %7267 }
 0x4b2   : > { %v4679_v61 = vsel %vm1996_vm8, %v4631_v15, %v7245_v16  ;;  %v4729_v57 = vsel %vm4696_vm7, %v4680_v8, %v7259_v46  ;;  %v7230_v23 = vunpack.i.h.bf16 %v13307_v39  ;;  %v4538_v30 = vsel %vm1898_vm6, %v4490_v38, %v6915_v11  ;;  %v7273_v29 = vpop.permute.xlu1 %7272  ;;  %v15228_v8 = vld [vmem:[#allocation130_spill] sm:$0xff] }
 0x4b3   : > { %v4899_v19 = vrot.slane %v4729_v57, 7  ;;  %v4727_v9 = vsel %vm4696_vm7, %v4678_v47, %v7254_v10  ;;  %v4728_v62 = vsel %vm4696_vm7, %v4679_v61, %v7255_v28  ;;  %v7240_v31 = vunpack.i.h.bf16 %v13320_v51  ;;  %v15229_v47 = vld [vmem:[#allocation61_spill] sm:$0xff]  ;;  %v7528_v57 = vld [vmem:[#allocation3 + $0x188] sm:$0xff] }
 0x4b4   : > { %v4893_v58 = vrot.slane %v4727_v9, 7  ;;  %v4894_v3 = vrot.slane %v4728_v62, 7  ;;  %v7250_v53 = vunpack.i.h.bf16 %v7248_v1  ;;  %v7260_v42 = vunpack.i.h.bf16 %v7258_v36 }
 0x4b5   : > { %v7265_v44 = vunpack.i.h.bf16 %v7263_v34  ;;  %v7264_v48 = vunpack.i.l.bf16 %v7263_v34  ;;  %v7270_v49 = vunpack.i.h.bf16 %v7268_v5  ;;  %v7269_v14 = vunpack.i.l.bf16 %v7268_v5  ;;  %v7278_v51 = vpop.permute.xlu0 %7277  ;;  %v15230_v34 = vld [vmem:[#allocation37_spill] sm:$0xff] }
 0x4b6   : > { %v4895_v39 = vsel %vm2337_vm11, %v4893_v58, %v4894_v3  ;;  %v4900_v26 = vsel %vm2337_vm11, %v4894_v3, %v4899_v19  ;;  %v4584_v63 = vsel %vm2192_vm13, %v4536_v54, %v7230_v23  ;;  %v7280_v45 = vunpack.i.h.bf16 %v7278_v51  ;;  %v15224_v54 = vld [vmem:[#allocation30_spill] sm:$0xff] }
 0x4b7   : > { %v4585_v20 = vsel %vm2192_vm13, %v4537_v59, %v7264_v48  ;;  %v4586_v13 = vsel %vm2192_vm13, %v4538_v30, %v7265_v44  ;;  %v5037_v40 = vpack.c.bf16 %v4900_v26, %v4895_v39  ;;  %v4633_v55 = vsel %vm4599_vm2, %v4584_v63, %v7240_v31  ;;  %v13384_v16 = vpop.permute.xlu1 %7282  ;;  %v7529_v19 = vld [vmem:[#allocation3 + $0x180] sm:$0xff]  ;;  %v15233_v39 = vld [vmem:[#allocation132_spill] sm:$0xff] }
 0x4b8   : > { %v7279_v35 = vunpack.i.l.bf16 %v7278_v51  ;;  %v4681_v43 = vsel %vm1996_vm8, %v4633_v55, %v7250_v53  ;;  %v7275_v1 = vunpack.i.h.bf16 %v7273_v29  ;;  %v7274_v38 = vunpack.i.l.bf16 %v7273_v29  ;;  %v15231_v53 = vld [vmem:[#allocation107_spill] sm:$0xff] }
 0x4b9   : > { %5289 = vmatmul.mubr.bf16.gmra.mrb[40].mxu1 %v5037_v40  ;;  %v4730_v32 = vsel %vm4696_vm7, %v4681_v43, %v7260_v42  ;;  %v4634_v21 = vsel %vm4599_vm2, %v4585_v20, %v7269_v14  ;;  %v4635_v56 = vsel %vm4599_vm2, %v4586_v13, %v7270_v49  ;;  %v15225_v24 = vpack.c.bf16 %v15223_v25, %v15224_v54  ;;  %v7288_v7 = vpop.permute.xlu0 %7287  ;;  %v7530_v49 = vld [vmem:[#allocation3 + $0x190] sm:$0xff]  ;;  %v15234_v13 = vld [vmem:[#allocation126_spill] sm:$0xff] }
 0x4ba   : > { %v4682_v18 = vsel %vm1996_vm8, %v4634_v21, %v7274_v38  ;;  %v4683_v50 = vsel %vm1996_vm8, %v4635_v56, %v7275_v1  ;;  %v4903_v33 = vrot.slane %v4730_v32, 7  ;;  %v6780_v41 = vunpack.i.h.bf16 %v15226_v52 }
 0x4bb   : > { %5551 = vmatprep.mubr.msk.bf16.mxu1 %vm2094_vm5, %v15225_v24  ;;  %v4731_v12 = vsel %vm4696_vm7, %v4682_v18, %v7279_v35  ;;  %v4732_v0 = vsel %vm4696_vm7, %v4683_v50, %v7280_v45  ;;  %v6779_v36 = vunpack.i.l.bf16 %v15226_v52  ;;  %v6784_v2 = vunpack.i.l.bf16 %v15227_v60  ;;  %v13393_v10 = vpop.permute.xlu1 %7292 }
 0x4bc   : > { %v4904_v17 = vrot.slane %v4731_v12, 7  ;;  %v4909_v11 = vrot.slane %v4732_v0, 7  ;;  %v6785_v15 = vunpack.i.h.bf16 %v15227_v60  ;;  %v6789_v28 = vunpack.i.l.bf16 %v15228_v8  ;;  %v15235_v0 = vld [vmem:[#allocation19_spill] sm:$0xff] }
 0x4bd   : > { %v7298_v22 = vpop.permute.xlu0 %7297  ;;  %v6919_v61 = vunpack.i.l.bf16 %v15229_v47  ;;  %v4443_v23 = vsel %vm2094_vm5, %v7528_v57, %v6780_v41  ;;  %v4442_v9 = vsel %vm2094_vm5, %v7529_v19, %v6779_v36  ;;  %v6920_v62 = vunpack.i.h.bf16 %v15229_v47  ;;  %v7533_v47 = vld [vmem:[#allocation3 + $0x1a8] sm:$0xff] }
 0x4be   : > { %v4905_v46 = vsel %vm2337_vm11, %v4903_v33, %v4904_v17  ;;  %v4910_v4 = vsel %vm2337_vm11, %v4904_v17, %v4909_v11  ;;  %v7289_v5 = vunpack.i.l.bf16 %v7288_v7  ;;  %v4491_v30 = vsel %vm4454_vm1, %v4442_v9, %v6784_v2 }
 0x4bf   : > { %v5039_v59 = vpack.c.bf16 %v4910_v4, %v4905_v46  ;;  %v6790_v31 = vunpack.i.h.bf16 %v15228_v8  ;;  %v7290_v58 = vunpack.i.h.bf16 %v7288_v7  ;;  %v7299_v3 = vunpack.i.l.bf16 %v7298_v22 }
 0x4c0   : > { %v15232_v42 = vpack.c.bf16 %v15230_v34, %v15231_v53  ;;  %v4492_v48 = vsel %vm4454_vm1, %v4443_v23, %v6785_v15  ;;  %v4444_v14 = vsel %vm2094_vm5, %v7530_v49, %v6789_v28  ;;  %v6800_v26 = vunpack.i.h.bf16 %v15233_v39  ;;  %v13408_v20 = vpop.permute.xlu1 %7302  ;;  %v7531_v15 = vld [vmem:[#allocation3 + $0x1a0] sm:$0xff]  ;;  %v7532_v28 = vld [vmem:[#allocation3 + $0x1b0] sm:$0xff] }
 0x4c1   : > { %5297 = vmatmul.mubr.bf16.gmra.mrb[44].mxu1 %v5039_v59  ;;  %v7308_v44 = vpop.permute.xlu0 %7307  ;;  %v7300_v63 = vunpack.i.h.bf16 %v7298_v22  ;;  %v6794_v51 = vunpack.i.l.bf16 %v15234_v13  ;;  %v4539_v40 = vsel %vm1898_vm6, %v4491_v30, %v6919_v61  ;;  %v6799_v35 = vunpack.i.l.bf16 %v15233_v39 }
 0x4c2   : > { %5552 = vmatprep.mubr.msk.bf16.mxu1 %vm2094_vm5, %v15232_v42  ;;  %v7310_v55 = vunpack.i.h.bf16 %v7308_v44  ;;  %v7309_v45 = vunpack.i.l.bf16 %v7308_v44  ;;  %v4540_v29 = vsel %vm1898_vm6, %v4492_v48, %v6920_v62  ;;  %v4587_v43 = vsel %vm2192_vm13, %v4539_v40, %v7289_v5 }
 0x4c3   : > { %v7284_v1 = vunpack.i.l.bf16 %v13384_v16  ;;  %v6795_v38 = vunpack.i.h.bf16 %v15234_v13  ;;  %v4588_v32 = vsel %vm2192_vm13, %v4540_v29, %v7290_v58  ;;  %v4636_v21 = vsel %vm4599_vm2, %v4587_v43, %v7299_v3 }
 0x4c4   : > { %v7294_v56 = vunpack.i.l.bf16 %v13393_v10  ;;  %v4637_v54 = vsel %vm4599_vm2, %v4588_v32, %v7300_v63  ;;  %v7304_v24 = vunpack.i.l.bf16 %v13408_v20  ;;  %v7313_v7 = vpop.permute.xlu1 %7312  ;;  %v4493_v12 = vsel %vm4454_vm1, %v4444_v14, %v6794_v51 }
 0x4c5   : > { %v7318_v25 = vpop.permute.xlu0 %7317  ;;  %v6804_v33 = vunpack.i.l.bf16 %v15235_v0  ;;  %v4684_v17 = vsel %vm1996_vm8, %v4636_v21, %v7309_v45  ;;  %v4685_v11 = vsel %vm1996_vm8, %v4637_v54, %v7310_v55  ;;  %v4541_v52 = vsel %vm1898_vm6, %v4493_v12, %v7284_v1 }
 0x4c6   : > { %v7320_v18 = vunpack.i.h.bf16 %v7318_v25  ;;  %v7319_v50 = vunpack.i.l.bf16 %v7318_v25  ;;  %v7314_v60 = vunpack.i.l.bf16 %v7313_v7  ;;  %v6805_v2 = vunpack.i.h.bf16 %v15235_v0  ;;  %v15236_v0 = vld [vmem:[#allocation38_spill] sm:$0xff] }
 0x4c7   : > { %v7285_v22 = vunpack.i.h.bf16 %v13384_v16  ;;  %v4589_v46 = vsel %vm2192_vm13, %v4541_v52, %v7294_v56  ;;  %v4445_v8 = vsel %vm2094_vm5, %v7531_v15, %v6790_v31  ;;  %v4447_v59 = vsel %vm2094_vm5, %v7532_v28, %v6800_v26 }
 0x4c8   : > { %v4733_v41 = vsel %vm4696_vm7, %v4684_v17, %v7319_v50  ;;  %v4734_v36 = vsel %vm4696_vm7, %v4685_v11, %v7320_v18  ;;  %v4446_v61 = vsel %vm2094_vm5, %v7533_v47, %v6799_v35  ;;  %v4638_v57 = vsel %vm4599_vm2, %v4589_v46, %v7304_v24  ;;  %v7323_v23 = vpop.permute.xlu1 %7322 }
 0x4c9   : > { %v7328_v4 = vpop.permute.xlu0 %7327  ;;  %v4913_v19 = vrot.slane %v4733_v41, 7  ;;  %v4914_v9 = vrot.slane %v4734_v36, 7  ;;  %v7324_v5 = vunpack.i.l.bf16 %v7323_v23  ;;  %v4494_v16 = vsel %vm4454_vm1, %v4445_v8, %v6795_v38 }
 0x4ca   : > { %v7330_v62 = vunpack.i.h.bf16 %v7328_v4  ;;  %v4495_v30 = vsel %vm4454_vm1, %v4446_v61, %v6804_v33  ;;  %v4686_v58 = vsel %vm1996_vm8, %v4638_v57, %v7314_v60  ;;  %v7329_v31 = vunpack.i.l.bf16 %v7328_v4  ;;  %v15237_v33 = vld [vmem:[#allocation35_spill] sm:$0xff]  ;;  %v15239_v61 = vld [vmem:[#allocation24_spill] sm:$0xff] }
 0x4cb   : > { %v4496_v3 = vsel %vm4454_vm1, %v4447_v59, %v6805_v2  ;;  %v4542_v34 = vsel %vm1898_vm6, %v4494_v16, %v7285_v22  ;;  %v7295_v53 = vunpack.i.h.bf16 %v13393_v10  ;;  %v4735_v42 = vsel %vm4696_vm7, %v4686_v58, %v7324_v5  ;;  %v15243_v58 = vld [vmem:[#allocation142_spill] sm:$0xff] }
 0x4cc   : > { %v7305_v48 = vunpack.i.h.bf16 %v13408_v20  ;;  %v7315_v49 = vunpack.i.h.bf16 %v7313_v7  ;;  %v7325_v14 = vunpack.i.h.bf16 %v7323_v23  ;;  %v4919_v39 = vrot.slane %v4735_v42, 7  ;;  %v15240_v23 = vld [vmem:[#allocation131_spill] sm:$0xff]  ;;  %v7534_v42 = vld [vmem:[#allocation3 + $0x1d0] sm:$0xff] }
 0x4cd   : > { %v7338_v44 = vpop.permute.xlu0 %7337  ;;  %v7333_v26 = vpop.permute.xlu1 %7332  ;;  %v4544_v63 = vsel %vm1898_vm6, %v4496_v3, %v7330_v62  ;;  %v4915_v40 = vsel %vm2337_vm11, %v4913_v19, %v4914_v9  ;;  %v4543_v55 = vsel %vm1898_vm6, %v4495_v30, %v7329_v31  ;;  %v4590_v29 = vsel %vm2192_vm13, %v4542_v34, %v7295_v53  ;;  %v15242_v30 = vld [vmem:[#allocation143_spill] sm:$0xff] }
 0x4ce   : > { %v7335_v13 = vunpack.i.h.bf16 %v7333_v26  ;;  %v7334_v51 = vunpack.i.l.bf16 %v7333_v26  ;;  %v7340_v45 = vunpack.i.h.bf16 %v7338_v44  ;;  %v7339_v35 = vunpack.i.l.bf16 %v7338_v44  ;;  %v7535_v26 = vld [vmem:[#allocation3 + $0x1c8] sm:$0xff] }
 0x4cf   : > { %v4920_v10 = vsel %vm2337_vm11, %v4914_v9, %v4919_v39  ;;  %v4639_v32 = vsel %vm4599_vm2, %v4590_v29, %v7305_v48  ;;  %v15238_v17 = vpack.c.bf16 %v15236_v0, %v15237_v33  ;;  %v6829_v57 = vunpack.i.l.bf16 %v15239_v61  ;;  %v15241_v9 = vld [vmem:[#allocation20_spill] sm:$0xff]  ;;  %v15245_v48 = vld [vmem:[#allocation25_spill] sm:$0xff] }
 0x4d0   : > { %v4592_v20 = vsel %vm2192_vm13, %v4544_v63, %v7335_v13  ;;  %v4591_v43 = vsel %vm2192_vm13, %v4543_v55, %v7334_v51  ;;  %v5041_v38 = vpack.c.bf16 %v4920_v10, %v4915_v40  ;;  %v4687_v54 = vsel %vm1996_vm8, %v4639_v32, %v7315_v49  ;;  %v7536_v40 = vld [vmem:[#allocation3 + $0x1c0] sm:$0xff] }
 0x4d1   : > { %v7348_v1 = vpop.permute.xlu0 %7347  ;;  %v7343_v25 = vpop.permute.xlu1 %7342  ;;  %v4736_v50 = vsel %vm4696_vm7, %v4687_v54, %v7325_v14  ;;  %v4640_v7 = vsel %vm4599_vm2, %v4591_v43, %v7339_v35  ;;  %v4641_v12 = vsel %vm4599_vm2, %v4592_v20, %v7340_v45  ;;  %v6820_v19 = vunpack.i.h.bf16 %v15240_v23 }
 0x4d2   : > { %v7350_v21 = vunpack.i.h.bf16 %v7348_v1  ;;  %v7349_v56 = vunpack.i.l.bf16 %v7348_v1  ;;  %v7345_v24 = vunpack.i.h.bf16 %v7343_v25  ;;  %v7344_v18 = vunpack.i.l.bf16 %v7343_v25  ;;  %5305 = vmatmul.mubr.bf16.gmra.mrb[48].mxu1 %v5041_v38 }
 0x4d3   : > { %5553 = vmatprep.mubr.msk.bf16.mxu1 %vm2094_vm5, %v15238_v17  ;;  %v4923_v22 = vrot.slane %v4736_v50, 7  ;;  %v6834_v62 = vunpack.i.l.bf16 %v15241_v9  ;;  %v6819_v5 = vunpack.i.l.bf16 %v15240_v23  ;;  %v15244_v31 = vpack.c.bf16 %v15242_v30, %v15243_v58 }
 0x4d4   : > { %v4688_v11 = vsel %vm1996_vm8, %v4640_v7, %v7344_v18  ;;  %v4689_v52 = vsel %vm1996_vm8, %v4641_v12, %v7345_v24  ;;  %v4450_v44 = vsel %vm2094_vm5, %v7534_v42, %v6829_v57  ;;  %v6825_v49 = vunpack.i.h.bf16 %v15245_v48  ;;  %v15246_v12 = vld [vmem:[#allocation10_spill] sm:$0xff] }
 0x4d5   : > { %v13462_v41 = vpop.permute.xlu0 %7357  ;;  %v4737_v36 = vsel %vm4696_vm7, %v4688_v11, %v7349_v56  ;;  %v4738_v60 = vsel %vm4696_vm7, %v4689_v52, %v7350_v21  ;;  %v6824_v14 = vunpack.i.l.bf16 %v15245_v48  ;;  %v4449_v63 = vsel %vm2094_vm5, %v7535_v26, %v6820_v19 }
 0x4d6   : > { %v7353_v2 = vpop.permute.xlu1 %7352  ;;  %v4924_v46 = vrot.slane %v4737_v36, 7  ;;  %v4929_v4 = vrot.slane %v4738_v60, 7  ;;  %v7359_v16 = vunpack.i.l.bf16 %v13462_v41  ;;  %v4499_v13 = vsel %vm4454_vm1, %v4450_v44, %v6834_v62  ;;  %v15247_v36 = vld [vmem:[#allocation15_spill] sm:$0xff] }
 0x4d7   : > { %v7354_v51 = vunpack.i.l.bf16 %v7353_v2  ;;  %v4448_v55 = vsel %vm2094_vm5, %v7536_v40, %v6819_v5  ;;  %v7355_v35 = vunpack.i.h.bf16 %v7353_v2  ;;  %v4498_v56 = vsel %vm4454_vm1, %v4449_v63, %v6825_v49  ;;  %v7537_v5 = vld [vmem:[#allocation3 + $0x1f0] sm:$0xff] }
 0x4d8   : > { %v4925_v8 = vsel %vm2337_vm11, %v4923_v22, %v4924_v46  ;;  %v4930_v28 = vsel %vm2337_vm11, %v4924_v46, %v4929_v4  ;;  %v4547_v45 = vsel %vm1898_vm6, %v4499_v13, %v7359_v16  ;;  %v4497_v21 = vsel %vm4454_vm1, %v4448_v55, %v6824_v14 }
 0x4d9   : > { %v13466_v15 = vpop.permute.xlu0 %7367  ;;  %v5043_v47 = vpack.c.bf16 %v4930_v28, %v4925_v8  ;;  %v4545_v24 = vsel %vm1898_vm6, %v4497_v21, %v7354_v51  ;;  %v6855_v0 = vunpack.i.h.bf16 %v15246_v12  ;;  %v6854_v33 = vunpack.i.l.bf16 %v15246_v12 }
 0x4da   : > { %v7369_v34 = vunpack.i.l.bf16 %v13466_v15  ;;  %v4546_v17 = vsel %vm1898_vm6, %v4498_v56, %v7355_v35  ;;  %v6860_v60 = vunpack.i.h.bf16 %v15247_v36  ;;  %v6859_v2 = vunpack.i.l.bf16 %v15247_v36 }
 0x4db   : > { %v7363_v59 = vpop.permute.xlu1 %7362  ;;  %5313 = vmatmul.mubr.bf16.gmra.mrb[52].mxu1 %v5043_v47  ;;  %v6830_v57 = vunpack.i.h.bf16 %v15239_v61  ;;  %v6835_v62 = vunpack.i.h.bf16 %v15241_v9  ;;  %v4453_v16 = vsel %vm2094_vm5, %v7537_v5, %v6855_v0  ;;  %v7360_v40 = vunpack.i.h.bf16 %v13462_v41 }
 0x4dc   : > { %5554 = vmatprep.mubr.msk.bf16.mxu1 %vm2094_vm5, %v15244_v31  ;;  %v7364_v10 = vunpack.i.l.bf16 %v7363_v59  ;;  %v4595_v20 = vsel %vm2192_vm13, %v4547_v45, %v7369_v34  ;;  %v7365_v43 = vunpack.i.h.bf16 %v7363_v59  ;;  %v7538_v34 = vld [vmem:[#allocation3 + $0x1e8] sm:$0xff]  ;;  %v4502_v14 = vsel %vm4454_vm1, %v4453_v16, %v6860_v60 }
 0x4de   : > { %v13479_v3 = vpop.permute.xlu0 %7377  ;;  %v4593_v11 = vsel %vm2192_vm13, %v4545_v24, %v7364_v10  ;;  %v4594_v22 = vsel %vm2192_vm13, %v4546_v17, %v7365_v43 }
 0x4df   : > { %v7373_v53 = vpop.permute.xlu1 %7372  ;;  %v7379_v39 = vunpack.i.l.bf16 %v13479_v3  ;;  %v7380_v56 = vunpack.i.h.bf16 %v13479_v3 }
 0x4e0   : > { %v7374_v1 = vunpack.i.l.bf16 %v7373_v53  ;;  %v7375_v25 = vunpack.i.h.bf16 %v7373_v53  ;;  %v4452_v53 = vsel %vm2094_vm5, %v7538_v34, %v6854_v33 }
 0x4e1   : > { %v4644_v54 = vsel %vm4599_vm2, %v4595_v20, %v7379_v39  ;;  %v4501_v49 = vsel %vm4454_vm1, %v4452_v53, %v6859_v2  ;;  %v7539_v20 = vld [vmem:[#allocation3 + $0x1e0] sm:$0xff] }
 0x4e2   : > { %v13490_v29 = vpop.permute.xlu0 %7387  ;;  %v4642_v46 = vsel %vm4599_vm2, %v4593_v11, %v7374_v1  ;;  %v4643_v8 = vsel %vm4599_vm2, %v4594_v22, %v7375_v25  ;;  %v4451_v43 = vsel %vm2094_vm5, %v7539_v20, %v6830_v57  ;;  %v7370_v1 = vunpack.i.h.bf16 %v13466_v15 }
 0x4e3   : > { %v7389_v38 = vunpack.i.l.bf16 %v13490_v29  ;;  %v4500_v21 = vsel %vm4454_vm1, %v4451_v43, %v6835_v62  ;;  %v7390_v41 = vunpack.i.h.bf16 %v13490_v29 }
 0x4e4   : > { %v7383_v32 = vpop.permute.xlu1 %7382  ;;  %v4548_v15 = vsel %vm1898_vm6, %v4500_v21, %v7360_v40 }
 0x4e5   : > { %v7385_v18 = vunpack.i.h.bf16 %v7383_v32  ;;  %v7384_v50 = vunpack.i.l.bf16 %v7383_v32  ;;  %v4692_v7 = vsel %vm1996_vm8, %v4644_v54, %v7389_v38  ;;  %v4596_v0 = vsel %vm2192_vm13, %v4548_v15, %v7370_v1 }
 0x4e6   : > { %v4345_v52 = vpop.permute.xlu0 %4344  ;;  %v4645_v17 = vsel %vm4599_vm2, %v4596_v0, %v7380_v56 }
 0x4e7   : > { %v4741_v28 = vsel %vm4696_vm7, %v4692_v7, %v4345_v52  ;;  %v4690_v23 = vsel %vm1996_vm8, %v4642_v46, %v7384_v50  ;;  %v4691_v19 = vsel %vm1996_vm8, %v4643_v8, %v7385_v18  ;;  %v4693_v37 = vsel %vm1996_vm8, %v4645_v17, %v7390_v41 }
 0x4e8   : > { %v7393_v4 = vpop.permute.xlu1 %7392  ;;  %v4939_v42 = vrot.slane %v4741_v28, 7 }
 0x4e9   : > { %v7395_v59 = vunpack.i.h.bf16 %v7393_v4  ;;  %v7394_v47 = vunpack.i.l.bf16 %v7393_v4 }
 0x4eb   : > { %v4739_v30 = vsel %vm4696_vm7, %v4690_v23, %v7394_v47  ;;  %v4740_v58 = vsel %vm4696_vm7, %v4691_v19, %v7395_v59  ;;  %v7403_v31 = vpop.permute.xlu0 %7402  ;;  %v13551_v59 = vld [vmem:[%s13710_s6] ss:$0 sm:$0xff] }
 0x4ec   : > { %v4933_v44 = vrot.slane %v4739_v30, 7  ;;  %v4934_v61 = vrot.slane %v4740_v58, 7  ;;  %v7398_v48 = vpop.permute.xlu1 %7397  ;;  %v7405_v26 = vunpack.i.h.bf16 %v7403_v31  ;;  %v7404_v63 = vunpack.i.l.bf16 %v7403_v31 }
 0x4ed   : > { %v7400_v9 = vunpack.i.h.bf16 %v7398_v48  ;;  %v7399_v39 = vunpack.i.l.bf16 %v7398_v48 }
 0x4ee   : > { %v4935_v13 = vsel %vm2337_vm11, %v4933_v44, %v4934_v61  ;;  %v4940_v51 = vsel %vm2337_vm11, %v4934_v61, %v4939_v42 }
 0x4ef   : > { %v4549_v55 = vsel %vm1898_vm6, %v4501_v49, %v7399_v39  ;;  %v4550_v45 = vsel %vm1898_vm6, %v4502_v14, %v7400_v9  ;;  %v7413_v35 = vpop.permute.xlu0 %7412  ;;  %v5045_v10 = vpack.c.bf16 %v4940_v51, %v4935_v13 }
 0x4f0   : > { %v7415_v38 = vunpack.i.h.bf16 %v7413_v35  ;;  %v7414_v24 = vunpack.i.l.bf16 %v7413_v35  ;;  %v4597_v18 = vsel %vm2192_vm13, %v4549_v55, %v7404_v63  ;;  %v4598_v50 = vsel %vm2192_vm13, %v4550_v45, %v7405_v26 }
 0x4f1   : > { %v7408_v32 = vpop.permute.xlu1 %7407  ;;  %5321 = vmatmul.mubr.bf16.gmra.mrb[56].mxu1 %v5045_v10 }
 0x4f2   : > { %v7410_v25 = vunpack.i.h.bf16 %v7408_v32  ;;  %v7409_v54 = vunpack.i.l.bf16 %v7408_v32  ;;  %5555 = vmatprep.mubr.msk.bf16.mxu1 %vm2094_vm5, %v5048_v27 }
 0x4f3   : > { %v4351_v3 = vpop.permute.xlu0 %4350 }
 0x4f4   : > { %v4646_v7 = vsel %vm4599_vm2, %v4597_v18, %v7409_v54  ;;  %v4647_v12 = vsel %vm4599_vm2, %v4598_v50, %v7410_v25 }
 0x4f5   : > { %v4695_v29 = vsel %vm1996_vm8, %v4647_v12, %v7415_v38  ;;  %v7418_v33 = vpop.permute.xlu1 %7417  ;;  %v4694_v27 = vsel %vm1996_vm8, %v4646_v7, %v7414_v24 }
 0x4f6   : > { %v4744_v11 = vsel %vm4696_vm7, %v4695_v29, %v4351_v3  ;;  %v7420_v52 = vunpack.i.h.bf16 %v7418_v33  ;;  %v7419_v6 = vunpack.i.l.bf16 %v7418_v33 }
 0x4f7   : > { %v4949_v2 = vrot.slane %v4744_v11, 7 }
 0x4f8   : > { %v4742_v36 = vsel %vm4696_vm7, %v4693_v37, %v7419_v6  ;;  %v4743_v60 = vsel %vm4696_vm7, %v4694_v27, %v7420_v52 }
 0x4f9   : > { %v4943_v22 = vrot.slane %v4742_v36, 7  ;;  %v4944_v46 = vrot.slane %v4743_v60, 7 }
 0x4fb   : > { %v4945_v4 = vsel %vm2337_vm11, %v4943_v22, %v4944_v46  ;;  %v4950_v8 = vsel %vm2337_vm11, %v4944_v46, %v4949_v2 }
 0x4fc   : > { %v5047_v28 = vpack.c.bf16 %v4950_v8, %v4945_v4 }
 0x4fe   : > { %5329 = vmatmul.mubr.bf16.gmra.mrb[60].mxu1 %v5047_v28 }
 0x50c   : > { %v5210_v47 = vpop.f32.mrb[0].mxu1 }
 0x50d   : > { %v5211_v57 = vadd.f32 %v13551_v59, %v5210_v47  ;;  %v5212_v23 = vpop.f32.mrb[1].mxu1 }
 0x50e   : > { %v5213_v19 = vpop.f32.mrb[2].mxu1 }
 0x50f   : > { %v5337_v62 = vmax.f32 %v5211_v57, 0.0  ;;  %v5214_v5 = vadd.f32 %v13551_v59, %v5213_v19  ;;  %v5215_v16 = vpop.f32.mrb[3].mxu1 }
 0x511   : > { %5369 = vst.msk [vmem:[%s13557_s18] sm:$0xff] %vm2094_vm5, %v5337_v62  ;;  %v5338_v30 = vmax.f32 %v5214_v5, 0.0 }
 0x513   : > { %5370 = vst.msk [vmem:[%s13557_s18 + $0x8] sm:$0xff] %vm2094_vm5, %v5338_v30 }
 0x515   : > { %v5218_v58 = vpop.f32.mrb[4].mxu1 }
 0x516   : > { %v5219_v31 = vadd.f32 %v13551_v59, %v5218_v58  ;;  %v5220_v34 = vpop.f32.mrb[5].mxu1 }
 0x517   : > { %v5221_v53 = vpop.f32.mrb[6].mxu1 }
 0x518   : > { %v5339_v42 = vmax.f32 %v5219_v31, 0.0  ;;  %v5222_v44 = vadd.f32 %v13551_v59, %v5221_v53  ;;  %v5223_v61 = vpop.f32.mrb[7].mxu1 }
 0x51a   : > { %5371 = vst.msk [vmem:[%s13557_s18 + $0x10] sm:$0xff] %vm2094_vm5, %v5339_v42  ;;  %v5340_v48 = vmax.f32 %v5222_v44, 0.0 }
 0x51c   : > { %5372 = vst.msk [vmem:[%s13557_s18 + $0x18] sm:$0xff] %vm2094_vm5, %v5340_v48 }
 0x526   : > { %v5226_v49 = vpop.f32.mrb[8].mxu1 }
 0x527   : > { %v5227_v14 = vadd.f32 %v13551_v59, %v5226_v49  ;;  %v5228_v9 = vpop.f32.mrb[9].mxu1 }
 0x528   : > { %v5229_v39 = vpop.f32.mrb[10].mxu1 }
 0x529   : > { %v5341_v26 = vmax.f32 %v5227_v14, 0.0  ;;  %v5230_v63 = vadd.f32 %v13551_v59, %v5229_v39  ;;  %v5231_v13 = vpop.f32.mrb[11].mxu1 }
 0x52b   : > { %5373 = vst.msk [vmem:[%s13557_s18 + $0x20] sm:$0xff] %vm2094_vm5, %v5341_v26  ;;  %v5342_v51 = vmax.f32 %v5230_v63, 0.0 }
 0x52d   : > { %5374 = vst.msk [vmem:[%s13557_s18 + $0x28] sm:$0xff] %vm2094_vm5, %v5342_v51 }
 0x530   : > { %v5234_v40 = vpop.f32.mrb[12].mxu1 }
 0x531   : > { %v5235_v55 = vadd.f32 %v13551_v59, %v5234_v40  ;;  %v5236_v45 = vpop.f32.mrb[13].mxu1 }
 0x532   : > { %v5237_v35 = vpop.f32.mrb[14].mxu1 }
 0x533   : > { %v5343_v10 = vmax.f32 %v5235_v55, 0.0  ;;  %v5238_v20 = vadd.f32 %v13551_v59, %v5237_v35  ;;  %v5239_v43 = vpop.f32.mrb[15].mxu1 }
 0x535   : > { %5375 = vst.msk [vmem:[%s13557_s18 + $0x30] sm:$0xff] %vm2094_vm5, %v5343_v10  ;;  %v5344_v1 = vmax.f32 %v5238_v20, 0.0 }
 0x537   : > { %5376 = vst.msk [vmem:[%s13557_s18 + $0x38] sm:$0xff] %vm2094_vm5, %v5344_v1 }
 0x541   : > { %v5242_v38 = vpop.f32.mrb[16].mxu1 }
 0x542   : > { %v5243_v32 = vadd.f32 %v13551_v59, %v5242_v38  ;;  %v5244_v21 = vpop.f32.mrb[17].mxu1 }
 0x543   : > { %v5245_v56 = vpop.f32.mrb[18].mxu1 }
 0x544   : > { %v5345_v25 = vmax.f32 %v5243_v32, 0.0  ;;  %v5246_v54 = vadd.f32 %v13551_v59, %v5245_v56  ;;  %v5247_v41 = vpop.f32.mrb[19].mxu1 }
 0x546   : > { %5377 = vst.msk [vmem:[%s13557_s18 + $0x40] sm:$0xff] %vm2094_vm5, %v5345_v25  ;;  %v5346_v24 = vmax.f32 %v5246_v54, 0.0 }
 0x548   : > { %5378 = vst.msk [vmem:[%s13557_s18 + $0x48] sm:$0xff] %vm2094_vm5, %v5346_v24 }
 0x54b   : > { %v5250_v18 = vpop.f32.mrb[20].mxu1 }
 0x54c   : > { %v5251_v50 = vadd.f32 %v13551_v59, %v5250_v18  ;;  %v5252_v15 = vpop.f32.mrb[21].mxu1 }
 0x54d   : > { %v5253_v7 = vpop.f32.mrb[22].mxu1 }
 0x54e   : > { %v5347_v3 = vmax.f32 %v5251_v50, 0.0  ;;  %v5254_v12 = vadd.f32 %v13551_v59, %v5253_v7  ;;  %v5255_v0 = vpop.f32.mrb[23].mxu1 }
 0x550   : > { %5379 = vst.msk [vmem:[%s13557_s18 + $0x50] sm:$0xff] %vm2094_vm5, %v5347_v3  ;;  %v5348_v29 = vmax.f32 %v5254_v12, 0.0 }
 0x552   : > { %5380 = vst.msk [vmem:[%s13557_s18 + $0x58] sm:$0xff] %vm2094_vm5, %v5348_v29 }
 0x55b   : > { %v5258_v33 = vpop.f32.mrb[24].mxu1 }
 0x55c   : > { %v5259_v17 = vadd.f32 %v13551_v59, %v5258_v33  ;;  %v5260_v11 = vpop.f32.mrb[25].mxu1 }
 0x55d   : > { %v5261_v52 = vpop.f32.mrb[26].mxu1 }
 0x55e   : > { %v5349_v6 = vmax.f32 %v5259_v17, 0.0  ;;  %v5262_v37 = vadd.f32 %v13551_v59, %v5261_v52  ;;  %v5263_v27 = vpop.f32.mrb[27].mxu1 }
 0x560   : > { %5381 = vst.msk [vmem:[%s13557_s18 + $0x60] sm:$0xff] %vm2094_vm5, %v5349_v6  ;;  %v5350_v36 = vmax.f32 %v5262_v37, 0.0 }
 0x562   : > { %5382 = vst.msk [vmem:[%s13557_s18 + $0x68] sm:$0xff] %vm2094_vm5, %v5350_v36 }
 0x564   : > { %v5266_v60 = vpop.f32.mrb[28].mxu1 }
 0x565   : > { %v5267_v2 = vadd.f32 %v13551_v59, %v5266_v60  ;;  %v5268_v22 = vpop.f32.mrb[29].mxu1 }
 0x566   : > { %v5269_v46 = vpop.f32.mrb[30].mxu1 }
 0x567   : > { %v5351_v4 = vmax.f32 %v5267_v2, 0.0  ;;  %v5270_v8 = vadd.f32 %v13551_v59, %v5269_v46  ;;  %v5271_v28 = vpop.f32.mrb[31].mxu1 }
 0x569   : > { %5383 = vst.msk [vmem:[%s13557_s18 + $0x70] sm:$0xff] %vm2094_vm5, %v5351_v4  ;;  %v5352_v47 = vmax.f32 %v5270_v8, 0.0 }
 0x56b   : > { %5384 = vst.msk [vmem:[%s13557_s18 + $0x78] sm:$0xff] %vm2094_vm5, %v5352_v47 }
 0x574   : > { %v5274_v57 = vpop.f32.mrb[32].mxu1 }
 0x575   : > { %v5275_v23 = vadd.f32 %v13551_v59, %v5274_v57  ;;  %v5276_v19 = vpop.f32.mrb[33].mxu1 }
 0x576   : > { %v5277_v62 = vpop.f32.mrb[34].mxu1 }
 0x577   : > { %v5353_v5 = vmax.f32 %v5275_v23, 0.0  ;;  %v5278_v16 = vadd.f32 %v13551_v59, %v5277_v62  ;;  %v5279_v30 = vpop.f32.mrb[35].mxu1 }
 0x579   : > { %5385 = vst.msk [vmem:[%s13557_s18 + $0x80] sm:$0xff] %vm2094_vm5, %v5353_v5  ;;  %v5354_v58 = vmax.f32 %v5278_v16, 0.0 }
 0x57b   : > { %5386 = vst.msk [vmem:[%s13557_s18 + $0x88] sm:$0xff] %vm2094_vm5, %v5354_v58 }
 0x57d   : > { %v5282_v31 = vpop.f32.mrb[36].mxu1 }
 0x57e   : > { %v5283_v34 = vadd.f32 %v13551_v59, %v5282_v31  ;;  %v5284_v53 = vpop.f32.mrb[37].mxu1 }
 0x57f   : > { %v5285_v42 = vpop.f32.mrb[38].mxu1 }
 0x580   : > { %v5355_v44 = vmax.f32 %v5283_v34, 0.0  ;;  %v5286_v61 = vadd.f32 %v13551_v59, %v5285_v42  ;;  %v5287_v48 = vpop.f32.mrb[39].mxu1 }
 0x582   : > { %5387 = vst.msk [vmem:[%s13557_s18 + $0x90] sm:$0xff] %vm2094_vm5, %v5355_v44  ;;  %v5356_v49 = vmax.f32 %v5286_v61, 0.0 }
 0x584   : > { %5388 = vst.msk [vmem:[%s13557_s18 + $0x98] sm:$0xff] %vm2094_vm5, %v5356_v49 }
 0x58c   : > { %v5290_v14 = vpop.f32.mrb[40].mxu1 }
 0x58d   : > { %v5291_v9 = vadd.f32 %v13551_v59, %v5290_v14  ;;  %v5292_v39 = vpop.f32.mrb[41].mxu1 }
 0x58e   : > { %v5293_v26 = vpop.f32.mrb[42].mxu1 }
 0x58f   : > { %v5357_v63 = vmax.f32 %v5291_v9, 0.0  ;;  %v5294_v13 = vadd.f32 %v13551_v59, %v5293_v26  ;;  %v5295_v51 = vpop.f32.mrb[43].mxu1 }
 0x591   : > { %5389 = vst.msk [vmem:[%s13557_s18 + $0xa0] sm:$0xff] %vm2094_vm5, %v5357_v63  ;;  %v5358_v40 = vmax.f32 %v5294_v13, 0.0 }
 0x593   : > { %5390 = vst.msk [vmem:[%s13557_s18 + $0xa8] sm:$0xff] %vm2094_vm5, %v5358_v40 }
 0x594   : > { %v5298_v55 = vpop.f32.mrb[44].mxu1 }
 0x595   : > { %v5299_v45 = vadd.f32 %v13551_v59, %v5298_v55  ;;  %v5300_v35 = vpop.f32.mrb[45].mxu1 }
 0x596   : > { %v5301_v10 = vpop.f32.mrb[46].mxu1 }
 0x597   : > { %v5359_v20 = vmax.f32 %v5299_v45, 0.0  ;;  %v5302_v43 = vadd.f32 %v13551_v59, %v5301_v10  ;;  %v5303_v1 = vpop.f32.mrb[47].mxu1 }
 0x599   : > { %5391 = vst.msk [vmem:[%s13557_s18 + $0xb0] sm:$0xff] %vm2094_vm5, %v5359_v20  ;;  %v5360_v38 = vmax.f32 %v5302_v43, 0.0 }
 0x59b   : > { %5392 = vst.msk [vmem:[%s13557_s18 + $0xb8] sm:$0xff] %vm2094_vm5, %v5360_v38 }
 0x5a5   : > { %v5306_v32 = vpop.f32.mrb[48].mxu1 }
 0x5a6   : > { %v5307_v21 = vadd.f32 %v13551_v59, %v5306_v32  ;;  %v5308_v56 = vpop.f32.mrb[49].mxu1 }
 0x5a7   : > { %v5309_v25 = vpop.f32.mrb[50].mxu1 }
 0x5a8   : > { %v5361_v54 = vmax.f32 %v5307_v21, 0.0  ;;  %v5310_v41 = vadd.f32 %v13551_v59, %v5309_v25  ;;  %v5311_v24 = vpop.f32.mrb[51].mxu1 }
 0x5aa   : > { %5393 = vst.msk [vmem:[%s13557_s18 + $0xc0] sm:$0xff] %vm2094_vm5, %v5361_v54  ;;  %v5362_v18 = vmax.f32 %v5310_v41, 0.0 }
 0x5ac   : > { %5394 = vst.msk [vmem:[%s13557_s18 + $0xc8] sm:$0xff] %vm2094_vm5, %v5362_v18 }
 0x5ae   : > { %v5314_v50 = vpop.f32.mrb[52].mxu1 }
 0x5af   : > { %v5315_v15 = vadd.f32 %v13551_v59, %v5314_v50  ;;  %v5316_v7 = vpop.f32.mrb[53].mxu1 }
 0x5b0   : > { %v5317_v3 = vpop.f32.mrb[54].mxu1 }
 0x5b1   : > { %v5363_v12 = vmax.f32 %v5315_v15, 0.0  ;;  %v5318_v0 = vadd.f32 %v13551_v59, %v5317_v3  ;;  %v5319_v29 = vpop.f32.mrb[55].mxu1 }
 0x5b3   : > { %5395 = vst.msk [vmem:[%s13557_s18 + $0xd0] sm:$0xff] %vm2094_vm5, %v5363_v12  ;;  %v5364_v33 = vmax.f32 %v5318_v0, 0.0 }
 0x5b5   : > { %5396 = vst.msk [vmem:[%s13557_s18 + $0xd8] sm:$0xff] %vm2094_vm5, %v5364_v33 }
 0x5c4   : > { %v5322_v17 = vpop.f32.mrb[56].mxu1 }
 0x5c5   : > { %v5323_v11 = vadd.f32 %v13551_v59, %v5322_v17  ;;  %v5324_v52 = vpop.f32.mrb[57].mxu1 }
 0x5c6   : > { %v5325_v6 = vpop.f32.mrb[58].mxu1 }
 0x5c7   : > { %v5365_v37 = vmax.f32 %v5323_v11, 0.0  ;;  %v5326_v27 = vadd.f32 %v13551_v59, %v5325_v6  ;;  %v5327_v36 = vpop.f32.mrb[59].mxu1 }
 0x5c9   : > { %5397 = vst.msk [vmem:[%s13557_s18 + $0xe0] sm:$0xff] %vm2094_vm5, %v5365_v37  ;;  %v5366_v60 = vmax.f32 %v5326_v27, 0.0 }
 0x5cb   : > { %5398 = vst.msk [vmem:[%s13557_s18 + $0xe8] sm:$0xff] %vm2094_vm5, %v5366_v60 }
 0x5d1   : > { %v5330_v2 = vpop.f32.mrb[60].mxu1 }
 0x5d2   : > { %v5331_v22 = vadd.f32 %v13551_v59, %v5330_v2  ;;  %v5332_v46 = vpop.f32.mrb[61].mxu1 }
 0x5d3   : > { %v5333_v4 = vpop.f32.mrb[62].mxu1 }
 0x5d4   : > { %v5367_v8 = vmax.f32 %v5331_v22, 0.0  ;;  %v5334_v28 = vadd.f32 %v13551_v59, %v5333_v4  ;;  %v5335_v47 = vpop.f32.mrb[63].mxu1 }
 0x5d6   : > { %5399 = vst.msk [vmem:[%s13557_s18 + $0xf0] sm:$0xff] %vm2094_vm5, %v5367_v8  ;;  %v5368_v57 = vmax.f32 %v5334_v28, 0.0 }
 0x5d8   : > { %5400 = vst.msk [vmem:[%s13557_s18 + $0xf8] sm:$0xff] %vm2094_vm5, %v5368_v57 }
 0x5d9   : > { %7583 = shalt.err (!%p7580_p2)
}
 0x5da   : > { %s7584_s9 = scalar_lea.hbm %s13654_s15, 4096  ;;  %s7588_s18 = scalar_lea.hbm %s13711_s7, 8192 }
 0x5db   : > { %p7585_p4 = scmp.ne.s32.totalorder %s13654_s15, %s7584_s9  ;;  %p7589_p9 = scmp.lt.u32.totalorder %s13654_s15, %s13711_s7 }
 0x5dc   : > { %p7590_p1 = scmp.lt.u32.totalorder %s7588_s18, %s7584_s9  ;;  %p7592_p6 = scmp.lt.u32.totalorder %s7584_s9, %s13654_s15 }
 0x5dd   : > { %p7586_p5 = pnand %p7585_p4, %p15248_p11 }
 0x5de   : > { %p7591_p3 = por %p7590_p1, %p7589_p9 }
 0x5df   : > { %p7587_p7 = pneg %p7586_p5 }
 0x5e0   : > { %p7593_p12 = por %p7592_p6, %p7591_p3 }
 0x5e2   : > { %p7594_p13 = pnand %p7593_p12, %p7587_p7 }
 0x5e4   : > { %7597 = shalt.err (!%p7594_p13)
}
 0x5e5   : > { %s7655_s12 = smov 128   ;;  %s7656_s22 = smov 8  }
 0x5e6   : > { %5565 = dma.vmem_to_hbm [thread:$0]  (%p15248_p11), %s13656_s8, 4096, %s13654_s15, %s5402_s28, %s7655_s12, %s7655_s12, %s7656_s22  }
 0x5e7 PF: > { %s5430_s29 = sand.u32 1, %s7624_s24   ;;  %p15249_p8 = scmp.ne.s32.totalorder %s14216_s14, 0 }
 0x5e8   : > { %p15250_p10 = scmp.ge.s32.totalorder %s7636_s27, 2  ;;  %s5431_s21 = scalar_lea.sflag [#allocation6], %s5430_s29 }
 0x5ea   : > { %p5572_p0 = pnand %p15250_p10, %p15249_p8 }
 0x5ec   : > { %7619 = dma.done.wait (!%p5572_p0), %s5431_s21, 4096  }
 0x5ed   : > { %7621 = vsyncadd (!%p5572_p0), %s5431_s21, 4294963200  ;;  %p20_p2 = scmp.ge.s32.totalorder %s7722_s30, 4   ;;  %s15251_s24 = smov %s7628_s25 }
 0x5ee   : > { %s15252_s25 = smov %s7632_s26  ;;  %s15253_s26 = smov %s7734_s10 }
 0x5ef   : > { %s15254_s27 = smov %s7722_s30  ;;  %22 = sbr.rel (!%p20_p2) target bundleno = 5 (0x5), region = 97 }
 0x5f6   :  { %5436 = vsyncpa [#allocation5], 1 }
 0x5f7   :  { %5438 = vsyncpa [#allocation5 + $0x1], 1 }
 0x5f8   :  { %5439 = vsyncpa [#allocation6], 1 }
 0x5f9   :  { %5441 = vsyncpa [#allocation6 + $0x1], 1 }

</bundles_post_ra>
